<compile_context>
chip_gen: v7x
topology: tpu7x:2x2x1
jax: 0.10.0
libtpu: 0.0.40
codegen_flags: <defaults>
</compile_context>

<pallas_src>
import functools

import numpy as np
import jax
import jax.numpy as jnp
from jax.experimental import pallas as pl
from jax.experimental.pallas import tpu as pltpu

BN_EPS = 1e-5          # torch.nn.BatchNorm1d default eps
LEAKY_SLOPE = 0.01     # F.leaky_relu default negative_slope
BIG = 1e30


# ----------------------------------------------------------------------------
# In-kernel helpers (traced inside the Pallas kernel)
# ----------------------------------------------------------------------------
def _mxu(a, b):
    """bf16 MXU matmul with f32 accumulation."""
    return jnp.dot(a.astype(jnp.bfloat16), b.astype(jnp.bfloat16),
                   preferred_element_type=jnp.float32)


def _bn_train(h, gamma, beta, n_nodes):
    """BatchNorm1d training-mode forward, two-pass (cancellation-safe) batch stats."""
    inv_n = 1.0 / float(n_nodes)
    mean = jnp.sum(h, axis=0, keepdims=True) * inv_n
    d = h - mean
    var = jnp.maximum(jnp.sum(d * d, axis=0, keepdims=True) * inv_n, 0.0)
    return d * jax.lax.rsqrt(var + BN_EPS) * gamma + beta


def _leaky(h):
    return jnp.where(h > 0, h, LEAKY_SLOPE * h)


# ----------------------------------------------------------------------------
# Fused forward kernel
# ----------------------------------------------------------------------------
def fused_forward_kernel(
    # graph / node data
    x0_ref,        # [N, 1]  f32
    a_ref,         # [N, N]  bf16 aggregation adjacency, A[i,j] = #edges j->i
    wadj_ref,      # [N, N]  bf16 no-self-loop weighted adjacency
    st_ref,        # [N, G]  f32  one-hot graph membership
    # weights
    w2_1_ref,      # [H, H]       bf16  conv1 MLP second Linear
    convw_ref,     # [L-1, 2, H, H] bf16  convs[i] MLP Linear weights (0:w1, 1:w2)
    convp_ref,     # [L-1, 8, H]  f32   rows: b1,b2,g_mlp,bt_mlp,g_out,bt_out,pad,pad
    wl1_ref,       # [H, hidden1] bf16  lin1.weight.T
    psmall_ref,    # [16, H]      f32   rows: w1_1,b1_1,b2_1,gm1,btm1,go1,bto1,
                   #                          bl1(pad),wl2t(pad),bl2(pad),0...
    eps_ref,       # [L] f32 SMEM  GIN eps per layer
    # outputs
    probs_ref,     # [N, 1]   f32
    stats_ref,     # [1, 4*G] f32   packed [ew | ecw | edist | loss]
    *, num_layers: int, penalty_coefficient: float):
    n = x0_ref.shape[0]
    H = w2_1_ref.shape[0]
    hidden1 = wl1_ref.shape[1]

    a = a_ref[...]                    # [N, N] bf16 (exact for small integer edge counts)
    st = st_ref[...]                  # [N, G] f32

    # GraphSizeNorm per-node factor 1/sqrt(|G(node)|)
    counts = jnp.sum(st, axis=0, keepdims=True)                              # [1, G]
    invs = jnp.sum(st * jax.lax.rsqrt(counts), axis=1, keepdims=True)        # [N, 1]

    # unpack small parameters (one VMEM slab)
    p = psmall_ref[...]
    w1_1, b1_1, b2_1 = p[0:1, :], p[1:2, :], p[2:3, :]
    gm1, btm1, go1, bto1 = p[3:4, :], p[4:5, :], p[5:6, :], p[6:7, :]
    bl1 = p[7:8, :hidden1]
    wl2t = p[8:9, :hidden1]
    bl2 = p[9:10, 0:1]

    x = x0_ref[...]                   # [N, 1] f32  (data.x.unsqueeze(-1))

    # TODO(synk): get_mask approximation (reference helper undefined): nonzero-feature
    # indicator, propagated one directed hop per call through A, clipped to {0,1}.
    mask = (jnp.abs(x) > 0).astype(jnp.float32)                              # [N, 1]

    # ---- layer 1: conv1 aggregation and the initial mask hop share one MXU pass ----
    agg_cat = _mxu(a, jnp.concatenate([x, mask], axis=1))                    # [N, 2]
    mask = jnp.clip(mask + agg_cat[:, 1:2], 0.0, 1.0)
    h = (1.0 + eps_ref[0]) * x + agg_cat[:, 0:1]                             # [N, 1]
    h = h * w1_1 + b1_1                      # Linear(1, H) == outer product
    h = jnp.maximum(h, 0.0)
    h = _mxu(h, w2_1_ref[...]) + b2_1
    h = jnp.maximum(h, 0.0)
    h = _bn_train(h, gm1, btm1, n)           # BN inside the GIN MLP
    x = _leaky(h)
    x = x * (mask * invs)                    # x *= mask ; GraphSizeNorm
    x = _bn_train(x, go1, bto1, n)           # bn1

    # ---- layers 2..num_layers (mask hop fused into the aggregation matmul) ----
    for i in range(num_layers - 1):
        sp = convp_ref[i]                                    # [8, H]
        b1, b2 = sp[0:1], sp[1:2]
        g_mlp, bt_mlp, g_out, bt_out = sp[2:3], sp[3:4], sp[4:5], sp[5:6]
        w1 = convw_ref[i, 0]
        w2 = convw_ref[i, 1]

        agg_cat = _mxu(a, jnp.concatenate([x, mask], axis=1))               # [N, H+1]
        agg = agg_cat[:, :H]
        hop = agg_cat[:, H:H + 1]

        h = (1.0 + eps_ref[i + 1]) * x + agg
        h = _mxu(h, w1) + b1
        h = jnp.maximum(h, 0.0)
        h = _mxu(h, w2) + b2
        h = jnp.maximum(h, 0.0)
        h = _bn_train(h, g_mlp, bt_mlp, n)
        x = x + _leaky(h)                                    # residual
        mask = jnp.clip(mask + hop, 0.0, 1.0)                # get_mask(mask, A, 1)
        x = x * (mask * invs)
        x = _bn_train(x, g_out, bt_out, n)

    # ---- head: lin1 -> leaky -> mask -> lin2 -> leaky -> mask ----
    h = _mxu(x, wl1_ref[...]) + bl1                          # [N, hidden1]
    h = _leaky(h) * mask
    # lin2 is a tiny [hidden1]->1 projection: keep it as an f32 lane reduction.
    z = jnp.sum(h * wl2t, axis=1, keepdims=True) + bl2
    z = _leaky(z) * mask                                     # [N, 1]

    # per-graph min/max normalization (scatter_max/min + index_select equivalent)
    in_g = st > 0
    zmax = jnp.max(jnp.where(in_g, z, -BIG), axis=0, keepdims=True)          # [1, G]
    zmin = jnp.min(jnp.where(in_g, z, BIG), axis=0, keepdims=True)           # [1, G]
    node_max = jnp.sum(st * zmax, axis=1, keepdims=True)                     # [N, 1]
    node_min = jnp.sum(st * zmin, axis=1, keepdims=True)
    probs = (z - node_min) / (node_max + 1e-6 - node_min)
    probs_ref[...] = probs

    # clique-loss reductions (per graph via one-hot St)
    sum_p = jnp.sum(st * probs, axis=0, keepdims=True)                       # [1, G]
    pairwise = 0.5 * sum_p * sum_p            # conv1d trick: (sum p)^2 / 2
    self_sums = jnp.sum(st * (probs * probs), axis=0, keepdims=True)
    wp = _mxu(wadj_ref[...], probs)                                          # [N, 1]
    ew = 0.5 * jnp.sum(st * (probs * wp), axis=0, keepdims=True)             # E[weight(G)]
    ecw = pairwise - self_sums                # matches reference: (sum p)^2/2 - sum p^2
    edist = ecw - ew
    loss = penalty_coefficient * edist * 0.5 - 0.5 * ew
    stats_ref[...] = jnp.concatenate([ew, ecw, edist, loss], axis=1)         # [1, 4G]


# ----------------------------------------------------------------------------
# Wrapper (glue): densify graph structure, single pallas_call
# ----------------------------------------------------------------------------
def run_fused_forward(x0, A_bf16, Wadj_bf16, St, params, num_layers, penalty_coefficient):
    N = x0.shape[0]
    G = St.shape[1]
    vmem = pl.BlockSpec(memory_space=pltpu.MemorySpace.VMEM)
    smem = pl.BlockSpec(memory_space=pltpu.MemorySpace.SMEM)

    inputs = (x0, A_bf16, Wadj_bf16, St,
              params["w2_1"], params["convw"], params["convp"],
              params["wl1"], params["psmall"], params["eps_all"])

    # Scoped-VMEM budget sized to the resident set with headroom (review item):
    # default scoped limits (16/32 MiB) bind long before physical VMEM.
    total_bytes = sum(int(np.prod(a.shape)) * np.dtype(a.dtype).itemsize for a in inputs)
    total_bytes += (N * 1 + 4 * G) * 4                      # outputs
    vmem_limit = int(min(max(4 * total_bytes, 32 << 20), 64 << 20))

    kernel = functools.partial(fused_forward_kernel, num_layers=num_layers,
                               penalty_coefficient=float(penalty_coefficient))
    out_shape = (
        jax.ShapeDtypeStruct((N, 1), jnp.float32),       # probs
        jax.ShapeDtypeStruct((1, 4 * G), jnp.float32),   # packed [ew|ecw|edist|loss]
    )
    return pl.pallas_call(
        kernel,
        out_shape=out_shape,
        in_specs=[vmem] * 9 + [smem],
        out_specs=(vmem, vmem),
        compiler_params=pltpu.CompilerParams(vmem_limit_bytes=vmem_limit),
    )(*inputs)


def clique_mpnn_forward_arrays(x_nodes, edge_index, weights, batch, params,
                               num_graphs, num_layers, penalty_coefficient=0.25):
    """Array-only forward (jit-safe): returns (probs[N], stats[4, G])."""
    N = x_nodes.shape[0]
    row, col = edge_index[0], edge_index[1]

    # Dense structure (format conversion in glue, runs once under jit).
    A = jnp.zeros((N, N), jnp.float32).at[col, row].add(1.0)        # A[i,j] = #edges j->i
    keep_w = jnp.where(row != col, weights[row], 0.0)               # remove_self_loops
    Wadj = jnp.zeros((N, N), jnp.float32).at[row, col].add(keep_w)
    St = (batch[:, None] ==
          jnp.arange(num_graphs, dtype=batch.dtype)[None, :]).astype(jnp.float32)
    x0 = x_nodes[:, None].astype(jnp.float32)                       # x.unsqueeze(-1)

    probs, stats = run_fused_forward(x0, A.astype(jnp.bfloat16),
                                     Wadj.astype(jnp.bfloat16), St, params,
                                     num_layers, penalty_coefficient)
    return probs[:, 0], stats.reshape(4, num_graphs)


def clique_mpnn_forward(x_nodes, edge_index, weights, batch, params,
                        num_graphs, num_layers, penalty_coefficient=0.25,
                        arrays_fn=None):
    """Reproduces clique_MPNN.forward (edge_dropout=None path).
    NOTE: the retdict carries python strings, so this function must not be jitted;
    jit `clique_mpnn_forward_arrays` instead and pass it as `arrays_fn`."""
    if arrays_fn is None:
        arrays_fn = functools.partial(clique_mpnn_forward_arrays,
                                      num_graphs=num_graphs, num_layers=num_layers,
                                      penalty_coefficient=penalty_coefficient)
    probs, stats = arrays_fn(x_nodes, edge_index, weights, batch, params)
    ew, ecw, edist, loss = stats[0], stats[1], stats[2], stats[3]   # each [G]

    retdict = {}
    retdict["output"] = [probs, "hist"]
    retdict["losses histogram"] = [loss, "hist"]
    retdict["Expected weight(G)"] = [ew.mean(), "sequence"]
    retdict["Expected maximum weight"] = [ecw.mean(), "sequence"]
    retdict["Expected distance"] = [edist.mean(), "sequence"]
    retdict["loss"] = [loss.mean(), "sequence"]
    return retdict


# ----------------------------------------------------------------------------
# Deterministic parameter init (shapes from clique_MPNN.__init__), packed layout
# ----------------------------------------------------------------------------
def init_params(key, num_layers, hidden1, hidden2, heads):
    assert hidden2 == 1, "x.unsqueeze(-1) implies conv1 input dim == 1"
    assert num_layers >= 2
    H = heads * hidden1
    L1 = num_layers - 1

    def nrm(k, shape, scale=0.1):
        return scale * jax.random.normal(k, shape, dtype=jnp.float32)

    keys = iter(jax.random.split(key, 8 + 4 * L1))

    # conv1 (GIN block with input dim 1) + head small params -> one [16, H] slab
    w1_1 = nrm(next(keys), (1, H))                       # Linear(1, H) weight as row
    b1_1 = nrm(next(keys), (1, H))
    w2_1 = nrm(next(keys), (H, H))
    b2_1 = nrm(next(keys), (1, H))
    gm1, btm1 = jnp.ones((1, H), jnp.float32), jnp.zeros((1, H), jnp.float32)
    go1, bto1 = jnp.ones((1, H), jnp.float32), jnp.zeros((1, H), jnp.float32)
    wl1 = nrm(next(keys), (H, hidden1))                  # lin1.weight.T
    bl1 = nrm(next(keys), (1, hidden1))
    wl2t = nrm(next(keys), (1, hidden1))                 # lin2.weight
    bl2 = nrm(next(keys), (1, 1))

    def pad_row(r):
        return jnp.pad(r, ((0, 0), (0, H - r.shape[1])))

    psmall = jnp.concatenate(
        [w1_1, b1_1, b2_1, gm1, btm1, go1, bto1,
         pad_row(bl1), pad_row(wl2t), pad_row(bl2),
         jnp.zeros((6, H), jnp.float32)], axis=0)        # [16, H]

    # convs 2..num_layers, stacked along a leading layer axis
    w1s = jnp.stack([nrm(next(keys), (H, H)) for _ in range(L1)])
    w2s = jnp.stack([nrm(next(keys), (H, H)) for _ in range(L1)])
    convw = jnp.stack([w1s, w2s], axis=1).astype(jnp.bfloat16)          # [L1, 2, H, H]
    b1s = jnp.stack([nrm(next(keys), (1, H)) for _ in range(L1)])       # [L1, 1, H]
    b2s = jnp.stack([nrm(next(keys), (1, H)) for _ in range(L1)])
    gms = jnp.ones((L1, 1, H), jnp.float32)
    btms = jnp.zeros((L1, 1, H), jnp.float32)
    gos = jnp.ones((L1, 1, H), jnp.float32)
    btos = jnp.zeros((L1, 1, H), jnp.float32)
    convp = jnp.concatenate([b1s, b2s, gms, btms, gos, btos,
                             jnp.zeros((L1, 2, H), jnp.float32)], axis=1)  # [L1, 8, H]

    return {
        "w2_1": w2_1.astype(jnp.bfloat16),
        "convw": convw,
        "convp": convp,
        "wl1": wl1.astype(jnp.bfloat16),
        "psmall": psmall,
        "eps_all": jnp.zeros((num_layers,), jnp.float32),   # GIN train_eps init = 0
    }


# ----------------------------------------------------------------------------
if __name__ == "__main__":
    # 8 graphs x 16 nodes = 128 nodes so the MXU row dimension is fully occupied.
    num_layers, hidden1, hidden2, heads = 3, 16, 1, 8
    per_graph, num_graphs = 16, 8
    N = per_graph * num_graphs

    edges = []
    for g in range(num_graphs):
        off = g * per_graph
        for i in range(per_graph):
            for d in (1, 3):
                a, b = off + i, off + (i + d) % per_graph
                edges.append((a, b))
                edges.append((b, a))
    edge_index = jnp.asarray(np.array(edges, dtype=np.int32).T)        # [2, 512]
    batch = jnp.asarray(np.repeat(np.arange(num_graphs), per_graph).astype(np.int32))

    key = jax.random.PRNGKey(0)
    kx, kw, kp = jax.random.split(key, 3)
    x_nodes = jax.random.uniform(kx, (N,), jnp.float32) + 0.1          # data.x
    weights = jax.random.uniform(kw, (N,), jnp.float32)                # edge weights
    params = init_params(kp, num_layers, hidden1, hidden2, heads)

    # jit ONLY the array-producing forward (the retdict carries python strings).
    fwd_arrays = jax.jit(functools.partial(
        clique_mpnn_forward_arrays, num_graphs=num_graphs,
        num_layers=num_layers, penalty_coefficient=0.25))

    probs, stats = fwd_arrays(x_nodes, edge_index, weights, batch, params)
    jax.block_until_ready((probs, stats))

    retdict = clique_mpnn_forward(x_nodes, edge_index, weights, batch, params,
                                  num_graphs=num_graphs, num_layers=num_layers,
                                  penalty_coefficient=0.25,
                                  arrays_fn=fwd_arrays)
    jax.block_until_ready(retdict["loss"][0])
    jax.block_until_ready(retdict["output"][0])
    print("KERNEL_OK")
</pallas_src>

<mosaic_0001>
module attributes {stable_mosaic.version = 11 : i64} {
  func.func private @main(%arg0: i32) attributes {dimension_semantics = [#tpu.dimension_semantics<core_parallel>], iteration_bounds = array<i64: 2>, tpu.core_type = #tpu.core_type<sc_scalar_subcore>, window_params = []} {
    return
  }
}

module attributes {stable_mosaic.version = 11 : i64} {
  func.func private @main(%arg0: i32) attributes {dimension_semantics = [#tpu.dimension_semantics<core_parallel>], iteration_bounds = array<i64: 2>, tpu.core_type = #tpu.core_type<sc_scalar_subcore>, window_params = []} {
    return
  }
}

module attributes {stable_mosaic.version = 11 : i64} {
  func.func @fused_forward_kernel(%arg0: memref<128x1xf32, #tpu.memory_space<vmem>>, %arg1: memref<128x128xbf16, #tpu.memory_space<vmem>>, %arg2: memref<128x128xbf16, #tpu.memory_space<vmem>>, %arg3: memref<128x8xf32, #tpu.memory_space<vmem>>, %arg4: memref<128x128xbf16, #tpu.memory_space<vmem>>, %arg5: memref<2x2x128x128xbf16, #tpu.memory_space<vmem>>, %arg6: memref<2x8x128xf32, #tpu.memory_space<vmem>>, %arg7: memref<128x16xbf16, #tpu.memory_space<vmem>>, %arg8: memref<16x128xf32, #tpu.memory_space<vmem>>, %arg9: memref<3xf32, #tpu.memory_space<smem>>, %arg10: memref<128x1xf32, #tpu.memory_space<vmem>>, %arg11: memref<1x32xf32, #tpu.memory_space<vmem>>) attributes {dimension_semantics = [], scalar_prefetch = 0 : i64, scratch_operands = 0 : i64, tpu.core_type = #tpu.core_type<tc>} {
    %c0 = arith.constant 0 : index
    %c0_0 = arith.constant 0 : index
    %0 = vector.load %arg1[%c0, %c0_0] : memref<128x128xbf16, #tpu.memory_space<vmem>>, vector<128x128xbf16>
    %c0_1 = arith.constant 0 : index
    %c0_2 = arith.constant 0 : index
    %1 = vector.load %arg3[%c0_1, %c0_2] : memref<128x8xf32, #tpu.memory_space<vmem>>, vector<128x8xf32>
    %cst = arith.constant dense<0.000000e+00> : vector<8xf32>
    %2 = vector.multi_reduction <add>, %1, %cst [0] : vector<128x8xf32> to vector<8xf32>
    %3 = vector.shape_cast %2 : vector<8xf32> to vector<1x8xf32>
    %4 = math.rsqrt %3 : vector<1x8xf32>
    %5 = vector.broadcast %4 : vector<1x8xf32> to vector<128x8xf32>
    %6 = arith.mulf %1, %5 : vector<128x8xf32>
    %cst_3 = arith.constant dense<0.000000e+00> : vector<128xf32>
    %7 = vector.multi_reduction <add>, %6, %cst_3 [1] : vector<128x8xf32> to vector<128xf32>
    %8 = vector.shape_cast %7 : vector<128xf32> to vector<128x1xf32>
    %c0_4 = arith.constant 0 : index
    %c0_5 = arith.constant 0 : index
    %9 = vector.load %arg8[%c0_4, %c0_5] : memref<16x128xf32, #tpu.memory_space<vmem>>, vector<16x128xf32>
    %10 = vector.extract_strided_slice %9 {offsets = [0, 0], sizes = [1, 128], strides = [1, 1]} : vector<16x128xf32> to vector<1x128xf32>
    %11 = vector.extract_strided_slice %9 {offsets = [1, 0], sizes = [1, 128], strides = [1, 1]} : vector<16x128xf32> to vector<1x128xf32>
    %12 = vector.extract_strided_slice %9 {offsets = [2, 0], sizes = [1, 128], strides = [1, 1]} : vector<16x128xf32> to vector<1x128xf32>
    %13 = vector.extract_strided_slice %9 {offsets = [3, 0], sizes = [1, 128], strides = [1, 1]} : vector<16x128xf32> to vector<1x128xf32>
    %14 = vector.extract_strided_slice %9 {offsets = [4, 0], sizes = [1, 128], strides = [1, 1]} : vector<16x128xf32> to vector<1x128xf32>
    %15 = vector.extract_strided_slice %9 {offsets = [5, 0], sizes = [1, 128], strides = [1, 1]} : vector<16x128xf32> to vector<1x128xf32>
    %16 = vector.extract_strided_slice %9 {offsets = [6, 0], sizes = [1, 128], strides = [1, 1]} : vector<16x128xf32> to vector<1x128xf32>
    %17 = vector.extract_strided_slice %9 {offsets = [7, 0], sizes = [1, 16], strides = [1, 1]} : vector<16x128xf32> to vector<1x16xf32>
    %18 = vector.extract_strided_slice %9 {offsets = [8, 0], sizes = [1, 16], strides = [1, 1]} : vector<16x128xf32> to vector<1x16xf32>
    %19 = vector.extract_strided_slice %9 {offsets = [9, 0], sizes = [1, 1], strides = [1, 1]} : vector<16x128xf32> to vector<1x1xf32>
    %c0_6 = arith.constant 0 : index
    %c0_7 = arith.constant 0 : index
    %20 = vector.load %arg0[%c0_6, %c0_7] : memref<128x1xf32, #tpu.memory_space<vmem>>, vector<128x1xf32>
    %21 = math.absf %20 : vector<128x1xf32>
    %cst_8 = arith.constant 0.000000e+00 : f32
    %22 = vector.broadcast %cst_8 : f32 to vector<128x1xf32>
    %23 = arith.cmpf ogt, %21, %22 : vector<128x1xf32>
    %24 = arith.extui %23 : vector<128x1xi1> to vector<128x1xi32>
    %25 = arith.sitofp %24 : vector<128x1xi32> to vector<128x1xf32>
    %26 = tpu.concatenate %20, %25 in 1 : vector<128x1xf32>, vector<128x1xf32> -> vector<128x2xf32>
    %27 = arith.truncf %26 : vector<128x2xf32> to vector<128x2xbf16>
    %cst_9 = arith.constant dense<0.000000e+00> : vector<128x2xf32>
    %28 = tpu.matmul %0, %27, %cst_9 {dimension_numbers = #tpu.dot_dimension_numbers<[1], [0], [0], [1], [0, 0, 1, 1], [], []>} : vector<128x128xbf16>, vector<128x2xbf16>, vector<128x2xf32> -> vector<128x2xf32>
    %29 = vector.extract_strided_slice %28 {offsets = [0, 1], sizes = [128, 1], strides = [1, 1]} : vector<128x2xf32> to vector<128x1xf32>
    %30 = arith.addf %25, %29 : vector<128x1xf32>
    %cst_10 = arith.constant 0.000000e+00 : f32
    %cst_11 = arith.constant 1.000000e+00 : f32
    %31 = vector.broadcast %cst_10 : f32 to vector<128x1xf32>
    %32 = arith.maximumf %31, %30 : vector<128x1xf32>
    %33 = vector.broadcast %cst_11 : f32 to vector<128x1xf32>
    %34 = arith.minimumf %33, %32 : vector<128x1xf32>
    %c0_12 = arith.constant 0 : index
    %35 = memref.load %arg9[%c0_12] : memref<3xf32, #tpu.memory_space<smem>>
    %cst_13 = arith.constant 1.000000e+00 : f32
    %36 = arith.addf %cst_13, %35 : f32
    %37 = vector.broadcast %36 : f32 to vector<128x1xf32>
    %38 = arith.mulf %37, %20 : vector<128x1xf32>
    %39 = vector.extract_strided_slice %28 {offsets = [0, 0], sizes = [128, 1], strides = [1, 1]} : vector<128x2xf32> to vector<128x1xf32>
    %40 = arith.addf %38, %39 : vector<128x1xf32>
    %41 = vector.broadcast %40 : vector<128x1xf32> to vector<128x128xf32>
    %42 = vector.broadcast %10 : vector<1x128xf32> to vector<128x128xf32>
    %43 = arith.mulf %41, %42 : vector<128x128xf32>
    %44 = vector.broadcast %11 : vector<1x128xf32> to vector<128x128xf32>
    %45 = arith.addf %43, %44 : vector<128x128xf32>
    %cst_14 = arith.constant 0.000000e+00 : f32
    %46 = vector.broadcast %cst_14 : f32 to vector<128x128xf32>
    %47 = arith.maximumf %45, %46 : vector<128x128xf32>
    %c0_15 = arith.constant 0 : index
    %c0_16 = arith.constant 0 : index
    %48 = vector.load %arg4[%c0_15, %c0_16] : memref<128x128xbf16, #tpu.memory_space<vmem>>, vector<128x128xbf16>
    %49 = arith.truncf %47 : vector<128x128xf32> to vector<128x128xbf16>
    %cst_17 = arith.constant dense<0.000000e+00> : vector<128x128xf32>
    %50 = tpu.matmul %49, %48, %cst_17 {dimension_numbers = #tpu.dot_dimension_numbers<[1], [0], [0], [1], [0, 0, 1, 1], [], []>} : vector<128x128xbf16>, vector<128x128xbf16>, vector<128x128xf32> -> vector<128x128xf32>
    %51 = vector.broadcast %12 : vector<1x128xf32> to vector<128x128xf32>
    %52 = arith.addf %50, %51 : vector<128x128xf32>
    %cst_18 = arith.constant 0.000000e+00 : f32
    %53 = vector.broadcast %cst_18 : f32 to vector<128x128xf32>
    %54 = arith.maximumf %52, %53 : vector<128x128xf32>
    %cst_19 = arith.constant dense<0.000000e+00> : vector<128xf32>
    %55 = vector.multi_reduction <add>, %54, %cst_19 [0] : vector<128x128xf32> to vector<128xf32>
    %56 = vector.shape_cast %55 : vector<128xf32> to vector<1x128xf32>
    %cst_20 = arith.constant 7.812500e-03 : f32
    %57 = vector.broadcast %cst_20 : f32 to vector<1x128xf32>
    %58 = arith.mulf %56, %57 : vector<1x128xf32>
    %59 = vector.broadcast %58 : vector<1x128xf32> to vector<128x128xf32>
    %60 = arith.subf %54, %59 : vector<128x128xf32>
    %61 = arith.mulf %60, %60 : vector<128x128xf32>
    %cst_21 = arith.constant dense<0.000000e+00> : vector<128xf32>
    %62 = vector.multi_reduction <add>, %61, %cst_21 [0] : vector<128x128xf32> to vector<128xf32>
    %63 = vector.shape_cast %62 : vector<128xf32> to vector<1x128xf32>
    %cst_22 = arith.constant 7.812500e-03 : f32
    %64 = vector.broadcast %cst_22 : f32 to vector<1x128xf32>
    %65 = arith.mulf %63, %64 : vector<1x128xf32>
    %cst_23 = arith.constant 0.000000e+00 : f32
    %66 = vector.broadcast %cst_23 : f32 to vector<1x128xf32>
    %67 = arith.maximumf %65, %66 : vector<1x128xf32>
    %cst_24 = arith.constant 9.99999974E-6 : f32
    %68 = vector.broadcast %cst_24 : f32 to vector<1x128xf32>
    %69 = arith.addf %67, %68 : vector<1x128xf32>
    %70 = math.rsqrt %69 : vector<1x128xf32>
    %71 = vector.broadcast %70 : vector<1x128xf32> to vector<128x128xf32>
    %72 = arith.mulf %60, %71 : vector<128x128xf32>
    %73 = vector.broadcast %13 : vector<1x128xf32> to vector<128x128xf32>
    %74 = arith.mulf %72, %73 : vector<128x128xf32>
    %75 = vector.broadcast %14 : vector<1x128xf32> to vector<128x128xf32>
    %76 = arith.addf %74, %75 : vector<128x128xf32>
    %cst_25 = arith.constant 0.000000e+00 : f32
    %77 = vector.broadcast %cst_25 : f32 to vector<128x128xf32>
    %78 = arith.cmpf ogt, %76, %77 : vector<128x128xf32>
    %cst_26 = arith.constant 0.00999999977 : f32
    %79 = vector.broadcast %cst_26 : f32 to vector<128x128xf32>
    %80 = arith.mulf %79, %76 : vector<128x128xf32>
    %81 = arith.select %78, %76, %80 : vector<128x128xi1>, vector<128x128xf32>
    %82 = arith.mulf %34, %8 : vector<128x1xf32>
    %83 = vector.broadcast %82 : vector<128x1xf32> to vector<128x128xf32>
    %84 = arith.mulf %81, %83 : vector<128x128xf32>
    %cst_27 = arith.constant dense<0.000000e+00> : vector<128xf32>
    %85 = vector.multi_reduction <add>, %84, %cst_27 [0] : vector<128x128xf32> to vector<128xf32>
    %86 = vector.shape_cast %85 : vector<128xf32> to vector<1x128xf32>
    %cst_28 = arith.constant 7.812500e-03 : f32
    %87 = vector.broadcast %cst_28 : f32 to vector<1x128xf32>
    %88 = arith.mulf %86, %87 : vector<1x128xf32>
    %89 = vector.broadcast %88 : vector<1x128xf32> to vector<128x128xf32>
    %90 = arith.subf %84, %89 : vector<128x128xf32>
    %91 = arith.mulf %90, %90 : vector<128x128xf32>
    %cst_29 = arith.constant dense<0.000000e+00> : vector<128xf32>
    %92 = vector.multi_reduction <add>, %91, %cst_29 [0] : vector<128x128xf32> to vector<128xf32>
    %93 = vector.shape_cast %92 : vector<128xf32> to vector<1x128xf32>
    %cst_30 = arith.constant 7.812500e-03 : f32
    %94 = vector.broadcast %cst_30 : f32 to vector<1x128xf32>
    %95 = arith.mulf %93, %94 : vector<1x128xf32>
    %cst_31 = arith.constant 0.000000e+00 : f32
    %96 = vector.broadcast %cst_31 : f32 to vector<1x128xf32>
    %97 = arith.maximumf %95, %96 : vector<1x128xf32>
    %cst_32 = arith.constant 9.99999974E-6 : f32
    %98 = vector.broadcast %cst_32 : f32 to vector<1x128xf32>
    %99 = arith.addf %97, %98 : vector<1x128xf32>
    %100 = math.rsqrt %99 : vector<1x128xf32>
    %101 = vector.broadcast %100 : vector<1x128xf32> to vector<128x128xf32>
    %102 = arith.mulf %90, %101 : vector<128x128xf32>
    %103 = vector.broadcast %15 : vector<1x128xf32> to vector<128x128xf32>
    %104 = arith.mulf %102, %103 : vector<128x128xf32>
    %105 = vector.broadcast %16 : vector<1x128xf32> to vector<128x128xf32>
    %106 = arith.addf %104, %105 : vector<128x128xf32>
    %c0_33 = arith.constant 0 : index
    %c0_34 = arith.constant 0 : index
    %c0_35 = arith.constant 0 : index
    %107 = vector.load %arg6[%c0_33, %c0_34, %c0_35] : memref<2x8x128xf32, #tpu.memory_space<vmem>>, vector<1x8x128xf32>
    %108 = vector.shape_cast %107 : vector<1x8x128xf32> to vector<8x128xf32>
    %109 = vector.extract_strided_slice %108 {offsets = [0, 0], sizes = [1, 128], strides = [1, 1]} : vector<8x128xf32> to vector<1x128xf32>
    %110 = vector.extract_strided_slice %108 {offsets = [1, 0], sizes = [1, 128], strides = [1, 1]} : vector<8x128xf32> to vector<1x128xf32>
    %111 = vector.extract_strided_slice %108 {offsets = [2, 0], sizes = [1, 128], strides = [1, 1]} : vector<8x128xf32> to vector<1x128xf32>
    %112 = vector.extract_strided_slice %108 {offsets = [3, 0], sizes = [1, 128], strides = [1, 1]} : vector<8x128xf32> to vector<1x128xf32>
    %113 = vector.extract_strided_slice %108 {offsets = [4, 0], sizes = [1, 128], strides = [1, 1]} : vector<8x128xf32> to vector<1x128xf32>
    %114 = vector.extract_strided_slice %108 {offsets = [5, 0], sizes = [1, 128], strides = [1, 1]} : vector<8x128xf32> to vector<1x128xf32>
    %c0_36 = arith.constant 0 : index
    %c0_37 = arith.constant 0 : index
    %c0_38 = arith.constant 0 : index
    %c0_39 = arith.constant 0 : index
    %115 = vector.load %arg5[%c0_36, %c0_37, %c0_38, %c0_39] : memref<2x2x128x128xbf16, #tpu.memory_space<vmem>>, vector<1x1x128x128xbf16>
    %116 = vector.shape_cast %115 : vector<1x1x128x128xbf16> to vector<128x128xbf16>
    %c0_40 = arith.constant 0 : index
    %c1 = arith.constant 1 : index
    %c0_41 = arith.constant 0 : index
    %c0_42 = arith.constant 0 : index
    %117 = vector.load %arg5[%c0_40, %c1, %c0_41, %c0_42] : memref<2x2x128x128xbf16, #tpu.memory_space<vmem>>, vector<1x1x128x128xbf16>
    %118 = vector.shape_cast %117 : vector<1x1x128x128xbf16> to vector<128x128xbf16>
    %119 = tpu.concatenate %106, %34 in 1 : vector<128x128xf32>, vector<128x1xf32> -> vector<128x129xf32>
    %120 = arith.truncf %119 : vector<128x129xf32> to vector<128x129xbf16>
    %cst_43 = arith.constant dense<0.000000e+00> : vector<128x129xf32>
    %121 = tpu.matmul %0, %120, %cst_43 {dimension_numbers = #tpu.dot_dimension_numbers<[1], [0], [0], [1], [0, 0, 1, 1], [], []>} : vector<128x128xbf16>, vector<128x129xbf16>, vector<128x129xf32> -> vector<128x129xf32>
    %122 = vector.extract_strided_slice %121 {offsets = [0, 0], sizes = [128, 128], strides = [1, 1]} : vector<128x129xf32> to vector<128x128xf32>
    %123 = vector.extract_strided_slice %121 {offsets = [0, 128], sizes = [128, 1], strides = [1, 1]} : vector<128x129xf32> to vector<128x1xf32>
    %c1_44 = arith.constant 1 : index
    %124 = memref.load %arg9[%c1_44] : memref<3xf32, #tpu.memory_space<smem>>
    %cst_45 = arith.constant 1.000000e+00 : f32
    %125 = arith.addf %cst_45, %124 : f32
    %126 = vector.broadcast %125 : f32 to vector<128x128xf32>
    %127 = arith.mulf %126, %106 : vector<128x128xf32>
    %128 = arith.addf %127, %122 : vector<128x128xf32>
    %129 = arith.truncf %128 : vector<128x128xf32> to vector<128x128xbf16>
    %cst_46 = arith.constant dense<0.000000e+00> : vector<128x128xf32>
    %130 = tpu.matmul %129, %116, %cst_46 {dimension_numbers = #tpu.dot_dimension_numbers<[1], [0], [0], [1], [0, 0, 1, 1], [], []>} : vector<128x128xbf16>, vector<128x128xbf16>, vector<128x128xf32> -> vector<128x128xf32>
    %131 = vector.broadcast %109 : vector<1x128xf32> to vector<128x128xf32>
    %132 = arith.addf %130, %131 : vector<128x128xf32>
    %cst_47 = arith.constant 0.000000e+00 : f32
    %133 = vector.broadcast %cst_47 : f32 to vector<128x128xf32>
    %134 = arith.maximumf %132, %133 : vector<128x128xf32>
    %135 = arith.truncf %134 : vector<128x128xf32> to vector<128x128xbf16>
    %cst_48 = arith.constant dense<0.000000e+00> : vector<128x128xf32>
    %136 = tpu.matmul %135, %118, %cst_48 {dimension_numbers = #tpu.dot_dimension_numbers<[1], [0], [0], [1], [0, 0, 1, 1], [], []>} : vector<128x128xbf16>, vector<128x128xbf16>, vector<128x128xf32> -> vector<128x128xf32>
    %137 = vector.broadcast %110 : vector<1x128xf32> to vector<128x128xf32>
    %138 = arith.addf %136, %137 : vector<128x128xf32>
    %cst_49 = arith.constant 0.000000e+00 : f32
    %139 = vector.broadcast %cst_49 : f32 to vector<128x128xf32>
    %140 = arith.maximumf %138, %139 : vector<128x128xf32>
    %cst_50 = arith.constant dense<0.000000e+00> : vector<128xf32>
    %141 = vector.multi_reduction <add>, %140, %cst_50 [0] : vector<128x128xf32> to vector<128xf32>
    %142 = vector.shape_cast %141 : vector<128xf32> to vector<1x128xf32>
    %cst_51 = arith.constant 7.812500e-03 : f32
    %143 = vector.broadcast %cst_51 : f32 to vector<1x128xf32>
    %144 = arith.mulf %142, %143 : vector<1x128xf32>
    %145 = vector.broadcast %144 : vector<1x128xf32> to vector<128x128xf32>
    %146 = arith.subf %140, %145 : vector<128x128xf32>
    %147 = arith.mulf %146, %146 : vector<128x128xf32>
    %cst_52 = arith.constant dense<0.000000e+00> : vector<128xf32>
    %148 = vector.multi_reduction <add>, %147, %cst_52 [0] : vector<128x128xf32> to vector<128xf32>
    %149 = vector.shape_cast %148 : vector<128xf32> to vector<1x128xf32>
    %cst_53 = arith.constant 7.812500e-03 : f32
    %150 = vector.broadcast %cst_53 : f32 to vector<1x128xf32>
    %151 = arith.mulf %149, %150 : vector<1x128xf32>
    %cst_54 = arith.constant 0.000000e+00 : f32
    %152 = vector.broadcast %cst_54 : f32 to vector<1x128xf32>
    %153 = arith.maximumf %151, %152 : vector<1x128xf32>
    %cst_55 = arith.constant 9.99999974E-6 : f32
    %154 = vector.broadcast %cst_55 : f32 to vector<1x128xf32>
    %155 = arith.addf %153, %154 : vector<1x128xf32>
    %156 = math.rsqrt %155 : vector<1x128xf32>
    %157 = vector.broadcast %156 : vector<1x128xf32> to vector<128x128xf32>
    %158 = arith.mulf %146, %157 : vector<128x128xf32>
    %159 = vector.broadcast %111 : vector<1x128xf32> to vector<128x128xf32>
    %160 = arith.mulf %158, %159 : vector<128x128xf32>
    %161 = vector.broadcast %112 : vector<1x128xf32> to vector<128x128xf32>
    %162 = arith.addf %160, %161 : vector<128x128xf32>
    %cst_56 = arith.constant 0.000000e+00 : f32
    %163 = vector.broadcast %cst_56 : f32 to vector<128x128xf32>
    %164 = arith.cmpf ogt, %162, %163 : vector<128x128xf32>
    %cst_57 = arith.constant 0.00999999977 : f32
    %165 = vector.broadcast %cst_57 : f32 to vector<128x128xf32>
    %166 = arith.mulf %165, %162 : vector<128x128xf32>
    %167 = arith.select %164, %162, %166 : vector<128x128xi1>, vector<128x128xf32>
    %168 = arith.addf %106, %167 : vector<128x128xf32>
    %169 = arith.addf %34, %123 : vector<128x1xf32>
    %cst_58 = arith.constant 0.000000e+00 : f32
    %cst_59 = arith.constant 1.000000e+00 : f32
    %170 = vector.broadcast %cst_58 : f32 to vector<128x1xf32>
    %171 = arith.maximumf %170, %169 : vector<128x1xf32>
    %172 = vector.broadcast %cst_59 : f32 to vector<128x1xf32>
    %173 = arith.minimumf %172, %171 : vector<128x1xf32>
    %174 = arith.mulf %173, %8 : vector<128x1xf32>
    %175 = vector.broadcast %174 : vector<128x1xf32> to vector<128x128xf32>
    %176 = arith.mulf %168, %175 : vector<128x128xf32>
    %cst_60 = arith.constant dense<0.000000e+00> : vector<128xf32>
    %177 = vector.multi_reduction <add>, %176, %cst_60 [0] : vector<128x128xf32> to vector<128xf32>
    %178 = vector.shape_cast %177 : vector<128xf32> to vector<1x128xf32>
    %cst_61 = arith.constant 7.812500e-03 : f32
    %179 = vector.broadcast %cst_61 : f32 to vector<1x128xf32>
    %180 = arith.mulf %178, %179 : vector<1x128xf32>
    %181 = vector.broadcast %180 : vector<1x128xf32> to vector<128x128xf32>
    %182 = arith.subf %176, %181 : vector<128x128xf32>
    %183 = arith.mulf %182, %182 : vector<128x128xf32>
    %cst_62 = arith.constant dense<0.000000e+00> : vector<128xf32>
    %184 = vector.multi_reduction <add>, %183, %cst_62 [0] : vector<128x128xf32> to vector<128xf32>
    %185 = vector.shape_cast %184 : vector<128xf32> to vector<1x128xf32>
    %cst_63 = arith.constant 7.812500e-03 : f32
    %186 = vector.broadcast %cst_63 : f32 to vector<1x128xf32>
    %187 = arith.mulf %185, %186 : vector<1x128xf32>
    %cst_64 = arith.constant 0.000000e+00 : f32
    %188 = vector.broadcast %cst_64 : f32 to vector<1x128xf32>
    %189 = arith.maximumf %187, %188 : vector<1x128xf32>
    %cst_65 = arith.constant 9.99999974E-6 : f32
    %190 = vector.broadcast %cst_65 : f32 to vector<1x128xf32>
    %191 = arith.addf %189, %190 : vector<1x128xf32>
    %192 = math.rsqrt %191 : vector<1x128xf32>
    %193 = vector.broadcast %192 : vector<1x128xf32> to vector<128x128xf32>
    %194 = arith.mulf %182, %193 : vector<128x128xf32>
    %195 = vector.broadcast %113 : vector<1x128xf32> to vector<128x128xf32>
    %196 = arith.mulf %194, %195 : vector<128x128xf32>
    %197 = vector.broadcast %114 : vector<1x128xf32> to vector<128x128xf32>
    %198 = arith.addf %196, %197 : vector<128x128xf32>
    %c1_66 = arith.constant 1 : index
    %c0_67 = arith.constant 0 : index
    %c0_68 = arith.constant 0 : index
    %199 = vector.load %arg6[%c1_66, %c0_67, %c0_68] : memref<2x8x128xf32, #tpu.memory_space<vmem>>, vector<1x8x128xf32>
    %200 = vector.shape_cast %199 : vector<1x8x128xf32> to vector<8x128xf32>
    %201 = vector.extract_strided_slice %200 {offsets = [0, 0], sizes = [1, 128], strides = [1, 1]} : vector<8x128xf32> to vector<1x128xf32>
    %202 = vector.extract_strided_slice %200 {offsets = [1, 0], sizes = [1, 128], strides = [1, 1]} : vector<8x128xf32> to vector<1x128xf32>
    %203 = vector.extract_strided_slice %200 {offsets = [2, 0], sizes = [1, 128], strides = [1, 1]} : vector<8x128xf32> to vector<1x128xf32>
    %204 = vector.extract_strided_slice %200 {offsets = [3, 0], sizes = [1, 128], strides = [1, 1]} : vector<8x128xf32> to vector<1x128xf32>
    %205 = vector.extract_strided_slice %200 {offsets = [4, 0], sizes = [1, 128], strides = [1, 1]} : vector<8x128xf32> to vector<1x128xf32>
    %206 = vector.extract_strided_slice %200 {offsets = [5, 0], sizes = [1, 128], strides = [1, 1]} : vector<8x128xf32> to vector<1x128xf32>
    %c1_69 = arith.constant 1 : index
    %c0_70 = arith.constant 0 : index
    %c0_71 = arith.constant 0 : index
    %c0_72 = arith.constant 0 : index
    %207 = vector.load %arg5[%c1_69, %c0_70, %c0_71, %c0_72] : memref<2x2x128x128xbf16, #tpu.memory_space<vmem>>, vector<1x1x128x128xbf16>
    %208 = vector.shape_cast %207 : vector<1x1x128x128xbf16> to vector<128x128xbf16>
    %c1_73 = arith.constant 1 : index
    %c1_74 = arith.constant 1 : index
    %c0_75 = arith.constant 0 : index
    %c0_76 = arith.constant 0 : index
    %209 = vector.load %arg5[%c1_73, %c1_74, %c0_75, %c0_76] : memref<2x2x128x128xbf16, #tpu.memory_space<vmem>>, vector<1x1x128x128xbf16>
    %210 = vector.shape_cast %209 : vector<1x1x128x128xbf16> to vector<128x128xbf16>
    %211 = tpu.concatenate %198, %173 in 1 : vector<128x128xf32>, vector<128x1xf32> -> vector<128x129xf32>
    %212 = arith.truncf %211 : vector<128x129xf32> to vector<128x129xbf16>
    %cst_77 = arith.constant dense<0.000000e+00> : vector<128x129xf32>
    %213 = tpu.matmul %0, %212, %cst_77 {dimension_numbers = #tpu.dot_dimension_numbers<[1], [0], [0], [1], [0, 0, 1, 1], [], []>} : vector<128x128xbf16>, vector<128x129xbf16>, vector<128x129xf32> -> vector<128x129xf32>
    %214 = vector.extract_strided_slice %213 {offsets = [0, 0], sizes = [128, 128], strides = [1, 1]} : vector<128x129xf32> to vector<128x128xf32>
    %215 = vector.extract_strided_slice %213 {offsets = [0, 128], sizes = [128, 1], strides = [1, 1]} : vector<128x129xf32> to vector<128x1xf32>
    %c2 = arith.constant 2 : index
    %216 = memref.load %arg9[%c2] : memref<3xf32, #tpu.memory_space<smem>>
    %cst_78 = arith.constant 1.000000e+00 : f32
    %217 = arith.addf %cst_78, %216 : f32
    %218 = vector.broadcast %217 : f32 to vector<128x128xf32>
    %219 = arith.mulf %218, %198 : vector<128x128xf32>
    %220 = arith.addf %219, %214 : vector<128x128xf32>
    %221 = arith.truncf %220 : vector<128x128xf32> to vector<128x128xbf16>
    %cst_79 = arith.constant dense<0.000000e+00> : vector<128x128xf32>
    %222 = tpu.matmul %221, %208, %cst_79 {dimension_numbers = #tpu.dot_dimension_numbers<[1], [0], [0], [1], [0, 0, 1, 1], [], []>} : vector<128x128xbf16>, vector<128x128xbf16>, vector<128x128xf32> -> vector<128x128xf32>
    %223 = vector.broadcast %201 : vector<1x128xf32> to vector<128x128xf32>
    %224 = arith.addf %222, %223 : vector<128x128xf32>
    %cst_80 = arith.constant 0.000000e+00 : f32
    %225 = vector.broadcast %cst_80 : f32 to vector<128x128xf32>
    %226 = arith.maximumf %224, %225 : vector<128x128xf32>
    %227 = arith.truncf %226 : vector<128x128xf32> to vector<128x128xbf16>
    %cst_81 = arith.constant dense<0.000000e+00> : vector<128x128xf32>
    %228 = tpu.matmul %227, %210, %cst_81 {dimension_numbers = #tpu.dot_dimension_numbers<[1], [0], [0], [1], [0, 0, 1, 1], [], []>} : vector<128x128xbf16>, vector<128x128xbf16>, vector<128x128xf32> -> vector<128x128xf32>
    %229 = vector.broadcast %202 : vector<1x128xf32> to vector<128x128xf32>
    %230 = arith.addf %228, %229 : vector<128x128xf32>
    %cst_82 = arith.constant 0.000000e+00 : f32
    %231 = vector.broadcast %cst_82 : f32 to vector<128x128xf32>
    %232 = arith.maximumf %230, %231 : vector<128x128xf32>
    %cst_83 = arith.constant dense<0.000000e+00> : vector<128xf32>
    %233 = vector.multi_reduction <add>, %232, %cst_83 [0] : vector<128x128xf32> to vector<128xf32>
    %234 = vector.shape_cast %233 : vector<128xf32> to vector<1x128xf32>
    %cst_84 = arith.constant 7.812500e-03 : f32
    %235 = vector.broadcast %cst_84 : f32 to vector<1x128xf32>
    %236 = arith.mulf %234, %235 : vector<1x128xf32>
    %237 = vector.broadcast %236 : vector<1x128xf32> to vector<128x128xf32>
    %238 = arith.subf %232, %237 : vector<128x128xf32>
    %239 = arith.mulf %238, %238 : vector<128x128xf32>
    %cst_85 = arith.constant dense<0.000000e+00> : vector<128xf32>
    %240 = vector.multi_reduction <add>, %239, %cst_85 [0] : vector<128x128xf32> to vector<128xf32>
    %241 = vector.shape_cast %240 : vector<128xf32> to vector<1x128xf32>
    %cst_86 = arith.constant 7.812500e-03 : f32
    %242 = vector.broadcast %cst_86 : f32 to vector<1x128xf32>
    %243 = arith.mulf %241, %242 : vector<1x128xf32>
    %cst_87 = arith.constant 0.000000e+00 : f32
    %244 = vector.broadcast %cst_87 : f32 to vector<1x128xf32>
    %245 = arith.maximumf %243, %244 : vector<1x128xf32>
    %cst_88 = arith.constant 9.99999974E-6 : f32
    %246 = vector.broadcast %cst_88 : f32 to vector<1x128xf32>
    %247 = arith.addf %245, %246 : vector<1x128xf32>
    %248 = math.rsqrt %247 : vector<1x128xf32>
    %249 = vector.broadcast %248 : vector<1x128xf32> to vector<128x128xf32>
    %250 = arith.mulf %238, %249 : vector<128x128xf32>
    %251 = vector.broadcast %203 : vector<1x128xf32> to vector<128x128xf32>
    %252 = arith.mulf %250, %251 : vector<128x128xf32>
    %253 = vector.broadcast %204 : vector<1x128xf32> to vector<128x128xf32>
    %254 = arith.addf %252, %253 : vector<128x128xf32>
    %cst_89 = arith.constant 0.000000e+00 : f32
    %255 = vector.broadcast %cst_89 : f32 to vector<128x128xf32>
    %256 = arith.cmpf ogt, %254, %255 : vector<128x128xf32>
    %cst_90 = arith.constant 0.00999999977 : f32
    %257 = vector.broadcast %cst_90 : f32 to vector<128x128xf32>
    %258 = arith.mulf %257, %254 : vector<128x128xf32>
    %259 = arith.select %256, %254, %258 : vector<128x128xi1>, vector<128x128xf32>
    %260 = arith.addf %198, %259 : vector<128x128xf32>
    %261 = arith.addf %173, %215 : vector<128x1xf32>
    %cst_91 = arith.constant 0.000000e+00 : f32
    %cst_92 = arith.constant 1.000000e+00 : f32
    %262 = vector.broadcast %cst_91 : f32 to vector<128x1xf32>
    %263 = arith.maximumf %262, %261 : vector<128x1xf32>
    %264 = vector.broadcast %cst_92 : f32 to vector<128x1xf32>
    %265 = arith.minimumf %264, %263 : vector<128x1xf32>
    %266 = arith.mulf %265, %8 : vector<128x1xf32>
    %267 = vector.broadcast %266 : vector<128x1xf32> to vector<128x128xf32>
    %268 = arith.mulf %260, %267 : vector<128x128xf32>
    %cst_93 = arith.constant dense<0.000000e+00> : vector<128xf32>
    %269 = vector.multi_reduction <add>, %268, %cst_93 [0] : vector<128x128xf32> to vector<128xf32>
    %270 = vector.shape_cast %269 : vector<128xf32> to vector<1x128xf32>
    %cst_94 = arith.constant 7.812500e-03 : f32
    %271 = vector.broadcast %cst_94 : f32 to vector<1x128xf32>
    %272 = arith.mulf %270, %271 : vector<1x128xf32>
    %273 = vector.broadcast %272 : vector<1x128xf32> to vector<128x128xf32>
    %274 = arith.subf %268, %273 : vector<128x128xf32>
    %275 = arith.mulf %274, %274 : vector<128x128xf32>
    %cst_95 = arith.constant dense<0.000000e+00> : vector<128xf32>
    %276 = vector.multi_reduction <add>, %275, %cst_95 [0] : vector<128x128xf32> to vector<128xf32>
    %277 = vector.shape_cast %276 : vector<128xf32> to vector<1x128xf32>
    %cst_96 = arith.constant 7.812500e-03 : f32
    %278 = vector.broadcast %cst_96 : f32 to vector<1x128xf32>
    %279 = arith.mulf %277, %278 : vector<1x128xf32>
    %cst_97 = arith.constant 0.000000e+00 : f32
    %280 = vector.broadcast %cst_97 : f32 to vector<1x128xf32>
    %281 = arith.maximumf %279, %280 : vector<1x128xf32>
    %cst_98 = arith.constant 9.99999974E-6 : f32
    %282 = vector.broadcast %cst_98 : f32 to vector<1x128xf32>
    %283 = arith.addf %281, %282 : vector<1x128xf32>
    %284 = math.rsqrt %283 : vector<1x128xf32>
    %285 = vector.broadcast %284 : vector<1x128xf32> to vector<128x128xf32>
    %286 = arith.mulf %274, %285 : vector<128x128xf32>
    %287 = vector.broadcast %205 : vector<1x128xf32> to vector<128x128xf32>
    %288 = arith.mulf %286, %287 : vector<128x128xf32>
    %289 = vector.broadcast %206 : vector<1x128xf32> to vector<128x128xf32>
    %290 = arith.addf %288, %289 : vector<128x128xf32>
    %c0_99 = arith.constant 0 : index
    %c0_100 = arith.constant 0 : index
    %291 = vector.load %arg7[%c0_99, %c0_100] : memref<128x16xbf16, #tpu.memory_space<vmem>>, vector<128x16xbf16>
    %292 = arith.truncf %290 : vector<128x128xf32> to vector<128x128xbf16>
    %cst_101 = arith.constant dense<0.000000e+00> : vector<128x16xf32>
    %293 = tpu.matmul %292, %291, %cst_101 {dimension_numbers = #tpu.dot_dimension_numbers<[1], [0], [0], [1], [0, 0, 1, 1], [], []>} : vector<128x128xbf16>, vector<128x16xbf16>, vector<128x16xf32> -> vector<128x16xf32>
    %294 = vector.broadcast %17 : vector<1x16xf32> to vector<128x16xf32>
    %295 = arith.addf %293, %294 : vector<128x16xf32>
    %cst_102 = arith.constant 0.000000e+00 : f32
    %296 = vector.broadcast %cst_102 : f32 to vector<128x16xf32>
    %297 = arith.cmpf ogt, %295, %296 : vector<128x16xf32>
    %cst_103 = arith.constant 0.00999999977 : f32
    %298 = vector.broadcast %cst_103 : f32 to vector<128x16xf32>
    %299 = arith.mulf %298, %295 : vector<128x16xf32>
    %300 = arith.select %297, %295, %299 : vector<128x16xi1>, vector<128x16xf32>
    %301 = vector.broadcast %265 : vector<128x1xf32> to vector<128x16xf32>
    %302 = arith.mulf %300, %301 : vector<128x16xf32>
    %303 = vector.broadcast %18 : vector<1x16xf32> to vector<128x16xf32>
    %304 = arith.mulf %302, %303 : vector<128x16xf32>
    %cst_104 = arith.constant dense<0.000000e+00> : vector<128xf32>
    %305 = vector.multi_reduction <add>, %304, %cst_104 [1] : vector<128x16xf32> to vector<128xf32>
    %306 = vector.shape_cast %305 : vector<128xf32> to vector<128x1xf32>
    %307 = vector.broadcast %19 : vector<1x1xf32> to vector<128x1xf32>
    %308 = arith.addf %306, %307 : vector<128x1xf32>
    %cst_105 = arith.constant 0.000000e+00 : f32
    %309 = vector.broadcast %cst_105 : f32 to vector<128x1xf32>
    %310 = arith.cmpf ogt, %308, %309 : vector<128x1xf32>
    %cst_106 = arith.constant 0.00999999977 : f32
    %311 = vector.broadcast %cst_106 : f32 to vector<128x1xf32>
    %312 = arith.mulf %311, %308 : vector<128x1xf32>
    %313 = arith.select %310, %308, %312 : vector<128x1xi1>, vector<128x1xf32>
    %314 = arith.mulf %313, %265 : vector<128x1xf32>
    %cst_107 = arith.constant 0.000000e+00 : f32
    %315 = vector.broadcast %cst_107 : f32 to vector<128x8xf32>
    %316 = arith.cmpf ogt, %1, %315 : vector<128x8xf32>
    %cst_108 = arith.constant -1.000000e+30 : f32
    %317 = vector.shape_cast %314 : vector<128x1xf32> to vector<128x1xf32>
    %318 = vector.broadcast %317 : vector<128x1xf32> to vector<128x8xf32>
    %319 = vector.broadcast %cst_108 : f32 to vector<128x8xf32>
    %320 = arith.select %316, %318, %319 : vector<128x8xi1>, vector<128x8xf32>
    %cst_109 = arith.constant dense<0xFF800000> : vector<8xf32>
    %321 = vector.multi_reduction <maximumf>, %320, %cst_109 [0] : vector<128x8xf32> to vector<8xf32>
    %322 = vector.shape_cast %321 : vector<8xf32> to vector<1x8xf32>
    %cst_110 = arith.constant 1.000000e+30 : f32
    %323 = vector.shape_cast %314 : vector<128x1xf32> to vector<128x1xf32>
    %324 = vector.broadcast %323 : vector<128x1xf32> to vector<128x8xf32>
    %325 = vector.broadcast %cst_110 : f32 to vector<128x8xf32>
    %326 = arith.select %316, %324, %325 : vector<128x8xi1>, vector<128x8xf32>
    %cst_111 = arith.constant dense<0x7F800000> : vector<8xf32>
    %327 = vector.multi_reduction <minimumf>, %326, %cst_111 [0] : vector<128x8xf32> to vector<8xf32>
    %328 = vector.shape_cast %327 : vector<8xf32> to vector<1x8xf32>
    %329 = vector.broadcast %322 : vector<1x8xf32> to vector<128x8xf32>
    %330 = arith.mulf %1, %329 : vector<128x8xf32>
    %cst_112 = arith.constant dense<0.000000e+00> : vector<128xf32>
    %331 = vector.multi_reduction <add>, %330, %cst_112 [1] : vector<128x8xf32> to vector<128xf32>
    %332 = vector.shape_cast %331 : vector<128xf32> to vector<128x1xf32>
    %333 = vector.broadcast %328 : vector<1x8xf32> to vector<128x8xf32>
    %334 = arith.mulf %1, %333 : vector<128x8xf32>
    %cst_113 = arith.constant dense<0.000000e+00> : vector<128xf32>
    %335 = vector.multi_reduction <add>, %334, %cst_113 [1] : vector<128x8xf32> to vector<128xf32>
    %336 = vector.shape_cast %335 : vector<128xf32> to vector<128x1xf32>
    %337 = arith.subf %314, %336 : vector<128x1xf32>
    %cst_114 = arith.constant 9.99999997E-7 : f32
    %338 = vector.broadcast %cst_114 : f32 to vector<128x1xf32>
    %339 = arith.addf %332, %338 : vector<128x1xf32>
    %340 = arith.subf %339, %336 : vector<128x1xf32>
    %341 = arith.divf %337, %340 : vector<128x1xf32>
    %c0_115 = arith.constant 0 : index
    %c0_116 = arith.constant 0 : index
    %342 = vector.load %arg10[%c0_115, %c0_116] : memref<128x1xf32, #tpu.memory_space<vmem>>, vector<128x1xf32>
    tpu.vector_store %arg10[%c0_115, %c0_116], %341 {strides = array<i32>} : memref<128x1xf32, #tpu.memory_space<vmem>>, vector<128x1xf32>,
    %343 = vector.broadcast %341 : vector<128x1xf32> to vector<128x8xf32>
    %344 = arith.mulf %1, %343 : vector<128x8xf32>
    %cst_117 = arith.constant dense<0.000000e+00> : vector<8xf32>
    %345 = vector.multi_reduction <add>, %344, %cst_117 [0] : vector<128x8xf32> to vector<8xf32>
    %346 = vector.shape_cast %345 : vector<8xf32> to vector<1x8xf32>
    %cst_118 = arith.constant 5.000000e-01 : f32
    %347 = vector.broadcast %cst_118 : f32 to vector<1x8xf32>
    %348 = arith.mulf %347, %346 : vector<1x8xf32>
    %349 = arith.mulf %348, %346 : vector<1x8xf32>
    %350 = arith.mulf %341, %341 : vector<128x1xf32>
    %351 = vector.broadcast %350 : vector<128x1xf32> to vector<128x8xf32>
    %352 = arith.mulf %1, %351 : vector<128x8xf32>
    %cst_119 = arith.constant dense<0.000000e+00> : vector<8xf32>
    %353 = vector.multi_reduction <add>, %352, %cst_119 [0] : vector<128x8xf32> to vector<8xf32>
    %354 = vector.shape_cast %353 : vector<8xf32> to vector<1x8xf32>
    %c0_120 = arith.constant 0 : index
    %c0_121 = arith.constant 0 : index
    %355 = vector.load %arg2[%c0_120, %c0_121] : memref<128x128xbf16, #tpu.memory_space<vmem>>, vector<128x128xbf16>
    %356 = arith.truncf %341 : vector<128x1xf32> to vector<128x1xbf16>
    %cst_122 = arith.constant dense<0.000000e+00> : vector<128x1xf32>
    %357 = tpu.matmul %355, %356, %cst_122 {dimension_numbers = #tpu.dot_dimension_numbers<[1], [0], [0], [1], [0, 0, 1, 1], [], []>} : vector<128x128xbf16>, vector<128x1xbf16>, vector<128x1xf32> -> vector<128x1xf32>
    %358 = arith.mulf %341, %357 : vector<128x1xf32>
    %359 = vector.broadcast %358 : vector<128x1xf32> to vector<128x8xf32>
    %360 = arith.mulf %1, %359 : vector<128x8xf32>
    %cst_123 = arith.constant dense<0.000000e+00> : vector<8xf32>
    %361 = vector.multi_reduction <add>, %360, %cst_123 [0] : vector<128x8xf32> to vector<8xf32>
    %362 = vector.shape_cast %361 : vector<8xf32> to vector<1x8xf32>
    %cst_124 = arith.constant 5.000000e-01 : f32
    %363 = vector.broadcast %cst_124 : f32 to vector<1x8xf32>
    %364 = arith.mulf %363, %362 : vector<1x8xf32>
    %365 = arith.subf %349, %354 : vector<1x8xf32>
    %366 = arith.subf %365, %364 : vector<1x8xf32>
    %cst_125 = arith.constant 2.500000e-01 : f32
    %367 = vector.broadcast %cst_125 : f32 to vector<1x8xf32>
    %368 = arith.mulf %367, %366 : vector<1x8xf32>
    %cst_126 = arith.constant 5.000000e-01 : f32
    %369 = vector.broadcast %cst_126 : f32 to vector<1x8xf32>
    %370 = arith.mulf %368, %369 : vector<1x8xf32>
    %cst_127 = arith.constant 5.000000e-01 : f32
    %371 = vector.broadcast %cst_127 : f32 to vector<1x8xf32>
    %372 = arith.mulf %371, %364 : vector<1x8xf32>
    %373 = arith.subf %370, %372 : vector<1x8xf32>
    %374 = tpu.concatenate %364, %365, %366, %373 in 1 : vector<1x8xf32>, vector<1x8xf32>, vector<1x8xf32>, vector<1x8xf32> -> vector<1x32xf32>
    %c0_128 = arith.constant 0 : index
    %c0_129 = arith.constant 0 : index
    %375 = vector.load %arg11[%c0_128, %c0_129] : memref<1x32xf32, #tpu.memory_space<vmem>>, vector<1x32xf32>
    tpu.vector_store %arg11[%c0_128, %c0_129], %374 {strides = array<i32>} : memref<1x32xf32, #tpu.memory_space<vmem>>, vector<1x32xf32>,
    return
  }
}

</mosaic_0001>

<bundles_post_ra>
// kernel: clique_mpnn_forward_arrays.1
= control target key start
LH: loop header
LB: loop body
LE: loop exit
PB: predicated region body
PF: predicated region fallthrough
CT: control target
= control target key end

     0   :  { %17 = vsyncpa [#allocation3], 0  ;;  %s8851_s0 = inlined_call_operand.vmem [shape: f32[128,1], index: 0, kind: input, shape index: {}]   ;;  %s8852_s1 = inlined_call_operand.vmem [shape: bf16[128,128], index: 1, kind: input, shape index: {}]   ;;  %s8853_s2 = inlined_call_operand.vmem [shape: bf16[128,128], index: 2, kind: input, shape index: {}]   ;;  %s8854_s3 = inlined_call_operand.vmem [shape: f32[128,8], index: 3, kind: input, shape index: {}]   ;;  %s8855_s4 = inlined_call_operand.vmem [shape: bf16[128,128], index: 4, kind: input, shape index: {}]   ;;  %s8856_s5 = inlined_call_operand.vmem [shape: bf16[2,2,128,128], index: 5, kind: input, shape index: {}]   ;;  %s8857_s6 = inlined_call_operand.vmem [shape: f32[2,8,128], index: 6, kind: input, shape index: {}]   ;;  %s8858_s7 = inlined_call_operand.vmem [shape: bf16[128,16], index: 7, kind: input, shape index: {}]   ;;  %s8859_s8 = inlined_call_operand.vmem [shape: f32[16,128], index: 8, kind: input, shape index: {}]   ;;  %s8860_s9 = inlined_call_operand.vmem [shape: f32[3], index: 9, kind: input, shape index: {}]   ;;  %s8861_s10 = inlined_call_operand.vmem [shape: f32[128,1], index: 10, kind: output, shape index: {0}]   ;;  %s8862_s11 = inlined_call_operand.vmem [shape: f32[1,32], index: 11, kind: output, shape index: {1}]  }
   0x1   :  { %s42_s19 = sshll.u32 %s8860_s9, 4  ;;  %s43_s19 = int_to_ptr.vmem [resolvable:$true] %s42_s19 }
   0x2   :  { %s5739_s20 = scalar_lea.vmem %s43_s19, 16  ;;  %p5744_p1 = scmp.lt.s32.totalorder %s43_s19, %s43_s19 }
   0x3   :  { %p5740_p0 = scmp.ne.s32.totalorder %s43_s19, %s5739_s20  ;;  %p5745_p2 = scmp.lt.s32.totalorder %s5739_s20, %s5739_s20 }
   0x5   :  { %p5746_p3 = por %p5745_p2, %p5744_p1 }
   0x7   :  { %p5747_p4 = pnand %p5746_p3, %p5740_p0 }
   0x9   :  { %5750 = shalt.err (!%p5747_p4)
}
   0xa   :  { %s5753_s21 = smov [#allocation2]  }
   0xb   :  { %45 = dma.vmem_to_smem %s43_s19, 16, %s5753_s21, [#allocation3]  }
   0xc   :  { %5751 = dma.done.wait [#allocation3], 16  }
   0xd   :  { %5752 = vsyncadd [#allocation3], 4294967280 }
   0xe   :  { %49 = sfence }
   0xf   :  { %v5827_v0 = vld [vmem:[%s8851_s0] sm:$0xff]  ;;  %v5832_v1 = vld [vmem:[%s8851_s0 + $0x8] sm:$0xff]  ;;  %v5837_v2 = vld [vmem:[%s8851_s0 + $0x10] sm:$0xff]  ;;  %v5754_v13 = vmov 0.0   ;;  %s5755_s25 = smov 1   ;;  %s5062_s30 = sld [smem:[#allocation2 + $0x1]] }
  0x10   :  { %v204_v3 = vand.u32 2147483647, %v5827_v0  ;;  %v205_v4 = vand.u32 2147483647, %v5832_v1  ;;  %v5844_v5 = vld [vmem:[%s8851_s0 + $0x18] sm:$0xff]  ;;  %v5849_v6 = vld [vmem:[%s8851_s0 + $0x20] sm:$0xff] }
  0x11   :  { %v206_v7 = vand.u32 2147483647, %v5837_v2  ;;  %v207_v8 = vand.u32 2147483647, %v5844_v5  ;;  %v5856_v9 = vld [vmem:[%s8851_s0 + $0x28] sm:$0xff]  ;;  %v5861_v10 = vld [vmem:[%s8851_s0 + $0x30] sm:$0xff] }
  0x12   :  { %vm220_vm0 = vcmp.gt.f32.partialorder %v204_v3, 0.0  ;;  %vm221_vm1 = vcmp.gt.f32.partialorder %v205_v4, 0.0  ;;  %v208_v11 = vand.u32 2147483647, %v5849_v6  ;;  %v209_v12 = vand.u32 2147483647, %v5856_v9 }
  0x13   :  { %v5865_v14 = vsel %vm220_vm0, 1.0, %v5754_v13  ;;  %v5867_v15 = vsel %vm221_vm1, 1.0, %v5754_v13  ;;  %vm222_vm2 = vcmp.gt.f32.partialorder %v206_v7, 0.0  ;;  %vm223_vm3 = vcmp.gt.f32.partialorder %v207_v8, 0.0  ;;  %v5872_v16 = vld [vmem:[%s8851_s0 + $0x38] sm:$0xff]  ;;  %v5877_v17 = vld [vmem:[%s8851_s0 + $0x40] sm:$0xff] }
  0x14   :  { %v5537_v18 = vpack.i.bf16 %v5867_v15, %v5865_v14  ;;  %v5881_v19 = vsel %vm222_vm2, 1.0, %v5754_v13  ;;  %v5883_v20 = vsel %vm223_vm3, 1.0, %v5754_v13  ;;  %vm224_vm4 = vcmp.gt.f32.partialorder %v208_v11, 0.0  ;;  %v5888_v21 = vld [vmem:[%s8851_s0 + $0x48] sm:$0xff]  ;;  %v5893_v22 = vld [vmem:[%s8851_s0 + $0x50] sm:$0xff]  ;;  %v5901_v25 = vld [vmem:[%s8851_s0 + $0x58] sm:$0xff] }
  0x15   :  { %vm225_vm5 = vcmp.gt.f32.partialorder %v209_v12, 0.0  ;;  %v5895_v23 = vsel %vm224_vm4, 1.0, %v5754_v13  ;;  %v210_v24 = vand.u32 2147483647, %v5861_v10  ;;  %v5542_v26 = vpack.i.bf16 %v5883_v20, %v5881_v19  ;;  %v5913_v30 = vld [vmem:[%s8851_s0 + $0x60] sm:$0xff]  ;;  %v5918_v31 = vld [vmem:[%s8851_s0 + $0x68] sm:$0xff] }
  0x16   :  { %5538 = vrot.lane.b32.xlu0 %v5537_v18, %s5755_s25  ;;  %v5906_v27 = vsel %vm225_vm5, 1.0, %v5754_v13  ;;  %v211_v28 = vand.u32 2147483647, %v5872_v16  ;;  %v212_v29 = vand.u32 2147483647, %v5877_v17  ;;  %v5927_v35 = vld [vmem:[%s8851_s0 + $0x70] sm:$0xff] }
  0x17   :  { %v5547_v32 = vpack.i.bf16 %v5906_v27, %v5895_v23  ;;  %vm226_vm6 = vcmp.gt.f32.partialorder %v210_v24, 0.0  ;;  %v213_v33 = vand.u32 2147483647, %v5888_v21  ;;  %v214_v34 = vand.u32 2147483647, %v5893_v22  ;;  %v5935_v38 = vld [vmem:[%s8851_s0 + $0x78] sm:$0xff] }
  0x18   :  { %vm227_vm7 = vcmp.gt.f32.partialorder %v211_v28, 0.0  ;;  %v5929_v36 = vsel %vm226_vm6, 1.0, %v5754_v13  ;;  %vm228_vm8 = vcmp.gt.f32.partialorder %v212_v29, 0.0  ;;  %v215_v37 = vand.u32 2147483647, %v5901_v25  ;;  %v5579_v57 = vld [vmem:[%s8852_s1] sm:$0xff]  }
  0x19   :  { %5548 = vrot.lane.b32.xlu1 %v5547_v32, %s5755_s25  ;;  %v5938_v39 = vsel %vm227_vm7, 1.0, %v5754_v13  ;;  %vm229_vm9 = vcmp.gt.f32.partialorder %v213_v33, 0.0  ;;  %v5940_v40 = vsel %vm228_vm8, 1.0, %v5754_v13  ;;  %vm230_vm10 = vcmp.gt.f32.partialorder %v214_v34, 0.0  ;;  %5289 = vmatprep.mubr.bf16.mxu0 %v5579_v57  ;;  %v5982_v58 = vld [vmem:[%s8854_s3] sm:$0xff]  ;;  %v68_v59 = vld [vmem:[%s8854_s3 + $0x8] sm:$0xff] }
  0x1a   :  { %5543 = vrot.lane.b32.xlu0 %v5542_v26, %s5755_s25  ;;  %v5552_v41 = vpack.i.bf16 %v5938_v39, %v5929_v36  ;;  %v5945_v42 = vsel %vm229_vm9, 1.0, %v5754_v13  ;;  %vm231_vm11 = vcmp.gt.f32.partialorder %v215_v37, 0.0  ;;  %v5947_v43 = vsel %vm230_vm10, 1.0, %v5754_v13  ;;  %v69_v60 = vld [vmem:[%s8854_s3 + $0x10] sm:$0xff]  ;;  %v5993_v61 = vld [vmem:[%s8854_s3 + $0x18] sm:$0xff]  ;;  %v6002_v4 = vld [vmem:[%s8854_s3 + $0x20] sm:$0xff] }
  0x1b   :  { %v5557_v44 = vpack.i.bf16 %v5945_v42, %v5940_v40  ;;  %v5951_v45 = vsel %vm231_vm11, 1.0, %v5754_v13  ;;  %v216_v46 = vand.u32 2147483647, %v5913_v30  ;;  %v217_v47 = vand.u32 2147483647, %v5918_v31  ;;  %v6007_v8 = vld [vmem:[%s8854_s3 + $0x28] sm:$0xff] }
  0x1c   :  { %v218_v48 = vand.u32 2147483647, %v5927_v35  ;;  %v219_v49 = vand.u32 2147483647, %v5935_v38  ;;  %v5562_v50 = vpack.i.bf16 %v5951_v45, %v5947_v43  ;;  %vm83_vm0 = vcmask 64512   ;;  %v6012_v11 = vld [vmem:[%s8854_s3 + $0x30] sm:$0xff] }
  0x1d   :  { %5553 = vrot.lane.b32.xlu1 %v5552_v41, %s5755_s25  ;;  %vm232_vm12 = vcmp.gt.f32.partialorder %v216_v46, 0.0  ;;  %vm233_vm13 = vcmp.gt.f32.partialorder %v217_v47, 0.0  ;;  %v84_v62 = vsel %vm83_vm0, %v5982_v58, 0.0  ;;  %v85_v63 = vsel %vm83_vm0, %v68_v59, 0.0  ;;  %v6021_v24 = vld [vmem:[%s8854_s3 + $0x38] sm:$0xff]  ;;  %v6030_v33 = vld [vmem:[%s8854_s3 + $0x40] sm:$0xff] }
  0x1e   :  { %5558 = vrot.lane.b32.xlu0 %v5557_v44, %s5755_s25  ;;  %v5961_v51 = vsel %vm232_vm12, 1.0, %v5754_v13  ;;  %v5963_v52 = vsel %vm233_vm13, 1.0, %v5754_v13  ;;  %vm234_vm14 = vcmp.gt.f32.partialorder %v218_v48, 0.0  ;;  %vm235_vm15 = vcmp.gt.f32.partialorder %v219_v49, 0.0  ;;  %v6037_v41 = vld [vmem:[%s8854_s3 + $0x48] sm:$0xff]  ;;  %v6044_v47 = vld [vmem:[%s8854_s3 + $0x50] sm:$0xff] }
  0x1f   :  { %v5567_v53 = vpack.i.bf16 %v5963_v52, %v5961_v51  ;;  %v5967_v54 = vsel %vm234_vm14, 1.0, %v5754_v13  ;;  %v5969_v55 = vsel %vm235_vm15, 1.0, %v5754_v13  ;;  %v87_v3 = vsel %vm83_vm0, %v69_v60, 0.0  ;;  %v6058_v57 = vld [vmem:[%s8854_s3 + $0x60] sm:$0xff]  ;;  %s1568_s12 = sadd.f32 1.0, %s5062_s30  ;;  %s5760_s29 = smov 24  }
  0x20   :  { %8949 = vst [vmem:[#allocation5_spill] sm:$0xff] %v5969_v55  ;;  %v5572_v56 = vpack.i.bf16 %v5969_v55, %v5967_v54  ;;  %v86_v7 = vadd.f32 %v85_v63, %v84_v62  ;;  %v89_v12 = vsel %vm83_vm0, %v5993_v61, 0.0  ;;  %v91_v18 = vsel %vm83_vm0, %v6002_v4, 0.0 }
  0x21   :  { %5563 = vrot.lane.b32.xlu1 %v5562_v50, %s5755_s25  ;;  %v93_v28 = vsel %vm83_vm0, %v6007_v8, 0.0  ;;  %v95_v29 = vsel %vm83_vm0, %v6012_v11, 0.0  ;;  %v97_v37 = vsel %vm83_vm0, %v6021_v24, 0.0  ;;  %v99_v46 = vsel %vm83_vm0, %v6030_v33, 0.0  ;;  %v6051_v50 = vld [vmem:[%s8854_s3 + $0x58] sm:$0xff] }
  0x22   :  { %5568 = vrot.lane.b32.xlu0 %v5567_v53, %s5755_s25  ;;  %v88_v13 = vadd.f32 %v87_v3, %v86_v7  ;;  %v101_v49 = vsel %vm83_vm0, %v6037_v41, 0.0  ;;  %v105_v63 = vsel %vm83_vm0, %v6051_v50, 0.0  ;;  %v6065_v3 = vld [vmem:[%s8854_s3 + $0x68] sm:$0xff]  ;;  %vm332_vm1 = vcmask 7168  }
  0x24   :  { %v90_v26 = vadd.f32 %v89_v12, %v88_v13  ;;  %v107_v12 = vsel %vm83_vm0, %v6058_v57, 0.0  ;;  %v6072_v13 = vld [vmem:[%s8854_s3 + $0x70] sm:$0xff] }
  0x25   :  { %5573 = vrot.lane.b32.xlu1 %v5572_v56, %s5755_s25  ;;  %v103_v56 = vsel %vm83_vm0, %v6044_v47, 0.0  ;;  %s614_s25 = sld [smem:[#allocation2]] }
  0x26   :  { %v92_v32 = vadd.f32 %v91_v18, %v90_v26  ;;  %v109_v26 = vsel %vm83_vm0, %v6065_v3, 0.0 }
  0x28   :  { %v94_v34 = vadd.f32 %v93_v28, %v92_v32  ;;  %v6079_v28 = vld [vmem:[%s8854_s3 + $0x78] sm:$0xff]  ;;  %v111_v32 = vsel %vm83_vm0, %v6072_v13, 0.0 }
  0x2a   :  { %v96_v44 = vadd.f32 %v95_v29, %v94_v34 }
  0x2b   :  { %s615_s26 = sadd.f32 1.0, %s614_s25 }
  0x2c   :  { %v98_v48 = vadd.f32 %v97_v37, %v96_v44  ;;  %v113_v37 = vsel %vm83_vm0, %v6079_v28, 0.0 }
  0x2e   :  { %v100_v53 = vadd.f32 %v99_v46, %v98_v48 }
  0x30   :  { %v102_v62 = vadd.f32 %v101_v49, %v100_v53 }
  0x32   :  { %v104_v7 = vadd.f32 %v103_v56, %v102_v62 }
  0x34   :  { %v106_v18 = vadd.f32 %v105_v63, %v104_v7 }
  0x36   :  { %v108_v29 = vadd.f32 %v107_v12, %v106_v18 }
  0x38   :  { %v110_v34 = vadd.f32 %v109_v26, %v108_v29 }
  0x3a   :  { %v112_v44 = vadd.f32 %v111_v32, %v110_v34 }
  0x3c   :  { %v114_v46 = vadd.f32 %v113_v37, %v112_v44 }
  0x3e   :  { %v115_v48 = vrot.slane %v114_v46, 4 }
  0x40   :  { %v116_v49 = vadd.f32 %v115_v48, %v114_v46 }
  0x42   :  { %v117_v53 = vrot.slane %v116_v49, 2 }
  0x44   :  { %v118_v56 = vadd.f32 %v117_v53, %v116_v49 }
  0x46   :  { %v119_v62 = vrot.slane %v118_v56, 1 }
  0x48   :  { %v120_v63 = vadd.f32 %v119_v62, %v118_v56 }
  0x4a   :  { %5643 = vrsqrt.f32 %v120_v63 }
  0x54   :  { %v6085_v7 = vpop.eup %5643 }
  0x55   :  { %v123_v12 = vmul.f32 %v6085_v7, %v68_v59  ;;  %v124_v18 = vmul.f32 %v6085_v7, %v69_v60 }
  0x57   :  { %v141_v26 = vsel %vm83_vm0, %v123_v12, 0.0  ;;  %v144_v29 = vsel %vm83_vm0, %v124_v18, 0.0 }
  0x58   :  { %142 = vadd.xlane.f32.xlu0 %v141_v26 }
  0x5c   :  { %145 = vadd.xlane.f32.xlu0 %v144_v29 }
  0x88   :  { %v5539_v32 = vpop.permute.xlu0 %5538 }
  0x89   :  { %v5541_v34 = vunpack.i.h.bf16 %v5539_v32  ;;  %v5540_v37 = vunpack.i.l.bf16 %v5539_v32 }
  0x8b   :  { %v333_v44 = vsel %vm332_vm1, %v5827_v0, %v5540_v37  ;;  %v334_v46 = vsel %vm332_vm1, %v5832_v1, %v5541_v34  ;;  %v5549_v48 = vpop.permute.xlu1 %5548 }
  0x8c   :  { %v5544_v59 = vpop.permute.xlu0 %5543  ;;  %v349_v49 = vpack.c.bf16 %v334_v46, %v333_v44  ;;  %v5551_v60 = vunpack.i.h.bf16 %v5549_v48  ;;  %v5550_v53 = vunpack.i.l.bf16 %v5549_v48 }
  0x8d   :  { %v5546_v56 = vunpack.i.h.bf16 %v5544_v59  ;;  %v5545_v62 = vunpack.i.l.bf16 %v5544_v59 }
  0x8e   :  { %5273 = vmatprep.subr.bf16.mxu0 %v349_v49  ;;  %v337_v63 = vsel %vm332_vm1, %v5849_v6, %v5550_v53  ;;  %v338_v12 = vsel %vm332_vm1, %v5856_v9, %v5551_v60 }
  0x8f   :  { %5274 = vmatpush3.bf16.msra.mxu0 %v349_v49  ;;  %v335_v18 = vsel %vm332_vm1, %v5837_v2, %v5545_v62  ;;  %v336_v26 = vsel %vm332_vm1, %v5844_v5, %v5546_v56  ;;  %v5554_v29 = vpop.permute.xlu1 %5553  ;;  %v351_v44 = vpack.c.bf16 %v338_v12, %v337_v63 }
  0x90   :  { %v350_v32 = vpack.c.bf16 %v336_v26, %v335_v18  ;;  %v5556_v34 = vunpack.i.h.bf16 %v5554_v29  ;;  %v5555_v37 = vunpack.i.l.bf16 %v5554_v29  ;;  %v5559_v46 = vpop.permute.xlu0 %5558 }
  0x91   :  { %v5561_v48 = vunpack.i.h.bf16 %v5559_v46  ;;  %v5560_v59 = vunpack.i.l.bf16 %v5559_v46 }
  0x92   :  { %5275 = vmatprep.subr.bf16.mxu0 %v350_v32  ;;  %v339_v53 = vsel %vm332_vm1, %v5861_v10, %v5555_v37  ;;  %v340_v49 = vsel %vm332_vm1, %v5872_v16, %v5556_v34 }
  0x93   :  { %5276 = vmatpush3.bf16.msra.mxu0 %v350_v32  ;;  %v5564_v60 = vpop.permute.xlu1 %5563  ;;  %v352_v62 = vpack.c.bf16 %v340_v49, %v339_v53  ;;  %v341_v18 = vsel %vm332_vm1, %v5877_v17, %v5560_v59  ;;  %v342_v63 = vsel %vm332_vm1, %v5888_v21, %v5561_v48 }
  0x94   :  { %5277 = vmatprep.subr.bf16.mxu0 %v351_v44  ;;  %v5566_v56 = vunpack.i.h.bf16 %v5564_v60  ;;  %v5565_v55 = vunpack.i.l.bf16 %v5564_v60  ;;  %v5569_v12 = vpop.permute.xlu0 %5568  ;;  %v353_v26 = vpack.c.bf16 %v342_v63, %v341_v18  ;;  %v5580_v18 = vld [vmem:[%s8852_s1 + $0x8] sm:$0xff]   ;;  %v5581_v63 = vld [vmem:[%s8852_s1 + $0x10] sm:$0xff]  }
  0x95   :  { %v5571_v29 = vunpack.i.h.bf16 %v5569_v12  ;;  %v5570_v37 = vunpack.i.l.bf16 %v5569_v12  ;;  %v5582_v12 = vld [vmem:[%s8852_s1 + $0x18] sm:$0xff]  }
  0x96   :  { %v343_v32 = vsel %vm332_vm1, %v5893_v22, %v5565_v55  ;;  %v344_v34 = vsel %vm332_vm1, %v5901_v25, %v5566_v56 }
  0x97   :  { %5278 = vmatpush3.bf16.msra.mxu0 %v351_v44  ;;  %v5574_v46 = vpop.permute.xlu1 %5573  ;;  %v354_v53 = vpack.c.bf16 %v344_v34, %v343_v32  ;;  %v345_v48 = vsel %vm332_vm1, %v5913_v30, %v5570_v37  ;;  %v346_v44 = vsel %vm332_vm1, %v5918_v31, %v5571_v29  ;;  %v5584_v29 = vld [vmem:[%s8852_s1 + $0x28] sm:$0xff]   ;;  %v5585_v37 = vld [vmem:[%s8852_s1 + $0x30] sm:$0xff]   ;;  %v5586_v32 = vld [vmem:[%s8852_s1 + $0x38] sm:$0xff]   ;;  %v8864_v34 = vmov 0  }
  0x98   :  { %5279 = vmatprep.subr.bf16.mxu0 %v352_v62  ;;  %v5576_v59 = vunpack.i.h.bf16 %v5574_v46  ;;  %v5575_v49 = vunpack.i.l.bf16 %v5574_v46  ;;  %v355_v60 = vpack.c.bf16 %v346_v44, %v345_v48  ;;  %5577 = vset.pattern.permute.xlu1 %v8864_v34  ;;  %v5587_v46 = vld [vmem:[%s8855_s4] sm:$0xff]   ;;  %v5590_v48 = vld [vmem:[%s8855_s4 + $0x18] sm:$0xff]  }
  0x99   :  { %5578 = vset.pattern.permute.xlu0 %v8864_v34  ;;  %5305 = vmatprep.subr.bf16.mxu1 %v5587_v46 }
  0x9a   :  { %v347_v55 = vsel %vm332_vm1, %v5927_v35, %v5575_v49  ;;  %v348_v56 = vsel %vm332_vm1, %v5935_v38, %v5576_v59  ;;  %5306 = vmatpush3.bf16.msra.mxu1 %v5587_v46  ;;  %v5589_v59 = vld [vmem:[%s8855_s4 + $0x10] sm:$0xff]   ;;  %v6156_v49 = vstv %s615_s26 }
  0x9b   :  { %5280 = vmatpush3.bf16.msra.mxu0 %v352_v62  ;;  %v356_v62 = vpack.c.bf16 %v348_v56, %v347_v55  ;;  %v619_v44 = vmul.f32 %v6156_v49, %v5837_v2  ;;  %v5591_v55 = vld [vmem:[%s8855_s4 + $0x20] sm:$0xff]  }
  0x9c   :  { %5281 = vmatprep.subr.bf16.mxu0 %v353_v26 }
  0x9f   :  { %5282 = vmatpush3.bf16.msra.mxu0 %v353_v26  ;;  %v5583_v26 = vld [vmem:[%s8852_s1 + $0x20] sm:$0xff]  }
  0xa0   :  { %5283 = vmatprep.subr.bf16.mxu0 %v354_v53 }
  0xa3   :  { %5284 = vmatpush3.bf16.msra.mxu0 %v354_v53  ;;  %v5588_v53 = vld [vmem:[%s8855_s4 + $0x8] sm:$0xff]  }
  0xa4   :  { %5285 = vmatprep.subr.bf16.mxu0 %v355_v60  ;;  %5307 = vmatprep.subr.bf16.mxu1 %v5588_v53 }
  0xa5   :  { %5308 = vmatpush3.bf16.msra.mxu1 %v5588_v53  ;;  %v622_v53 = vmul.f32 %v6156_v49, %v5856_v9  ;;  %v624_v9 = vmul.f32 %v6156_v49, %v5872_v16 }
  0xa6   :  { %5309 = vmatprep.subr.bf16.mxu1 %v5589_v59 }
  0xa7   :  { %5286 = vmatpush3.bf16.msra.mxu0 %v355_v60  ;;  %v617_v60 = vmul.f32 %v6156_v49, %v5827_v0  ;;  %v620_v0 = vmul.f32 %v6156_v49, %v5844_v5  ;;  %v5593_v5 = vld [vmem:[%s8855_s4 + $0x30] sm:$0xff]  }
  0xa8   :  { %5287 = vmatprep.subr.bf16.mxu0 %v356_v62 }
  0xa9   :  { %5310 = vmatpush3.bf16.msra.mxu1 %v5589_v59 }
  0xaa   :  { %5311 = vmatprep.subr.bf16.mxu1 %v5590_v48 }
  0xab   :  { %5288 = vmatpush3.bf16.msra.mxu0 %v356_v62  ;;  %v618_v62 = vmul.f32 %v6156_v49, %v5832_v1 }
  0xad   :  { %5312 = vmatpush3.bf16.msra.mxu1 %v5590_v48 }
  0xae   :  { %5290 = vmatmul.mubr.bf16.vlgmr.msra.gmra.mrb[0].mxu0 %v5580_v18  ;;  %5313 = vmatprep.subr.bf16.mxu1 %v5591_v55 }
  0xaf   :  { %5293 = vmatprep.mubr.bf16.mxu0 %v5581_v63 }
  0xb1   :  { %5314 = vmatpush3.bf16.msra.mxu1 %v5591_v55 }
  0xb6   :  { %5294 = vmatmul.mubr.bf16.gmra.mrb[4].mxu0 %v5582_v12 }
  0xb7   :  { %5297 = vmatprep.mubr.bf16.mxu0 %v5583_v26  ;;  %v5592_v26 = vld [vmem:[%s8855_s4 + $0x28] sm:$0xff]  }
  0xb8   :  { %5315 = vmatprep.subr.bf16.mxu1 %v5592_v26 }
  0xb9   :  { %5316 = vmatpush3.bf16.msra.mxu1 %v5592_v26  ;;  %v626_v26 = vmul.f32 %v6156_v49, %v5888_v21 }
  0xba   :  { %5317 = vmatprep.subr.bf16.mxu1 %v5593_v5 }
  0xbd   :  { %5318 = vmatpush3.bf16.msra.mxu1 %v5593_v5  ;;  %v628_v5 = vmul.f32 %v6156_v49, %v5901_v25  ;;  %v629_v25 = vmul.f32 %v6156_v49, %v5913_v30  ;;  %v126_v30 = vmul.f32 %v6085_v7, %v6002_v4 }
  0xbe   :  { %5298 = vmatmul.mubr.bf16.gmra.mrb[8].mxu0 %v5584_v29 }
  0xbf   :  { %5301 = vmatprep.mubr.bf16.mxu0 %v5585_v37  ;;  %v623_v37 = vmul.f32 %v6156_v49, %v5861_v10  ;;  %v621_v10 = vmul.f32 %v6156_v49, %v5849_v6  ;;  %v627_v6 = vmul.f32 %v6156_v49, %v5893_v22 }
  0xc6   :  { %5302 = vmatmul.mubr.bf16.gmra.mrb[12].mxu0 %v5586_v32 }
  0xc7   :  { %1486 = vmatprep.mubr.bf16.mxu0 %v8864_v34 }
 0x181   :  { %v6168_v56 = vpop.f32.mrb[0].mxu0 }
 0x182   :  { %v635_v18 = vadd.f32 %v6168_v56, %v619_v44  ;;  %v6173_v63 = vpop.f32.mrb[1].mxu0 }
 0x183   :  { %v633_v2 = vadd.f32 %v617_v60, %v6173_v63  ;;  %v6176_v12 = vpop.f32.mrb[2].mxu0  ;;  %v5594_v60 = vld [vmem:[%s8855_s4 + $0x38] sm:$0xff]   ;;  %s5757_s4 = smov 127  }
 0x184   :  { %661 = vperm.xlu1 %5577, %v635_v18   ;;  %v6183_v29 = vpop.f32.mrb[3].mxu0  ;;  %v636_v32 = vadd.f32 %v6176_v12, %v620_v0  ;;  %5319 = vmatprep.subr.bf16.mxu1 %v5594_v60 }
 0x185   :  { %v634_v1 = vadd.f32 %v618_v62, %v6183_v29  ;;  %651 = vperm.xlu0 %5578, %v633_v2   ;;  %5320 = vmatpush3.bf16.msra.mxu1 %v5594_v60 }
 0x188   :  { %656 = vperm.xlu1 %5577, %v634_v1  }
 0x189   :  { %666 = vperm.xlu0 %5578, %v636_v32   ;;  %v6192_v46 = vpop.f32.mrb[4].mxu0 }
 0x18a   :  { %v639_v59 = vadd.f32 %v6192_v46, %v623_v37  ;;  %v6197_v48 = vpop.f32.mrb[5].mxu0  ;;  %v625_v37 = vmul.f32 %v6156_v49, %v5877_v17  ;;  %v632_v17 = vmul.f32 %v6156_v49, %v5935_v38  ;;  %v630_v38 = vmul.f32 %v6156_v49, %v5918_v31 }
 0x18b   :  { %v6201_v44 = vpop.f32.mrb[6].mxu0  ;;  %v637_v18 = vadd.f32 %v621_v10, %v6197_v48  ;;  %v125_v31 = vmul.f32 %v6085_v7, %v5993_v61  ;;  %v729_v61 = vlaneseq }
 0x18c   :  { %681 = vperm.xlu1 %5577, %v639_v59   ;;  %v6206_v55 = vpop.f32.mrb[7].mxu0  ;;  %v640_v2 = vadd.f32 %v6201_v44, %v624_v9  ;;  %v631_v59 = vmul.f32 %v6156_v49, %v5927_v35 }
 0x18d   :  { %v638_v62 = vadd.f32 %v622_v53, %v6206_v55  ;;  %v147_v49 = vsel %vm83_vm0, %v125_v31, 0.0 }
 0x18f   :  { %676 = vperm.xlu0 %5578, %v638_v62  }
 0x190   :  { %671 = vperm.xlu1 %5577, %v637_v18  }
 0x191   :  { %v6215_v0 = vpop.f32.mrb[8].mxu0 }
 0x192   :  { %v643_v16 = vadd.f32 %v6215_v0, %v627_v6  ;;  %v6220_v1 = vpop.f32.mrb[9].mxu0 }
 0x193   :  { %686 = vperm.xlu0 %5578, %v640_v2   ;;  %v6224_v32 = vpop.f32.mrb[10].mxu0  ;;  %v641_v21 = vadd.f32 %v625_v37, %v6220_v1  ;;  %v150_v37 = vsel %vm83_vm0, %v126_v30, 0.0 }
 0x194   :  { %701 = vperm.xlu1 %5577, %v643_v16   ;;  %v6226_v22 = vpop.f32.mrb[11].mxu0  ;;  %v644_v10 = vadd.f32 %v6224_v32, %v628_v5  ;;  %v122_v16 = vmul.f32 %v6085_v7, %v5982_v58  ;;  %v129_v58 = vmul.f32 %v6085_v7, %v6021_v24 }
 0x195   :  { %v642_v53 = vadd.f32 %v626_v26, %v6226_v22 }
 0x196   :  { %v138_v5 = vsel %vm83_vm0, %v122_v16, 0.0 }
 0x197   :  { %696 = vperm.xlu0 %5578, %v642_v53   ;;  %v127_v53 = vmul.f32 %v6085_v7, %v6007_v8  ;;  %v159_v8 = vsel %vm83_vm0, %v129_v58, 0.0 }
 0x198   :  { %691 = vperm.xlu1 %5577, %v641_v21   ;;  %v130_v21 = vmul.f32 %v6085_v7, %v6030_v33 }
 0x199   :  { %v6237_v60 = vpop.f32.mrb[12].mxu0  ;;  %v153_v4 = vsel %vm83_vm0, %v127_v53, 0.0 }
 0x19a   :  { %v647_v9 = vadd.f32 %v6237_v60, %v631_v59  ;;  %v6240_v62 = vpop.f32.mrb[13].mxu0  ;;  %v6276_v59 = vshrl.u32 %v729_v61, 7 }
 0x19b   :  { %706 = vperm.xlu0 %5578, %v644_v10   ;;  %v6244_v18 = vpop.f32.mrb[14].mxu0  ;;  %v645_v2 = vadd.f32 %v629_v25, %v6240_v62  ;;  %v6290_v10 = vld [vmem:[%s8859_s8] sm:$0xff] }
 0x19c   :  { %v648_v35 = vadd.f32 %v6244_v18, %v632_v17  ;;  %721 = vperm.xlu1 %5577, %v647_v9   ;;  %v6247_v6 = vpop.f32.mrb[15].mxu0  ;;  %8950 = vst [vmem:[#allocation6_spill] sm:$0xff] %v6276_v59  ;;  %v6278_v17 = vpop.xlane.xlu0 %142  ;;  %v6295_v9 = vsub.s32 1, %v6276_v59 }
 0x19d   :  { %v646_v26 = vadd.f32 %v630_v38, %v6247_v6  ;;  %8951 = vst [vmem:[#allocation7_spill] sm:$0xff] %v6278_v17 }
 0x19e   :  { %8954 = vst [vmem:[#allocation10_spill] sm:$0xff] %v6295_v9 }
 0x19f   :  { %726 = vperm.xlu0 %5578, %v648_v35   ;;  %v6303_v35 = vrot.slane %v6290_v10, %v6295_v9 }
 0x1a0   :  { %711 = vperm.xlu1 %5577, %v645_v2   ;;  %v6292_v33 = vpop.xlane.xlu0 %145 }
 0x1a1   :  { %8953 = vst [vmem:[#allocation9_spill] sm:$0xff] %v6292_v33 }
 0x1a3   :  { %716 = vperm.xlu0 %5578, %v646_v26  }
 0x1c2   :  { %151 = vadd.xlane.f32.xlu0 %v150_v37 }
 0x1c4   :  { %139 = vadd.xlane.f32.xlu1 %v138_v5 }
 0x1c8   :  { %148 = vadd.xlane.f32.xlu1 %v147_v49 }
 0x1cc   :  { %154 = vadd.xlane.f32.xlu1 %v153_v4 }
 0x1d8   :  { %518 = vrot.lane.b32.xlu0 %v6173_v63, %s5757_s4  ;;  %v128_v63 = vmul.f32 %v6085_v7, %v6012_v11 }
 0x1da   :  { %v156_v24 = vsel %vm83_vm0, %v128_v63, 0.0 }
 0x1dc   :  { %522 = vrot.lane.b32.xlu0 %v6168_v56, %s5757_s4  ;;  %v162_v56 = vsel %vm83_vm0, %v130_v21, 0.0 }
 0x1dd   :  { %520 = vrot.lane.b32.xlu1 %v6183_v29, %s5757_s4  ;;  %v6284_v29 = vsub.s32 0, %v6276_v59 }
 0x1df   :  { %8952 = vst [vmem:[#allocation8_spill] sm:$0xff] %v6284_v29  ;;  %v6299_v11 = vrot.slane %v6290_v10, %v6284_v29 }
 0x1fb   :  { %160 = vadd.xlane.f32.xlu0 %v159_v8 }
 0x1ff   :  { %163 = vadd.xlane.f32.xlu0 %v162_v56 }
 0x201   :  { %157 = vadd.xlane.f32.xlu1 %v156_v24 }
 0x203   :  { %v662_v25 = vpop.permute.xlu1 %661 }
 0x204   :  { %v652_v38 = vpop.permute.xlu0 %651  ;;  %v735_v2 = vmul.f32 %v6299_v11, %v662_v25 }
 0x205   :  { %v733_v26 = vmul.f32 %v6299_v11, %v652_v38 }
 0x206   :  { %v755_v31 = vadd.f32 %v6303_v35, %v735_v2 }
 0x207   :  { %v657_v30 = vpop.permute.xlu1 %656  ;;  %v753_v5 = vadd.f32 %v6303_v35, %v733_v26 }
 0x208   :  { %v734_v16 = vmul.f32 %v6299_v11, %v657_v30  ;;  %v667_v37 = vpop.permute.xlu0 %666  ;;  %v771_v21 = vmax.f32 %v755_v31, 0.0 }
 0x209   :  { %v736_v49 = vmul.f32 %v6299_v11, %v667_v37  ;;  %v769_v61 = vmax.f32 %v753_v5, 0.0 }
 0x20a   :  { %v754_v53 = vadd.f32 %v6303_v35, %v734_v16 }
 0x20b   :  { %v756_v4 = vadd.f32 %v6303_v35, %v736_v49  ;;  %v682_v58 = vpop.permute.xlu1 %681 }
 0x20c   :  { %v770_v8 = vmax.f32 %v754_v53, 0.0  ;;  %v739_v25 = vmul.f32 %v6299_v11, %v682_v58 }
 0x20d   :  { %v772_v63 = vmax.f32 %v756_v4, 0.0 }
 0x20e   :  { %v677_v56 = vpop.permute.xlu0 %676  ;;  %v801_v24 = vpack.c.bf16 %v770_v8, %v769_v61  ;;  %v759_v31 = vadd.f32 %v6303_v35, %v739_v25 }
 0x20f   :  { %v738_v38 = vmul.f32 %v6299_v11, %v677_v56  ;;  %v672_v26 = vpop.permute.xlu1 %671  ;;  %v802_v30 = vpack.c.bf16 %v772_v63, %v771_v21 }
 0x210   :  { %v737_v2 = vmul.f32 %v6299_v11, %v672_v26  ;;  %5321 = vmatprep.mubr.bf16.mxu1 %v801_v24  ;;  %v775_v63 = vmax.f32 %v759_v31, 0.0 }
 0x211   :  { %v758_v16 = vadd.f32 %v6303_v35, %v738_v38  ;;  %5322 = vmatmul.mubr.bf16.vlgmr.msra.gmra.mrb[0].mxu1 %v802_v30 }
 0x212   :  { %v757_v37 = vadd.f32 %v6303_v35, %v737_v2  ;;  %v687_v5 = vpop.permute.xlu0 %686  ;;  %524 = vrot.lane.b32.xlu1 %v6176_v12, %s5757_s4 }
 0x213   :  { %v774_v49 = vmax.f32 %v758_v16, 0.0  ;;  %v740_v53 = vmul.f32 %v6299_v11, %v687_v5  ;;  %v702_v4 = vpop.permute.xlu1 %701 }
 0x214   :  { %v773_v58 = vmax.f32 %v757_v37, 0.0  ;;  %v743_v24 = vmul.f32 %v6299_v11, %v702_v4 }
 0x215   :  { %v760_v61 = vadd.f32 %v6303_v35, %v740_v53  ;;  %526 = vrot.lane.b32.xlu0 %v6197_v48, %s5757_s4 }
 0x216   :  { %v697_v8 = vpop.permute.xlu0 %696  ;;  %v803_v21 = vpack.c.bf16 %v774_v49, %v773_v58  ;;  %v763_v16 = vadd.f32 %v6303_v35, %v743_v24 }
 0x217   :  { %v776_v56 = vmax.f32 %v760_v61, 0.0  ;;  %v742_v12 = vmul.f32 %v6299_v11, %v697_v8  ;;  %v692_v38 = vpop.permute.xlu1 %691 }
 0x218   :  { %v741_v25 = vmul.f32 %v6299_v11, %v692_v38  ;;  %5325 = vmatprep.mubr.bf16.mxu1 %v803_v21  ;;  %v779_v61 = vmax.f32 %v763_v16, 0.0 }
 0x219   :  { %v762_v26 = vadd.f32 %v6303_v35, %v742_v12  ;;  %528 = vrot.lane.b32.xlu0 %v6206_v55, %s5757_s4  ;;  %v804_v30 = vpack.c.bf16 %v776_v56, %v775_v63 }
 0x21a   :  { %v761_v48 = vadd.f32 %v6303_v35, %v741_v25  ;;  %v707_v2 = vpop.permute.xlu0 %706 }
 0x21b   :  { %v778_v37 = vmax.f32 %v762_v26, 0.0  ;;  %v744_v5 = vmul.f32 %v6299_v11, %v707_v2  ;;  %5326 = vmatmul.mubr.bf16.gmra.mrb[4].mxu1 %v804_v30  ;;  %v722_v31 = vpop.permute.xlu1 %721 }
 0x21c   :  { %v777_v49 = vmax.f32 %v761_v48, 0.0  ;;  %v747_v63 = vmul.f32 %v6299_v11, %v722_v31 }
 0x21d   :  { %v764_v53 = vadd.f32 %v6303_v35, %v744_v5 }
 0x21e   :  { %v727_v4 = vpop.permute.xlu0 %726  ;;  %v805_v58 = vpack.c.bf16 %v778_v37, %v777_v49  ;;  %v767_v30 = vadd.f32 %v6303_v35, %v747_v63 }
 0x21f   :  { %v780_v8 = vmax.f32 %v764_v53, 0.0  ;;  %v748_v55 = vmul.f32 %v6299_v11, %v727_v4  ;;  %v712_v21 = vpop.permute.xlu1 %711  ;;  %v131_v53 = vmul.f32 %v6085_v7, %v6037_v41  ;;  %v132_v4 = vmul.f32 %v6085_v7, %v6044_v47 }
 0x220   :  { %v745_v56 = vmul.f32 %v6299_v11, %v712_v21  ;;  %5329 = vmatprep.mubr.bf16.mxu1 %v805_v58  ;;  %v783_v5 = vmax.f32 %v767_v30, 0.0 }
 0x221   :  { %v806_v24 = vpack.c.bf16 %v780_v8, %v779_v61  ;;  %v768_v12 = vadd.f32 %v6303_v35, %v748_v55  ;;  %v168_v58 = vsel %vm83_vm0, %v132_v4, 0.0 }
 0x222   :  { %v717_v38 = vpop.permute.xlu0 %716  ;;  %v765_v25 = vadd.f32 %v6303_v35, %v745_v56 }
 0x223   :  { %v746_v26 = vmul.f32 %v6299_v11, %v717_v38  ;;  %5330 = vmatmul.mubr.bf16.gmra.mrb[8].mxu1 %v806_v24  ;;  %v784_v2 = vmax.f32 %v768_v12, 0.0  ;;  %v165_v11 = vsel %vm83_vm0, %v131_v53, 0.0 }
 0x224   :  { %v781_v16 = vmax.f32 %v765_v25, 0.0 }
 0x225   :  { %v766_v48 = vadd.f32 %v6303_v35, %v746_v26  ;;  %v808_v49 = vpack.c.bf16 %v784_v2, %v783_v5  ;;  %v133_v35 = vmul.f32 %v6085_v7, %v6051_v50  ;;  %v136_v26 = vmul.f32 %v6085_v7, %v6072_v13 }
 0x227   :  { %v782_v37 = vmax.f32 %v766_v48, 0.0  ;;  %v171_v61 = vsel %vm83_vm0, %v133_v35, 0.0  ;;  %v137_v48 = vmul.f32 %v6085_v7, %v6079_v28 }
 0x229   :  { %v807_v31 = vpack.c.bf16 %v782_v37, %v781_v16  ;;  %v183_v2 = vsel %vm83_vm0, %v137_v48, 0.0  ;;  %v6452_v48 = vsub.s32 2, %v6276_v59 }
 0x22b   :  { %5333 = vmatprep.mubr.bf16.mxu1 %v807_v31  ;;  %8965 = vst [vmem:[#allocation21_spill] sm:$0xff] %v6452_v48 }
 0x22c   :  { %5334 = vmatmul.mubr.bf16.gmra.mrb[12].mxu1 %v808_v49 }
 0x236   :  { %166 = vadd.xlane.f32.xlu1 %v165_v11 }
 0x238   :  { %169 = vadd.xlane.f32.xlu0 %v168_v58 }
 0x23c   :  { %172 = vadd.xlane.f32.xlu0 %v171_v61 }
 0x247   :  { %530 = vrot.lane.b32.xlu1 %v6192_v46, %s5757_s4 }
 0x24f   :  { %v6354_v8 = vpop.xlane.xlu0 %151 }
 0x250   :  { %8955 = vst [vmem:[#allocation11_spill] sm:$0xff] %v6354_v8 }
 0x251   :  { %v6356_v41 = vpop.xlane.xlu1 %139 }
 0x252   :  { %8956 = vst [vmem:[#allocation12_spill] sm:$0xff] %v6356_v41  ;;  %532 = vrot.lane.b32.xlu0 %v6201_v44, %s5757_s4 }
 0x253   :  { %v519_v50 = vpop.permute.xlu0 %518 }
 0x254   :  { %v566_v21 = vadd.f32 %v5865_v14, %v519_v50  ;;  %v135_v14 = vmul.f32 %v6085_v7, %v6065_v3 }
 0x255   :  { %v6360_v47 = vpop.xlane.xlu1 %148 }
 0x256   :  { %8957 = vst [vmem:[#allocation13_spill] sm:$0xff] %v6360_v47  ;;  %534 = vrot.lane.b32.xlu0 %v6220_v1, %s5757_s4  ;;  %v582_v56 = vmax.f32 %v566_v21, 0.0  ;;  %v134_v1 = vmul.f32 %v6085_v7, %v6058_v57  ;;  %v180_v57 = vsel %vm83_vm0, %v136_v26, 0.0 }
 0x257   :  { %v523_v30 = vpop.permute.xlu0 %522 }
 0x258   :  { %v6368_v12 = vmin.f32 %v582_v56, 1.0  ;;  %v174_v25 = vsel %vm83_vm0, %v134_v1, 0.0  ;;  %v568_v31 = vadd.f32 %v5881_v19, %v523_v30 }
 0x259   :  { %v6364_v55 = vpop.xlane.xlu1 %154 }
 0x25a   :  { %8958 = vst [vmem:[#allocation14_spill] sm:$0xff] %v6364_v55  ;;  %v584_v53 = vmax.f32 %v568_v31, 0.0 }
 0x25d   :  { %v521_v63 = vpop.permute.xlu1 %520 }
 0x25e   :  { %v567_v46 = vadd.f32 %v5867_v15, %v521_v63  ;;  %v177_v15 = vsel %vm83_vm0, %v135_v14, 0.0 }
 0x260   :  { %v583_v24 = vmax.f32 %v567_v46, 0.0 }
 0x262   :  { %v6370_v38 = vmin.f32 %v583_v24, 1.0 }
 0x264   :  { %v1439_v44 = vpack.c.bf16 %v6370_v38, %v6368_v12 }
 0x266   :  { %1454 = vmatprep.subr.bf16.mxu0 %v1439_v44 }
 0x26b   :  { %175 = vadd.xlane.f32.xlu1 %v174_v25 }
 0x275   :  { %178 = vadd.xlane.f32.xlu0 %v177_v15 }
 0x27c   :  { %536 = vrot.lane.b32.xlu1 %v6226_v22, %s5757_s4 }
 0x288   :  { %v6389_v3 = vpop.xlane.xlu0 %160 }
 0x289   :  { %8959 = vst [vmem:[#allocation15_spill] sm:$0xff] %v6389_v3 }
 0x28b   :  { %538 = vrot.lane.b32.xlu0 %v6215_v0, %s5757_s4 }
 0x28c   :  { %v6392_v16 = vpop.xlane.xlu0 %163 }
 0x28d   :  { %8960 = vst [vmem:[#allocation16_spill] sm:$0xff] %v6392_v16 }
 0x28e   :  { %v6394_v22 = vpop.xlane.xlu1 %157 }
 0x28f   :  { %8961 = vst [vmem:[#allocation17_spill] sm:$0xff] %v6394_v22 }
 0x290   :  { %v527_v0 = vpop.permute.xlu0 %526 }
 0x292   :  { %v525_v13 = vpop.permute.xlu1 %524 }
 0x293   :  { %v569_v37 = vadd.f32 %v5883_v20, %v525_v13  ;;  %v1157_v20 = vmul.f32 %v6368_v12, %v6356_v41 }
 0x294   :  { %v529_v28 = vpop.permute.xlu0 %528 }
 0x295   :  { %v585_v7 = vmax.f32 %v569_v37, 0.0  ;;  %v571_v5 = vadd.f32 %v5906_v27, %v529_v28  ;;  %v6418_v27 = vmin.f32 %v584_v53, 1.0 }
 0x297   :  { %v6407_v49 = vmin.f32 %v585_v7, 1.0  ;;  %v1159_v61 = vmul.f32 %v6418_v27, %v6292_v33 }
 0x299   :  { %v1160_v19 = vmul.f32 %v6407_v49, %v6360_v47 }
 0x2a0   :  { %181 = vadd.xlane.f32.xlu1 %v180_v57 }
 0x2aa   :  { %184 = vadd.xlane.f32.xlu0 %v183_v2  ;;  %v6456_v2 = vrot.slane %v6290_v10, %v6452_v48 }
 0x2b1   :  { %540 = vrot.lane.b32.xlu1 %v6224_v32, %s5757_s4  ;;  %v587_v32 = vmax.f32 %v571_v5, 0.0 }
 0x2b5   :  { %542 = vrot.lane.b32.xlu1 %v6240_v62, %s5757_s4  ;;  %v570_v62 = vadd.f32 %v5895_v23, %v527_v0  ;;  %v1158_v23 = vmul.f32 %v6370_v38, %v6278_v17 }
 0x2b9   :  { %546 = vrot.lane.b32.xlu1 %v6237_v60, %s5757_s4  ;;  %v6414_v60 = vmin.f32 %v587_v32, 1.0 }
 0x2bd   :  { %548 = vrot.lane.b32.xlu1 %v6244_v18, %s5757_s4  ;;  %v586_v18 = vmax.f32 %v570_v62, 0.0 }
 0x2bf   :  { %v6428_v58 = vmin.f32 %v586_v18, 1.0 }
 0x2c0   :  { %544 = vrot.lane.b32.xlu0 %v6247_v6, %s5757_s4  ;;  %v1162_v6 = vmul.f32 %v6414_v60, %v6364_v55 }
 0x2c1   :  { %1175 = vperm.xlu1 %5577, %v1157_v20   ;;  %v1161_v56 = vmul.f32 %v6428_v58, %v6354_v8 }
 0x2c3   :  { %v6420_v4 = vpop.xlane.xlu1 %166 }
 0x2c4   :  { %8962 = vst [vmem:[#allocation18_spill] sm:$0xff] %v6420_v4  ;;  %1190 = vperm.xlu0 %5578, %v1160_v19  }
 0x2c5   :  { %1180 = vperm.xlu1 %5577, %v1158_v23   ;;  %v6424_v11 = vpop.xlane.xlu0 %169 }
 0x2c6   :  { %8963 = vst [vmem:[#allocation19_spill] sm:$0xff] %v6424_v11 }
 0x2c7   :  { %v531_v35 = vpop.permute.xlu1 %530 }
 0x2c8   :  { %v572_v50 = vadd.f32 %v5929_v36, %v531_v35  ;;  %1200 = vperm.xlu0 %5578, %v1162_v6  }
 0x2c9   :  { %1185 = vperm.xlu1 %5577, %v1159_v61   ;;  %v6433_v21 = vpop.xlane.xlu0 %172 }
 0x2ca   :  { %8964 = vst [vmem:[#allocation20_spill] sm:$0xff] %v6433_v21  ;;  %v588_v63 = vmax.f32 %v572_v50, 0.0 }
 0x2cc   :  { %v6437_v46 = vmin.f32 %v588_v63, 1.0 }
 0x2cd   :  { %1195 = vperm.xlu1 %5577, %v1161_v56   ;;  %v533_v24 = vpop.permute.xlu0 %532 }
 0x2ce   :  { %v573_v44 = vadd.f32 %v5938_v39, %v533_v24  ;;  %v1163_v1 = vmul.f32 %v6437_v46, %v6394_v22 }
 0x2d0   :  { %v589_v25 = vmax.f32 %v573_v44, 0.0 }
 0x2d1   :  { %1205 = vperm.xlu1 %5577, %v1163_v1   ;;  %v535_v36 = vpop.permute.xlu0 %534 }
 0x2d2   :  { %v6442_v14 = vmin.f32 %v589_v25, 1.0  ;;  %v574_v15 = vadd.f32 %v5940_v40, %v535_v36 }
 0x2d4   :  { %v590_v26 = vmax.f32 %v574_v15, 0.0  ;;  %v1164_v57 = vmul.f32 %v6442_v14, %v6389_v3 }
 0x2d6   :  { %v6447_v30 = vmin.f32 %v590_v26, 1.0  ;;  %1210 = vperm.xlu0 %5578, %v1164_v57  }
 0x2d8   :  { %v1165_v39 = vmul.f32 %v6447_v30, %v6392_v16 }
 0x2da   :  { %1215 = vperm.xlu1 %5577, %v1165_v39  }
 0x2e4   :  { %v5323_v0 = vpop.f32.mrb[0].mxu1 }
 0x2e5   :  { %v895_v40 = vpop.f32.mrb[1].mxu1  ;;  %v6462_v7 = vadd.f32 %v5323_v0, %v6456_v2 }
 0x2e6   :  { %v6459_v13 = vadd.f32 %v895_v40, %v6456_v2  ;;  %v5324_v37 = vpop.f32.mrb[2].mxu1 }
 0x2e7   :  { %v898_v28 = vpop.f32.mrb[3].mxu1  ;;  %v6469_v32 = vadd.f32 %v5324_v37, %v6456_v2  ;;  %v8870_v62 = vmax.f32 %v6462_v7, 0.0 }
 0x2e8   :  { %v6465_v5 = vadd.f32 %v898_v28, %v6456_v2  ;;  %v8872_v31 = vmax.f32 %v6459_v13, 0.0 }
 0x2e9   :  { %v8869_v19 = vmax.f32 %v6469_v32, 0.0 }
 0x2ea   :  { %v8871_v53 = vmax.f32 %v6465_v5, 0.0 }
 0x2ec   :  { %v974_v20 = vadd.f32 %v8871_v53, %v8872_v31 }
 0x2ee   :  { %v975_v18 = vadd.f32 %v974_v20, %v8870_v62  ;;  %v5327_v23 = vpop.f32.mrb[4].mxu1 }
 0x2ef   :  { %v911_v6 = vpop.f32.mrb[5].mxu1  ;;  %v6486_v56 = vadd.f32 %v5327_v23, %v6456_v2 }
 0x2f0   :  { %v6481_v35 = vadd.f32 %v911_v6, %v6456_v2  ;;  %v976_v61 = vadd.f32 %v975_v18, %v8869_v19  ;;  %v5328_v50 = vpop.f32.mrb[6].mxu1 }
 0x2f1   :  { %v914_v63 = vpop.f32.mrb[7].mxu1  ;;  %v6495_v25 = vadd.f32 %v5328_v50, %v6456_v2  ;;  %v8867_v15 = vmax.f32 %v6486_v56, 0.0 }
 0x2f2   :  { %v8868_v24 = vmax.f32 %v6481_v35, 0.0  ;;  %v6490_v44 = vadd.f32 %v914_v63, %v6456_v2 }
 0x2f3   :  { %v965_v0 = vmax.f32 %v6495_v25, 0.0 }
 0x2f4   :  { %v977_v1 = vadd.f32 %v976_v61, %v8868_v24  ;;  %v8866_v36 = vmax.f32 %v6490_v44, 0.0 }
 0x2f6   :  { %v978_v26 = vadd.f32 %v977_v1, %v8866_v36  ;;  %v5331_v57 = vpop.f32.mrb[8].mxu1 }
 0x2f7   :  { %v927_v39 = vpop.f32.mrb[9].mxu1  ;;  %v936_v23 = vadd.f32 %v5331_v57, %v6456_v2 }
 0x2f8   :  { %v979_v40 = vadd.f32 %v978_v26, %v8867_v15  ;;  %v928_v37 = vadd.f32 %v927_v39, %v6456_v2  ;;  %v5332_v28 = vpop.f32.mrb[10].mxu1  ;;  %v6505_v20 = vpop.xlane.xlu1 %175 }
 0x2f9   :  { %8966 = vst [vmem:[#allocation22_spill] sm:$0xff] %v6505_v20  ;;  %v930_v18 = vpop.f32.mrb[11].mxu1  ;;  %v939_v1 = vadd.f32 %v5332_v28, %v6456_v2  ;;  %v968_v26 = vmax.f32 %v936_v23, 0.0 }
 0x2fa   :  { %v966_v6 = vmax.f32 %v928_v37, 0.0  ;;  %v980_v61 = vadd.f32 %v979_v40, %v965_v0  ;;  %v931_v50 = vadd.f32 %v930_v18, %v6456_v2 }
 0x2fb   :  { %v969_v19 = vmax.f32 %v939_v1, 0.0 }
 0x2fc   :  { %v981_v63 = vadd.f32 %v980_v61, %v966_v6  ;;  %v967_v34 = vmax.f32 %v931_v50, 0.0  ;;  %v537_v25 = vpop.permute.xlu1 %536 }
 0x2fd   :  { %v575_v36 = vadd.f32 %v5945_v42, %v537_v25 }
 0x2fe   :  { %v982_v15 = vadd.f32 %v981_v63, %v967_v34 }
 0x2ff   :  { %v591_v39 = vmax.f32 %v575_v36, 0.0  ;;  %v5335_v24 = vpop.f32.mrb[12].mxu1 }
 0x300   :  { %v983_v62 = vadd.f32 %v982_v15, %v968_v26  ;;  %v943_v53 = vpop.f32.mrb[13].mxu1  ;;  %v952_v28 = vadd.f32 %v5335_v24, %v6456_v2 }
 0x301   :  { %v6511_v31 = vmin.f32 %v591_v39, 1.0  ;;  %v944_v57 = vadd.f32 %v943_v53, %v6456_v2  ;;  %v5336_v40 = vpop.f32.mrb[14].mxu1 }
 0x302   :  { %v984_v37 = vadd.f32 %v983_v62, %v969_v19  ;;  %v946_v18 = vpop.f32.mrb[15].mxu1  ;;  %v6514_v61 = vpop.xlane.xlu0 %178  ;;  %v955_v15 = vadd.f32 %v5336_v40, %v6456_v2  ;;  %v972_v53 = vmax.f32 %v952_v28, 0.0 }
 0x303   :  { %8967 = vst [vmem:[#allocation23_spill] sm:$0xff] %v6514_v61  ;;  %v970_v50 = vmax.f32 %v944_v57, 0.0  ;;  %v947_v42 = vadd.f32 %v946_v18, %v6456_v2  ;;  %v1166_v36 = vmul.f32 %v6511_v31, %v6420_v4 }
 0x304   :  { %v973_v39 = vmax.f32 %v955_v15, 0.0  ;;  %v8969_v15 = vmax.f32 %v6465_v5, 0.0  ;;  %v8974_v5 = vmax.f32 %v6486_v56, 0.0 }
 0x305   :  { %v985_v23 = vadd.f32 %v984_v37, %v970_v50  ;;  %v971_v63 = vmax.f32 %v947_v42, 0.0  ;;  %1220 = vperm.xlu0 %5578, %v1166_v36  }
 0x306   :  { %v539_v1 = vpop.permute.xlu0 %538 }
 0x307   :  { %v986_v25 = vadd.f32 %v985_v23, %v971_v63  ;;  %v576_v62 = vadd.f32 %v5947_v43, %v539_v1  ;;  %v8968_v23 = vmax.f32 %v6459_v13, 0.0  ;;  %v8973_v13 = vmax.f32 %v6490_v44, 0.0 }
 0x309   :  { %v987_v48 = vadd.f32 %v986_v25, %v972_v53  ;;  %v592_v9 = vmax.f32 %v576_v62, 0.0  ;;  %v8971_v25 = vmax.f32 %v6469_v32, 0.0  ;;  %v8972_v62 = vmax.f32 %v6481_v35, 0.0 }
 0x30b   :  { %v988_v24 = vadd.f32 %v987_v48, %v973_v39  ;;  %v6522_v57 = vmin.f32 %v592_v9, 1.0  ;;  %v8970_v9 = vmax.f32 %v6462_v7, 0.0 }
 0x30d   :  { %v989_v18 = vrot.slane %v988_v24, 4  ;;  %v1167_v29 = vmul.f32 %v6522_v57, %v6424_v11 }
 0x30f   :  { %v990_v37 = vadd.f32 %v989_v18, %v988_v24  ;;  %1225 = vperm.xlu1 %5577, %v1167_v29  }
 0x311   :  { %v991_v2 = vrot.slane %v990_v37, 2 }
 0x313   :  { %v992_v40 = vadd.f32 %v991_v2, %v990_v37 }
 0x315   :  { %v993_v42 = vrot.slane %v992_v40, 1 }
 0x317   :  { %v994_v36 = vadd.f32 %v993_v42, %v992_v40 }
 0x319   :  { %v995_v28 = vmul.f32 0.0078125, %v994_v36 }
 0x31b   :  { %v6528_v43 = vsub.f32 %v8968_v23, %v995_v28  ;;  %v6532_v48 = vsub.f32 %v8969_v15, %v995_v28  ;;  %v6536_v1 = vsub.f32 %v8970_v9, %v995_v28  ;;  %v6540_v29 = vsub.f32 %v8971_v25, %v995_v28 }
 0x31c   :  { %v6544_v24 = vsub.f32 %v8972_v62, %v995_v28  ;;  %v6548_v18 = vsub.f32 %v8973_v13, %v995_v28  ;;  %v6552_v37 = vsub.f32 %v8974_v5, %v995_v28  ;;  %v6554_v2 = vsub.f32 %v965_v0, %v995_v28 }
 0x31d   :  { %v6556_v7 = vsub.f32 %v966_v6, %v995_v28  ;;  %v6558_v40 = vsub.f32 %v967_v34, %v995_v28  ;;  %v6560_v32 = vsub.f32 %v968_v26, %v995_v28  ;;  %v6562_v42 = vsub.f32 %v969_v19, %v995_v28 }
 0x31e   :  { %v6564_v35 = vsub.f32 %v970_v50, %v995_v28  ;;  %v6566_v36 = vsub.f32 %v971_v63, %v995_v28  ;;  %v6568_v44 = vsub.f32 %v972_v53, %v995_v28  ;;  %v6570_v23 = vsub.f32 %v973_v39, %v995_v28 }
 0x31f   :  { %v1012_v56 = vmul.f32 %v6528_v43, %v6528_v43  ;;  %v1013_v0 = vmul.f32 %v6532_v48, %v6532_v48  ;;  %v1014_v34 = vmul.f32 %v6536_v1, %v6536_v1  ;;  %v1015_v19 = vmul.f32 %v6540_v29, %v6540_v29 }
 0x320   :  { %v1016_v50 = vmul.f32 %v6544_v24, %v6544_v24  ;;  %v1017_v53 = vmul.f32 %v6548_v18, %v6548_v18  ;;  %v1018_v28 = vmul.f32 %v6552_v37, %v6552_v37  ;;  %v1019_v9 = vmul.f32 %v6554_v2, %v6554_v2 }
 0x321   :  { %v1028_v6 = vadd.f32 %v1013_v0, %v1012_v56  ;;  %v1020_v13 = vmul.f32 %v6556_v7, %v6556_v7  ;;  %v1021_v56 = vmul.f32 %v6558_v40, %v6558_v40 }
 0x323   :  { %v1029_v26 = vadd.f32 %v1028_v6, %v1014_v34 }
 0x325   :  { %v1030_v63 = vadd.f32 %v1029_v26, %v1015_v19  ;;  %v1022_v19 = vmul.f32 %v6560_v32, %v6560_v32 }
 0x327   :  { %v1031_v39 = vadd.f32 %v1030_v63, %v1016_v50  ;;  %v1023_v63 = vmul.f32 %v6562_v42, %v6562_v42 }
 0x329   :  { %v1032_v15 = vadd.f32 %v1031_v39, %v1017_v53 }
 0x32b   :  { %v1033_v25 = vadd.f32 %v1032_v15, %v1018_v28 }
 0x32d   :  { %v6588_v62 = vpop.xlane.xlu1 %181  ;;  %v1034_v5 = vadd.f32 %v1033_v25, %v1019_v9  ;;  %v1024_v9 = vmul.f32 %v6564_v35, %v6564_v35 }
 0x32e   :  { %8975 = vst [vmem:[#allocation24_spill] sm:$0xff] %v6588_v62 }
 0x32f   :  { %v1035_v0 = vadd.f32 %v1034_v5, %v1020_v13 }
 0x331   :  { %v541_v34 = vpop.permute.xlu1 %540  ;;  %v1036_v26 = vadd.f32 %v1035_v0, %v1021_v56  ;;  %v1025_v56 = vmul.f32 %v6566_v36, %v6566_v36 }
 0x332   :  { %v577_v6 = vadd.f32 %v5951_v45, %v541_v34 }
 0x333   :  { %v1037_v53 = vadd.f32 %v1036_v26, %v1022_v19 }
 0x334   :  { %v593_v50 = vmax.f32 %v577_v6, 0.0 }
 0x335   :  { %v543_v39 = vpop.permute.xlu1 %542  ;;  %v1038_v25 = vadd.f32 %v1037_v53, %v1023_v63 }
 0x336   :  { %v6599_v28 = vmin.f32 %v593_v50, 1.0  ;;  %v578_v15 = vadd.f32 %v5961_v51, %v543_v39  ;;  %v1026_v51 = vmul.f32 %v6568_v44, %v6568_v44 }
 0x337   :  { %v6604_v13 = vpop.xlane.xlu0 %184  ;;  %v1039_v0 = vadd.f32 %v1038_v25, %v1024_v9 }
 0x338   :  { %8976 = vst [vmem:[#allocation25_spill] sm:$0xff] %v6604_v13  ;;  %v594_v45 = vmax.f32 %v578_v15, 0.0  ;;  %v1168_v5 = vmul.f32 %v6599_v28, %v6433_v21  ;;  %v1027_v15 = vmul.f32 %v6570_v23, %v6570_v23 }
 0x339   :  { %v547_v34 = vpop.permute.xlu1 %546  ;;  %v1040_v26 = vadd.f32 %v1039_v0, %v1025_v56 }
 0x33a   :  { %v6610_v6 = vmin.f32 %v594_v45, 1.0  ;;  %v580_v19 = vadd.f32 %v5967_v54, %v547_v34  ;;  %1230 = vperm.xlu0 %5578, %v1168_v5   ;;  %v8977_v5 = vld [vmem:[#allocation5_spill] sm:$0xff] }
 0x33b   :  { %v545_v50 = vpop.permute.xlu0 %544  ;;  %v1041_v9 = vadd.f32 %v1040_v26, %v1026_v51 }
 0x33c   :  { %v596_v63 = vmax.f32 %v580_v19, 0.0  ;;  %v579_v53 = vadd.f32 %v5963_v52, %v545_v50  ;;  %v1169_v39 = vmul.f32 %v6610_v6, %v6505_v20 }
 0x33d   :  { %v549_v25 = vpop.permute.xlu1 %548  ;;  %v1042_v21 = vadd.f32 %v1041_v9, %v1027_v15 }
 0x33e   :  { %v6620_v45 = vmin.f32 %v596_v63, 1.0  ;;  %v595_v54 = vmax.f32 %v579_v53, 0.0  ;;  %v581_v34 = vadd.f32 %v8977_v5, %v549_v25  ;;  %1235 = vperm.xlu1 %5577, %v1169_v39  }
 0x33f   :  { %v1043_v19 = vrot.slane %v1042_v21, 4 }
 0x340   :  { %v6623_v56 = vmin.f32 %v595_v54, 1.0  ;;  %v597_v0 = vmax.f32 %v581_v34, 0.0  ;;  %v1171_v52 = vmul.f32 %v6620_v45, %v6588_v62  ;;  %v6634_v34 = vsub.s32 3, %v6276_v59 }
 0x341   :  { %v1044_v26 = vadd.f32 %v1043_v19, %v1042_v21  ;;  %v1176_v21 = vpop.permute.xlu1 %1175 }
 0x342   :  { %v6627_v50 = vmin.f32 %v597_v0, 1.0  ;;  %1245 = vperm.xlu1 %5577, %v1171_v52   ;;  %v1170_v51 = vmul.f32 %v6623_v56, %v6514_v61  ;;  %8978 = vst [vmem:[#allocation5_spill] sm:$0xff] %v6634_v34  ;;  %v6637_v0 = vsub.s32 4, %v6276_v59  ;;  %v6641_v52 = vrot.slane %v6290_v10, %v6634_v34 }
 0x343   :  { %v1045_v63 = vrot.slane %v1044_v26, 2 }
 0x344   :  { %1240 = vperm.xlu0 %5578, %v1170_v51   ;;  %v1172_v53 = vmul.f32 %v6627_v50, %v6604_v13  ;;  %8979 = vst [vmem:[#allocation26_spill] sm:$0xff] %v6637_v0  ;;  %v6647_v51 = vrot.slane %v6290_v10, %v6637_v0 }
 0x345   :  { %v1046_v39 = vadd.f32 %v1045_v63, %v1044_v26 }
 0x347   :  { %v1047_v15 = vrot.slane %v1046_v39, 1 }
 0x348   :  { %1250 = vperm.xlu0 %5578, %v1172_v53  }
 0x349   :  { %v1048_v9 = vadd.f32 %v1047_v15, %v1046_v39  ;;  %v1181_v15 = vpop.permute.xlu1 %1180 }
 0x34b   :  { %v1049_v25 = vmul.f32 0.0078125, %v1048_v9 }
 0x34d   :  { %v1050_v54 = vmax.f32 %v1049_v25, 0.0  ;;  %v1186_v34 = vpop.permute.xlu1 %1185 }
 0x34f   :  { %v1051_v5 = vadd.f32 1e-05, %v1050_v54 }
 0x351   :  { %5645 = vrsqrt.f32 %v1051_v5 }
 0x35b   :  { %v6643_v19 = vpop.eup %5645 }
 0x35c   :  { %v6651_v26 = vmul.f32 %v6643_v19, %v6566_v36  ;;  %v1053_v63 = vmul.f32 %v6643_v19, %v6528_v43  ;;  %v1056_v53 = vmul.f32 %v6643_v19, %v6540_v29  ;;  %v1054_v39 = vmul.f32 %v6643_v19, %v6532_v48 }
 0x35d   :  { %v1058_v9 = vmul.f32 %v6643_v19, %v6548_v18  ;;  %v1055_v10 = vmul.f32 %v6643_v19, %v6536_v1  ;;  %v1057_v36 = vmul.f32 %v6643_v19, %v6544_v24  ;;  %v1059_v25 = vmul.f32 %v6643_v19, %v6552_v37 }
 0x35e   :  { %v1073_v43 = vmul.f32 %v6641_v52, %v1053_v63  ;;  %v1076_v29 = vmul.f32 %v6641_v52, %v1056_v53  ;;  %v1074_v54 = vmul.f32 %v6641_v52, %v1054_v39  ;;  %v1060_v37 = vmul.f32 %v6643_v19, %v6554_v2 }
 0x35f   :  { %v1078_v48 = vmul.f32 %v6641_v52, %v1058_v9  ;;  %v1075_v5 = vmul.f32 %v6641_v52, %v1055_v10  ;;  %v1077_v18 = vmul.f32 %v6641_v52, %v1057_v36  ;;  %v1079_v53 = vmul.f32 %v6641_v52, %v1059_v25 }
 0x360   :  { %v1093_v1 = vadd.f32 %v6647_v51, %v1073_v43  ;;  %v1096_v0 = vadd.f32 %v6647_v51, %v1076_v29  ;;  %v1094_v24 = vadd.f32 %v6647_v51, %v1074_v54 }
 0x361   :  { %v1095_v63 = vadd.f32 %v6647_v51, %v1075_v5  ;;  %v1098_v9 = vadd.f32 %v6647_v51, %v1078_v48  ;;  %v1097_v10 = vadd.f32 %v6647_v51, %v1077_v18  ;;  %v1099_v5 = vadd.f32 %v6647_v51, %v1079_v53  ;;  %v1191_v18 = vpop.permute.xlu0 %1190 }
 0x362   :  { %vm1109_vm2 = vcmp.gt.f32.partialorder %v1093_v1, 0.0  ;;  %v1125_v39 = vmul.f32 0.01, %v1093_v1  ;;  %v1128_v36 = vmul.f32 0.01, %v1096_v0  ;;  %vm1110_vm3 = vcmp.gt.f32.partialorder %v1094_v24, 0.0 }
 0x363   :  { %v1126_v43 = vmul.f32 0.01, %v1094_v24  ;;  %vm1112_vm4 = vcmp.gt.f32.partialorder %v1096_v0, 0.0  ;;  %vm1111_vm5 = vcmp.gt.f32.partialorder %v1095_v63, 0.0  ;;  %v1127_v54 = vmul.f32 0.01, %v1095_v63 }
 0x364   :  { %v1141_v29 = vsel %vm1109_vm2, %v1093_v1, %v1125_v39  ;;  %vm1114_vm6 = vcmp.gt.f32.partialorder %v1098_v9, 0.0  ;;  %vm1113_vm7 = vcmp.gt.f32.partialorder %v1097_v10, 0.0  ;;  %v1144_v48 = vsel %vm1112_vm4, %v1096_v0, %v1128_v36 }
 0x365   :  { %v6682_v13 = vmul.f32 %v1176_v21, %v1141_v29  ;;  %v1142_v2 = vsel %vm1110_vm3, %v1094_v24, %v1126_v43  ;;  %v1143_v62 = vsel %vm1111_vm5, %v1095_v63, %v1127_v54  ;;  %v1130_v61 = vmul.f32 0.01, %v1098_v9  ;;  %v1196_v63 = vpop.permute.xlu1 %1195 }
 0x366   :  { %v6685_v25 = vmul.f32 %v1181_v15, %v1142_v2  ;;  %v6687_v20 = vmul.f32 %v1186_v34, %v1143_v62  ;;  %v1129_v11 = vmul.f32 0.01, %v1097_v10  ;;  %v1080_v21 = vmul.f32 %v6641_v52, %v1060_v37 }
 0x367   :  { %v1061_v24 = vmul.f32 %v6643_v19, %v6556_v7  ;;  %v1062_v15 = vmul.f32 %v6643_v19, %v6558_v40  ;;  %v1131_v39 = vmul.f32 0.01, %v1099_v5  ;;  %v1063_v0 = vmul.f32 %v6643_v19, %v6560_v32 }
 0x368   :  { %v1269_v1 = vadd.f32 %v6685_v25, %v6682_v13  ;;  %v1145_v53 = vsel %vm1113_vm7, %v1097_v10, %v1129_v11  ;;  %v1064_v62 = vmul.f32 %v6643_v19, %v6562_v42  ;;  %v6700_v34 = vmul.f32 %v1191_v18, %v1144_v48  ;;  %v1201_v10 = vpop.permute.xlu0 %1200 }
 0x369   :  { %vm1115_vm8 = vcmp.gt.f32.partialorder %v1099_v5, 0.0  ;;  %v1100_v37 = vadd.f32 %v6647_v51, %v1080_v21  ;;  %v1146_v7 = vsel %vm1114_vm6, %v1098_v9, %v1130_v61  ;;  %v6705_v43 = vmul.f32 %v1196_v63, %v1145_v53  ;;  %v1206_v9 = vpop.permute.xlu1 %1205 }
 0x36a   :  { %v1270_v36 = vadd.f32 %v1269_v1, %v6687_v20  ;;  %v1081_v11 = vmul.f32 %v6641_v52, %v1061_v24  ;;  %v1065_v42 = vmul.f32 %v6643_v19, %v6564_v35  ;;  %v1147_v29 = vsel %vm1115_vm8, %v1099_v5, %v1131_v39 }
 0x36b   :  { %vm1116_vm9 = vcmp.gt.f32.partialorder %v1100_v37, 0.0  ;;  %v1132_v32 = vmul.f32 0.01, %v1100_v37  ;;  %v6712_v2 = vmul.f32 %v1201_v10, %v1146_v7  ;;  %v1067_v61 = vmul.f32 %v6643_v19, %v6568_v44 }
 0x36c   :  { %v1271_v40 = vadd.f32 %v1270_v36, %v6700_v34  ;;  %v1101_v54 = vadd.f32 %v6647_v51, %v1081_v11  ;;  %v6717_v21 = vmul.f32 %v1206_v9, %v1147_v29  ;;  %v1211_v35 = vpop.permute.xlu0 %1210  ;;  %v1068_v44 = vmul.f32 %v6643_v19, %v6570_v23 }
 0x36d   :  { %v1148_v18 = vsel %vm1116_vm9, %v1100_v37, %v1132_v32  ;;  %v1216_v39 = vpop.permute.xlu1 %1215  ;;  %v1082_v11 = vmul.f32 %v6641_v52, %v1062_v15  ;;  %v1083_v10 = vmul.f32 %v6641_v52, %v1063_v0  ;;  %v1085_v0 = vmul.f32 %v6641_v52, %v1065_v42 }
 0x36e   :  { %v1272_v48 = vadd.f32 %v1271_v40, %v6705_v43  ;;  %vm1117_vm10 = vcmp.gt.f32.partialorder %v1101_v54, 0.0  ;;  %v1133_v1 = vmul.f32 0.01, %v1101_v54  ;;  %v6721_v63 = vmul.f32 %v1211_v35, %v1148_v18 }
 0x36f   :  { %v1102_v40 = vadd.f32 %v6647_v51, %v1082_v11  ;;  %v1103_v9 = vadd.f32 %v6647_v51, %v1083_v10  ;;  %v1084_v35 = vmul.f32 %v6641_v52, %v1064_v62 }
 0x370   :  { %v1273_v24 = vadd.f32 %v1272_v48, %v6712_v2  ;;  %v1149_v53 = vsel %vm1117_vm10, %v1101_v54, %v1133_v1 }
 0x371   :  { %v6724_v7 = vmul.f32 %v1216_v39, %v1149_v53  ;;  %v1134_v32 = vmul.f32 0.01, %v1102_v40  ;;  %vm1118_vm11 = vcmp.gt.f32.partialorder %v1102_v40, 0.0  ;;  %v1135_v1 = vmul.f32 0.01, %v1103_v9 }
 0x372   :  { %v1274_v5 = vadd.f32 %v1273_v24, %v6717_v21  ;;  %vm1119_vm12 = vcmp.gt.f32.partialorder %v1103_v9, 0.0  ;;  %v1104_v53 = vadd.f32 %v6647_v51, %v1084_v35  ;;  %v1105_v39 = vadd.f32 %v6647_v51, %v1085_v0 }
 0x373   :  { %v1150_v29 = vsel %vm1118_vm11, %v1102_v40, %v1134_v32  ;;  %v1151_v23 = vsel %vm1119_vm12, %v1103_v9, %v1135_v1  ;;  %v1087_v32 = vmul.f32 %v6641_v52, %v1067_v61 }
 0x374   :  { %v1275_v36 = vadd.f32 %v1274_v5, %v6721_v63  ;;  %v1136_v5 = vmul.f32 0.01, %v1104_v53  ;;  %vm1120_vm13 = vcmp.gt.f32.partialorder %v1104_v53, 0.0  ;;  %v1137_v40 = vmul.f32 0.01, %v1105_v39 }
 0x375   :  { %vm1121_vm14 = vcmp.gt.f32.partialorder %v1105_v39, 0.0 }
 0x376   :  { %v1276_v37 = vadd.f32 %v1275_v36, %v6724_v7  ;;  %v1086_v36 = vmul.f32 %v6641_v52, %v6651_v26  ;;  %v1153_v42 = vsel %vm1121_vm14, %v1105_v39, %v1137_v40 }
 0x378   :  { %v1106_v62 = vadd.f32 %v6647_v51, %v1086_v36 }
 0x37a   :  { %vm1122_vm15 = vcmp.gt.f32.partialorder %v1106_v62, 0.0 }
 0x384   :  { %v1221_v54 = vpop.permute.xlu0 %1220 }
 0x385   :  { %v6732_v48 = vmul.f32 %v1221_v54, %v1150_v29  ;;  %v1088_v29 = vmul.f32 %v6641_v52, %v1068_v44 }
 0x387   :  { %v1277_v18 = vadd.f32 %v1276_v37, %v6732_v48  ;;  %v1152_v37 = vsel %vm1120_vm13, %v1104_v53, %v1136_v5  ;;  %v1108_v26 = vadd.f32 %v6647_v51, %v1088_v29 }
 0x389   :  { %v1140_v5 = vmul.f32 0.01, %v1108_v26  ;;  %vm1124_vm3 = vcmp.gt.f32.partialorder %v1108_v26, 0.0 }
 0x38b   :  { %v1156_v39 = vsel %vm1124_vm3, %v1108_v26, %v1140_v5 }
 0x38e   :  { %v1226_v19 = vpop.permute.xlu1 %1225 }
 0x38f   :  { %v1263_v24 = vmul.f32 %v1226_v19, %v1151_v23  ;;  %v1138_v23 = vmul.f32 0.01, %v1106_v62 }
 0x391   :  { %v1278_v15 = vadd.f32 %v1277_v18, %v1263_v24  ;;  %v1107_v18 = vadd.f32 %v6647_v51, %v1087_v32  ;;  %v1154_v53 = vsel %vm1122_vm15, %v1106_v62, %v1138_v23 }
 0x393   :  { %v1139_v35 = vmul.f32 0.01, %v1107_v18  ;;  %vm1123_vm2 = vcmp.gt.f32.partialorder %v1107_v18, 0.0 }
 0x395   :  { %v1155_v52 = vsel %vm1123_vm2, %v1107_v18, %v1139_v35 }
 0x3b9   :  { %v1231_v11 = vpop.permute.xlu0 %1230 }
 0x3ba   :  { %v1264_v10 = vmul.f32 %v1231_v11, %v1152_v37 }
 0x3bc   :  { %v1279_v54 = vadd.f32 %v1278_v15, %v1264_v10 }
 0x3bd   :  { %v1236_v9 = vpop.permute.xlu1 %1235 }
 0x3be   :  { %v1265_v1 = vmul.f32 %v1236_v9, %v1153_v42 }
 0x3c0   :  { %v1280_v19 = vadd.f32 %v1279_v54, %v1265_v1 }
 0x3c1   :  { %v1246_v61 = vpop.permute.xlu1 %1245 }
 0x3c2   :  { %v1267_v44 = vmul.f32 %v1246_v61, %v1155_v52 }
 0x3c3   :  { %v1241_v0 = vpop.permute.xlu0 %1240 }
 0x3c4   :  { %v1266_v36 = vmul.f32 %v1241_v0, %v1154_v53 }
 0x3c6   :  { %v1281_v15 = vadd.f32 %v1280_v19, %v1266_v36 }
 0x3c7   :  { %v1251_v37 = vpop.permute.xlu0 %1250 }
 0x3c8   :  { %v1282_v11 = vadd.f32 %v1281_v15, %v1267_v44  ;;  %v1268_v40 = vmul.f32 %v1251_v37, %v1156_v39 }
 0x3ca   :  { %v1283_v32 = vadd.f32 %v1282_v11, %v1268_v40 }
 0x3cc   :  { %v1284_v42 = vrot.slane %v1283_v32, 4 }
 0x3ce   :  { %v1285_v51 = vadd.f32 %v1284_v42, %v1283_v32 }
 0x3d0   :  { %v1286_v29 = vrot.slane %v1285_v51, 2 }
 0x3d2   :  { %v1287_v54 = vadd.f32 %v1286_v29, %v1285_v51 }
 0x3d4   :  { %v1288_v9 = vrot.slane %v1287_v54, 1 }
 0x3d6   :  { %v1289_v4 = vadd.f32 %v1288_v9, %v1287_v54 }
 0x3d8   :  { %v1290_v16 = vmul.f32 0.0078125, %v1289_v4 }
 0x3da   :  { %v6748_v62 = vsub.f32 %v6682_v13, %v1290_v16  ;;  %v6751_v23 = vsub.f32 %v6685_v25, %v1290_v16  ;;  %v6754_v18 = vsub.f32 %v6687_v20, %v1290_v16  ;;  %v6757_v26 = vsub.f32 %v6700_v34, %v1290_v16 }
 0x3db   :  { %v6760_v19 = vsub.f32 %v6705_v43, %v1290_v16  ;;  %v6763_v35 = vsub.f32 %v6712_v2, %v1290_v16  ;;  %v6766_v4 = vsub.f32 %v6717_v21, %v1290_v16  ;;  %v6769_v13 = vsub.f32 %v6721_v63, %v1290_v16 }
 0x3dc   :  { %v6772_v25 = vsub.f32 %v6724_v7, %v1290_v16  ;;  %v6775_v20 = vsub.f32 %v6732_v48, %v1290_v16  ;;  %v6777_v34 = vsub.f32 %v1263_v24, %v1290_v16  ;;  %v6779_v61 = vsub.f32 %v1264_v10, %v1290_v16 }
 0x3dd   :  { %v6781_v43 = vsub.f32 %v1265_v1, %v1290_v16  ;;  %v6783_v2 = vsub.f32 %v1266_v36, %v1290_v16  ;;  %v6785_v53 = vsub.f32 %v1267_v44, %v1290_v16  ;;  %v6787_v21 = vsub.f32 %v1268_v40, %v1290_v16 }
 0x3de   :  { %v1307_v63 = vmul.f32 %v6748_v62, %v6748_v62  ;;  %v1308_v7 = vmul.f32 %v6751_v23, %v6751_v23  ;;  %v1309_v48 = vmul.f32 %v6754_v18, %v6754_v18  ;;  %v1310_v10 = vmul.f32 %v6757_v26, %v6757_v26 }
 0x3df   :  { %v1311_v0 = vmul.f32 %v6760_v19, %v6760_v19  ;;  %v1312_v16 = vmul.f32 %v6763_v35, %v6763_v35  ;;  %v1313_v52 = vmul.f32 %v6766_v4, %v6766_v4  ;;  %v1314_v15 = vmul.f32 %v6769_v13, %v6769_v13 }
 0x3e0   :  { %v1323_v24 = vadd.f32 %v1308_v7, %v1307_v63  ;;  %v1315_v37 = vmul.f32 %v6772_v25, %v6772_v25  ;;  %v1316_v40 = vmul.f32 %v6775_v20, %v6775_v20  ;;  %v1317_v42 = vmul.f32 %v6777_v34, %v6777_v34 }
 0x3e1   :  { %v1318_v29 = vmul.f32 %v6779_v61, %v6779_v61  ;;  %v1319_v9 = vmul.f32 %v6781_v43, %v6781_v43  ;;  %v1320_v7 = vmul.f32 %v6783_v2, %v6783_v2 }
 0x3e2   :  { %v1324_v1 = vadd.f32 %v1323_v24, %v1309_v48  ;;  %v1321_v24 = vmul.f32 %v6785_v53, %v6785_v53 }
 0x3e4   :  { %v1325_v5 = vadd.f32 %v1324_v1, %v1310_v10  ;;  %v1322_v1 = vmul.f32 %v6787_v21, %v6787_v21 }
 0x3e6   :  { %v1326_v36 = vadd.f32 %v1325_v5, %v1311_v0  ;;  %v5595_v5 = vld [vmem:[%s8856_s5] sm:$0xff]  }
 0x3e7   :  { %5337 = vmatprep.subr.bf16.mxu1 %v5595_v5 }
 0x3e8   :  { %v1327_v44 = vadd.f32 %v1326_v36, %v1312_v16  ;;  %v5596_v16 = vld [vmem:[%s8856_s5 + $0x8] sm:$0xff]   ;;  %5338 = vmatpush3.bf16.msra.mxu1 %v5595_v5 }
 0x3e9   :  { %5339 = vmatprep.subr.bf16.mxu1 %v5596_v16 }
 0x3ea   :  { %v1328_v39 = vadd.f32 %v1327_v44, %v1313_v52  ;;  %v5597_v44 = vld [vmem:[%s8856_s5 + $0x10] sm:$0xff]  }
 0x3ec   :  { %v1329_v11 = vadd.f32 %v1328_v39, %v1314_v15  ;;  %5340 = vmatpush3.bf16.msra.mxu1 %v5596_v16 }
 0x3ed   :  { %5341 = vmatprep.subr.bf16.mxu1 %v5597_v44 }
 0x3ee   :  { %v1330_v32 = vadd.f32 %v1329_v11, %v1315_v37  ;;  %v5598_v37 = vld [vmem:[%s8856_s5 + $0x18] sm:$0xff]  }
 0x3f0   :  { %v1331_v51 = vadd.f32 %v1330_v32, %v1316_v40  ;;  %5342 = vmatpush3.bf16.msra.mxu1 %v5597_v44  ;;  %v5599_v32 = vld [vmem:[%s8856_s5 + $0x20] sm:$0xff]  }
 0x3f1   :  { %5343 = vmatprep.subr.bf16.mxu1 %v5598_v37 }
 0x3f2   :  { %v1332_v54 = vadd.f32 %v1331_v51, %v1317_v42 }
 0x3f4   :  { %v1333_v63 = vadd.f32 %v1332_v54, %v1318_v29  ;;  %5344 = vmatpush3.bf16.msra.mxu1 %v5598_v37 }
 0x3f5   :  { %5345 = vmatprep.subr.bf16.mxu1 %v5599_v32 }
 0x3f6   :  { %v1334_v48 = vadd.f32 %v1333_v63, %v1319_v9  ;;  %v6837_v9 = vsub.s32 5, %v6276_v59  ;;  %v1386_v63 = vsub.s32 6, %v6276_v59 }
 0x3f8   :  { %v1335_v10 = vadd.f32 %v1334_v48, %v1320_v7  ;;  %5346 = vmatpush3.bf16.msra.mxu1 %v5599_v32  ;;  %v5689_v7 = vld [vmem:[%s8859_s8] sm:$0xff] }
 0x3f9   :  { %v6844_v48 = vrot.slane %v5689_v7, %v6837_v9 }
 0x3fa   :  { %v1336_v0 = vadd.f32 %v1335_v10, %v1321_v24  ;;  %v6846_v10 = vrot.slane %v5689_v7, %v1386_v63 }
 0x3fc   :  { %v1337_v36 = vadd.f32 %v1336_v0, %v1322_v1 }
 0x3fe   :  { %v1338_v52 = vrot.slane %v1337_v36, 4 }
 0x400   :  { %v1339_v15 = vadd.f32 %v1338_v52, %v1337_v36 }
 0x402   :  { %v1340_v39 = vrot.slane %v1339_v15, 2 }
 0x404   :  { %v1341_v11 = vadd.f32 %v1340_v39, %v1339_v15 }
 0x406   :  { %v1342_v40 = vrot.slane %v1341_v11, 1 }
 0x408   :  { %v1343_v42 = vadd.f32 %v1342_v40, %v1341_v11 }
 0x40a   :  { %v1344_v51 = vmul.f32 0.0078125, %v1343_v42  ;;  %v1441_v42 = vpack.c.bf16 %v6407_v49, %v6418_v27 }
 0x40c   :  { %v1345_v29 = vmax.f32 %v1344_v51, 0.0 }
 0x40e   :  { %v1346_v54 = vadd.f32 1e-05, %v1345_v29 }
 0x410   :  { %5647 = vrsqrt.f32 %v1346_v54 }
 0x41a   :  { %v5648_v24 = vpop.eup %5647 }
 0x41b   :  { %v6849_v1 = vmul.f32 %v5648_v24, %v6785_v53  ;;  %v1363_v0 = vmul.f32 %v5648_v24, %v6787_v21  ;;  %v1348_v5 = vmul.f32 %v5648_v24, %v6748_v62  ;;  %v1349_v16 = vmul.f32 %v5648_v24, %v6751_v23 }
 0x41c   :  { %v1350_v36 = vmul.f32 %v5648_v24, %v6754_v18  ;;  %v1351_v52 = vmul.f32 %v5648_v24, %v6757_v26  ;;  %v1352_v44 = vmul.f32 %v5648_v24, %v6760_v19  ;;  %v1353_v15 = vmul.f32 %v5648_v24, %v6763_v35 }
 0x41d   :  { %v1368_v39 = vmul.f32 %v6844_v48, %v1348_v5  ;;  %v1369_v37 = vmul.f32 %v6844_v48, %v1349_v16  ;;  %v1354_v53 = vmul.f32 %v5648_v24, %v6766_v4  ;;  %v1355_v26 = vmul.f32 %v5648_v24, %v6769_v13 }
 0x41e   :  { %v1370_v21 = vmul.f32 %v6844_v48, %v1350_v36  ;;  %v1371_v62 = vmul.f32 %v6844_v48, %v1351_v52  ;;  %v1372_v19 = vmul.f32 %v6844_v48, %v1352_v44  ;;  %v1373_v35 = vmul.f32 %v6844_v48, %v1353_v15 }
 0x41f   :  { %v6864_v23 = vadd.f32 %v6846_v10, %v1368_v39  ;;  %v6867_v18 = vadd.f32 %v6846_v10, %v1369_v37  ;;  %v1356_v32 = vmul.f32 %v5648_v24, %v6772_v25  ;;  %v1357_v13 = vmul.f32 %v5648_v24, %v6775_v20 }
 0x420   :  { %v6875_v4 = vadd.f32 %v6846_v10, %v1370_v21  ;;  %v6878_v40 = vadd.f32 %v6846_v10, %v1371_v62  ;;  %v1358_v51 = vmul.f32 %v5648_v24, %v6777_v34  ;;  %v1359_v29 = vmul.f32 %v5648_v24, %v6779_v61 }
 0x421   :  { %v1438_v11 = vpack.c.bf16 %v6867_v18, %v6864_v23  ;;  %v6887_v54 = vadd.f32 %v6846_v10, %v1372_v19  ;;  %v6890_v63 = vadd.f32 %v6846_v10, %v1373_v35  ;;  %v1360_v7 = vmul.f32 %v5648_v24, %v6781_v43 }
 0x422   :  { %v1361_v25 = vmul.f32 %v5648_v24, %v6783_v2  ;;  %v1440_v5 = vpack.c.bf16 %v6878_v40, %v6875_v4  ;;  %v1374_v20 = vmul.f32 %v6844_v48, %v1354_v53  ;;  %v1375_v34 = vmul.f32 %v6844_v48, %v1355_v26 }
 0x423   :  { %1455 = vmatpush1.bf16.msra.mxu0 %v1438_v11  ;;  %v1443_v61 = vpack.c.bf16 %v6414_v60, %v6428_v58  ;;  %v1442_v16 = vpack.c.bf16 %v6890_v63, %v6887_v54  ;;  %v1376_v2 = vmul.f32 %v6844_v48, %v1356_v32  ;;  %v1377_v24 = vmul.f32 %v6844_v48, %v1357_v13 }
 0x424   :  { %1456 = vmatprep.subr.bf16.mxu0 %v1441_v42  ;;  %v6903_v36 = vadd.f32 %v6846_v10, %v1374_v20  ;;  %v6906_v43 = vadd.f32 %v6846_v10, %v1375_v34  ;;  %v1445_v52 = vpack.c.bf16 %v6442_v14, %v6437_v46  ;;  %v1378_v44 = vmul.f32 %v6844_v48, %v1358_v51 }
 0x425   :  { %v6916_v39 = vadd.f32 %v6846_v10, %v1376_v2  ;;  %v6919_v37 = vadd.f32 %v6846_v10, %v1377_v24  ;;  %v1379_v53 = vmul.f32 %v6844_v48, %v1359_v29  ;;  %v1447_v21 = vpack.c.bf16 %v6511_v31, %v6447_v30  ;;  %v5693_v2 = vld [vmem:[%s8852_s1 + $0x18] sm:$0xff]   ;;  %v5694_v24 = vld [vmem:[%s8852_s1 + $0x20] sm:$0xff]  }
 0x426   :  { %v1444_v15 = vpack.c.bf16 %v6906_v43, %v6903_v36  ;;  %v6925_v62 = vadd.f32 %v6846_v10, %v1378_v44  ;;  %v1380_v35 = vmul.f32 %v6844_v48, %v1360_v7  ;;  %v1381_v11 = vmul.f32 %v6844_v48, %v1361_v25  ;;  %v5696_v44 = vld [vmem:[%s8852_s1 + $0x30] sm:$0xff]  }
 0x427   :  { %1457 = vmatpush1.bf16.msra.mxu0 %v1440_v5  ;;  %v1446_v26 = vpack.c.bf16 %v6919_v37, %v6916_v39  ;;  %v6930_v19 = vadd.f32 %v6846_v10, %v1379_v53  ;;  %v1449_v32 = vpack.c.bf16 %v6599_v28, %v6522_v57  ;;  %v1383_v42 = vmul.f32 %v6844_v48, %v1363_v0  ;;  %v5600_v53 = vld [vmem:[%s8856_s5 + $0x28] sm:$0xff]  }
 0x428   :  { %1458 = vmatprep.subr.bf16.mxu0 %v1443_v61  ;;  %v6940_v51 = vadd.f32 %v6846_v10, %v1380_v35  ;;  %v6943_v29 = vadd.f32 %v6846_v10, %v1381_v11  ;;  %v1382_v7 = vmul.f32 %v6844_v48, %v6849_v1  ;;  %v1451_v25 = vpack.c.bf16 %v6623_v56, %v6610_v6  ;;  %v5690_v1 = vld [vmem:[%s8852_s1] sm:$0xff]  }
 0x429   :  { %v1448_v13 = vpack.c.bf16 %v6930_v19, %v6925_v62  ;;  %v6950_v0 = vadd.f32 %v6846_v10, %v1383_v42  ;;  %v1453_v34 = vpack.c.bf16 %v6627_v50, %v6620_v45  ;;  %v8980_v61 = vmov 0   ;;  %5347 = vmatprep.subr.bf16.mxu1 %v5600_v53 }
 0x42a   :  { %v1450_v5 = vpack.c.bf16 %v6943_v29, %v6940_v51  ;;  %v6955_v20 = vadd.f32 %v6846_v10, %v1382_v7  ;;  %v5691_v10 = vld [vmem:[%s8852_s1 + $0x8] sm:$0xff]   ;;  %5348 = vmatpush3.bf16.msra.mxu1 %v5600_v53  ;;  %v7002_v35 = vstv %s1568_s12 }
 0x42b   :  { %1459 = vmatpush1.bf16.msra.mxu0 %v1442_v16  ;;  %v5692_v16 = vld [vmem:[%s8852_s1 + $0x10] sm:$0xff]  }
 0x42c   :  { %1460 = vmatprep.subr.bf16.mxu0 %v1445_v52  ;;  %v1452_v48 = vpack.c.bf16 %v6950_v0, %v6955_v20  ;;  %v5695_v52 = vld [vmem:[%s8852_s1 + $0x28] sm:$0xff]  }
 0x42f   :  { %1461 = vmatpush1.bf16.msra.mxu0 %v1444_v15  ;;  %v5697_v15 = vld [vmem:[%s8852_s1 + $0x38] sm:$0xff]  }
 0x430   :  { %1462 = vmatprep.subr.bf16.mxu0 %v1447_v21  ;;  %v5601_v21 = vld [vmem:[%s8856_s5 + $0x30] sm:$0xff]  }
 0x431   :  { %5349 = vmatprep.subr.bf16.mxu1 %v5601_v21 }
 0x432   :  { %5350 = vmatpush3.bf16.msra.mxu1 %v5601_v21  ;;  %v1573_v21 = vmul.f32 %v7002_v35, %v6878_v40 }
 0x433   :  { %1463 = vmatpush1.bf16.msra.mxu0 %v1446_v26  ;;  %v5602_v26 = vld [vmem:[%s8856_s5 + $0x38] sm:$0xff]  }
 0x434   :  { %1464 = vmatprep.subr.bf16.mxu0 %v1449_v32  ;;  %5351 = vmatprep.subr.bf16.mxu1 %v5602_v26  ;;  %v1570_v32 = vmul.f32 %v7002_v35, %v6864_v23 }
 0x436   :  { %5352 = vmatpush3.bf16.msra.mxu1 %v5602_v26 }
 0x437   :  { %1465 = vmatpush1.bf16.msra.mxu0 %v1448_v13  ;;  %v1571_v13 = vmul.f32 %v7002_v35, %v6867_v18 }
 0x438   :  { %1466 = vmatprep.subr.bf16.mxu0 %v1451_v25 }
 0x43b   :  { %1467 = vmatpush1.bf16.msra.mxu0 %v1450_v5 }
 0x43c   :  { %1468 = vmatprep.subr.bf16.mxu0 %v1453_v34 }
 0x43f   :  { %1469 = vmatpush1.bf16.msra.mxu0 %v1452_v48 }
 0x442   :  { %1487 = vmatmul.mubr.bf16.vlgmr.msra.gmra.mrb[16].mxu0 %v5690_v1 }
 0x443   :  { %1496 = vmatprep.mubr.bf16.mxu0 %v8980_v61 }
 0x44a   :  { %1497 = vmatmul.mubr.bf16.gmra.mrb[20].mxu0 %v5691_v10 }
 0x44b   :  { %1506 = vmatprep.mubr.bf16.mxu0 %v8980_v61 }
 0x452   :  { %1507 = vmatmul.mubr.bf16.gmra.mrb[24].mxu0 %v5692_v16 }
 0x453   :  { %1516 = vmatprep.mubr.bf16.mxu0 %v8980_v61 }
 0x45a   :  { %1517 = vmatmul.mubr.bf16.gmra.mrb[28].mxu0 %v5693_v2 }
 0x45b   :  { %1526 = vmatprep.mubr.bf16.mxu0 %v8980_v61 }
 0x462   :  { %1527 = vmatmul.mubr.bf16.gmra.mrb[32].mxu0 %v5694_v24 }
 0x463   :  { %1536 = vmatprep.mubr.bf16.mxu0 %v8980_v61 }
 0x46a   :  { %1537 = vmatmul.mubr.bf16.gmra.mrb[36].mxu0 %v5695_v52 }
 0x46b   :  { %1546 = vmatprep.mubr.bf16.mxu0 %v8980_v61 }
 0x472   :  { %1547 = vmatmul.mubr.bf16.gmra.mrb[40].mxu0 %v5696_v44 }
 0x473   :  { %1556 = vmatprep.mubr.bf16.mxu0 %v8980_v61 }
 0x47a   :  { %1557 = vmatmul.mubr.bf16.gmra.mrb[44].mxu0 %v5697_v15 }
 0x47b   :  { %2526 = vmatprep.mubr.bf16.mxu0 %v8980_v61 }
 0x515   :  { %v1488_v11 = vpop.f32.mrb[16].mxu0 }
 0x516   :  { %v1490_v42 = vpop.f32.mrb[17].mxu0  ;;  %v1586_v5 = vadd.f32 %v1570_v32, %v1488_v11 }
 0x517   :  { %v2147_v7 = vadd.f32 %v1490_v42, %v6368_v12  ;;  %v1492_v25 = vpop.f32.mrb[18].mxu0  ;;  %v1572_v12 = vmul.f32 %v7002_v35, %v6875_v4 }
 0x518   :  { %v1587_v34 = vadd.f32 %v1571_v13, %v1492_v25  ;;  %v1494_v48 = vpop.f32.mrb[19].mxu0 }
 0x519   :  { %v2163_v1 = vmax.f32 %v2147_v7, 0.0  ;;  %v2148_v10 = vadd.f32 %v1494_v48, %v6370_v38 }
 0x51a   :  { %v1602_v16 = vpack.c.bf16 %v1587_v34, %v1586_v5 }
 0x51b   :  { %v7010_v2 = vmin.f32 %v2163_v1, 1.0  ;;  %v2164_v24 = vmax.f32 %v2148_v10, 0.0 }
 0x51c   :  { %5353 = vmatprep.mubr.bf16.mxu1 %v1602_v16 }
 0x51d   :  { %8981 = vst [vmem:[#allocation27_spill] sm:$0xff] %v7010_v2  ;;  %v7012_v52 = vmin.f32 %v2164_v24, 1.0  ;;  %v1498_v44 = vpop.f32.mrb[20].mxu0  ;;  %v2195_v15 = vmul.f32 %v7010_v2, %v6356_v41  ;;  %v1574_v24 = vmul.f32 %v7002_v35, %v6887_v54 }
 0x51e   :  { %v1500_v53 = vpop.f32.mrb[21].mxu0  ;;  %v1588_v42 = vadd.f32 %v1572_v12, %v1498_v44 }
 0x51f   :  { %8982 = vst [vmem:[#allocation28_spill] sm:$0xff] %v7012_v52  ;;  %v2149_v38 = vadd.f32 %v1500_v53, %v6418_v27  ;;  %2213 = vperm.xlu1 %5577, %v2195_v15   ;;  %v1502_v26 = vpop.f32.mrb[22].mxu0  ;;  %v2479_v11 = vpack.c.bf16 %v7012_v52, %v7010_v2  ;;  %v2196_v32 = vmul.f32 %v7012_v52, %v6278_v17 }
 0x520   :  { %v1589_v13 = vadd.f32 %v1573_v21, %v1502_v26  ;;  %v1504_v7 = vpop.f32.mrb[23].mxu0 }
 0x521   :  { %v2165_v25 = vmax.f32 %v2149_v38, 0.0  ;;  %v2150_v5 = vadd.f32 %v1504_v7, %v6407_v49  ;;  %2494 = vmatprep.subr.bf16.mxu0 %v2479_v11  ;;  %2218 = vperm.xlu0 %5578, %v2196_v32   ;;  %v1575_v49 = vmul.f32 %v7002_v35, %v6890_v63 }
 0x522   :  { %v1603_v34 = vpack.c.bf16 %v1589_v13, %v1588_v42 }
 0x523   :  { %v7026_v48 = vmin.f32 %v2165_v25, 1.0  ;;  %v2166_v27 = vmax.f32 %v2150_v5, 0.0 }
 0x524   :  { %5354 = vmatmul.mubr.bf16.vlgmr.msra.gmra.mrb[16].mxu1 %v1603_v34  ;;  %v1576_v34 = vmul.f32 %v7002_v35, %v6903_v36 }
 0x525   :  { %v7028_v1 = vmin.f32 %v2166_v27, 1.0  ;;  %v1508_v10 = vpop.f32.mrb[24].mxu0  ;;  %v2197_v16 = vmul.f32 %v7026_v48, %v6292_v33 }
 0x526   :  { %v1510_v44 = vpop.f32.mrb[25].mxu0  ;;  %v1590_v21 = vadd.f32 %v1574_v24, %v1508_v10  ;;  %v1577_v10 = vmul.f32 %v7002_v35, %v6906_v43 }
 0x527   :  { %v2151_v15 = vadd.f32 %v1510_v44, %v6428_v58  ;;  %2223 = vperm.xlu1 %5577, %v2197_v16   ;;  %v1512_v12 = vpop.f32.mrb[26].mxu0  ;;  %v2198_v53 = vmul.f32 %v7028_v1, %v6360_v47 }
 0x528   :  { %v1591_v38 = vadd.f32 %v1575_v49, %v1512_v12  ;;  %v1514_v26 = vpop.f32.mrb[27].mxu0 }
 0x529   :  { %v2167_v11 = vmax.f32 %v2151_v15, 0.0  ;;  %v2152_v32 = vadd.f32 %v1514_v26, %v6414_v60  ;;  %2228 = vperm.xlu0 %5578, %v2198_v53  }
 0x52a   :  { %v1604_v42 = vpack.c.bf16 %v1591_v38, %v1590_v21 }
 0x52b   :  { %v7040_v13 = vmin.f32 %v2167_v11, 1.0  ;;  %v2168_v7 = vmax.f32 %v2152_v32, 0.0 }
 0x52c   :  { %5357 = vmatprep.mubr.bf16.mxu1 %v1604_v42  ;;  %v1578_v42 = vmul.f32 %v7002_v35, %v6916_v39 }
 0x52d   :  { %v7042_v25 = vmin.f32 %v2168_v7, 1.0  ;;  %v1518_v58 = vpop.f32.mrb[28].mxu0  ;;  %v2199_v5 = vmul.f32 %v7040_v13, %v6354_v8 }
 0x52e   :  { %v1520_v27 = vpop.f32.mrb[29].mxu0  ;;  %v1592_v44 = vadd.f32 %v1576_v34, %v1518_v58  ;;  %v1579_v58 = vmul.f32 %v7002_v35, %v6919_v37 }
 0x52f   :  { %v2153_v60 = vadd.f32 %v1520_v27, %v6437_v46  ;;  %2233 = vperm.xlu1 %5577, %v2199_v5   ;;  %v1522_v16 = vpop.f32.mrb[30].mxu0  ;;  %v2200_v24 = vmul.f32 %v7042_v25, %v6364_v55 }
 0x530   :  { %v1593_v49 = vadd.f32 %v1577_v10, %v1522_v16  ;;  %v1524_v15 = vpop.f32.mrb[31].mxu0 }
 0x531   :  { %v2169_v12 = vmax.f32 %v2153_v60, 0.0  ;;  %v2154_v53 = vadd.f32 %v1524_v15, %v6442_v14  ;;  %2238 = vperm.xlu0 %5578, %v2200_v24  }
 0x532   :  { %v1605_v21 = vpack.c.bf16 %v1593_v49, %v1592_v44 }
 0x533   :  { %v7054_v38 = vmin.f32 %v2169_v12, 1.0  ;;  %v2170_v26 = vmax.f32 %v2154_v53, 0.0  ;;  %v8984_v53 = vld [vmem:[#allocation16_spill] sm:$0xff] }
 0x534   :  { %5358 = vmatmul.mubr.bf16.gmra.mrb[20].mxu1 %v1605_v21 }
 0x535   :  { %v7056_v11 = vmin.f32 %v2170_v26, 1.0  ;;  %v1528_v46 = vpop.f32.mrb[32].mxu0  ;;  %v2201_v32 = vmul.f32 %v7054_v38, %v6394_v22  ;;  %v1580_v26 = vmul.f32 %v7002_v35, %v6925_v62 }
 0x536   :  { %v1530_v7 = vpop.f32.mrb[33].mxu0  ;;  %v1594_v27 = vadd.f32 %v1578_v42, %v1528_v46 }
 0x537   :  { %v2155_v14 = vadd.f32 %v1530_v7, %v6447_v30  ;;  %2243 = vperm.xlu1 %5577, %v2201_v32   ;;  %v1532_v5 = vpop.f32.mrb[34].mxu0  ;;  %v2202_v34 = vmul.f32 %v7056_v11, %v6389_v3  ;;  %v1581_v32 = vmul.f32 %v7002_v35, %v6930_v19  ;;  %v8985_v7 = vld [vmem:[#allocation18_spill] sm:$0xff] }
 0x538   :  { %v1595_v10 = vadd.f32 %v1579_v58, %v1532_v5  ;;  %v1534_v60 = vpop.f32.mrb[35].mxu0 }
 0x539   :  { %v2171_v16 = vmax.f32 %v2155_v14, 0.0  ;;  %v2156_v24 = vadd.f32 %v1534_v60, %v6511_v31  ;;  %2248 = vperm.xlu0 %5578, %v2202_v34  }
 0x53a   :  { %v1606_v44 = vpack.c.bf16 %v1595_v10, %v1594_v27 }
 0x53b   :  { %v7068_v49 = vmin.f32 %v2171_v16, 1.0  ;;  %v2172_v15 = vmax.f32 %v2156_v24, 0.0 }
 0x53c   :  { %5361 = vmatprep.mubr.bf16.mxu1 %v1606_v44 }
 0x53d   :  { %v7070_v12 = vmin.f32 %v2172_v15, 1.0  ;;  %v1538_v30 = vpop.f32.mrb[36].mxu0  ;;  %v2203_v21 = vmul.f32 %v7068_v49, %v8984_v53  ;;  %v8988_v15 = vld [vmem:[#allocation19_spill] sm:$0xff] }
 0x53e   :  { %v1540_v46 = vpop.f32.mrb[37].mxu0  ;;  %v1596_v14 = vadd.f32 %v1580_v26, %v1538_v30  ;;  %v1582_v30 = vmul.f32 %v7002_v35, %v6940_v51 }
 0x53f   :  { %8983 = vst [vmem:[#allocation29_spill] sm:$0xff] %v7070_v12  ;;  %v2157_v31 = vadd.f32 %v1540_v46, %v6522_v57  ;;  %2253 = vperm.xlu1 %5577, %v2203_v21   ;;  %v1542_v42 = vpop.f32.mrb[38].mxu0  ;;  %v2204_v58 = vmul.f32 %v7070_v12, %v8985_v7  ;;  %v1583_v46 = vmul.f32 %v7002_v35, %v6943_v29 }
 0x540   :  { %v1597_v5 = vadd.f32 %v1581_v32, %v1542_v42  ;;  %v1544_v34 = vpop.f32.mrb[39].mxu0 }
 0x541   :  { %v2173_v27 = vmax.f32 %v2157_v31, 0.0  ;;  %v2158_v10 = vadd.f32 %v1544_v34, %v6599_v28  ;;  %2258 = vperm.xlu0 %5578, %v2204_v58   ;;  %v8989_v31 = vld [vmem:[#allocation20_spill] sm:$0xff] }
 0x542   :  { %v1607_v60 = vpack.c.bf16 %v1597_v5, %v1596_v14 }
 0x543   :  { %v7082_v16 = vmin.f32 %v2173_v27, 1.0  ;;  %v2174_v24 = vmax.f32 %v2158_v10, 0.0 }
 0x544   :  { %5362 = vmatmul.mubr.bf16.gmra.mrb[24].mxu1 %v1607_v60 }
 0x545   :  { %8986 = vst [vmem:[#allocation30_spill] sm:$0xff] %v7082_v16  ;;  %v7084_v44 = vmin.f32 %v2174_v24, 1.0  ;;  %v1548_v57 = vpop.f32.mrb[40].mxu0  ;;  %v2205_v21 = vmul.f32 %v7082_v16, %v8988_v15 }
 0x546   :  { %v1550_v26 = vpop.f32.mrb[41].mxu0  ;;  %v1598_v58 = vadd.f32 %v1582_v30, %v1548_v57  ;;  %v1584_v57 = vmul.f32 %v7002_v35, %v6955_v20 }
 0x547   :  { %8987 = vst [vmem:[#allocation31_spill] sm:$0xff] %v7084_v44  ;;  %v2159_v28 = vadd.f32 %v1550_v26, %v6610_v6  ;;  %2263 = vperm.xlu1 %5577, %v2205_v21   ;;  %v1552_v32 = vpop.f32.mrb[42].mxu0  ;;  %v2206_v42 = vmul.f32 %v7084_v44, %v8989_v31  ;;  %v8992_v21 = vld [vmem:[#allocation22_spill] sm:$0xff] }
 0x548   :  { %v1599_v14 = vadd.f32 %v1583_v46, %v1552_v32  ;;  %v1554_v5 = vpop.f32.mrb[43].mxu0  ;;  %v1585_v46 = vmul.f32 %v7002_v35, %v6950_v0  ;;  %v8993_v32 = vld [vmem:[#allocation23_spill] sm:$0xff] }
 0x549   :  { %v2175_v34 = vmax.f32 %v2159_v28, 0.0  ;;  %v2160_v27 = vadd.f32 %v1554_v5, %v6623_v56  ;;  %2268 = vperm.xlu0 %5578, %v2206_v42  }
 0x54a   :  { %v1608_v10 = vpack.c.bf16 %v1599_v14, %v1598_v58 }
 0x54b   :  { %v7096_v60 = vmin.f32 %v2175_v34, 1.0  ;;  %v2176_v24 = vmax.f32 %v2160_v27, 0.0 }
 0x54c   :  { %5365 = vmatprep.mubr.bf16.mxu1 %v1608_v10 }
 0x54d   :  { %8990 = vst [vmem:[#allocation32_spill] sm:$0xff] %v7096_v60  ;;  %v7098_v59 = vmin.f32 %v2176_v24, 1.0  ;;  %v1558_v6 = vpop.f32.mrb[44].mxu0  ;;  %v2207_v26 = vmul.f32 %v7096_v60, %v8992_v21 }
 0x54e   :  { %v1560_v30 = vpop.f32.mrb[45].mxu0  ;;  %v1600_v58 = vadd.f32 %v1584_v57, %v1558_v6  ;;  %v5603_v57 = vld [vmem:[%s8856_s5 + $0x40] sm:$0xff]  }
 0x54f   :  { %8991 = vst [vmem:[#allocation33_spill] sm:$0xff] %v7098_v59  ;;  %v2161_v56 = vadd.f32 %v1560_v30, %v6620_v45  ;;  %2273 = vperm.xlu1 %5577, %v2207_v26   ;;  %v1562_v28 = vpop.f32.mrb[46].mxu0  ;;  %v2208_v42 = vmul.f32 %v7098_v59, %v8993_v32  ;;  %v8996_v45 = vld [vmem:[#allocation24_spill] sm:$0xff]  ;;  %v8997_v30 = vld [vmem:[#allocation25_spill] sm:$0xff]  ;;  %5369 = vmatprep.subr.bf16.mxu1 %v5603_v57 }
 0x550   :  { %v1601_v14 = vadd.f32 %v1585_v46, %v1562_v28  ;;  %v1564_v5 = vpop.f32.mrb[47].mxu0  ;;  %5370 = vmatpush3.bf16.msra.mxu1 %v5603_v57  ;;  %v5606_v46 = vld [vmem:[%s8856_s5 + $0x58] sm:$0xff]   ;;  %v5608_v28 = vld [vmem:[%s8856_s5 + $0x68] sm:$0xff]  }
 0x551   :  { %v2177_v34 = vmax.f32 %v2161_v56, 0.0  ;;  %v2162_v27 = vadd.f32 %v1564_v5, %v6627_v50  ;;  %2278 = vperm.xlu0 %5578, %v2208_v42   ;;  %v5604_v50 = vld [vmem:[%s8856_s5 + $0x48] sm:$0xff]   ;;  %v5607_v56 = vld [vmem:[%s8856_s5 + $0x60] sm:$0xff]   ;;  %v5609_v42 = vld [vmem:[%s8856_s5 + $0x70] sm:$0xff]  }
 0x552   :  { %v1609_v10 = vpack.c.bf16 %v1601_v14, %v1600_v58  ;;  %5371 = vmatprep.subr.bf16.mxu1 %v5604_v50  ;;  %v5610_v58 = vld [vmem:[%s8856_s5 + $0x78] sm:$0xff]   ;;  %v7145_v14 = vld [vmem:[%s8857_s6] sm:$0xff] }
 0x553   :  { %v7110_v24 = vmin.f32 %v2177_v34, 1.0  ;;  %v2178_v21 = vmax.f32 %v2162_v27, 0.0  ;;  %v8998_v5 = vld [vmem:[#allocation8_spill] sm:$0xff] }
 0x554   :  { %5366 = vmatmul.mubr.bf16.gmra.mrb[28].mxu1 %v1609_v10  ;;  %v1613_v34 = vrot.slane %v7145_v14, %v8998_v5 }
 0x555   :  { %8994 = vst [vmem:[#allocation34_spill] sm:$0xff] %v7110_v24  ;;  %v7112_v35 = vmin.f32 %v2178_v21, 1.0  ;;  %v2209_v26 = vmul.f32 %v7110_v24, %v8996_v45  ;;  %v5605_v21 = vld [vmem:[%s8856_s5 + $0x50] sm:$0xff]   ;;  %5372 = vmatpush3.bf16.msra.mxu1 %v5604_v50 }
 0x556   :  { %5373 = vmatprep.subr.bf16.mxu1 %v5605_v21 }
 0x557   :  { %8995 = vst [vmem:[#allocation35_spill] sm:$0xff] %v7112_v35  ;;  %2283 = vperm.xlu1 %5577, %v2209_v26   ;;  %v2210_v6 = vmul.f32 %v7112_v35, %v8997_v30 }
 0x559   :  { %2288 = vperm.xlu0 %5578, %v2210_v6   ;;  %5374 = vmatpush3.bf16.msra.mxu1 %v5605_v21 }
 0x55a   :  { %5375 = vmatprep.subr.bf16.mxu1 %v5606_v46 }
 0x55d   :  { %5376 = vmatpush3.bf16.msra.mxu1 %v5606_v46 }
 0x55e   :  { %5377 = vmatprep.subr.bf16.mxu1 %v5607_v56 }
 0x561   :  { %5378 = vmatpush3.bf16.msra.mxu1 %v5607_v56 }
 0x562   :  { %5379 = vmatprep.subr.bf16.mxu1 %v5608_v28 }
 0x565   :  { %5380 = vmatpush3.bf16.msra.mxu1 %v5608_v28 }
 0x566   :  { %5381 = vmatprep.subr.bf16.mxu1 %v5609_v42 }
 0x569   :  { %5382 = vmatpush3.bf16.msra.mxu1 %v5609_v42 }
 0x56a   :  { %5383 = vmatprep.subr.bf16.mxu1 %v5610_v58 }
 0x56d   :  { %5384 = vmatpush3.bf16.msra.mxu1 %v5610_v58 }
 0x5f7   :  { %v5355_v27 = vpop.f32.mrb[16].mxu1 }
 0x5f8   :  { %v1705_v10 = vadd.f32 %v5355_v27, %v1613_v34  ;;  %v1696_v26 = vpop.f32.mrb[17].mxu1 }
 0x5f9   :  { %v1697_v6 = vadd.f32 %v1696_v26, %v1613_v34  ;;  %v5356_v57 = vpop.f32.mrb[18].mxu1 }
 0x5fa   :  { %v1708_v50 = vadd.f32 %v5356_v57, %v1613_v34  ;;  %v1699_v21 = vpop.f32.mrb[19].mxu1  ;;  %v1761_v56 = vmax.f32 %v1705_v10, 0.0 }
 0x5fb   :  { %v1700_v46 = vadd.f32 %v1699_v21, %v1613_v34  ;;  %v1759_v42 = vmax.f32 %v1697_v6, 0.0 }
 0x5fc   :  { %v1762_v28 = vmax.f32 %v1708_v50, 0.0 }
 0x5fd   :  { %v1760_v58 = vmax.f32 %v1700_v46, 0.0 }
 0x5fe   :  { %v1776_v30 = vpack.c.bf16 %v1762_v28, %v1761_v56 }
 0x5ff   :  { %v1775_v45 = vpack.c.bf16 %v1760_v58, %v1759_v42 }
 0x601   :  { %5385 = vmatprep.mubr.bf16.mxu1 %v1775_v45 }
 0x602   :  { %5386 = vmatmul.mubr.bf16.vlgmr.msra.gmra.mrb[32].mxu1 %v1776_v30 }
 0x607   :  { %v5359_v32 = vpop.f32.mrb[20].mxu1 }
 0x608   :  { %v1721_v31 = vadd.f32 %v5359_v32, %v1613_v34  ;;  %v1712_v15 = vpop.f32.mrb[21].mxu1 }
 0x609   :  { %v1713_v5 = vadd.f32 %v1712_v15, %v1613_v34  ;;  %v5360_v7 = vpop.f32.mrb[22].mxu1 }
 0x60a   :  { %v1724_v27 = vadd.f32 %v5360_v7, %v1613_v34  ;;  %v1715_v53 = vpop.f32.mrb[23].mxu1  ;;  %v1765_v3 = vmax.f32 %v1721_v31, 0.0 }
 0x60b   :  { %v1716_v26 = vadd.f32 %v1715_v53, %v1613_v34  ;;  %v1763_v22 = vmax.f32 %v1713_v5, 0.0 }
 0x60c   :  { %v1766_v57 = vmax.f32 %v1724_v27, 0.0 }
 0x60d   :  { %v1764_v21 = vmax.f32 %v1716_v26, 0.0 }
 0x60e   :  { %v1778_v10 = vpack.c.bf16 %v1766_v57, %v1765_v3 }
 0x60f   :  { %v1777_v50 = vpack.c.bf16 %v1764_v21, %v1763_v22 }
 0x611   :  { %5389 = vmatprep.mubr.bf16.mxu1 %v1777_v50 }
 0x612   :  { %5390 = vmatmul.mubr.bf16.gmra.mrb[36].mxu1 %v1778_v10 }
 0x617   :  { %v5363_v6 = vpop.f32.mrb[24].mxu1 }
 0x618   :  { %v1737_v46 = vadd.f32 %v5363_v6, %v1613_v34  ;;  %v1728_v45 = vpop.f32.mrb[25].mxu1 }
 0x619   :  { %v1729_v30 = vadd.f32 %v1728_v45, %v1613_v34  ;;  %v5364_v56 = vpop.f32.mrb[26].mxu1 }
 0x61a   :  { %v1740_v32 = vadd.f32 %v5364_v56, %v1613_v34  ;;  %v1731_v28 = vpop.f32.mrb[27].mxu1  ;;  %v1769_v42 = vmax.f32 %v1737_v46, 0.0 }
 0x61b   :  { %v1732_v15 = vadd.f32 %v1731_v28, %v1613_v34  ;;  %v1767_v58 = vmax.f32 %v1729_v30, 0.0  ;;  %v8999_v30 = vld [vmem:[#allocation10_spill] sm:$0xff] }
 0x61c   :  { %v1770_v7 = vmax.f32 %v1740_v32, 0.0 }
 0x61d   :  { %v1768_v53 = vmax.f32 %v1732_v15, 0.0  ;;  %v1786_v15 = vrot.slane %v7145_v14, %v8999_v30 }
 0x61e   :  { %v1780_v31 = vpack.c.bf16 %v1770_v7, %v1769_v42 }
 0x61f   :  { %v1779_v27 = vpack.c.bf16 %v1768_v53, %v1767_v58 }
 0x621   :  { %5393 = vmatprep.mubr.bf16.mxu1 %v1779_v27 }
 0x622   :  { %5394 = vmatmul.mubr.bf16.gmra.mrb[40].mxu1 %v1780_v31 }
 0x627   :  { %v5367_v3 = vpop.f32.mrb[28].mxu1 }
 0x628   :  { %v1753_v22 = vadd.f32 %v5367_v3, %v1613_v34  ;;  %v1744_v5 = vpop.f32.mrb[29].mxu1 }
 0x629   :  { %v1745_v26 = vadd.f32 %v1744_v5, %v1613_v34  ;;  %v5368_v57 = vpop.f32.mrb[30].mxu1 }
 0x62a   :  { %v1756_v21 = vadd.f32 %v5368_v57, %v1613_v34  ;;  %v1747_v10 = vpop.f32.mrb[31].mxu1  ;;  %v1773_v6 = vmax.f32 %v1753_v22, 0.0 }
 0x62b   :  { %v1748_v50 = vadd.f32 %v1747_v10, %v1613_v34  ;;  %v1771_v56 = vmax.f32 %v1745_v26, 0.0 }
 0x62c   :  { %v1774_v45 = vmax.f32 %v1756_v21, 0.0 }
 0x62d   :  { %v1772_v28 = vmax.f32 %v1748_v50, 0.0 }
 0x62e   :  { %v1782_v46 = vpack.c.bf16 %v1774_v45, %v1773_v6 }
 0x62f   :  { %v1781_v32 = vpack.c.bf16 %v1772_v28, %v1771_v56 }
 0x631   :  { %5397 = vmatprep.mubr.bf16.mxu1 %v1781_v32 }
 0x632   :  { %5398 = vmatmul.mubr.bf16.gmra.mrb[44].mxu1 %v1782_v46 }
 0x6d5   :  { %v5387_v42 = vpop.f32.mrb[32].mxu1 }
 0x6d6   :  { %v1869_v7 = vpop.f32.mrb[33].mxu1  ;;  %v7153_v27 = vadd.f32 %v5387_v42, %v1786_v15 }
 0x6d7   :  { %v7151_v58 = vadd.f32 %v1869_v7, %v1786_v15  ;;  %v5388_v53 = vpop.f32.mrb[34].mxu1 }
 0x6d8   :  { %v1872_v31 = vpop.f32.mrb[35].mxu1  ;;  %v7158_v22 = vadd.f32 %v5388_v53, %v1786_v15  ;;  %v1934_v26 = vmax.f32 %v7153_v27, 0.0 }
 0x6d9   :  { %v7155_v34 = vadd.f32 %v1872_v31, %v1786_v15  ;;  %v8904_v3 = vmax.f32 %v7151_v58, 0.0  ;;  %v9000_v44 = vmax.f32 %v7151_v58, 0.0 }
 0x6da   :  { %v1935_v21 = vmax.f32 %v7158_v22, 0.0 }
 0x6db   :  { %v1933_v5 = vmax.f32 %v7155_v34, 0.0 }
 0x6dd   :  { %v1948_v57 = vadd.f32 %v1933_v5, %v8904_v3 }
 0x6df   :  { %v1949_v10 = vadd.f32 %v1948_v57, %v1934_v26 }
 0x6e1   :  { %v1950_v50 = vadd.f32 %v1949_v10, %v1935_v21 }
 0x6e5   :  { %v5391_v6 = vpop.f32.mrb[36].mxu1 }
 0x6e6   :  { %v1885_v45 = vpop.f32.mrb[37].mxu1  ;;  %v1894_v32 = vadd.f32 %v5391_v6, %v1786_v15 }
 0x6e7   :  { %v1886_v56 = vadd.f32 %v1885_v45, %v1786_v15  ;;  %v5392_v28 = vpop.f32.mrb[38].mxu1 }
 0x6e8   :  { %v1888_v46 = vpop.f32.mrb[39].mxu1  ;;  %v1897_v31 = vadd.f32 %v5392_v28, %v1786_v15  ;;  %v1938_v30 = vmax.f32 %v1894_v32, 0.0 }
 0x6e9   :  { %v1936_v42 = vmax.f32 %v1886_v56, 0.0  ;;  %v1889_v7 = vadd.f32 %v1888_v46, %v1786_v15 }
 0x6ea   :  { %v1939_v55 = vmax.f32 %v1897_v31, 0.0 }
 0x6eb   :  { %v1951_v53 = vadd.f32 %v1950_v50, %v1936_v42  ;;  %v1937_v34 = vmax.f32 %v1889_v7, 0.0 }
 0x6ed   :  { %v1952_v27 = vadd.f32 %v1951_v53, %v1937_v34 }
 0x6ef   :  { %v1953_v8 = vadd.f32 %v1952_v27, %v1938_v30 }
 0x6f1   :  { %v1954_v3 = vadd.f32 %v1953_v8, %v1939_v55 }
 0x6f5   :  { %v5395_v47 = vpop.f32.mrb[40].mxu1 }
 0x6f6   :  { %v1901_v22 = vpop.f32.mrb[41].mxu1  ;;  %v1910_v17 = vadd.f32 %v5395_v47, %v1786_v15 }
 0x6f7   :  { %v1902_v57 = vadd.f32 %v1901_v22, %v1786_v15  ;;  %v5396_v10 = vpop.f32.mrb[42].mxu1 }
 0x6f8   :  { %v1904_v33 = vpop.f32.mrb[43].mxu1  ;;  %v1913_v6 = vadd.f32 %v5396_v10, %v1786_v15  ;;  %v1942_v46 = vmax.f32 %v1910_v17, 0.0 }
 0x6f9   :  { %v1940_v45 = vmax.f32 %v1902_v57, 0.0  ;;  %v1905_v41 = vadd.f32 %v1904_v33, %v1786_v15 }
 0x6fa   :  { %v1943_v28 = vmax.f32 %v1913_v6, 0.0 }
 0x6fb   :  { %v1955_v52 = vadd.f32 %v1954_v3, %v1940_v45  ;;  %v1941_v56 = vmax.f32 %v1905_v41, 0.0 }
 0x6fd   :  { %v1956_v50 = vadd.f32 %v1955_v52, %v1941_v56 }
 0x6ff   :  { %v1957_v7 = vadd.f32 %v1956_v50, %v1942_v46 }
 0x701   :  { %v1958_v32 = vadd.f32 %v1957_v7, %v1943_v28 }
 0x705   :  { %v5399_v53 = vpop.f32.mrb[44].mxu1 }
 0x706   :  { %v1917_v31 = vpop.f32.mrb[45].mxu1  ;;  %v1926_v61 = vadd.f32 %v5399_v53, %v1786_v15 }
 0x707   :  { %v1918_v27 = vadd.f32 %v1917_v31, %v1786_v15  ;;  %v5400_v8 = vpop.f32.mrb[46].mxu1 }
 0x708   :  { %v1920_v2 = vpop.f32.mrb[47].mxu1  ;;  %v1929_v47 = vadd.f32 %v5400_v8, %v1786_v15  ;;  %v1946_v33 = vmax.f32 %v1926_v61, 0.0 }
 0x709   :  { %v1944_v22 = vmax.f32 %v1918_v27, 0.0  ;;  %v1921_v35 = vadd.f32 %v1920_v2, %v1786_v15 }
 0x70a   :  { %v1947_v10 = vmax.f32 %v1929_v47, 0.0 }
 0x70b   :  { %v1959_v24 = vadd.f32 %v1958_v32, %v1944_v22  ;;  %v1945_v57 = vmax.f32 %v1921_v35, 0.0 }
 0x70d   :  { %v1960_v3 = vadd.f32 %v1959_v24, %v1945_v57 }
 0x70f   :  { %v1961_v41 = vadd.f32 %v1960_v3, %v1946_v33 }
 0x711   :  { %v1962_v17 = vadd.f32 %v1961_v41, %v1947_v10 }
 0x713   :  { %v1963_v52 = vrot.slane %v1962_v17, 4 }
 0x715   :  { %v1964_v6 = vadd.f32 %v1963_v52, %v1962_v17 }
 0x717   :  { %v1965_v50 = vrot.slane %v1964_v6, 2 }
 0x719   :  { %v1966_v7 = vadd.f32 %v1965_v50, %v1964_v6 }
 0x71b   :  { %v1967_v59 = vrot.slane %v1966_v7, 1 }
 0x71d   :  { %v1968_v60 = vadd.f32 %v1967_v59, %v1966_v7 }
 0x71f   :  { %v1969_v31 = vmul.f32 0.0078125, %v1968_v60 }
 0x721   :  { %v1970_v53 = vsub.f32 %v9000_v44, %v1969_v31  ;;  %v1971_v27 = vsub.f32 %v1933_v5, %v1969_v31  ;;  %v1972_v2 = vsub.f32 %v1934_v26, %v1969_v31  ;;  %v1973_v32 = vsub.f32 %v1935_v21, %v1969_v31 }
 0x722   :  { %v1974_v15 = vsub.f32 %v1936_v42, %v1969_v31  ;;  %v1975_v35 = vsub.f32 %v1937_v34, %v1969_v31  ;;  %v1976_v61 = vsub.f32 %v1938_v30, %v1969_v31  ;;  %v1977_v24 = vsub.f32 %v1939_v55, %v1969_v31 }
 0x723   :  { %v1978_v8 = vsub.f32 %v1940_v45, %v1969_v31  ;;  %v1979_v47 = vsub.f32 %v1941_v56, %v1969_v31  ;;  %v1980_v3 = vsub.f32 %v1942_v46, %v1969_v31  ;;  %v1981_v41 = vsub.f32 %v1943_v28, %v1969_v31 }
 0x724   :  { %v1982_v17 = vsub.f32 %v1944_v22, %v1969_v31  ;;  %v1983_v52 = vsub.f32 %v1945_v57, %v1969_v31  ;;  %v1984_v6 = vsub.f32 %v1946_v33, %v1969_v31  ;;  %v1985_v50 = vsub.f32 %v1947_v10, %v1969_v31 }
 0x725   :  { %v1986_v59 = vmul.f32 %v1970_v53, %v1970_v53  ;;  %v1987_v60 = vmul.f32 %v1971_v27, %v1971_v27  ;;  %v1988_v7 = vmul.f32 %v1972_v2, %v1972_v2  ;;  %v1989_v44 = vmul.f32 %v1973_v32, %v1973_v32 }
 0x726   :  { %v1990_v26 = vmul.f32 %v1974_v15, %v1974_v15  ;;  %v1991_v42 = vmul.f32 %v1975_v35, %v1975_v35  ;;  %v1992_v30 = vmul.f32 %v1976_v61, %v1976_v61  ;;  %v1993_v45 = vmul.f32 %v1977_v24, %v1977_v24 }
 0x727   :  { %v2002_v58 = vadd.f32 %v1987_v60, %v1986_v59  ;;  %v1994_v46 = vmul.f32 %v1978_v8, %v1978_v8  ;;  %v1995_v22 = vmul.f32 %v1979_v47, %v1979_v47  ;;  %v1996_v33 = vmul.f32 %v1980_v3, %v1980_v3 }
 0x728   :  { %v1997_v31 = vmul.f32 %v1981_v41, %v1981_v41  ;;  %v1998_v12 = vmul.f32 %v1982_v17, %v1982_v17  ;;  %v1999_v60 = vmul.f32 %v1983_v52, %v1983_v52 }
 0x729   :  { %v2003_v5 = vadd.f32 %v2002_v58, %v1988_v7  ;;  %v2000_v58 = vmul.f32 %v1984_v6, %v1984_v6 }
 0x72b   :  { %v2004_v21 = vadd.f32 %v2003_v5, %v1989_v44  ;;  %v2001_v5 = vmul.f32 %v1985_v50, %v1985_v50 }
 0x72d   :  { %v2005_v34 = vadd.f32 %v2004_v21, %v1990_v26 }
 0x72f   :  { %v2006_v55 = vadd.f32 %v2005_v34, %v1991_v42 }
 0x731   :  { %v2007_v56 = vadd.f32 %v2006_v55, %v1992_v30 }
 0x733   :  { %v2008_v28 = vadd.f32 %v2007_v56, %v1993_v45 }
 0x735   :  { %v2009_v57 = vadd.f32 %v2008_v28, %v1994_v46 }
 0x737   :  { %v2010_v10 = vadd.f32 %v2009_v57, %v1995_v22 }
 0x739   :  { %v2011_v16 = vadd.f32 %v2010_v10, %v1996_v33 }
 0x73b   :  { %v2012_v59 = vadd.f32 %v2011_v16, %v1997_v31 }
 0x73d   :  { %v2013_v7 = vadd.f32 %v2012_v59, %v1998_v12 }
 0x73f   :  { %v2014_v44 = vadd.f32 %v2013_v7, %v1999_v60 }
 0x741   :  { %v2015_v26 = vadd.f32 %v2014_v44, %v2000_v58 }
 0x743   :  { %v2016_v21 = vadd.f32 %v2015_v26, %v2001_v5 }
 0x745   :  { %v2017_v42 = vrot.slane %v2016_v21, 4 }
 0x747   :  { %v2018_v34 = vadd.f32 %v2017_v42, %v2016_v21 }
 0x749   :  { %v2019_v30 = vrot.slane %v2018_v34, 2 }
 0x74b   :  { %v2020_v55 = vadd.f32 %v2019_v30, %v2018_v34 }
 0x74d   :  { %v2021_v45 = vrot.slane %v2020_v55, 1 }
 0x74f   :  { %v2022_v56 = vadd.f32 %v2021_v45, %v2020_v55 }
 0x751   :  { %v2023_v46 = vmul.f32 0.0078125, %v2022_v56 }
 0x753   :  { %v2024_v28 = vmax.f32 %v2023_v46, 0.0 }
 0x755   :  { %v2025_v22 = vadd.f32 1e-05, %v2024_v28 }
 0x757   :  { %5649 = vrsqrt.f32 %v2025_v22 }
 0x761   :  { %v5650_v57 = vpop.eup %5649 }
 0x762   :  { %v2027_v33 = vmul.f32 %v5650_v57, %v1970_v53  ;;  %v2028_v16 = vmul.f32 %v5650_v57, %v1971_v27  ;;  %v2029_v10 = vmul.f32 %v5650_v57, %v1972_v2  ;;  %v2030_v12 = vmul.f32 %v5650_v57, %v1973_v32  ;;  %v9001_v53 = vld [vmem:[#allocation21_spill] sm:$0xff] }
 0x763   :  { %v2031_v31 = vmul.f32 %v5650_v57, %v1974_v15  ;;  %v2032_v59 = vmul.f32 %v5650_v57, %v1975_v35  ;;  %v2033_v60 = vmul.f32 %v5650_v57, %v1976_v61  ;;  %v2034_v7 = vmul.f32 %v5650_v57, %v1977_v24  ;;  %v9002_v15 = vld [vmem:[#allocation5_spill] sm:$0xff] }
 0x764   :  { %v2035_v58 = vmul.f32 %v5650_v57, %v1978_v8  ;;  %v2036_v44 = vmul.f32 %v5650_v57, %v1979_v47  ;;  %v2037_v5 = vmul.f32 %v5650_v57, %v1980_v3  ;;  %v2038_v26 = vmul.f32 %v5650_v57, %v1981_v41 }
 0x765   :  { %v7167_v21 = vmul.f32 %v5650_v57, %v1982_v17  ;;  %v7169_v42 = vmul.f32 %v5650_v57, %v1983_v52  ;;  %v7171_v34 = vmul.f32 %v5650_v57, %v1984_v6  ;;  %v7173_v30 = vmul.f32 %v5650_v57, %v1985_v50 }
 0x766   :  { %v7177_v27 = vrot.slane %v7145_v14, %v9001_v53  ;;  %v7183_v35 = vrot.slane %v7145_v14, %v9002_v15 }
 0x768   :  { %v2047_v2 = vmul.f32 %v7177_v27, %v2027_v33  ;;  %v2048_v32 = vmul.f32 %v7177_v27, %v2028_v16  ;;  %v2049_v61 = vmul.f32 %v7177_v27, %v2029_v10  ;;  %v2050_v47 = vmul.f32 %v7177_v27, %v2030_v12 }
 0x769   :  { %v2051_v3 = vmul.f32 %v7177_v27, %v2031_v31  ;;  %v2052_v6 = vmul.f32 %v7177_v27, %v2032_v59  ;;  %v2053_v55 = vmul.f32 %v7177_v27, %v2033_v60  ;;  %v2054_v22 = vmul.f32 %v7177_v27, %v2034_v7 }
 0x76a   :  { %v2067_v24 = vadd.f32 %v7183_v35, %v2047_v2  ;;  %v2068_v8 = vadd.f32 %v7183_v35, %v2048_v32  ;;  %v2069_v41 = vadd.f32 %v7183_v35, %v2049_v61  ;;  %v2070_v50 = vadd.f32 %v7183_v35, %v2050_v47  ;;  %v2214_v2 = vpop.permute.xlu1 %2213  ;;  %v2219_v32 = vpop.permute.xlu0 %2218 }
 0x76b   :  { %v2071_v45 = vadd.f32 %v7183_v35, %v2051_v3  ;;  %v2072_v57 = vadd.f32 %v7183_v35, %v2052_v6  ;;  %v2055_v12 = vmul.f32 %v7177_v27, %v2035_v58  ;;  %v2073_v31 = vadd.f32 %v7183_v35, %v2053_v55 }
 0x76c   :  { %v2099_v17 = vmul.f32 0.01, %v2067_v24  ;;  %v2100_v52 = vmul.f32 0.01, %v2068_v8  ;;  %vm2083_vm4 = vcmp.gt.f32.partialorder %v2067_v24, 0.0  ;;  %vm2084_vm5 = vcmp.gt.f32.partialorder %v2068_v8, 0.0 }
 0x76d   :  { %v2101_v56 = vmul.f32 0.01, %v2069_v41  ;;  %vm2085_vm6 = vcmp.gt.f32.partialorder %v2069_v41, 0.0  ;;  %v2102_v33 = vmul.f32 0.01, %v2070_v50  ;;  %vm2086_vm7 = vcmp.gt.f32.partialorder %v2070_v50, 0.0 }
 0x76e   :  { %v2115_v46 = vsel %vm2083_vm4, %v2067_v24, %v2099_v17  ;;  %v2116_v28 = vsel %vm2084_vm5, %v2068_v8, %v2100_v52  ;;  %v2103_v59 = vmul.f32 0.01, %v2071_v45  ;;  %vm2087_vm8 = vcmp.gt.f32.partialorder %v2071_v45, 0.0  ;;  %v2224_v52 = vpop.permute.xlu1 %2223 }
 0x76f   :  { %v2131_v16 = vadd.f32 %v2115_v46, %v6864_v23  ;;  %v2132_v10 = vadd.f32 %v2116_v28, %v6867_v18  ;;  %v2117_v60 = vsel %vm2085_vm6, %v2069_v41, %v2101_v56  ;;  %v2056_v61 = vmul.f32 %v7177_v27, %v2036_v44  ;;  %v2229_v28 = vpop.permute.xlu0 %2228 }
 0x770   :  { %v2074_v7 = vadd.f32 %v7183_v35, %v2054_v22  ;;  %v2104_v24 = vmul.f32 0.01, %v2072_v57  ;;  %v2118_v8 = vsel %vm2086_vm7, %v2070_v50, %v2102_v33  ;;  %vm2088_vm9 = vcmp.gt.f32.partialorder %v2072_v57, 0.0 }
 0x771   :  { %v2133_v23 = vadd.f32 %v2117_v60, %v6875_v4  ;;  %v7204_v47 = vmul.f32 %v2214_v2, %v2131_v16  ;;  %v7206_v18 = vmul.f32 %v2219_v32, %v2132_v10  ;;  %v2057_v58 = vmul.f32 %v7177_v27, %v2037_v5 }
 0x772   :  { %v2075_v3 = vadd.f32 %v7183_v35, %v2055_v12  ;;  %v2105_v41 = vmul.f32 0.01, %v2073_v31  ;;  %v2119_v17 = vsel %vm2087_vm8, %v2071_v45, %v2103_v59  ;;  %vm2089_vm10 = vcmp.gt.f32.partialorder %v2073_v31, 0.0  ;;  %v2234_v16 = vpop.permute.xlu1 %2233 }
 0x773   :  { %v2134_v44 = vadd.f32 %v2118_v8, %v6878_v40  ;;  %v2058_v6 = vmul.f32 %v7177_v27, %v2038_v26  ;;  %v2076_v50 = vadd.f32 %v7183_v35, %v2056_v61  ;;  %v2106_v55 = vmul.f32 0.01, %v2074_v7  ;;  %v2239_v2 = vpop.permute.xlu0 %2238 }
 0x774   :  { %v2120_v4 = vsel %vm2088_vm9, %v2072_v57, %v2104_v24  ;;  %vm2090_vm11 = vcmp.gt.f32.partialorder %v2074_v7, 0.0  ;;  %v2135_v56 = vadd.f32 %v2119_v17, %v6887_v54  ;;  %v7214_v46 = vmul.f32 %v2224_v52, %v2133_v23 }
 0x775   :  { %v2307_v5 = vadd.f32 %v7206_v18, %v7204_v47  ;;  %v2059_v45 = vmul.f32 %v7177_v27, %v7167_v21  ;;  %v2077_v40 = vadd.f32 %v7183_v35, %v2057_v58  ;;  %v2107_v22 = vmul.f32 0.01, %v2075_v3 }
 0x776   :  { %v2121_v26 = vsel %vm2089_vm10, %v2073_v31, %v2105_v41  ;;  %vm2091_vm12 = vcmp.gt.f32.partialorder %v2075_v3, 0.0  ;;  %v2136_v33 = vadd.f32 %v2120_v4, %v6890_v63  ;;  %v7222_v57 = vmul.f32 %v2229_v28, %v2134_v44  ;;  %v2244_v23 = vpop.permute.xlu1 %2243 }
 0x777   :  { %v2308_v54 = vadd.f32 %v2307_v5, %v7214_v46  ;;  %v2060_v10 = vmul.f32 %v7177_v27, %v7169_v42  ;;  %v2078_v12 = vadd.f32 %v7183_v35, %v2058_v6  ;;  %v2108_v59 = vmul.f32 0.01, %v2076_v50  ;;  %v2249_v52 = vpop.permute.xlu0 %2248 }
 0x778   :  { %v2122_v21 = vsel %vm2090_vm11, %v2074_v7, %v2106_v55  ;;  %vm2092_vm13 = vcmp.gt.f32.partialorder %v2076_v50, 0.0  ;;  %v2137_v60 = vadd.f32 %v2121_v26, %v6903_v36  ;;  %v7230_v31 = vmul.f32 %v2234_v16, %v2135_v56 }
 0x779   :  { %v2309_v63 = vadd.f32 %v2308_v54, %v7222_v57  ;;  %v2061_v32 = vmul.f32 %v7177_v27, %v7171_v34  ;;  %v2079_v61 = vadd.f32 %v7183_v35, %v2059_v45  ;;  %v2109_v24 = vmul.f32 0.01, %v2077_v40 }
 0x77a   :  { %v2123_v42 = vsel %vm2091_vm12, %v2075_v3, %v2107_v22  ;;  %vm2093_vm14 = vcmp.gt.f32.partialorder %v2077_v40, 0.0  ;;  %v2138_v8 = vadd.f32 %v2122_v21, %v6906_v43  ;;  %v7238_v7 = vmul.f32 %v2239_v2, %v2136_v33 }
 0x77b   :  { %v2310_v36 = vadd.f32 %v2309_v63, %v7230_v31  ;;  %v2062_v58 = vmul.f32 %v7177_v27, %v7173_v30  ;;  %v2080_v41 = vadd.f32 %v7183_v35, %v2060_v10  ;;  %v2110_v17 = vmul.f32 0.01, %v2078_v12  ;;  %v2259_v33 = vpop.permute.xlu0 %2258 }
 0x77c   :  { %v2124_v34 = vsel %vm2092_vm13, %v2076_v50, %v2108_v59  ;;  %vm2094_vm15 = vcmp.gt.f32.partialorder %v2078_v12, 0.0  ;;  %v2139_v44 = vadd.f32 %v2123_v42, %v6916_v39  ;;  %v7246_v3 = vmul.f32 %v2244_v23, %v2137_v60  ;;  %v2254_v50 = vpop.permute.xlu1 %2253 }
 0x77d   :  { %v2311_v43 = vadd.f32 %v2310_v36, %v7238_v7  ;;  %v2081_v6 = vadd.f32 %v7183_v35, %v2061_v32  ;;  %v2111_v55 = vmul.f32 0.01, %v2079_v61  ;;  %v2125_v4 = vsel %vm2093_vm14, %v2077_v40, %v2109_v24 }
 0x77e   :  { %vm2095_vm2 = vcmp.gt.f32.partialorder %v2079_v61, 0.0  ;;  %v2140_v30 = vadd.f32 %v2124_v34, %v6919_v37  ;;  %v2298_v27 = vmul.f32 %v2249_v52, %v2138_v8  ;;  %v2082_v5 = vadd.f32 %v7183_v35, %v2062_v58 }
 0x77f   :  { %v2312_v56 = vadd.f32 %v2311_v43, %v7246_v3  ;;  %v2112_v39 = vmul.f32 0.01, %v2080_v41  ;;  %v2126_v28 = vsel %vm2094_vm15, %v2078_v12, %v2110_v17  ;;  %vm2096_vm3 = vcmp.gt.f32.partialorder %v2080_v41, 0.0  ;;  %v2269_v2 = vpop.permute.xlu0 %2268 }
 0x780   :  { %v2141_v45 = vadd.f32 %v2125_v4, %v6925_v62  ;;  %v2299_v22 = vmul.f32 %v2254_v50, %v2139_v44  ;;  %v2113_v54 = vmul.f32 0.01, %v2081_v6  ;;  %v2127_v16 = vsel %vm2095_vm2, %v2079_v61, %v2111_v55  ;;  %v2264_v59 = vpop.permute.xlu1 %2263 }
 0x781   :  { %v2313_v26 = vadd.f32 %v2312_v56, %v2298_v27  ;;  %vm2097_vm4 = vcmp.gt.f32.partialorder %v2081_v6, 0.0  ;;  %v2142_v40 = vadd.f32 %v2126_v28, %v6930_v19  ;;  %v2300_v37 = vmul.f32 %v2259_v33, %v2140_v30 }
 0x782   :  { %v2114_v21 = vmul.f32 0.01, %v2082_v5  ;;  %v2128_v60 = vsel %vm2096_vm3, %v2080_v41, %v2112_v39  ;;  %vm2098_vm5 = vcmp.gt.f32.partialorder %v2082_v5, 0.0  ;;  %v2143_v35 = vadd.f32 %v2127_v16, %v6940_v51 }
 0x783   :  { %v2314_v10 = vadd.f32 %v2313_v26, %v2299_v22  ;;  %v2301_v12 = vmul.f32 %v2264_v59, %v2141_v45  ;;  %v2129_v62 = vsel %vm2097_vm4, %v2081_v6, %v2113_v54  ;;  %v2144_v32 = vadd.f32 %v2128_v60, %v6943_v29  ;;  %v2279_v58 = vpop.permute.xlu0 %2278 }
 0x784   :  { %v2302_v24 = vmul.f32 %v2269_v2, %v2142_v40  ;;  %v2274_v61 = vpop.permute.xlu1 %2273  ;;  %v2130_v8 = vsel %vm2098_vm5, %v2082_v5, %v2114_v21  ;;  %v2145_v19 = vadd.f32 %v2129_v62, %v6955_v20 }
 0x785   :  { %v2315_v63 = vadd.f32 %v2314_v10, %v2300_v37  ;;  %v2303_v36 = vmul.f32 %v2274_v61, %v2143_v35  ;;  %v2146_v41 = vadd.f32 %v2130_v8, %v6950_v0  ;;  %v2304_v17 = vmul.f32 %v2279_v58, %v2144_v32 }
 0x787   :  { %v2316_v42 = vadd.f32 %v2315_v63, %v2301_v12  ;;  %v2289_v52 = vpop.permute.xlu0 %2288 }
 0x788   :  { %v2284_v51 = vpop.permute.xlu1 %2283  ;;  %v2306_v6 = vmul.f32 %v2289_v52, %v2146_v41 }
 0x789   :  { %v2317_v23 = vadd.f32 %v2316_v42, %v2302_v24  ;;  %v2305_v44 = vmul.f32 %v2284_v51, %v2145_v19 }
 0x78b   :  { %v2318_v34 = vadd.f32 %v2317_v23, %v2303_v36 }
 0x78d   :  { %v2319_v43 = vadd.f32 %v2318_v34, %v2304_v17 }
 0x78f   :  { %v2320_v55 = vadd.f32 %v2319_v43, %v2305_v44 }
 0x791   :  { %v2321_v29 = vadd.f32 %v2320_v55, %v2306_v6 }
 0x793   :  { %v2322_v4 = vrot.slane %v2321_v29, 4 }
 0x795   :  { %v2323_v30 = vadd.f32 %v2322_v4, %v2321_v29  ;;  %v5611_v4 = vld [vmem:[%s8856_s5 + $0x80] sm:$0xff]  }
 0x796   :  { %5401 = vmatprep.subr.bf16.mxu1 %v5611_v4 }
 0x797   :  { %v2324_v56 = vrot.slane %v2323_v30, 2  ;;  %5402 = vmatpush3.bf16.msra.mxu1 %v5611_v4 }
 0x799   :  { %v2325_v50 = vadd.f32 %v2324_v56, %v2323_v30  ;;  %v5612_v30 = vld [vmem:[%s8856_s5 + $0x88] sm:$0xff]  }
 0x79a   :  { %5403 = vmatprep.subr.bf16.mxu1 %v5612_v30 }
 0x79b   :  { %v2326_v5 = vrot.slane %v2325_v50, 1  ;;  %5404 = vmatpush3.bf16.msra.mxu1 %v5612_v30 }
 0x79d   :  { %v2327_v20 = vadd.f32 %v2326_v5, %v2325_v50  ;;  %v5613_v5 = vld [vmem:[%s8856_s5 + $0x90] sm:$0xff]  }
 0x79e   :  { %5405 = vmatprep.subr.bf16.mxu1 %v5613_v5 }
 0x79f   :  { %v2328_v39 = vmul.f32 0.0078125, %v2327_v20  ;;  %5406 = vmatpush3.bf16.msra.mxu1 %v5613_v5  ;;  %v2485_v5 = vpack.c.bf16 %v7056_v11, %v7054_v38 }
 0x7a1   :  { %v7260_v28 = vsub.f32 %v2298_v27, %v2328_v39  ;;  %v7262_v45 = vsub.f32 %v2299_v22, %v2328_v39  ;;  %v7264_v0 = vsub.f32 %v2300_v37, %v2328_v39  ;;  %v7266_v26 = vsub.f32 %v2301_v12, %v2328_v39 }
 0x7a2   :  { %v7268_v33 = vsub.f32 %v2302_v24, %v2328_v39  ;;  %v7270_v54 = vsub.f32 %v2303_v36, %v2328_v39  ;;  %v7272_v16 = vsub.f32 %v2304_v17, %v2328_v39  ;;  %v7274_v40 = vsub.f32 %v2305_v44, %v2328_v39 }
 0x7a3   :  { %v7276_v10 = vsub.f32 %v2306_v6, %v2328_v39  ;;  %v7279_v59 = vsub.f32 %v7204_v47, %v2328_v39  ;;  %v7282_v27 = vsub.f32 %v7206_v18, %v2328_v39  ;;  %v7285_v22 = vsub.f32 %v7214_v46, %v2328_v39 }
 0x7a4   :  { %v7288_v37 = vsub.f32 %v7222_v57, %v2328_v39  ;;  %v7291_v21 = vsub.f32 %v7230_v31, %v2328_v39  ;;  %v7294_v60 = vsub.f32 %v7238_v7, %v2328_v39  ;;  %v7297_v35 = vsub.f32 %v7246_v3, %v2328_v39 }
 0x7a5   :  { %v2345_v47 = vmul.f32 %v7279_v59, %v7279_v59  ;;  %v2346_v18 = vmul.f32 %v7282_v27, %v7282_v27  ;;  %v2347_v46 = vmul.f32 %v7285_v22, %v7285_v22  ;;  %v2352_v24 = vmul.f32 %v7260_v28, %v7260_v28 }
 0x7a6   :  { %v2348_v31 = vmul.f32 %v7288_v37, %v7288_v37  ;;  %v2349_v7 = vmul.f32 %v7291_v21, %v7291_v21  ;;  %v2350_v3 = vmul.f32 %v7294_v60, %v7294_v60  ;;  %v2351_v62 = vmul.f32 %v7297_v35, %v7297_v35 }
 0x7a7   :  { %v2361_v57 = vadd.f32 %v2346_v18, %v2345_v47  ;;  %v2353_v61 = vmul.f32 %v7262_v45, %v7262_v45  ;;  %v2354_v19 = vmul.f32 %v7264_v0, %v7264_v0  ;;  %v2355_v23 = vmul.f32 %v7266_v26, %v7266_v26  ;;  %v5614_v47 = vld [vmem:[%s8856_s5 + $0x98] sm:$0xff]  }
 0x7a8   :  { %v2356_v41 = vmul.f32 %v7268_v33, %v7268_v33  ;;  %v2357_v34 = vmul.f32 %v7270_v54, %v7270_v54  ;;  %v2358_v44 = vmul.f32 %v7272_v16, %v7272_v16  ;;  %v2359_v52 = vmul.f32 %v7274_v40, %v7274_v40  ;;  %5407 = vmatprep.subr.bf16.mxu1 %v5614_v47 }
 0x7a9   :  { %v2362_v12 = vadd.f32 %v2361_v57, %v2347_v46  ;;  %v2360_v55 = vmul.f32 %v7276_v10, %v7276_v10  ;;  %v5615_v57 = vld [vmem:[%s8856_s5 + $0xa0] sm:$0xff]   ;;  %5408 = vmatpush3.bf16.msra.mxu1 %v5614_v47 }
 0x7aa   :  { %5409 = vmatprep.subr.bf16.mxu1 %v5615_v57 }
 0x7ab   :  { %v2363_v63 = vadd.f32 %v2362_v12, %v2348_v31 }
 0x7ad   :  { %v2364_v2 = vadd.f32 %v2363_v63, %v2349_v7  ;;  %5410 = vmatpush3.bf16.msra.mxu1 %v5615_v57  ;;  %v9004_v57 = vld [vmem:[#allocation29_spill] sm:$0xff] }
 0x7af   :  { %v2365_v32 = vadd.f32 %v2364_v2, %v2350_v3  ;;  %v9003_v3 = vld [vmem:[#allocation26_spill] sm:$0xff] }
 0x7b0   :  { %v7348_v2 = vrot.slane %v7145_v14, %v9003_v3 }
 0x7b1   :  { %v2366_v42 = vadd.f32 %v2365_v32, %v2351_v62  ;;  %v7352_v32 = vrot.slane %v7145_v14, %v6837_v9 }
 0x7b3   :  { %v2367_v8 = vadd.f32 %v2366_v42, %v2352_v24 }
 0x7b5   :  { %v2368_v36 = vadd.f32 %v2367_v8, %v2353_v61 }
 0x7b7   :  { %v2369_v58 = vadd.f32 %v2368_v36, %v2354_v19 }
 0x7b9   :  { %v2370_v17 = vadd.f32 %v2369_v58, %v2355_v23 }
 0x7bb   :  { %v2371_v51 = vadd.f32 %v2370_v17, %v2356_v41 }
 0x7bd   :  { %v2372_v43 = vadd.f32 %v2371_v51, %v2357_v34 }
 0x7bf   :  { %v2373_v6 = vadd.f32 %v2372_v43, %v2358_v44  ;;  %v2481_v44 = vpack.c.bf16 %v7028_v1, %v7026_v48 }
 0x7c1   :  { %v2374_v29 = vadd.f32 %v2373_v6, %v2359_v52 }
 0x7c3   :  { %v2375_v56 = vadd.f32 %v2374_v29, %v2360_v55 }
 0x7c5   :  { %v2376_v50 = vrot.slane %v2375_v56, 4 }
 0x7c7   :  { %v2377_v20 = vadd.f32 %v2376_v50, %v2375_v56 }
 0x7c9   :  { %v2378_v39 = vrot.slane %v2377_v20, 2 }
 0x7cb   :  { %v2379_v18 = vadd.f32 %v2378_v39, %v2377_v20 }
 0x7cd   :  { %v2380_v46 = vrot.slane %v2379_v18, 1 }
 0x7cf   :  { %v2381_v31 = vadd.f32 %v2380_v46, %v2379_v18 }
 0x7d1   :  { %v2382_v12 = vmul.f32 0.0078125, %v2381_v31  ;;  %v2487_v31 = vpack.c.bf16 %v9004_v57, %v7068_v49 }
 0x7d3   :  { %v2383_v7 = vmax.f32 %v2382_v12, 0.0 }
 0x7d5   :  { %v2384_v63 = vadd.f32 1e-05, %v2383_v7 }
 0x7d7   :  { %5651 = vrsqrt.f32 %v2384_v63 }
 0x7e1   :  { %v5652_v62 = vpop.eup %5651 }
 0x7e2   :  { %v2386_v24 = vmul.f32 %v5652_v62, %v7279_v59  ;;  %v2387_v42 = vmul.f32 %v5652_v62, %v7282_v27  ;;  %v2388_v61 = vmul.f32 %v5652_v62, %v7285_v22  ;;  %v2389_v8 = vmul.f32 %v5652_v62, %v7288_v37 }
 0x7e3   :  { %v2390_v19 = vmul.f32 %v5652_v62, %v7291_v21  ;;  %v2391_v36 = vmul.f32 %v5652_v62, %v7294_v60  ;;  %v2392_v23 = vmul.f32 %v5652_v62, %v7297_v35  ;;  %v2393_v58 = vmul.f32 %v5652_v62, %v7260_v28 }
 0x7e4   :  { %v2406_v41 = vmul.f32 %v7348_v2, %v2386_v24  ;;  %v2407_v14 = vmul.f32 %v7348_v2, %v2387_v42  ;;  %v2408_v59 = vmul.f32 %v7348_v2, %v2388_v61  ;;  %v2409_v27 = vmul.f32 %v7348_v2, %v2389_v8  ;;  %v9005_v42 = vld [vmem:[#allocation30_spill] sm:$0xff]  ;;  %v9006_v61 = vld [vmem:[#allocation31_spill] sm:$0xff] }
 0x7e5   :  { %v2410_v60 = vmul.f32 %v7348_v2, %v2390_v19  ;;  %v2411_v28 = vmul.f32 %v7348_v2, %v2391_v36  ;;  %v2394_v34 = vmul.f32 %v5652_v62, %v7262_v45  ;;  %v2395_v51 = vmul.f32 %v5652_v62, %v7264_v0 }
 0x7e6   :  { %v7367_v22 = vadd.f32 %v7352_v32, %v2406_v41  ;;  %v7370_v37 = vadd.f32 %v7352_v32, %v2407_v14  ;;  %v7373_v21 = vadd.f32 %v7352_v32, %v2408_v59  ;;  %v7380_v17 = vadd.f32 %v7352_v32, %v2409_v27  ;;  %v9007_v14 = vld [vmem:[#allocation32_spill] sm:$0xff]  ;;  %v9008_v59 = vld [vmem:[#allocation33_spill] sm:$0xff] }
 0x7e7   :  { %v2396_v43 = vmul.f32 %v5652_v62, %v7266_v26  ;;  %v2397_v52 = vmul.f32 %v5652_v62, %v7268_v33  ;;  %v2398_v6 = vmul.f32 %v5652_v62, %v7270_v54  ;;  %v2399_v55 = vmul.f32 %v5652_v62, %v7272_v16 }
 0x7e8   :  { %v2478_v35 = vpack.c.bf16 %v7370_v37, %v7367_v22  ;;  %v2412_v29 = vmul.f32 %v7348_v2, %v2392_v23  ;;  %v2413_v4 = vmul.f32 %v7348_v2, %v2393_v58  ;;  %v2400_v45 = vmul.f32 %v5652_v62, %v7274_v40 }
 0x7e9   :  { %v2401_v0 = vmul.f32 %v5652_v62, %v7276_v10  ;;  %v2480_v30 = vpack.c.bf16 %v7380_v17, %v7373_v21  ;;  %v7397_v26 = vadd.f32 %v7352_v32, %v2410_v60  ;;  %v7400_v33 = vadd.f32 %v7352_v32, %v2411_v28 }
 0x7ea   :  { %2495 = vmatpush1.bf16.msra.mxu0 %v2478_v35  ;;  %v2483_v54 = vpack.c.bf16 %v7042_v25, %v7040_v13  ;;  %v7405_v16 = vadd.f32 %v7352_v32, %v2412_v29  ;;  %v7408_v40 = vadd.f32 %v7352_v32, %v2413_v4  ;;  %v2414_v56 = vmul.f32 %v7348_v2, %v2394_v34  ;;  %v9009_v34 = vld [vmem:[#allocation34_spill] sm:$0xff]  ;;  %v5702_v29 = vld [vmem:[%s8852_s1 + $0x20] sm:$0xff]   ;;  %v5703_v4 = vld [vmem:[%s8852_s1 + $0x28] sm:$0xff]  }
 0x7eb   :  { %2496 = vmatprep.subr.bf16.mxu0 %v2481_v44  ;;  %v2482_v10 = vpack.c.bf16 %v7400_v33, %v7397_v26  ;;  %v2415_v50 = vmul.f32 %v7348_v2, %v2395_v51  ;;  %v2416_v18 = vmul.f32 %v7348_v2, %v2396_v43  ;;  %v2417_v46 = vmul.f32 %v7348_v2, %v2397_v52  ;;  %v9010_v51 = vld [vmem:[#allocation35_spill] sm:$0xff]  ;;  %v5698_v43 = vld [vmem:[%s8852_s1] sm:$0xff]  }
 0x7ec   :  { %v2484_v20 = vpack.c.bf16 %v7408_v40, %v7405_v16  ;;  %v7419_v39 = vadd.f32 %v7352_v32, %v2414_v56  ;;  %v2418_v12 = vmul.f32 %v7348_v2, %v2398_v6  ;;  %v2419_v24 = vmul.f32 %v7348_v2, %v2399_v55  ;;  %v5700_v6 = vld [vmem:[%s8852_s1 + $0x10] sm:$0xff]   ;;  %v5701_v55 = vld [vmem:[%s8852_s1 + $0x18] sm:$0xff]  }
 0x7ed   :  { %v7422_v47 = vadd.f32 %v7352_v32, %v2415_v50  ;;  %v7432_v63 = vadd.f32 %v7352_v32, %v2416_v18  ;;  %v7435_v62 = vadd.f32 %v7352_v32, %v2417_v46  ;;  %v2489_v8 = vpack.c.bf16 %v9006_v61, %v9005_v42  ;;  %v9012_v46 = vld [vmem:[#allocation27_spill] sm:$0xff] }
 0x7ee   :  { %2497 = vmatpush1.bf16.msra.mxu0 %v2480_v30  ;;  %v2420_v19 = vmul.f32 %v7348_v2, %v2400_v45  ;;  %v7444_v23 = vadd.f32 %v7352_v32, %v2418_v12  ;;  %v7447_v58 = vadd.f32 %v7352_v32, %v2419_v24  ;;  %v2421_v41 = vmul.f32 %v7348_v2, %v2401_v0  ;;  %v5704_v45 = vld [vmem:[%s8852_s1 + $0x30] sm:$0xff]   ;;  %v5705_v0 = vld [vmem:[%s8852_s1 + $0x38] sm:$0xff]   ;;  %v5616_v30 = vld [vmem:[%s8856_s5 + $0xa8] sm:$0xff]  }
 0x7ef   :  { %2498 = vmatprep.subr.bf16.mxu0 %v2483_v54  ;;  %v2486_v7 = vpack.c.bf16 %v7422_v47, %v7419_v39  ;;  %v2488_v36 = vpack.c.bf16 %v7435_v62, %v7432_v63  ;;  %v2491_v27 = vpack.c.bf16 %v9008_v59, %v9007_v14  ;;  %v2493_v44 = vpack.c.bf16 %v9010_v51, %v9009_v34  ;;  %v5617_v54 = vld [vmem:[%s8856_s5 + $0xb0] sm:$0xff]  }
 0x7f0   :  { %v2490_v60 = vpack.c.bf16 %v7447_v58, %v7444_v23  ;;  %v7455_v28 = vadd.f32 %v7352_v32, %v2420_v19  ;;  %v7458_v35 = vadd.f32 %v7352_v32, %v2421_v41  ;;  %v9011_v52 = vmov 0   ;;  %v5699_v32 = vld [vmem:[%s8852_s1 + $0x8] sm:$0xff]   ;;  %5411 = vmatprep.subr.bf16.mxu1 %v5616_v30  ;;  %s5112_s1 = sld [smem:[#allocation2 + $0x2]] }
 0x7f1   :  { %5412 = vmatpush3.bf16.msra.mxu1 %v5616_v30 }
 0x7f2   :  { %2499 = vmatpush1.bf16.msra.mxu0 %v2482_v10  ;;  %v2492_v2 = vpack.c.bf16 %v7458_v35, %v7455_v28  ;;  %5413 = vmatprep.subr.bf16.mxu1 %v5617_v54  ;;  %v5618_v10 = vld [vmem:[%s8856_s5 + $0xb8] sm:$0xff]  }
 0x7f3   :  { %2500 = vmatprep.subr.bf16.mxu0 %v2485_v5 }
 0x7f5   :  { %5414 = vmatpush3.bf16.msra.mxu1 %v5617_v54 }
 0x7f6   :  { %2501 = vmatpush1.bf16.msra.mxu0 %v2484_v20  ;;  %5415 = vmatprep.subr.bf16.mxu1 %v5618_v10  ;;  %s2608_s17 = sadd.f32 1.0, %s5112_s1 }
 0x7f7   :  { %2502 = vmatprep.subr.bf16.mxu0 %v2487_v31 }
 0x7f8   :  { %v7504_v56 = vstv %s2608_s17 }
 0x7f9   :  { %5416 = vmatpush3.bf16.msra.mxu1 %v5618_v10  ;;  %v2610_v5 = vmul.f32 %v7504_v56, %v7367_v22  ;;  %v2611_v18 = vmul.f32 %v7504_v56, %v7370_v37 }
 0x7fa   :  { %2503 = vmatpush1.bf16.msra.mxu0 %v2486_v7 }
 0x7fb   :  { %2504 = vmatprep.subr.bf16.mxu0 %v2489_v8 }
 0x7fe   :  { %2505 = vmatpush1.bf16.msra.mxu0 %v2488_v36  ;;  %v9013_v36 = vld [vmem:[#allocation28_spill] sm:$0xff] }
 0x7ff   :  { %2506 = vmatprep.subr.bf16.mxu0 %v2491_v27 }
 0x802   :  { %2507 = vmatpush1.bf16.msra.mxu0 %v2490_v60 }
 0x803   :  { %2508 = vmatprep.subr.bf16.mxu0 %v2493_v44 }
 0x806   :  { %2509 = vmatpush1.bf16.msra.mxu0 %v2492_v2 }
 0x809   :  { %2527 = vmatmul.mubr.bf16.vlgmr.msra.gmra.mrb[48].mxu0 %v5698_v43 }
 0x80a   :  { %2536 = vmatprep.mubr.bf16.mxu0 %v9011_v52 }
 0x811   :  { %2537 = vmatmul.mubr.bf16.gmra.mrb[52].mxu0 %v5699_v32 }
 0x812   :  { %2546 = vmatprep.mubr.bf16.mxu0 %v9011_v52 }
 0x819   :  { %2547 = vmatmul.mubr.bf16.gmra.mrb[56].mxu0 %v5700_v6  ;;  %v2612_v6 = vmul.f32 %v7504_v56, %v7373_v21 }
 0x81a   :  { %2556 = vmatprep.mubr.bf16.mxu0 %v9011_v52 }
 0x821   :  { %2557 = vmatmul.mubr.bf16.gmra.mrb[60].mxu0 %v5701_v55 }
 0x822   :  { %2566 = vmatprep.mubr.bf16.mxu0 %v9011_v52 }
 0x829   :  { %2567 = vmatmul.mubr.bf16.gmra.mrb[64].mxu0 %v5702_v29  ;;  %v2613_v29 = vmul.f32 %v7504_v56, %v7380_v17 }
 0x82a   :  { %2576 = vmatprep.mubr.bf16.mxu0 %v9011_v52 }
 0x831   :  { %2577 = vmatmul.mubr.bf16.gmra.mrb[68].mxu0 %v5703_v4 }
 0x832   :  { %2586 = vmatprep.mubr.bf16.mxu0 %v9011_v52 }
 0x839   :  { %2587 = vmatmul.mubr.bf16.gmra.mrb[72].mxu0 %v5704_v45 }
 0x83a   :  { %2596 = vmatprep.mubr.bf16.mxu0 %v9011_v52  ;;  %v9015_v52 = vld [vmem:[#allocation12_spill] sm:$0xff] }
 0x841   :  { %2597 = vmatmul.mubr.bf16.gmra.mrb[76].mxu0 %v5705_v0  ;;  %v9016_v0 = vld [vmem:[#allocation7_spill] sm:$0xff] }
 0x8dc   :  { %v2528_v50 = vpop.f32.mrb[48].mxu0 }
 0x8dd   :  { %v2530_v20 = vpop.f32.mrb[49].mxu0  ;;  %v2626_v7 = vadd.f32 %v2610_v5, %v2528_v50 }
 0x8de   :  { %v3187_v31 = vadd.f32 %v2530_v20, %v9012_v46  ;;  %v2532_v12 = vpop.f32.mrb[50].mxu0 }
 0x8df   :  { %v2627_v24 = vadd.f32 %v2611_v18, %v2532_v12  ;;  %v2534_v8 = vpop.f32.mrb[51].mxu0 }
 0x8e0   :  { %v3203_v19 = vmax.f32 %v3187_v31, 0.0  ;;  %v3188_v41 = vadd.f32 %v2534_v8, %v9013_v36  ;;  %v2614_v8 = vmul.f32 %v7504_v56, %v7397_v26  ;;  %v2615_v36 = vmul.f32 %v7504_v56, %v7400_v33 }
 0x8e1   :  { %v2642_v27 = vpack.c.bf16 %v2627_v24, %v2626_v7  ;;  %v9018_v7 = vld [vmem:[#allocation9_spill] sm:$0xff] }
 0x8e2   :  { %v7512_v60 = vmin.f32 %v3203_v19, 1.0  ;;  %v3204_v44 = vmax.f32 %v3188_v41, 0.0 }
 0x8e3   :  { %5417 = vmatprep.mubr.bf16.mxu1 %v2642_v27  ;;  %v9019_v27 = vld [vmem:[#allocation13_spill] sm:$0xff] }
 0x8e4   :  { %v7514_v2 = vmin.f32 %v3204_v44, 1.0  ;;  %v2538_v43 = vpop.f32.mrb[52].mxu0  ;;  %v3235_v32 = vmul.f32 %v7512_v60, %v9015_v52 }
 0x8e5   :  { %v2540_v55 = vpop.f32.mrb[53].mxu0  ;;  %v2628_v54 = vadd.f32 %v2612_v6, %v2538_v43 }
 0x8e6   :  { %9014 = vst [vmem:[#allocation21_spill] sm:$0xff] %v7514_v2  ;;  %v3189_v4 = vadd.f32 %v2540_v55, %v7026_v48  ;;  %3253 = vperm.xlu1 %5577, %v3235_v32   ;;  %v2542_v45 = vpop.f32.mrb[54].mxu0  ;;  %v3236_v30 = vmul.f32 %v7514_v2, %v9016_v0 }
 0x8e7   :  { %v2629_v10 = vadd.f32 %v2613_v29, %v2542_v45  ;;  %v2544_v50 = vpop.f32.mrb[55].mxu0 }
 0x8e8   :  { %v3205_v5 = vmax.f32 %v3189_v4, 0.0  ;;  %v3190_v20 = vadd.f32 %v2544_v50, %v7028_v1  ;;  %3258 = vperm.xlu0 %5578, %v3236_v30   ;;  %v9022_v30 = vld [vmem:[#allocation11_spill] sm:$0xff] }
 0x8e9   :  { %v2643_v18 = vpack.c.bf16 %v2629_v10, %v2628_v54  ;;  %v2616_v10 = vmul.f32 %v7504_v56, %v7405_v16 }
 0x8ea   :  { %v7526_v46 = vmin.f32 %v3205_v5, 1.0  ;;  %v3206_v31 = vmax.f32 %v3190_v20, 0.0  ;;  %v2617_v5 = vmul.f32 %v7504_v56, %v7408_v40 }
 0x8eb   :  { %5418 = vmatmul.mubr.bf16.vlgmr.msra.gmra.mrb[48].mxu1 %v2643_v18  ;;  %v9023_v18 = vld [vmem:[#allocation14_spill] sm:$0xff] }
 0x8ec   :  { %v7528_v12 = vmin.f32 %v3206_v31, 1.0  ;;  %v2548_v48 = vpop.f32.mrb[56].mxu0  ;;  %v3237_v24 = vmul.f32 %v7526_v46, %v9018_v7 }
 0x8ed   :  { %v2550_v19 = vpop.f32.mrb[57].mxu0  ;;  %v2630_v43 = vadd.f32 %v2614_v8, %v2548_v48 }
 0x8ee   :  { %9017 = vst [vmem:[#allocation5_spill] sm:$0xff] %v7528_v12  ;;  %v3191_v1 = vadd.f32 %v2550_v19, %v7040_v13  ;;  %3263 = vperm.xlu1 %5577, %v3237_v24   ;;  %v2552_v41 = vpop.f32.mrb[58].mxu0  ;;  %v3238_v44 = vmul.f32 %v7528_v12, %v9019_v27 }
 0x8ef   :  { %v2631_v52 = vadd.f32 %v2615_v36, %v2552_v41  ;;  %v2554_v32 = vpop.f32.mrb[59].mxu0 }
 0x8f0   :  { %v3207_v6 = vmax.f32 %v3191_v1, 0.0  ;;  %v3192_v55 = vadd.f32 %v2554_v32, %v7042_v25  ;;  %3268 = vperm.xlu0 %5578, %v3238_v44   ;;  %v9026_v44 = vld [vmem:[#allocation17_spill] sm:$0xff] }
 0x8f1   :  { %v2644_v29 = vpack.c.bf16 %v2631_v52, %v2630_v43  ;;  %v2618_v52 = vmul.f32 %v7504_v56, %v7419_v39 }
 0x8f2   :  { %v7540_v4 = vmin.f32 %v3207_v6, 1.0  ;;  %v3208_v45 = vmax.f32 %v3192_v55, 0.0  ;;  %v2619_v6 = vmul.f32 %v7504_v56, %v7422_v47 }
 0x8f3   :  { %5421 = vmatprep.mubr.bf16.mxu1 %v2644_v29  ;;  %v9027_v29 = vld [vmem:[#allocation15_spill] sm:$0xff] }
 0x8f4   :  { %9020 = vst [vmem:[#allocation26_spill] sm:$0xff] %v7540_v4  ;;  %v7542_v0 = vmin.f32 %v3208_v45, 1.0  ;;  %v2558_v13 = vpop.f32.mrb[60].mxu0  ;;  %v3239_v54 = vmul.f32 %v7540_v4, %v9022_v30 }
 0x8f5   :  { %v2560_v50 = vpop.f32.mrb[61].mxu0  ;;  %v2632_v48 = vadd.f32 %v2616_v10, %v2558_v13 }
 0x8f6   :  { %9021 = vst [vmem:[#allocation29_spill] sm:$0xff] %v7542_v0  ;;  %v3193_v25 = vadd.f32 %v2560_v50, %v7054_v38  ;;  %3273 = vperm.xlu1 %5577, %v3239_v54   ;;  %v2562_v20 = vpop.f32.mrb[62].mxu0  ;;  %v3240_v31 = vmul.f32 %v7542_v0, %v9023_v18 }
 0x8f7   :  { %v2633_v7 = vadd.f32 %v2617_v5, %v2562_v20  ;;  %v2564_v24 = vpop.f32.mrb[63].mxu0 }
 0x8f8   :  { %v3209_v8 = vmax.f32 %v3193_v25, 0.0  ;;  %v3194_v19 = vadd.f32 %v2564_v24, %v7056_v11  ;;  %3278 = vperm.xlu0 %5578, %v3240_v31   ;;  %v9030_v31 = vld [vmem:[#allocation16_spill] sm:$0xff] }
 0x8f9   :  { %v2645_v36 = vpack.c.bf16 %v2633_v7, %v2632_v48  ;;  %v2620_v7 = vmul.f32 %v7504_v56, %v7432_v63 }
 0x8fa   :  { %v7554_v1 = vmin.f32 %v3209_v8, 1.0  ;;  %v3210_v41 = vmax.f32 %v3194_v19, 0.0  ;;  %v2621_v8 = vmul.f32 %v7504_v56, %v7435_v62 }
 0x8fb   :  { %5422 = vmatmul.mubr.bf16.gmra.mrb[52].mxu1 %v2645_v36  ;;  %v9031_v36 = vld [vmem:[#allocation18_spill] sm:$0xff] }
 0x8fc   :  { %9024 = vst [vmem:[#allocation30_spill] sm:$0xff] %v7554_v1  ;;  %v7556_v27 = vmin.f32 %v3210_v41, 1.0  ;;  %v2568_v38 = vpop.f32.mrb[64].mxu0  ;;  %v3241_v43 = vmul.f32 %v7554_v1, %v9026_v44 }
 0x8fd   :  { %v2570_v32 = vpop.f32.mrb[65].mxu0  ;;  %v2634_v13 = vadd.f32 %v2618_v52, %v2568_v38 }
 0x8fe   :  { %9025 = vst [vmem:[#allocation31_spill] sm:$0xff] %v7556_v27  ;;  %v3195_v11 = vadd.f32 %v2570_v32, %v7068_v49  ;;  %3283 = vperm.xlu1 %5577, %v3241_v43   ;;  %v2572_v55 = vpop.f32.mrb[66].mxu0  ;;  %v3242_v45 = vmul.f32 %v7556_v27, %v9027_v29  ;;  %v9033_v29 = vld [vmem:[#allocation19_spill] sm:$0xff] }
 0x8ff   :  { %v2635_v30 = vadd.f32 %v2619_v6, %v2572_v55  ;;  %v2574_v54 = vpop.f32.mrb[67].mxu0 }
 0x900   :  { %v3211_v10 = vmax.f32 %v3195_v11, 0.0  ;;  %v3196_v50 = vadd.f32 %v2574_v54, %v9004_v57  ;;  %3288 = vperm.xlu0 %5578, %v3242_v45  }
 0x901   :  { %v2646_v5 = vpack.c.bf16 %v2635_v30, %v2634_v13  ;;  %v2622_v30 = vmul.f32 %v7504_v56, %v7444_v23 }
 0x902   :  { %v7568_v25 = vmin.f32 %v3211_v10, 1.0  ;;  %v3212_v20 = vmax.f32 %v3196_v50, 0.0  ;;  %v2623_v10 = vmul.f32 %v7504_v56, %v7447_v58 }
 0x903   :  { %5425 = vmatprep.mubr.bf16.mxu1 %v2646_v5 }
 0x904   :  { %9028 = vst [vmem:[#allocation32_spill] sm:$0xff] %v7568_v25  ;;  %v7570_v18 = vmin.f32 %v3212_v20, 1.0  ;;  %v2578_v49 = vpop.f32.mrb[68].mxu0  ;;  %v3243_v48 = vmul.f32 %v7568_v25, %v9030_v31 }
 0x905   :  { %v2580_v24 = vpop.f32.mrb[69].mxu0  ;;  %v2636_v38 = vadd.f32 %v2620_v7, %v2578_v49 }
 0x906   :  { %9029 = vst [vmem:[#allocation33_spill] sm:$0xff] %v7570_v18  ;;  %v3197_v57 = vadd.f32 %v2580_v24, %v9005_v42  ;;  %3293 = vperm.xlu1 %5577, %v3243_v48   ;;  %v2582_v19 = vpop.f32.mrb[70].mxu0  ;;  %v3244_v41 = vmul.f32 %v7570_v18, %v9031_v36  ;;  %v9037_v36 = vld [vmem:[#allocation22_spill] sm:$0xff] }
 0x907   :  { %v2637_v44 = vadd.f32 %v2621_v8, %v2582_v19  ;;  %v2584_v43 = vpop.f32.mrb[71].mxu0 }
 0x908   :  { %v3213_v52 = vmax.f32 %v3197_v57, 0.0  ;;  %v3198_v32 = vadd.f32 %v2584_v43, %v9006_v61  ;;  %3298 = vperm.xlu0 %5578, %v3244_v41   ;;  %v9035_v61 = vld [vmem:[#allocation20_spill] sm:$0xff] }
 0x909   :  { %v2647_v6 = vpack.c.bf16 %v2637_v44, %v2636_v38  ;;  %v2624_v44 = vmul.f32 %v7504_v56, %v7455_v28 }
 0x90a   :  { %v7582_v11 = vmin.f32 %v3213_v52, 1.0  ;;  %v3214_v55 = vmax.f32 %v3198_v32, 0.0  ;;  %v2625_v52 = vmul.f32 %v7504_v56, %v7458_v35  ;;  %v9041_v56 = vld [vmem:[#allocation24_spill] sm:$0xff] }
 0x90b   :  { %5426 = vmatmul.mubr.bf16.gmra.mrb[56].mxu1 %v2647_v6 }
 0x90c   :  { %9032 = vst [vmem:[#allocation34_spill] sm:$0xff] %v7582_v11  ;;  %v3245_v42 = vmul.f32 %v7582_v11, %v9033_v29  ;;  %v7586_v45 = vmin.f32 %v3214_v55, 1.0  ;;  %v2588_v13 = vpop.f32.mrb[72].mxu0 }
 0x90d   :  { %v2590_v54 = vpop.f32.mrb[73].mxu0  ;;  %v2638_v49 = vadd.f32 %v2622_v30, %v2588_v13 }
 0x90e   :  { %9034 = vst [vmem:[#allocation35_spill] sm:$0xff] %v7586_v45  ;;  %v3246_v50 = vmul.f32 %v7586_v45, %v9035_v61  ;;  %v3199_v5 = vadd.f32 %v2590_v54, %v9007_v14  ;;  %3303 = vperm.xlu1 %5577, %v3245_v42   ;;  %v2592_v20 = vpop.f32.mrb[74].mxu0 }
 0x90f   :  { %v2639_v31 = vadd.f32 %v2623_v10, %v2592_v20  ;;  %v2594_v48 = vpop.f32.mrb[75].mxu0 }
 0x910   :  { %v3215_v7 = vmax.f32 %v3199_v5, 0.0  ;;  %v3200_v24 = vadd.f32 %v2594_v48, %v9008_v59  ;;  %3308 = vperm.xlu0 %5578, %v3246_v50   ;;  %v9039_v59 = vld [vmem:[#allocation23_spill] sm:$0xff]  ;;  %v5621_v48 = vld [vmem:[%s8856_s5 + $0xd0] sm:$0xff]  }
 0x911   :  { %v2648_v8 = vpack.c.bf16 %v2639_v31, %v2638_v49  ;;  %v5620_v31 = vld [vmem:[%s8856_s5 + $0xc8] sm:$0xff]  }
 0x912   :  { %v7596_v57 = vmin.f32 %v3215_v7, 1.0  ;;  %v3216_v19 = vmax.f32 %v3200_v24, 0.0  ;;  %v5622_v7 = vld [vmem:[%s8856_s5 + $0xd8] sm:$0xff]   ;;  %v5623_v24 = vld [vmem:[%s8856_s5 + $0xe0] sm:$0xff]  }
 0x913   :  { %5429 = vmatprep.mubr.bf16.mxu1 %v2648_v8  ;;  %v5624_v8 = vld [vmem:[%s8856_s5 + $0xe8] sm:$0xff]  }
 0x914   :  { %9036 = vst [vmem:[#allocation27_spill] sm:$0xff] %v7596_v57  ;;  %v3247_v41 = vmul.f32 %v7596_v57, %v9037_v36  ;;  %v7600_v38 = vmin.f32 %v3216_v19, 1.0  ;;  %v2598_v14 = vpop.f32.mrb[76].mxu0  ;;  %v5625_v19 = vld [vmem:[%s8856_s5 + $0xf0] sm:$0xff]   ;;  %v5626_v36 = vld [vmem:[%s8856_s5 + $0xf8] sm:$0xff]  }
 0x915   :  { %v2600_v43 = vpop.f32.mrb[77].mxu0  ;;  %v2640_v29 = vadd.f32 %v2624_v44, %v2598_v14  ;;  %v9044_v14 = vld [vmem:[#allocation8_spill] sm:$0xff] }
 0x916   :  { %9038 = vst [vmem:[#allocation28_spill] sm:$0xff] %v7600_v38  ;;  %v3248_v32 = vmul.f32 %v7600_v38, %v9039_v59  ;;  %v3201_v6 = vadd.f32 %v2600_v43, %v9009_v34  ;;  %3313 = vperm.xlu1 %5577, %v3247_v41   ;;  %v2602_v55 = vpop.f32.mrb[78].mxu0  ;;  %v9043_v34 = vld [vmem:[#allocation25_spill] sm:$0xff] }
 0x917   :  { %v2641_v42 = vadd.f32 %v2625_v52, %v2602_v55  ;;  %v2604_v13 = vpop.f32.mrb[79].mxu0  ;;  %v7661_v41 = vld [vmem:[%s8857_s6 + $0x8] sm:$0xff] }
 0x918   :  { %v3217_v30 = vmax.f32 %v3201_v6, 0.0  ;;  %v3202_v54 = vadd.f32 %v2604_v13, %v9010_v51  ;;  %3318 = vperm.xlu0 %5578, %v3248_v32   ;;  %v5619_v51 = vld [vmem:[%s8856_s5 + $0xc0] sm:$0xff]   ;;  %v2653_v44 = vrot.slane %v7661_v41, %v9044_v14 }
 0x919   :  { %v2649_v10 = vpack.c.bf16 %v2641_v42, %v2640_v29  ;;  %5433 = vmatprep.subr.bf16.mxu1 %v5619_v51 }
 0x91a   :  { %v7610_v61 = vmin.f32 %v3217_v30, 1.0  ;;  %v3218_v50 = vmax.f32 %v3202_v54, 0.0  ;;  %5434 = vmatpush3.bf16.msra.mxu1 %v5619_v51 }
 0x91b   :  { %5430 = vmatmul.mubr.bf16.gmra.mrb[60].mxu1 %v2649_v10  ;;  %5435 = vmatprep.subr.bf16.mxu1 %v5620_v31 }
 0x91c   :  { %9040 = vst [vmem:[#allocation12_spill] sm:$0xff] %v7610_v61  ;;  %v3249_v5 = vmul.f32 %v7610_v61, %v9041_v56  ;;  %v7614_v20 = vmin.f32 %v3218_v50, 1.0 }
 0x91e   :  { %9042 = vst [vmem:[#allocation7_spill] sm:$0xff] %v7614_v20  ;;  %v3250_v49 = vmul.f32 %v7614_v20, %v9043_v34  ;;  %3323 = vperm.xlu1 %5577, %v3249_v5   ;;  %5436 = vmatpush3.bf16.msra.mxu1 %v5620_v31 }
 0x91f   :  { %5437 = vmatprep.subr.bf16.mxu1 %v5621_v48 }
 0x920   :  { %3328 = vperm.xlu0 %5578, %v3250_v49  }
 0x922   :  { %3705 = vperm.xlu1 %5577, %v7512_v60   ;;  %5438 = vmatpush3.bf16.msra.mxu1 %v5621_v48 }
 0x923   :  { %5439 = vmatprep.subr.bf16.mxu1 %v5622_v7 }
 0x924   :  { %3710 = vperm.xlu0 %5578, %v7514_v2  }
 0x926   :  { %3715 = vperm.xlu1 %5577, %v7526_v46   ;;  %5440 = vmatpush3.bf16.msra.mxu1 %v5622_v7 }
 0x927   :  { %5441 = vmatprep.subr.bf16.mxu1 %v5623_v24 }
 0x928   :  { %3720 = vperm.xlu0 %5578, %v7528_v12  }
 0x92a   :  { %3725 = vperm.xlu1 %5577, %v7540_v4   ;;  %5442 = vmatpush3.bf16.msra.mxu1 %v5623_v24 }
 0x92b   :  { %5443 = vmatprep.subr.bf16.mxu1 %v5624_v8 }
 0x92c   :  { %3730 = vperm.xlu0 %5578, %v7542_v0  }
 0x92e   :  { %3735 = vperm.xlu1 %5577, %v7554_v1   ;;  %5444 = vmatpush3.bf16.msra.mxu1 %v5624_v8 }
 0x92f   :  { %5445 = vmatprep.subr.bf16.mxu1 %v5625_v19 }
 0x930   :  { %3740 = vperm.xlu0 %5578, %v7556_v27  }
 0x932   :  { %3745 = vperm.xlu1 %5577, %v7568_v25   ;;  %5446 = vmatpush3.bf16.msra.mxu1 %v5625_v19 }
 0x933   :  { %5447 = vmatprep.subr.bf16.mxu1 %v5626_v36 }
 0x934   :  { %3750 = vperm.xlu0 %5578, %v7570_v18  }
 0x936   :  { %3755 = vperm.xlu1 %5577, %v7582_v11   ;;  %5448 = vmatpush3.bf16.msra.mxu1 %v5626_v36 }
 0x938   :  { %3760 = vperm.xlu0 %5578, %v7586_v45  }
 0x93a   :  { %3765 = vperm.xlu1 %5577, %v7596_v57  }
 0x93c   :  { %3770 = vperm.xlu0 %5578, %v7600_v38  }
 0x93e   :  { %3775 = vperm.xlu1 %5577, %v7610_v61  }
 0x940   :  { %3780 = vperm.xlu0 %5578, %v7614_v20  }
 0x9be   :  { %v5419_v43 = vpop.f32.mrb[48].mxu1 }
 0x9bf   :  { %v2745_v52 = vadd.f32 %v5419_v43, %v2653_v44  ;;  %v2736_v59 = vpop.f32.mrb[49].mxu1 }
 0x9c0   :  { %v2737_v32 = vadd.f32 %v2736_v59, %v2653_v44  ;;  %v5420_v6 = vpop.f32.mrb[50].mxu1 }
 0x9c1   :  { %v2748_v55 = vadd.f32 %v5420_v6, %v2653_v44  ;;  %v2739_v29 = vpop.f32.mrb[51].mxu1  ;;  %v2801_v13 = vmax.f32 %v2745_v52, 0.0 }
 0x9c2   :  { %v2740_v42 = vadd.f32 %v2739_v29, %v2653_v44  ;;  %v2799_v54 = vmax.f32 %v2737_v32, 0.0 }
 0x9c3   :  { %v2802_v30 = vmax.f32 %v2748_v55, 0.0 }
 0x9c4   :  { %v2800_v10 = vmax.f32 %v2740_v42, 0.0 }
 0x9c5   :  { %v2816_v50 = vpack.c.bf16 %v2802_v30, %v2801_v13 }
 0x9c6   :  { %v2815_v56 = vpack.c.bf16 %v2800_v10, %v2799_v54 }
 0x9c8   :  { %5449 = vmatprep.mubr.bf16.mxu1 %v2815_v56 }
 0x9c9   :  { %5450 = vmatmul.mubr.bf16.vlgmr.msra.gmra.mrb[64].mxu1 %v2816_v50 }
 0x9ce   :  { %v5423_v5 = vpop.f32.mrb[52].mxu1 }
 0x9cf   :  { %v2761_v34 = vadd.f32 %v5423_v5, %v2653_v44  ;;  %v2752_v49 = vpop.f32.mrb[53].mxu1 }
 0x9d0   :  { %v2753_v51 = vadd.f32 %v2752_v49, %v2653_v44  ;;  %v5424_v31 = vpop.f32.mrb[54].mxu1 }
 0x9d1   :  { %v2764_v48 = vadd.f32 %v5424_v31, %v2653_v44  ;;  %v2755_v7 = vpop.f32.mrb[55].mxu1  ;;  %v2805_v8 = vmax.f32 %v2761_v34, 0.0 }
 0x9d2   :  { %v2756_v24 = vadd.f32 %v2755_v7, %v2653_v44  ;;  %v2803_v36 = vmax.f32 %v2753_v51, 0.0 }
 0x9d3   :  { %v2806_v19 = vmax.f32 %v2764_v48, 0.0 }
 0x9d4   :  { %v2804_v43 = vmax.f32 %v2756_v24, 0.0 }
 0x9d5   :  { %v2818_v52 = vpack.c.bf16 %v2806_v19, %v2805_v8 }
 0x9d6   :  { %v2817_v59 = vpack.c.bf16 %v2804_v43, %v2803_v36 }
 0x9d8   :  { %5453 = vmatprep.mubr.bf16.mxu1 %v2817_v59 }
 0x9d9   :  { %5454 = vmatmul.mubr.bf16.gmra.mrb[68].mxu1 %v2818_v52 }
 0x9de   :  { %v5427_v32 = vpop.f32.mrb[56].mxu1 }
 0x9df   :  { %v2777_v6 = vadd.f32 %v5427_v32, %v2653_v44  ;;  %v2768_v55 = vpop.f32.mrb[57].mxu1 }
 0x9e0   :  { %v2769_v29 = vadd.f32 %v2768_v55, %v2653_v44  ;;  %v5428_v42 = vpop.f32.mrb[58].mxu1 }
 0x9e1   :  { %v2780_v13 = vadd.f32 %v5428_v42, %v2653_v44  ;;  %v2771_v30 = vpop.f32.mrb[59].mxu1  ;;  %v2809_v10 = vmax.f32 %v2777_v6, 0.0 }
 0x9e2   :  { %v2772_v54 = vadd.f32 %v2771_v30, %v2653_v44  ;;  %v2807_v56 = vmax.f32 %v2769_v29, 0.0  ;;  %v9045_v29 = vld [vmem:[#allocation10_spill] sm:$0xff] }
 0x9e3   :  { %v2810_v50 = vmax.f32 %v2780_v13, 0.0  ;;  %v7667_v42 = vrot.slane %v7661_v41, %v9045_v29 }
 0x9e4   :  { %v2808_v5 = vmax.f32 %v2772_v54, 0.0 }
 0x9e5   :  { %v2820_v34 = vpack.c.bf16 %v2810_v50, %v2809_v10 }
 0x9e6   :  { %v2819_v49 = vpack.c.bf16 %v2808_v5, %v2807_v56 }
 0x9e8   :  { %5457 = vmatprep.mubr.bf16.mxu1 %v2819_v49 }
 0x9e9   :  { %5458 = vmatmul.mubr.bf16.gmra.mrb[72].mxu1 %v2820_v34 }
 0x9ee   :  { %v5431_v51 = vpop.f32.mrb[60].mxu1 }
 0x9ef   :  { %v2793_v31 = vadd.f32 %v5431_v51, %v2653_v44  ;;  %v2784_v48 = vpop.f32.mrb[61].mxu1 }
 0x9f0   :  { %v2785_v7 = vadd.f32 %v2784_v48, %v2653_v44  ;;  %v5432_v24 = vpop.f32.mrb[62].mxu1 }
 0x9f1   :  { %v2796_v8 = vadd.f32 %v5432_v24, %v2653_v44  ;;  %v2787_v19 = vpop.f32.mrb[63].mxu1  ;;  %v2813_v43 = vmax.f32 %v2793_v31, 0.0 }
 0x9f2   :  { %v2788_v36 = vadd.f32 %v2787_v19, %v2653_v44  ;;  %v2811_v59 = vmax.f32 %v2785_v7, 0.0 }
 0x9f3   :  { %v2814_v52 = vmax.f32 %v2796_v8, 0.0 }
 0x9f4   :  { %v2812_v32 = vmax.f32 %v2788_v36, 0.0 }
 0x9f5   :  { %v2822_v6 = vpack.c.bf16 %v2814_v52, %v2813_v43 }
 0x9f6   :  { %v2821_v55 = vpack.c.bf16 %v2812_v32, %v2811_v59 }
 0x9f8   :  { %5461 = vmatprep.mubr.bf16.mxu1 %v2821_v55 }
 0x9f9   :  { %5462 = vmatmul.mubr.bf16.gmra.mrb[76].mxu1 %v2822_v6 }
 0xa9c   :  { %v5451_v13 = vpop.f32.mrb[64].mxu1 }
 0xa9d   :  { %v2909_v30 = vpop.f32.mrb[65].mxu1  ;;  %v7673_v44 = vadd.f32 %v5451_v13, %v7667_v42 }
 0xa9e   :  { %v7670_v54 = vadd.f32 %v2909_v30, %v7667_v42  ;;  %v5452_v10 = vpop.f32.mrb[66].mxu1 }
 0xa9f   :  { %v2912_v50 = vpop.f32.mrb[67].mxu1  ;;  %v7680_v34 = vadd.f32 %v5452_v10, %v7667_v42  ;;  %v8931_v51 = vmax.f32 %v7673_v44, 0.0 }
 0xaa0   :  { %v7676_v56 = vadd.f32 %v2912_v50, %v7667_v42  ;;  %v8933_v5 = vmax.f32 %v7670_v54, 0.0 }
 0xaa1   :  { %v8930_v48 = vmax.f32 %v7680_v34, 0.0 }
 0xaa2   :  { %v8932_v49 = vmax.f32 %v7676_v56, 0.0 }
 0xaa4   :  { %v2988_v31 = vadd.f32 %v8932_v49, %v8933_v5 }
 0xaa6   :  { %v2989_v7 = vadd.f32 %v2988_v31, %v8931_v51 }
 0xaa8   :  { %v2990_v24 = vadd.f32 %v2989_v7, %v8930_v48 }
 0xaac   :  { %v5455_v8 = vpop.f32.mrb[68].mxu1 }
 0xaad   :  { %v2925_v19 = vpop.f32.mrb[69].mxu1  ;;  %v7697_v59 = vadd.f32 %v5455_v8, %v7667_v42 }
 0xaae   :  { %v7694_v36 = vadd.f32 %v2925_v19, %v7667_v42  ;;  %v5456_v43 = vpop.f32.mrb[70].mxu1 }
 0xaaf   :  { %v2928_v52 = vpop.f32.mrb[71].mxu1  ;;  %v7706_v13 = vadd.f32 %v5456_v43, %v7667_v42  ;;  %v8929_v10 = vmax.f32 %v7697_v59, 0.0 }
 0xab0   :  { %v8926_v32 = vmax.f32 %v7694_v36, 0.0  ;;  %v7701_v6 = vadd.f32 %v2928_v52, %v7667_v42 }
 0xab1   :  { %v8928_v31 = vmax.f32 %v7706_v13, 0.0 }
 0xab2   :  { %v2991_v55 = vadd.f32 %v2990_v24, %v8926_v32  ;;  %v8927_v30 = vmax.f32 %v7701_v6, 0.0  ;;  %v5627_v32 = vld [vmem:[%s8858_s7] sm:$0xff]  }
 0xab3   :  { %5465 = vmatprep.subr.bf16.mxu0 %v5627_v32 }
 0xab4   :  { %v2992_v50 = vadd.f32 %v2991_v55, %v8927_v30  ;;  %v5628_v55 = vld [vmem:[%s8858_s7 + $0x8] sm:$0xff]   ;;  %5466 = vmatpush3.bf16.msra.mxu0 %v5627_v32  ;;  %v5630_v32 = vld [vmem:[%s8858_s7 + $0x18] sm:$0xff]  }
 0xab5   :  { %5467 = vmatprep.subr.bf16.mxu0 %v5628_v55 }
 0xab6   :  { %v2993_v7 = vadd.f32 %v2992_v50, %v8929_v10 }
 0xab8   :  { %v2994_v8 = vadd.f32 %v2993_v7, %v8928_v31  ;;  %5468 = vmatpush3.bf16.msra.mxu0 %v5628_v55 }
 0xabc   :  { %v5459_v19 = vpop.f32.mrb[72].mxu1 }
 0xabd   :  { %v2941_v24 = vpop.f32.mrb[73].mxu1  ;;  %v7727_v50 = vadd.f32 %v5459_v19, %v7667_v42  ;;  %v5629_v19 = vld [vmem:[%s8858_s7 + $0x10] sm:$0xff]  }
 0xabe   :  { %v7718_v43 = vadd.f32 %v2941_v24, %v7667_v42  ;;  %v5460_v52 = vpop.f32.mrb[74].mxu1  ;;  %5469 = vmatprep.subr.bf16.mxu0 %v5629_v19 }
 0xabf   :  { %v2944_v30 = vpop.f32.mrb[75].mxu1  ;;  %v2953_v10 = vadd.f32 %v5460_v52, %v7667_v42  ;;  %v2982_v51 = vmax.f32 %v7727_v50, 0.0  ;;  %5470 = vmatpush3.bf16.msra.mxu0 %v5629_v19 }
 0xac0   :  { %v8934_v7 = vmax.f32 %v7718_v43, 0.0  ;;  %v7731_v31 = vadd.f32 %v2944_v30, %v7667_v42  ;;  %5471 = vmatprep.subr.bf16.mxu0 %v5630_v32 }
 0xac1   :  { %v2983_v30 = vmax.f32 %v2953_v10, 0.0 }
 0xac2   :  { %v2995_v24 = vadd.f32 %v2994_v8, %v8934_v7  ;;  %v2981_v48 = vmax.f32 %v7731_v31, 0.0  ;;  %v5631_v31 = vld [vmem:[%s8858_s7 + $0x20] sm:$0xff]  }
 0xac3   :  { %5472 = vmatpush3.bf16.msra.mxu0 %v5630_v32 }
 0xac4   :  { %v2996_v49 = vadd.f32 %v2995_v24, %v2981_v48  ;;  %5473 = vmatprep.subr.bf16.mxu0 %v5631_v31 }
 0xac6   :  { %v2997_v5 = vadd.f32 %v2996_v49, %v2982_v51  ;;  %v5632_v49 = vld [vmem:[%s8858_s7 + $0x28] sm:$0xff]  }
 0xac7   :  { %5474 = vmatpush3.bf16.msra.mxu0 %v5631_v31 }
 0xac8   :  { %v2998_v8 = vadd.f32 %v2997_v5, %v2983_v30  ;;  %5475 = vmatprep.subr.bf16.mxu0 %v5632_v49 }
 0xacb   :  { %5476 = vmatpush3.bf16.msra.mxu0 %v5632_v49 }
 0xacc   :  { %v5463_v52 = vpop.f32.mrb[76].mxu1 }
 0xacd   :  { %v2957_v7 = vpop.f32.mrb[77].mxu1  ;;  %v2966_v5 = vadd.f32 %v5463_v52, %v7667_v42  ;;  %v5634_v52 = vld [vmem:[%s8858_s7 + $0x38] sm:$0xff]  }
 0xace   :  { %v2958_v50 = vadd.f32 %v2957_v7, %v7667_v42  ;;  %v5464_v55 = vpop.f32.mrb[78].mxu1  ;;  %v5633_v7 = vld [vmem:[%s8858_s7 + $0x30] sm:$0xff]  }
 0xacf   :  { %v2960_v10 = vpop.f32.mrb[79].mxu1  ;;  %v2969_v61 = vadd.f32 %v5464_v55, %v7667_v42  ;;  %v2986_v32 = vmax.f32 %v2966_v5, 0.0  ;;  %5477 = vmatprep.subr.bf16.mxu0 %v5633_v7 }
 0xad0   :  { %v2984_v24 = vmax.f32 %v2958_v50, 0.0  ;;  %v2961_v19 = vadd.f32 %v2960_v10, %v7667_v42  ;;  %5478 = vmatpush3.bf16.msra.mxu0 %v5633_v7 }
 0xad1   :  { %v2987_v18 = vmax.f32 %v2969_v61, 0.0  ;;  %5479 = vmatprep.subr.bf16.mxu0 %v5634_v52 }
 0xad2   :  { %v2999_v20 = vadd.f32 %v2998_v8, %v2984_v24  ;;  %v2985_v38 = vmax.f32 %v2961_v19, 0.0 }
 0xad4   :  { %v3000_v57 = vadd.f32 %v2999_v20, %v2985_v38  ;;  %5480 = vmatpush3.bf16.msra.mxu0 %v5634_v52  ;;  %v9046_v20 = vmax.f32 %v7670_v54, 0.0  ;;  %v9052_v54 = vmax.f32 %v7697_v59, 0.0 }
 0xad6   :  { %v3001_v25 = vadd.f32 %v3000_v57, %v2986_v32  ;;  %v9047_v57 = vmax.f32 %v7676_v56, 0.0  ;;  %v9053_v56 = vmax.f32 %v7706_v13, 0.0 }
 0xad8   :  { %v3002_v31 = vadd.f32 %v3001_v25, %v2987_v18  ;;  %v9048_v25 = vmax.f32 %v7673_v44, 0.0 }
 0xada   :  { %v3003_v8 = vrot.slane %v3002_v31, 4 }
 0xadc   :  { %v3004_v42 = vadd.f32 %v3003_v8, %v3002_v31  ;;  %v9049_v31 = vmax.f32 %v7680_v34, 0.0  ;;  %v9050_v8 = vmax.f32 %v7694_v36, 0.0 }
 0xade   :  { %v3005_v50 = vrot.slane %v3004_v42, 2 }
 0xae0   :  { %v3006_v55 = vadd.f32 %v3005_v50, %v3004_v42  ;;  %v9051_v50 = vmax.f32 %v7701_v6, 0.0 }
 0xae2   :  { %v3007_v10 = vrot.slane %v3006_v55, 1 }
 0xae4   :  { %v3008_v19 = vadd.f32 %v3007_v10, %v3006_v55 }
 0xae6   :  { %v3009_v5 = vmul.f32 0.0078125, %v3008_v19 }
 0xae8   :  { %v7762_v61 = vsub.f32 %v9046_v20, %v3009_v5  ;;  %v7766_v49 = vsub.f32 %v9047_v57, %v3009_v5  ;;  %v7770_v7 = vsub.f32 %v9048_v25, %v3009_v5  ;;  %v3013_v52 = vsub.f32 %v9049_v31, %v3009_v5 }
 0xae9   :  { %v3014_v42 = vsub.f32 %v9050_v8, %v3009_v5  ;;  %v3015_v55 = vsub.f32 %v9051_v50, %v3009_v5  ;;  %v3016_v10 = vsub.f32 %v9052_v54, %v3009_v5  ;;  %v3017_v19 = vsub.f32 %v9053_v56, %v3009_v5 }
 0xaea   :  { %v9054_v20 = vmax.f32 %v7718_v43, 0.0  ;;  %v3019_v57 = vsub.f32 %v2981_v48, %v3009_v5  ;;  %v3020_v25 = vsub.f32 %v2982_v51, %v3009_v5  ;;  %v3021_v45 = vsub.f32 %v2983_v30, %v3009_v5 }
 0xaeb   :  { %v3022_v34 = vsub.f32 %v2984_v24, %v3009_v5  ;;  %v3023_v31 = vsub.f32 %v2985_v38, %v3009_v5  ;;  %v3024_v11 = vsub.f32 %v2986_v32, %v3009_v5  ;;  %v3025_v36 = vsub.f32 %v2987_v18, %v3009_v5 }
 0xaec   :  { %v3018_v44 = vsub.f32 %v9054_v20, %v3009_v5  ;;  %v3026_v6 = vmul.f32 %v7762_v61, %v7762_v61  ;;  %v3027_v59 = vmul.f32 %v7766_v49, %v7766_v49  ;;  %v3028_v13 = vmul.f32 %v7770_v7, %v7770_v7 }
 0xaed   :  { %v3029_v50 = vmul.f32 %v3013_v52, %v3013_v52  ;;  %v3030_v54 = vmul.f32 %v3014_v42, %v3014_v42  ;;  %v3031_v51 = vmul.f32 %v3015_v55, %v3015_v55  ;;  %v3032_v24 = vmul.f32 %v3016_v10, %v3016_v10 }
 0xaee   :  { %v3042_v8 = vadd.f32 %v3027_v59, %v3026_v6  ;;  %v3033_v32 = vmul.f32 %v3017_v19, %v3017_v19  ;;  %v3034_v5 = vmul.f32 %v3018_v44, %v3018_v44  ;;  %v3035_v20 = vmul.f32 %v3019_v57, %v3019_v57 }
 0xaef   :  { %v3036_v4 = vmul.f32 %v3020_v25, %v3020_v25  ;;  %v3037_v1 = vmul.f32 %v3021_v45, %v3021_v45  ;;  %v3038_v2 = vmul.f32 %v3022_v34, %v3022_v34  ;;  %v3039_v59 = vmul.f32 %v3023_v31, %v3023_v31 }
 0xaf0   :  { %v3043_v43 = vadd.f32 %v3042_v8, %v3028_v13  ;;  %v3040_v8 = vmul.f32 %v3024_v11, %v3024_v11 }
 0xaf2   :  { %v3044_v48 = vadd.f32 %v3043_v43, %v3029_v50  ;;  %v3041_v43 = vmul.f32 %v3025_v36, %v3025_v36 }
 0xaf4   :  { %v3045_v30 = vadd.f32 %v3044_v48, %v3030_v54 }
 0xaf6   :  { %v3046_v38 = vadd.f32 %v3045_v30, %v3031_v51 }
 0xaf8   :  { %v3047_v18 = vadd.f32 %v3046_v38, %v3032_v24 }
 0xafa   :  { %v3048_v56 = vadd.f32 %v3047_v18, %v3033_v32 }
 0xafc   :  { %v3049_v0 = vadd.f32 %v3048_v56, %v3034_v5 }
 0xafe   :  { %v3050_v27 = vadd.f32 %v3049_v0, %v3035_v20 }
 0xb00   :  { %v3051_v12 = vadd.f32 %v3050_v27, %v3036_v4 }
 0xb02   :  { %v3052_v6 = vadd.f32 %v3051_v12, %v3037_v1 }
 0xb04   :  { %v3053_v13 = vadd.f32 %v3052_v6, %v3038_v2 }
 0xb06   :  { %v3054_v50 = vadd.f32 %v3053_v13, %v3039_v59 }
 0xb08   :  { %v3055_v54 = vadd.f32 %v3054_v50, %v3040_v8 }
 0xb0a   :  { %v3056_v48 = vadd.f32 %v3055_v54, %v3041_v43 }
 0xb0c   :  { %v3057_v51 = vrot.slane %v3056_v48, 4 }
 0xb0e   :  { %v3058_v30 = vadd.f32 %v3057_v51, %v3056_v48 }
 0xb10   :  { %v3059_v24 = vrot.slane %v3058_v30, 2 }
 0xb12   :  { %v3060_v38 = vadd.f32 %v3059_v24, %v3058_v30 }
 0xb14   :  { %v3061_v32 = vrot.slane %v3060_v38, 1 }
 0xb16   :  { %v3062_v18 = vadd.f32 %v3061_v32, %v3060_v38 }
 0xb18   :  { %v3063_v5 = vmul.f32 0.0078125, %v3062_v18 }
 0xb1a   :  { %v3064_v56 = vmax.f32 %v3063_v5, 0.0 }
 0xb1c   :  { %v3065_v0 = vadd.f32 1e-05, %v3064_v56 }
 0xb1e   :  { %5653 = vrsqrt.f32 %v3065_v0 }
 0xb28   :  { %v5654_v4 = vpop.eup %5653 }
 0xb29   :  { %v3070_v27 = vmul.f32 %v5654_v4, %v3013_v52  ;;  %v3071_v12 = vmul.f32 %v5654_v4, %v3014_v42  ;;  %v3072_v1 = vmul.f32 %v5654_v4, %v3015_v55  ;;  %v3073_v2 = vmul.f32 %v5654_v4, %v3016_v10 }
 0xb2a   :  { %v3074_v20 = vmul.f32 %v5654_v4, %v3017_v19  ;;  %v3075_v6 = vmul.f32 %v5654_v4, %v3018_v44  ;;  %v3076_v59 = vmul.f32 %v5654_v4, %v3019_v57  ;;  %v3077_v13 = vmul.f32 %v5654_v4, %v3020_v25 }
 0xb2b   :  { %v3078_v8 = vmul.f32 %v5654_v4, %v3021_v45  ;;  %v7790_v50 = vmul.f32 %v5654_v4, %v3022_v34  ;;  %v7792_v43 = vmul.f32 %v5654_v4, %v3023_v31  ;;  %v7794_v54 = vmul.f32 %v5654_v4, %v3024_v11 }
 0xb2c   :  { %v7796_v48 = vmul.f32 %v5654_v4, %v3025_v36  ;;  %v3067_v51 = vmul.f32 %v5654_v4, %v7762_v61  ;;  %v3068_v52 = vmul.f32 %v5654_v4, %v7766_v49  ;;  %v7802_v42 = vrot.slane %v7661_v41, %v9001_v53 }
 0xb2d   :  { %v7808_v10 = vrot.slane %v7661_v41, %v9002_v15  ;;  %v3069_v11 = vmul.f32 %v5654_v4, %v7770_v7 }
 0xb2e   :  { %v3091_v55 = vmul.f32 %v7802_v42, %v3071_v12  ;;  %v3092_v45 = vmul.f32 %v7802_v42, %v3072_v1  ;;  %v3087_v19 = vmul.f32 %v7802_v42, %v3067_v51  ;;  %v3088_v61 = vmul.f32 %v7802_v42, %v3068_v52 }
 0xb2f   :  { %v3089_v49 = vmul.f32 %v7802_v42, %v3069_v11  ;;  %v3090_v44 = vmul.f32 %v7802_v42, %v3070_v27  ;;  %v3093_v53 = vmul.f32 %v7802_v42, %v3073_v2  ;;  %v3094_v57 = vmul.f32 %v7802_v42, %v3074_v20  ;;  %v3254_v27 = vpop.permute.xlu1 %3253 }
 0xb30   :  { %v3112_v25 = vadd.f32 %v7808_v10, %v3092_v45  ;;  %v3111_v34 = vadd.f32 %v7808_v10, %v3091_v55  ;;  %v3107_v15 = vadd.f32 %v7808_v10, %v3087_v19  ;;  %v3108_v7 = vadd.f32 %v7808_v10, %v3088_v61  ;;  %v3259_v55 = vpop.permute.xlu0 %3258 }
 0xb31   :  { %v3109_v31 = vadd.f32 %v7808_v10, %v3089_v49  ;;  %v3110_v36 = vadd.f32 %v7808_v10, %v3090_v44  ;;  %v3095_v30 = vmul.f32 %v7802_v42, %v3075_v6  ;;  %v3096_v24 = vmul.f32 %v7802_v42, %v3076_v59 }
 0xb32   :  { %v3143_v38 = vmul.f32 0.01, %v3111_v34  ;;  %vm3123_vm6 = vcmp.gt.f32.partialorder %v3107_v15, 0.0  ;;  %vm3124_vm7 = vcmp.gt.f32.partialorder %v3108_v7, 0.0  ;;  %v3113_v32 = vadd.f32 %v7808_v10, %v3093_v53 }
 0xb33   :  { %vm3125_vm8 = vcmp.gt.f32.partialorder %v3109_v31, 0.0  ;;  %vm3126_vm9 = vcmp.gt.f32.partialorder %v3110_v36, 0.0  ;;  %v3139_v18 = vmul.f32 0.01, %v3107_v15  ;;  %v3140_v5 = vmul.f32 0.01, %v3108_v7 }
 0xb34   :  { %v3141_v56 = vmul.f32 0.01, %v3109_v31  ;;  %v3114_v0 = vadd.f32 %v7808_v10, %v3094_v57  ;;  %vm3127_vm10 = vcmp.gt.f32.partialorder %v3111_v34, 0.0  ;;  %vm3128_vm11 = vcmp.gt.f32.partialorder %v3112_v25, 0.0 }
 0xb35   :  { %v3142_v4 = vmul.f32 0.01, %v3110_v36  ;;  %v3144_v12 = vmul.f32 0.01, %v3112_v25  ;;  %v3155_v1 = vsel %vm3123_vm6, %v3107_v15, %v3139_v18  ;;  %v3156_v2 = vsel %vm3124_vm7, %v3108_v7, %v3140_v5 }
 0xb36   :  { %v3157_v20 = vsel %vm3125_vm8, %v3109_v31, %v3141_v56  ;;  %v3171_v59 = vadd.f32 %v3155_v1, %v7367_v22  ;;  %v3172_v51 = vadd.f32 %v3156_v2, %v7370_v37  ;;  %v3097_v45 = vmul.f32 %v7802_v42, %v3077_v13  ;;  %v3264_v22 = vpop.permute.xlu1 %3263 }
 0xb37   :  { %v3158_v6 = vsel %vm3126_vm9, %v3110_v36, %v3142_v4  ;;  %v3173_v52 = vadd.f32 %v3157_v20, %v7373_v21  ;;  %v3115_v11 = vadd.f32 %v7808_v10, %v3095_v30  ;;  %v3145_v19 = vmul.f32 0.01, %v3113_v32 }
 0xb38   :  { %v3159_v61 = vsel %vm3127_vm10, %v3111_v34, %v3143_v38  ;;  %vm3129_vm12 = vcmp.gt.f32.partialorder %v3113_v32, 0.0  ;;  %v3174_v49 = vadd.f32 %v3158_v6, %v7380_v17  ;;  %v7834_v44 = vmul.f32 %v3254_v27, %v3171_v59  ;;  %v3269_v34 = vpop.permute.xlu0 %3268 }
 0xb39   :  { %v7836_v53 = vmul.f32 %v3259_v55, %v3172_v51  ;;  %v3098_v37 = vmul.f32 %v7802_v42, %v3078_v8  ;;  %v3116_v21 = vadd.f32 %v7808_v10, %v3096_v24  ;;  %v3146_v57 = vmul.f32 0.01, %v3114_v0 }
 0xb3a   :  { %v3160_v13 = vsel %vm3128_vm11, %v3112_v25, %v3144_v12  ;;  %vm3130_vm13 = vcmp.gt.f32.partialorder %v3114_v0, 0.0  ;;  %v3175_v15 = vadd.f32 %v3159_v61, %v7397_v26  ;;  %v7842_v7 = vmul.f32 %v3264_v22, %v3173_v52  ;;  %v3274_v38 = vpop.permute.xlu1 %3273 }
 0xb3b   :  { %v3347_v17 = vadd.f32 %v7836_v53, %v7834_v44  ;;  %v3099_v31 = vmul.f32 %v7802_v42, %v7790_v50  ;;  %v3117_v36 = vadd.f32 %v7808_v10, %v3097_v45  ;;  %v3147_v8 = vmul.f32 0.01, %v3115_v11 }
 0xb3c   :  { %v3161_v30 = vsel %vm3129_vm12, %v3113_v32, %v3145_v19  ;;  %vm3131_vm14 = vcmp.gt.f32.partialorder %v3115_v11, 0.0  ;;  %v3176_v25 = vadd.f32 %v3160_v13, %v7400_v33  ;;  %v7851_v24 = vmul.f32 %v3269_v34, %v3174_v49  ;;  %v3279_v27 = vpop.permute.xlu0 %3278 }
 0xb3d   :  { %v3348_v26 = vadd.f32 %v3347_v17, %v7842_v7  ;;  %v3100_v18 = vmul.f32 %v7802_v42, %v7792_v43  ;;  %v3118_v5 = vadd.f32 %v7808_v10, %v3098_v37  ;;  %v3148_v56 = vmul.f32 0.01, %v3116_v21 }
 0xb3e   :  { %v3162_v50 = vsel %vm3130_vm13, %v3114_v0, %v3146_v57  ;;  %vm3132_vm15 = vcmp.gt.f32.partialorder %v3116_v21, 0.0  ;;  %v3177_v4 = vadd.f32 %v3161_v30, %v7405_v16  ;;  %v7859_v32 = vmul.f32 %v3274_v38, %v3175_v15  ;;  %v3284_v6 = vpop.permute.xlu1 %3283 }
 0xb3f   :  { %v3349_v33 = vadd.f32 %v3348_v26, %v7851_v24  ;;  %v3101_v12 = vmul.f32 %v7802_v42, %v7794_v54  ;;  %v3119_v1 = vadd.f32 %v7808_v10, %v3099_v31  ;;  %v3149_v2 = vmul.f32 0.01, %v3117_v36 }
 0xb40   :  { %v3163_v43 = vsel %vm3131_vm14, %v3115_v11, %v3147_v8  ;;  %vm3133_vm2 = vcmp.gt.f32.partialorder %v3117_v36, 0.0  ;;  %v3178_v20 = vadd.f32 %v3162_v50, %v7408_v40  ;;  %v7867_v0 = vmul.f32 %v3279_v27, %v3176_v25  ;;  %v3289_v11 = vpop.permute.xlu0 %3288 }
 0xb41   :  { %v3350_v16 = vadd.f32 %v3349_v33, %v7859_v32  ;;  %v3102_v59 = vmul.f32 %v7802_v42, %v7796_v48  ;;  %v3120_v51 = vadd.f32 %v7808_v10, %v3100_v18  ;;  %v3150_v52 = vmul.f32 0.01, %v3118_v5 }
 0xb42   :  { %v3164_v54 = vsel %vm3132_vm15, %v3116_v21, %v3148_v56  ;;  %vm3134_vm3 = vcmp.gt.f32.partialorder %v3118_v5, 0.0  ;;  %v3179_v55 = vadd.f32 %v3163_v43, %v7419_v39  ;;  %v7875_v45 = vmul.f32 %v3284_v6, %v3177_v4  ;;  %v3294_v37 = vpop.permute.xlu1 %3293 }
 0xb43   :  { %v3351_v40 = vadd.f32 %v3350_v16, %v7867_v0  ;;  %v3121_v19 = vadd.f32 %v7808_v10, %v3101_v12  ;;  %v3151_v61 = vmul.f32 0.01, %v3119_v1  ;;  %v3165_v49 = vsel %vm3133_vm2, %v3117_v36, %v3149_v2 }
 0xb44   :  { %vm3135_vm4 = vcmp.gt.f32.partialorder %v3119_v1, 0.0  ;;  %v3180_v48 = vadd.f32 %v3164_v54, %v7422_v47  ;;  %v3338_v42 = vmul.f32 %v3289_v11, %v3178_v20  ;;  %v3122_v21 = vadd.f32 %v7808_v10, %v3102_v59  ;;  %v3299_v34 = vpop.permute.xlu0 %3298 }
 0xb45   :  { %v3352_v22 = vadd.f32 %v3351_v40, %v7875_v45  ;;  %v3152_v39 = vmul.f32 0.01, %v3120_v51  ;;  %v3166_v57 = vsel %vm3134_vm3, %v3118_v5, %v3150_v52  ;;  %vm3136_vm5 = vcmp.gt.f32.partialorder %v3120_v51, 0.0 }
 0xb46   :  { %v3181_v13 = vadd.f32 %v3165_v49, %v7432_v63  ;;  %v3339_v15 = vmul.f32 %v3294_v37, %v3179_v55  ;;  %v3153_v31 = vmul.f32 0.01, %v3121_v19  ;;  %v3167_v8 = vsel %vm3135_vm4, %v3119_v1, %v3151_v61  ;;  %v3304_v25 = vpop.permute.xlu1 %3303 }
 0xb47   :  { %v3353_v17 = vadd.f32 %v3352_v22, %v3338_v42  ;;  %vm3137_vm6 = vcmp.gt.f32.partialorder %v3121_v19, 0.0  ;;  %v3182_v36 = vadd.f32 %v3166_v57, %v7435_v62  ;;  %v3340_v47 = vmul.f32 %v3299_v34, %v3180_v48 }
 0xb48   :  { %v3154_v26 = vmul.f32 0.01, %v3122_v21  ;;  %v3168_v38 = vsel %vm3136_vm5, %v3120_v51, %v3152_v39  ;;  %vm3138_vm7 = vcmp.gt.f32.partialorder %v3122_v21, 0.0  ;;  %v3183_v10 = vadd.f32 %v3167_v8, %v7444_v23  ;;  %v3309_v56 = vpop.permute.xlu0 %3308 }
 0xb49   :  { %v3354_v30 = vadd.f32 %v3353_v17, %v3339_v15  ;;  %v3341_v18 = vmul.f32 %v3304_v25, %v3181_v13  ;;  %v3169_v63 = vsel %vm3137_vm6, %v3121_v19, %v3153_v31  ;;  %v3184_v50 = vadd.f32 %v3168_v38, %v7447_v58 }
 0xb4a   :  { %v3342_v4 = vmul.f32 %v3309_v56, %v3182_v36  ;;  %v3314_v27 = vpop.permute.xlu1 %3313  ;;  %v3170_v12 = vsel %vm3138_vm7, %v3122_v21, %v3154_v26  ;;  %v3185_v62 = vadd.f32 %v3169_v63, %v7455_v28  ;;  %vm3819_vm12 = vcmask 130048  }
 0xb4b   :  { %v3355_v5 = vadd.f32 %v3354_v30, %v3340_v47  ;;  %v3343_v1 = vmul.f32 %v3314_v27, %v3183_v10  ;;  %v3186_v20 = vadd.f32 %v3170_v12, %v7458_v35 }
 0xb4c   :  { %v3319_v43 = vpop.permute.xlu0 %3318 }
 0xb4d   :  { %v3356_v33 = vadd.f32 %v3355_v5, %v3341_v18  ;;  %v3344_v16 = vmul.f32 %v3319_v43, %v3184_v50 }
 0xb4e   :  { %v3324_v23 = vpop.permute.xlu1 %3323 }
 0xb4f   :  { %v3357_v2 = vadd.f32 %v3356_v33, %v3342_v4  ;;  %v3345_v59 = vmul.f32 %v3324_v23, %v3185_v62 }
 0xb50   :  { %v3329_v52 = vpop.permute.xlu0 %3328 }
 0xb51   :  { %v3358_v6 = vadd.f32 %v3357_v2, %v3343_v1  ;;  %v3346_v54 = vmul.f32 %v3329_v52, %v3186_v20 }
 0xb53   :  { %v3359_v51 = vadd.f32 %v3358_v6, %v3344_v16 }
 0xb55   :  { %v3360_v55 = vadd.f32 %v3359_v51, %v3345_v59 }
 0xb57   :  { %v3361_v58 = vadd.f32 %v3360_v55, %v3346_v54 }
 0xb59   :  { %v3362_v40 = vrot.slane %v3361_v58, 4 }
 0xb5b   :  { %v3363_v11 = vadd.f32 %v3362_v40, %v3361_v58 }
 0xb5d   :  { %v3364_v19 = vrot.slane %v3363_v11, 2 }
 0xb5f   :  { %v3365_v61 = vadd.f32 %v3364_v19, %v3363_v11 }
 0xb61   :  { %v3366_v49 = vrot.slane %v3365_v61, 1 }
 0xb63   :  { %v3367_v28 = vadd.f32 %v3366_v49, %v3365_v61 }
 0xb65   :  { %v3368_v48 = vmul.f32 0.0078125, %v3367_v28 }
 0xb67   :  { %v3369_v22 = vsub.f32 %v7834_v44, %v3368_v48  ;;  %v3370_v35 = vsub.f32 %v7836_v53, %v3368_v48  ;;  %v3371_v37 = vsub.f32 %v7842_v7, %v3368_v48  ;;  %v3372_v21 = vsub.f32 %v7851_v24, %v3368_v48 }
 0xb68   :  { %v3373_v39 = vsub.f32 %v7859_v32, %v3368_v48  ;;  %v3374_v57 = vsub.f32 %v7867_v0, %v3368_v48  ;;  %v3375_v13 = vsub.f32 %v7875_v45, %v3368_v48  ;;  %v3376_v17 = vsub.f32 %v3338_v42, %v3368_v48 }
 0xb69   :  { %v7896_v34 = vsub.f32 %v3339_v15, %v3368_v48  ;;  %v7898_v31 = vsub.f32 %v3340_v47, %v3368_v48  ;;  %v7900_v8 = vsub.f32 %v3341_v18, %v3368_v48  ;;  %v7902_v44 = vsub.f32 %v3342_v4, %v3368_v48 }
 0xb6a   :  { %v7904_v53 = vsub.f32 %v3343_v1, %v3368_v48  ;;  %v7906_v7 = vsub.f32 %v3344_v16, %v3368_v48  ;;  %v7908_v24 = vsub.f32 %v3345_v59, %v3368_v48  ;;  %v7910_v32 = vsub.f32 %v3346_v54, %v3368_v48 }
 0xb6b   :  { %v3385_v0 = vmul.f32 %v3369_v22, %v3369_v22  ;;  %v3386_v36 = vmul.f32 %v3370_v35, %v3370_v35  ;;  %v3387_v45 = vmul.f32 %v3371_v37, %v3371_v37  ;;  %v3388_v15 = vmul.f32 %v3372_v21, %v3372_v21 }
 0xb6c   :  { %v3389_v47 = vmul.f32 %v3373_v39, %v3373_v39  ;;  %v3390_v26 = vmul.f32 %v3374_v57, %v3374_v57  ;;  %v3391_v10 = vmul.f32 %v3375_v13, %v3375_v13  ;;  %v3392_v5 = vmul.f32 %v3376_v17, %v3376_v17 }
 0xb6d   :  { %v3401_v42 = vadd.f32 %v3386_v36, %v3385_v0  ;;  %v3393_v63 = vmul.f32 %v7896_v34, %v7896_v34  ;;  %v3394_v4 = vmul.f32 %v7898_v31, %v7898_v31  ;;  %v3395_v27 = vmul.f32 %v7900_v8, %v7900_v8 }
 0xb6e   :  { %v3396_v62 = vmul.f32 %v7902_v44, %v7902_v44  ;;  %v3397_v2 = vmul.f32 %v7904_v53, %v7904_v53  ;;  %v3398_v20 = vmul.f32 %v7906_v7, %v7906_v7  ;;  %v3399_v6 = vmul.f32 %v7908_v24, %v7908_v24 }
 0xb6f   :  { %v3402_v30 = vadd.f32 %v3401_v42, %v3387_v45  ;;  %v3400_v59 = vmul.f32 %v7910_v32, %v7910_v32  ;;  %v3445_v48 = vrot.slane %v7661_v41, %v9003_v3  ;;  %v3465_v36 = vrot.slane %v7661_v41, %v6837_v9 }
 0xb71   :  { %v3403_v25 = vadd.f32 %v3402_v30, %v3388_v15 }
 0xb73   :  { %v3404_v38 = vadd.f32 %v3403_v25, %v3389_v47 }
 0xb75   :  { %v3405_v18 = vadd.f32 %v3404_v38, %v3390_v26 }
 0xb77   :  { %v3406_v56 = vadd.f32 %v3405_v18, %v3391_v10 }
 0xb79   :  { %v3407_v50 = vadd.f32 %v3406_v56, %v3392_v5 }
 0xb7b   :  { %v3408_v33 = vadd.f32 %v3407_v50, %v3393_v63 }
 0xb7d   :  { %v3409_v12 = vadd.f32 %v3408_v33, %v3394_v4 }
 0xb7f   :  { %v3410_v1 = vadd.f32 %v3409_v12, %v3395_v27 }
 0xb81   :  { %v3411_v43 = vadd.f32 %v3410_v1, %v3396_v62 }
 0xb83   :  { %v3412_v16 = vadd.f32 %v3411_v43, %v3397_v2 }
 0xb85   :  { %v3413_v23 = vadd.f32 %v3412_v16, %v3398_v20 }
 0xb87   :  { %v3414_v51 = vadd.f32 %v3413_v23, %v3399_v6 }
 0xb89   :  { %v3415_v52 = vadd.f32 %v3414_v51, %v3400_v59 }
 0xb8b   :  { %v3416_v54 = vrot.slane %v3415_v52, 4 }
 0xb8d   :  { %v3417_v55 = vadd.f32 %v3416_v54, %v3415_v52 }
 0xb8f   :  { %v3418_v58 = vrot.slane %v3417_v55, 2 }
 0xb91   :  { %v3419_v40 = vadd.f32 %v3418_v58, %v3417_v55 }
 0xb93   :  { %v3420_v11 = vrot.slane %v3419_v40, 1 }
 0xb95   :  { %v3421_v19 = vadd.f32 %v3420_v11, %v3419_v40 }
 0xb97   :  { %v3422_v61 = vmul.f32 0.0078125, %v3421_v19 }
 0xb99   :  { %v3423_v49 = vmax.f32 %v3422_v61, 0.0 }
 0xb9b   :  { %v3424_v28 = vadd.f32 1e-05, %v3423_v49 }
 0xb9d   :  { %5655 = vrsqrt.f32 %v3424_v28 }
 0xba7   :  { %v5656_v0 = vpop.eup %5655 }
 0xba8   :  { %v3426_v45 = vmul.f32 %v5656_v0, %v3369_v22  ;;  %v3427_v42 = vmul.f32 %v5656_v0, %v3370_v35  ;;  %v3428_v15 = vmul.f32 %v5656_v0, %v3371_v37  ;;  %v3429_v30 = vmul.f32 %v5656_v0, %v3372_v21 }
 0xba9   :  { %v3430_v47 = vmul.f32 %v5656_v0, %v3373_v39  ;;  %v3431_v25 = vmul.f32 %v5656_v0, %v3374_v57  ;;  %v3432_v26 = vmul.f32 %v5656_v0, %v3375_v13  ;;  %v3433_v38 = vmul.f32 %v5656_v0, %v3376_v17 }
 0xbaa   :  { %v3446_v10 = vmul.f32 %v3445_v48, %v3426_v45  ;;  %v3447_v18 = vmul.f32 %v3445_v48, %v3427_v42  ;;  %v3448_v5 = vmul.f32 %v3445_v48, %v3428_v15  ;;  %v3449_v56 = vmul.f32 %v3445_v48, %v3429_v30 }
 0xbab   :  { %v3450_v63 = vmul.f32 %v3445_v48, %v3430_v47  ;;  %v3451_v50 = vmul.f32 %v3445_v48, %v3431_v25  ;;  %v3452_v4 = vmul.f32 %v3445_v48, %v3432_v26  ;;  %v3453_v3 = vmul.f32 %v3445_v48, %v3433_v38 }
 0xbac   :  { %v3466_v33 = vadd.f32 %v3465_v36, %v3446_v10  ;;  %v3467_v27 = vadd.f32 %v3465_v36, %v3447_v18  ;;  %v3468_v12 = vadd.f32 %v3465_v36, %v3448_v5  ;;  %v3469_v9 = vadd.f32 %v3465_v36, %v3449_v56  ;;  %v7952_v10 = vld [vmem:[%s8859_s8 + $0x8] sm:$0xff] }
 0xbad   :  { %v3470_v41 = vadd.f32 %v3465_v36, %v3450_v63  ;;  %v3471_v22 = vadd.f32 %v3465_v36, %v3451_v50  ;;  %v3472_v35 = vadd.f32 %v3465_v36, %v3452_v4  ;;  %v3473_v37 = vadd.f32 %v3465_v36, %v3453_v3 }
 0xbae   :  { %v3498_v21 = vpack.c.bf16 %v3467_v27, %v3466_v33  ;;  %v3499_v39 = vpack.c.bf16 %v3469_v9, %v3468_v12  ;;  %v3434_v57 = vmul.f32 %v5656_v0, %v7896_v34  ;;  %v3435_v13 = vmul.f32 %v5656_v0, %v7898_v31 }
 0xbaf   :  { %v3500_v17 = vpack.c.bf16 %v3471_v22, %v3470_v41  ;;  %v3501_v62 = vpack.c.bf16 %v3473_v37, %v3472_v35  ;;  %v3436_v1 = vmul.f32 %v5656_v0, %v7900_v8  ;;  %v3437_v2 = vmul.f32 %v5656_v0, %v7902_v44 }
 0xbb0   :  { %5481 = vmatprep.mubr.bf16.mxu0 %v3498_v21  ;;  %v3454_v43 = vmul.f32 %v3445_v48, %v3434_v57  ;;  %v3455_v20 = vmul.f32 %v3445_v48, %v3435_v13  ;;  %v3438_v16 = vmul.f32 %v5656_v0, %v7904_v53  ;;  %v3439_v6 = vmul.f32 %v5656_v0, %v7906_v7 }
 0xbb1   :  { %5482 = vmatmul.mubr.bf16.vlgmr.msra.gmra.mrb[80].mxu0 %v3499_v39  ;;  %v3456_v23 = vmul.f32 %v3445_v48, %v3436_v1  ;;  %v3457_v59 = vmul.f32 %v3445_v48, %v3437_v2  ;;  %v3440_v34 = vmul.f32 %v5656_v0, %v7908_v24  ;;  %v3441_v31 = vmul.f32 %v5656_v0, %v7910_v32  ;;  %v3706_v24 = vpop.permute.xlu1 %3705  ;;  %v3711_v32 = vpop.permute.xlu0 %3710  ;;  %v9055_v0 = vld [vmem:[#allocation6_spill] sm:$0xff] }
 0xbb2   :  { %5485 = vmatprep.mubr.bf16.mxu0 %v3500_v17  ;;  %v3474_v51 = vadd.f32 %v3465_v36, %v3454_v43  ;;  %v3475_v52 = vadd.f32 %v3465_v36, %v3455_v20  ;;  %v3458_v8 = vmul.f32 %v3445_v48, %v3438_v16  ;;  %v3459_v54 = vmul.f32 %v3445_v48, %v3439_v6 }
 0xbb3   :  { %v3476_v44 = vadd.f32 %v3465_v36, %v3456_v23  ;;  %v3477_v55 = vadd.f32 %v3465_v36, %v3457_v59  ;;  %v3460_v58 = vmul.f32 %v3445_v48, %v3440_v34  ;;  %v3461_v40 = vmul.f32 %v3445_v48, %v3441_v31  ;;  %v5706_v48 = vld [vmem:[%s8859_s8] sm:$0xff]  ;;  %s5759_s8 = smov 16  }
 0xbb4   :  { %v3502_v11 = vpack.c.bf16 %v3475_v52, %v3474_v51  ;;  %v3478_v53 = vadd.f32 %v3465_v36, %v3458_v8  ;;  %v3479_v19 = vadd.f32 %v3465_v36, %v3459_v54  ;;  %v3508_v42 = vsub.s32 7, %v9055_v0 }
 0xbb5   :  { %v3503_v7 = vpack.c.bf16 %v3477_v55, %v3476_v44  ;;  %v3480_v61 = vadd.f32 %v3465_v36, %v3460_v58  ;;  %v3481_v49 = vadd.f32 %v3465_v36, %v3461_v40  ;;  %v3716_v15 = vpop.permute.xlu1 %3715  ;;  %v3721_v30 = vpop.permute.xlu0 %3720  ;;  %v7961_v27 = vrot.slane %v7952_v10, %v9044_v14 }
 0xbb6   :  { %v3504_v28 = vpack.c.bf16 %v3479_v19, %v3478_v53  ;;  %v7944_v47 = vrot.slane %v5706_v48, %v3508_v42 }
 0xbb7   :  { %v3505_v45 = vpack.c.bf16 %v3481_v49, %v3480_v61 }
 0xbb9   :  { %5486 = vmatmul.mubr.bf16.gmra.mrb[84].mxu0 %v3501_v62  ;;  %v7946_v36 = vpop.permute.xlu1 %3725  ;;  %v7954_v18 = vpop.permute.xlu0 %3730 }
 0xbba   :  { %5489 = vmatprep.mubr.bf16.mxu0 %v3502_v11 }
 0xbbd   :  { %v3736_v41 = vpop.permute.xlu1 %3735  ;;  %v3741_v57 = vpop.permute.xlu0 %3740 }
 0xbc1   :  { %5490 = vmatmul.mubr.bf16.gmra.mrb[88].mxu0 %v3503_v7  ;;  %v3746_v8 = vpop.permute.xlu1 %3745  ;;  %v3751_v11 = vpop.permute.xlu0 %3750 }
 0xbc2   :  { %5493 = vmatprep.mubr.bf16.mxu0 %v3504_v28 }
 0xbc5   :  { %v3756_v48 = vpop.permute.xlu1 %3755 }
 0xbc9   :  { %5494 = vmatmul.mubr.bf16.gmra.mrb[92].mxu0 %v3505_v45 }
 0xc84   :  { %v5483_v25 = vpop.f32.mrb[80].mxu0 }
 0xc85   :  { %v3601_v26 = vadd.f32 %v5483_v25, %v7944_v47  ;;  %v3592_v38 = vpop.f32.mrb[81].mxu0 }
 0xc86   :  { %v3593_v5 = vadd.f32 %v3592_v38, %v7944_v47  ;;  %v5484_v56 = vpop.f32.mrb[82].mxu0 }
 0xc87   :  { %vm3657_vm8 = vcmp.gt.f32.partialorder %v3601_v26, 0.0  ;;  %v3673_v63 = vmul.f32 0.01, %v3601_v26  ;;  %v3604_v50 = vadd.f32 %v5484_v56, %v7944_v47  ;;  %v3595_v4 = vpop.f32.mrb[83].mxu0 }
 0xc88   :  { %vm3655_vm9 = vcmp.gt.f32.partialorder %v3593_v5, 0.0  ;;  %v3671_v3 = vmul.f32 0.01, %v3593_v5  ;;  %v3596_v33 = vadd.f32 %v3595_v4, %v7944_v47 }
 0xc89   :  { %v3689_v12 = vsel %vm3657_vm8, %v3601_v26, %v3673_v63  ;;  %vm3658_vm10 = vcmp.gt.f32.partialorder %v3604_v50, 0.0  ;;  %v3674_v9 = vmul.f32 0.01, %v3604_v50 }
 0xc8a   :  { %v3687_v22 = vsel %vm3655_vm9, %v3593_v5, %v3671_v3  ;;  %vm3656_vm11 = vcmp.gt.f32.partialorder %v3596_v33, 0.0  ;;  %v3672_v35 = vmul.f32 0.01, %v3596_v33  ;;  %v3785_v37 = vmul.f32 %v3716_v15, %v3689_v12  ;;  %v3761_v3 = vpop.permute.xlu0 %3760 }
 0xc8b   :  { %v3690_v21 = vsel %vm3658_vm10, %v3604_v50, %v3674_v9  ;;  %v3783_v39 = vmul.f32 %v3706_v24, %v3687_v22 }
 0xc8c   :  { %v3688_v13 = vsel %vm3656_vm11, %v3596_v33, %v3672_v35  ;;  %v5487_v17 = vpop.f32.mrb[84].mxu0  ;;  %v3805_v62 = vmul.f32 %v7961_v27, %v3785_v37  ;;  %v3786_v1 = vmul.f32 %v3721_v30, %v3690_v21 }
 0xc8d   :  { %v3617_v14 = vadd.f32 %v5487_v17, %v7944_v47  ;;  %v3608_v2 = vpop.f32.mrb[85].mxu0  ;;  %v3803_v43 = vmul.f32 %v7961_v27, %v3783_v39  ;;  %v3784_v20 = vmul.f32 %v3711_v32, %v3688_v13  ;;  %v3766_v17 = vpop.permute.xlu1 %3765 }
 0xc8e   :  { %v3609_v16 = vadd.f32 %v3608_v2, %v7944_v47  ;;  %v5488_v6 = vpop.f32.mrb[86].mxu0  ;;  %v3826_v23 = vsel %vm3819_vm12, %v3805_v62, 0.0  ;;  %v3806_v59 = vmul.f32 %v7961_v27, %v3786_v1 }
 0xc8f   :  { %vm3661_vm13 = vcmp.gt.f32.partialorder %v3617_v14, 0.0  ;;  %v3677_v34 = vmul.f32 0.01, %v3617_v14  ;;  %v3620_v31 = vadd.f32 %v5488_v6, %v7944_v47  ;;  %3827 = vadd.xlane.f32.xlu0 %v3826_v23  ;;  %v3611_v51 = vpop.f32.mrb[87].mxu0  ;;  %v3820_v52 = vsel %vm3819_vm12, %v3803_v43, 0.0  ;;  %v3771_v6 = vpop.permute.xlu0 %3770 }
 0xc90   :  { %vm3659_vm14 = vcmp.gt.f32.partialorder %v3609_v16, 0.0  ;;  %v3675_v54 = vmul.f32 0.01, %v3609_v16  ;;  %v3612_v44 = vadd.f32 %v3611_v51, %v7944_v47  ;;  %3821 = vadd.xlane.f32.xlu1 %v3820_v52  ;;  %v3804_v55 = vmul.f32 %v7961_v27, %v3784_v20 }
 0xc91   :  { %v3693_v58 = vsel %vm3661_vm13, %v3617_v14, %v3677_v34  ;;  %vm3662_vm15 = vcmp.gt.f32.partialorder %v3620_v31, 0.0  ;;  %v3678_v40 = vmul.f32 0.01, %v3620_v31  ;;  %v3829_v49 = vsel %vm3819_vm12, %v3806_v59, 0.0 }
 0xc92   :  { %v3691_v53 = vsel %vm3659_vm14, %v3609_v16, %v3675_v54  ;;  %vm3660_vm2 = vcmp.gt.f32.partialorder %v3612_v44, 0.0  ;;  %v3676_v19 = vmul.f32 0.01, %v3612_v44  ;;  %v3823_v7 = vsel %vm3819_vm12, %v3804_v55, 0.0 }
 0xc93   :  { %v3694_v61 = vsel %vm3662_vm15, %v3620_v31, %v3678_v40  ;;  %3824 = vadd.xlane.f32.xlu0 %v3823_v7  ;;  %v3789_v28 = vmul.f32 %v3736_v41, %v3693_v58  ;;  %v3787_v45 = vmul.f32 %v7946_v36, %v3691_v53  ;;  %v3776_v7 = vpop.permute.xlu1 %3775 }
 0xc94   :  { %v3692_v24 = vsel %vm3660_vm2, %v3612_v44, %v3676_v19  ;;  %v5491_v32 = vpop.f32.mrb[88].mxu0  ;;  %3830 = vadd.xlane.f32.xlu1 %v3829_v49  ;;  %v3790_v0 = vmul.f32 %v3741_v57, %v3694_v61 }
 0xc95   :  { %v3633_v42 = vadd.f32 %v5491_v32, %v7944_v47  ;;  %v3624_v15 = vpop.f32.mrb[89].mxu0  ;;  %v3809_v30 = vmul.f32 %v7961_v27, %v3789_v28  ;;  %v3807_v5 = vmul.f32 %v7961_v27, %v3787_v45  ;;  %v3788_v56 = vmul.f32 %v7954_v18, %v3692_v24 }
 0xc96   :  { %v3625_v25 = vadd.f32 %v3624_v15, %v7944_v47  ;;  %v5492_v26 = vpop.f32.mrb[90].mxu0  ;;  %v3810_v38 = vmul.f32 %v7961_v27, %v3790_v0  ;;  %v3781_v0 = vpop.permute.xlu0 %3780 }
 0xc97   :  { %vm3665_vm3 = vcmp.gt.f32.partialorder %v3633_v42, 0.0  ;;  %v3681_v36 = vmul.f32 0.01, %v3633_v42  ;;  %v3636_v63 = vadd.f32 %v5492_v26, %v7944_v47  ;;  %v3627_v50 = vpop.f32.mrb[91].mxu0  ;;  %v3838_v4 = vsel %vm3819_vm12, %v3809_v30, 0.0 }
 0xc98   :  { %vm3663_vm4 = vcmp.gt.f32.partialorder %v3625_v25, 0.0  ;;  %v3679_v33 = vmul.f32 0.01, %v3625_v25  ;;  %v3628_v12 = vadd.f32 %v3627_v50, %v7944_v47  ;;  %3839 = vadd.xlane.f32.xlu0 %v3838_v4  ;;  %v3841_v9 = vsel %vm3819_vm12, %v3810_v38, 0.0 }
 0xc99   :  { %v3697_v41 = vsel %vm3665_vm3, %v3633_v42, %v3681_v36  ;;  %vm3666_vm5 = vcmp.gt.f32.partialorder %v3636_v63, 0.0  ;;  %v3682_v22 = vmul.f32 0.01, %v3636_v63  ;;  %3842 = vadd.xlane.f32.xlu1 %v3841_v9  ;;  %v3808_v37 = vmul.f32 %v7961_v27, %v3788_v56 }
 0xc9a   :  { %v3695_v18 = vsel %vm3663_vm4, %v3625_v25, %v3679_v33  ;;  %vm3664_vm6 = vcmp.gt.f32.partialorder %v3628_v12, 0.0  ;;  %v3680_v35 = vmul.f32 0.01, %v3628_v12  ;;  %v3832_v39 = vsel %vm3819_vm12, %v3807_v5, 0.0 }
 0xc9b   :  { %v3698_v21 = vsel %vm3666_vm5, %v3636_v63, %v3682_v22  ;;  %v3793_v57 = vmul.f32 %v3756_v48, %v3697_v41  ;;  %v3791_v13 = vmul.f32 %v3746_v8, %v3695_v18  ;;  %v3835_v14 = vsel %vm3819_vm12, %v3808_v37, 0.0 }
 0xc9c   :  { %v3696_v62 = vsel %vm3664_vm6, %v3628_v12, %v3680_v35  ;;  %3833 = vadd.xlane.f32.xlu0 %v3832_v39  ;;  %v5495_v1 = vpop.f32.mrb[92].mxu0  ;;  %v3794_v2 = vmul.f32 %v3761_v3, %v3698_v21  ;;  %v8011_v50 = vrot.slane %v7952_v10, %v9045_v29 }
 0xc9d   :  { %v3649_v43 = vadd.f32 %v5495_v1, %v7944_v47  ;;  %v3640_v20 = vpop.f32.mrb[93].mxu0  ;;  %3836 = vadd.xlane.f32.xlu1 %v3835_v14  ;;  %v3813_v16 = vmul.f32 %v7961_v27, %v3793_v57  ;;  %v3811_v31 = vmul.f32 %v7961_v27, %v3791_v13  ;;  %v3792_v51 = vmul.f32 %v3751_v11, %v3696_v62  ;;  %v9056_v62 = vld [vmem:[#allocation21_spill] sm:$0xff] }
 0xc9e   :  { %v3641_v23 = vadd.f32 %v3640_v20, %v7944_v47  ;;  %v5496_v59 = vpop.f32.mrb[94].mxu0  ;;  %v3814_v34 = vmul.f32 %v7961_v27, %v3794_v2 }
 0xc9f   :  { %vm3669_vm7 = vcmp.gt.f32.partialorder %v3649_v43, 0.0  ;;  %v3685_v52 = vmul.f32 0.01, %v3649_v43  ;;  %v3652_v8 = vadd.f32 %v5496_v59, %v7944_v47  ;;  %v3643_v54 = vpop.f32.mrb[95].mxu0  ;;  %v3850_v44 = vsel %vm3819_vm12, %v3813_v16, 0.0 }
 0xca0   :  { %vm3667_vm8 = vcmp.gt.f32.partialorder %v3641_v23, 0.0  ;;  %v3683_v55 = vmul.f32 0.01, %v3641_v23  ;;  %v3644_v58 = vadd.f32 %v3643_v54, %v7944_v47  ;;  %3851 = vadd.xlane.f32.xlu0 %v3850_v44  ;;  %v3853_v40 = vsel %vm3819_vm12, %v3814_v34, 0.0  ;;  %v9059_v44 = vld [vmem:[#allocation31_spill] sm:$0xff] }
 0xca1   :  { %v3701_v53 = vsel %vm3669_vm7, %v3649_v43, %v3685_v52  ;;  %vm3670_vm9 = vcmp.gt.f32.partialorder %v3652_v8, 0.0  ;;  %v3686_v19 = vmul.f32 0.01, %v3652_v8  ;;  %3854 = vadd.xlane.f32.xlu1 %v3853_v40  ;;  %v3812_v49 = vmul.f32 %v7961_v27, %v3792_v51  ;;  %v9057_v43 = vld [vmem:[#allocation5_spill] sm:$0xff]  ;;  %v9058_v51 = vld [vmem:[#allocation30_spill] sm:$0xff] }
 0xca2   :  { %v3699_v11 = vsel %vm3667_vm8, %v3641_v23, %v3683_v55  ;;  %vm3668_vm10 = vcmp.gt.f32.partialorder %v3644_v58, 0.0  ;;  %v3684_v61 = vmul.f32 0.01, %v3644_v58  ;;  %v3844_v45 = vsel %vm3819_vm12, %v3811_v31, 0.0 }
 0xca3   :  { %v3702_v28 = vsel %vm3670_vm9, %v3652_v8, %v3686_v19  ;;  %v3795_v24 = vmul.f32 %v3766_v17, %v3699_v11  ;;  %v3797_v32 = vmul.f32 %v3776_v7, %v3701_v53  ;;  %v3847_v42 = vsel %vm3819_vm12, %v3812_v49, 0.0 }
 0xca4   :  { %v3700_v47 = vsel %vm3668_vm10, %v3644_v58, %v3684_v61  ;;  %3845 = vadd.xlane.f32.xlu0 %v3844_v45  ;;  %v3798_v48 = vmul.f32 %v3781_v0, %v3702_v28  ;;  %v9060_v61 = vld [vmem:[#allocation26_spill] sm:$0xff] }
 0xca5   :  { %3848 = vadd.xlane.f32.xlu1 %v3847_v42  ;;  %v3815_v15 = vmul.f32 %v7961_v27, %v3795_v24  ;;  %v3796_v30 = vmul.f32 %v3771_v6, %v3700_v47  ;;  %v3817_v38 = vmul.f32 %v7961_v27, %v3797_v32  ;;  %v9061_v24 = vld [vmem:[#allocation29_spill] sm:$0xff] }
 0xca6   :  { %v3818_v56 = vmul.f32 %v7961_v27, %v3798_v48 }
 0xca7   :  { %v3856_v25 = vsel %vm3819_vm12, %v3815_v15, 0.0  ;;  %v3816_v26 = vmul.f32 %v7961_v27, %v3796_v30  ;;  %v3862_v36 = vsel %vm3819_vm12, %v3817_v38, 0.0 }
 0xca8   :  { %3857 = vadd.xlane.f32.xlu0 %v3856_v25  ;;  %v3865_v63 = vsel %vm3819_vm12, %v3818_v56, 0.0  ;;  %v9062_v25 = vld [vmem:[#allocation34_spill] sm:$0xff]  ;;  %v9063_v56 = vld [vmem:[#allocation35_spill] sm:$0xff] }
 0xca9   :  { %v3859_v5 = vsel %vm3819_vm12, %v3816_v26, 0.0 }
 0xcaa   :  { %3860 = vadd.xlane.f32.xlu1 %v3859_v5 }
 0xcac   :  { %3863 = vadd.xlane.f32.xlu0 %v3862_v36 }
 0xcae   :  { %3866 = vadd.xlane.f32.xlu1 %v3865_v63 }
 0xd1c   :  { %v3828_v4 = vpop.xlane.xlu0 %3827 }
 0xd1d   :  { %v3874_v3 = vadd.f32 %v8011_v50, %v3828_v4  ;;  %v3822_v33 = vpop.xlane.xlu1 %3821 }
 0xd1e   :  { %v3872_v12 = vadd.f32 %v8011_v50, %v3822_v33 }
 0xd1f   :  { %vm3890_vm11 = vcmp.gt.f32.partialorder %v3874_v3, 0.0  ;;  %v3906_v9 = vmul.f32 0.01, %v3874_v3 }
 0xd20   :  { %vm3888_vm13 = vcmp.gt.f32.partialorder %v3872_v12, 0.0  ;;  %v3904_v27 = vmul.f32 0.01, %v3872_v12  ;;  %v3825_v41 = vpop.xlane.xlu0 %3824 }
 0xd21   :  { %v3922_v22 = vsel %vm3890_vm11, %v3874_v3, %v3906_v9  ;;  %v3873_v18 = vadd.f32 %v8011_v50, %v3825_v41  ;;  %v3831_v35 = vpop.xlane.xlu1 %3830  ;;  %v9064_v9 = vld [vmem:[#allocation32_spill] sm:$0xff] }
 0xd22   :  { %v8017_v37 = vmul.f32 %v3922_v22, %v7526_v46  ;;  %v3920_v29 = vsel %vm3888_vm13, %v3872_v12, %v3904_v27  ;;  %v3875_v10 = vadd.f32 %v8011_v50, %v3831_v35 }
 0xd23   :  { %v8021_v21 = vmul.f32 %v3920_v29, %v7512_v60  ;;  %vm3889_vm14 = vcmp.gt.f32.partialorder %v3873_v18, 0.0  ;;  %v3905_v39 = vmul.f32 0.01, %v3873_v18 }
 0xd24   :  { %vm3891_vm15 = vcmp.gt.f32.partialorder %v3875_v10, 0.0  ;;  %v3907_v57 = vmul.f32 0.01, %v3875_v10  ;;  %3980 = vperm.xlu1 %5577, %v8017_v37  }
 0xd25   :  { %v3921_v13 = vsel %vm3889_vm14, %v3873_v18, %v3905_v39  ;;  %v3840_v17 = vpop.xlane.xlu0 %3839  ;;  %3970 = vperm.xlu0 %5578, %v8021_v21   ;;  %v9065_v18 = vld [vmem:[#allocation33_spill] sm:$0xff] }
 0xd26   :  { %v8026_v1 = vmul.f32 %v3921_v13, %v9056_v62  ;;  %v3923_v46 = vsel %vm3891_vm15, %v3875_v10, %v3907_v57  ;;  %v3878_v14 = vadd.f32 %v8011_v50, %v3840_v17  ;;  %v3843_v2 = vpop.xlane.xlu1 %3842  ;;  %v9066_v62 = vld [vmem:[#allocation27_spill] sm:$0xff] }
 0xd27   :  { %v8030_v60 = vmul.f32 %v3923_v46, %v9057_v43  ;;  %v3879_v20 = vadd.f32 %v8011_v50, %v3843_v2 }
 0xd28   :  { %vm3894_vm2 = vcmp.gt.f32.partialorder %v3878_v14, 0.0  ;;  %v3910_v16 = vmul.f32 0.01, %v3878_v14  ;;  %3975 = vperm.xlu1 %5577, %v8026_v1  }
 0xd29   :  { %vm3895_vm3 = vcmp.gt.f32.partialorder %v3879_v20, 0.0  ;;  %v3911_v6 = vmul.f32 0.01, %v3879_v20  ;;  %v3834_v23 = vpop.xlane.xlu0 %3833  ;;  %3985 = vperm.xlu0 %5578, %v8030_v60  }
 0xd2a   :  { %v3926_v59 = vsel %vm3894_vm2, %v3878_v14, %v3910_v16  ;;  %v3876_v34 = vadd.f32 %v8011_v50, %v3834_v23  ;;  %v3837_v31 = vpop.xlane.xlu1 %3836  ;;  %v9067_v16 = vld [vmem:[#allocation28_spill] sm:$0xff] }
 0xd2b   :  { %v8037_v52 = vmul.f32 %v3926_v59, %v9058_v51  ;;  %v3927_v8 = vsel %vm3895_vm3, %v3879_v20, %v3911_v6  ;;  %v3877_v54 = vadd.f32 %v8011_v50, %v3837_v31 }
 0xd2c   :  { %v8041_v55 = vmul.f32 %v3927_v8, %v9059_v44  ;;  %vm3892_vm4 = vcmp.gt.f32.partialorder %v3876_v34, 0.0  ;;  %v3908_v58 = vmul.f32 0.01, %v3876_v34  ;;  %v9069_v8 = vld [vmem:[#allocation7_spill] sm:$0xff] }
 0xd2d   :  { %vm3893_vm5 = vcmp.gt.f32.partialorder %v3877_v54, 0.0  ;;  %v3909_v40 = vmul.f32 0.01, %v3877_v54  ;;  %4000 = vperm.xlu1 %5577, %v8037_v52   ;;  %v3852_v53 = vpop.xlane.xlu0 %3851 }
 0xd2e   :  { %v3924_v19 = vsel %vm3892_vm4, %v3876_v34, %v3908_v58  ;;  %v3882_v7 = vadd.f32 %v8011_v50, %v3852_v53  ;;  %4005 = vperm.xlu0 %5578, %v8041_v55   ;;  %v3855_v11 = vpop.xlane.xlu1 %3854  ;;  %v9068_v34 = vld [vmem:[#allocation12_spill] sm:$0xff]  ;;  %v8096_v53 = vld [vmem:[%s8854_s3 + $0x10] sm:$0xff] }
 0xd2f   :  { %v8047_v49 = vmul.f32 %v3924_v19, %v9060_v61  ;;  %v3925_v28 = vsel %vm3893_vm5, %v3877_v54, %v3909_v40  ;;  %v3883_v45 = vadd.f32 %v8011_v50, %v3855_v11  ;;  %vm3954_vm15 = vcmp.gt.f32.partialorder %v8096_v53, 0.0  ;;  %v8108_v11 = vld [vmem:[%s8854_s3 + $0x8] sm:$0xff] }
 0xd30   :  { %v8051_v32 = vmul.f32 %v3925_v28, %v9061_v24  ;;  %vm3898_vm6 = vcmp.gt.f32.partialorder %v3882_v7, 0.0  ;;  %v3914_v0 = vmul.f32 0.01, %v3882_v7  ;;  %vm3953_vm3 = vcmp.gt.f32.partialorder %v8108_v11, 0.0  ;;  %v8114_v24 = vld [vmem:[%s8854_s3 + $0x18] sm:$0xff] }
 0xd31   :  { %vm3899_vm7 = vcmp.gt.f32.partialorder %v3883_v45, 0.0  ;;  %v3915_v47 = vmul.f32 0.01, %v3883_v45  ;;  %3990 = vperm.xlu1 %5577, %v8047_v49   ;;  %v3846_v42 = vpop.xlane.xlu0 %3845  ;;  %vm3955_vm4 = vcmp.gt.f32.partialorder %v8114_v24, 0.0 }
 0xd32   :  { %v3930_v15 = vsel %vm3898_vm6, %v3882_v7, %v3914_v0  ;;  %v3880_v30 = vadd.f32 %v8011_v50, %v3846_v42  ;;  %3995 = vperm.xlu0 %5578, %v8051_v32   ;;  %v3849_v48 = vpop.xlane.xlu1 %3848  ;;  %v8102_v7 = vld [vmem:[%s8854_s3] sm:$0xff]  ;;  %v8120_v0 = vld [vmem:[%s8854_s3 + $0x30] sm:$0xff] }
 0xd33   :  { %v8057_v26 = vmul.f32 %v3930_v15, %v9062_v25  ;;  %v3931_v38 = vsel %vm3899_vm7, %v3883_v45, %v3915_v47  ;;  %v3881_v5 = vadd.f32 %v8011_v50, %v3849_v48  ;;  %vm3952_vm2 = vcmp.gt.f32.partialorder %v8102_v7, 0.0  ;;  %v8126_v47 = vld [vmem:[%s8854_s3 + $0x38] sm:$0xff]  ;;  %v8132_v42 = vld [vmem:[%s8854_s3 + $0x20] sm:$0xff]  ;;  %v8138_v15 = vld [vmem:[%s8854_s3 + $0x28] sm:$0xff] }
 0xd34   :  { %v8061_v36 = vmul.f32 %v3931_v38, %v9063_v56  ;;  %vm3896_vm8 = vcmp.gt.f32.partialorder %v3880_v30, 0.0  ;;  %v3912_v63 = vmul.f32 0.01, %v3880_v30  ;;  %vm3958_vm5 = vcmp.gt.f32.partialorder %v8120_v0, 0.0 }
 0xd35   :  { %vm3897_vm9 = vcmp.gt.f32.partialorder %v3881_v5, 0.0  ;;  %v3913_v4 = vmul.f32 0.01, %v3881_v5  ;;  %4020 = vperm.xlu1 %5577, %v8057_v26   ;;  %v3858_v3 = vpop.xlane.xlu0 %3857  ;;  %vm3959_vm6 = vcmp.gt.f32.partialorder %v8126_v47, 0.0  ;;  %vm3956_vm7 = vcmp.gt.f32.partialorder %v8132_v42, 0.0 }
 0xd36   :  { %v3928_v33 = vsel %vm3896_vm8, %v3880_v30, %v3912_v63  ;;  %v3884_v12 = vadd.f32 %v8011_v50, %v3858_v3  ;;  %4025 = vperm.xlu0 %5578, %v8061_v36   ;;  %vm3957_vm8 = vcmp.gt.f32.partialorder %v8138_v15, 0.0  ;;  %v8144_v30 = vld [vmem:[%s8854_s3 + $0x50] sm:$0xff]  ;;  %v8162_v3 = vld [vmem:[%s8854_s3 + $0x58] sm:$0xff] }
 0xd37   :  { %v8067_v27 = vmul.f32 %v3928_v33, %v9064_v9  ;;  %v3929_v41 = vsel %vm3897_vm9, %v3881_v5, %v3913_v4  ;;  %v3861_v22 = vpop.xlane.xlu1 %3860  ;;  %vm3962_vm9 = vcmp.gt.f32.partialorder %v8144_v30, 0.0  ;;  %v8168_v33 = vld [vmem:[%s8854_s3 + $0x48] sm:$0xff] }
 0xd38   :  { %v8070_v35 = vmul.f32 %v3929_v41, %v9065_v18  ;;  %vm3900_vm10 = vcmp.gt.f32.partialorder %v3884_v12, 0.0  ;;  %v3916_v29 = vmul.f32 0.01, %v3884_v12  ;;  %v3885_v10 = vadd.f32 %v8011_v50, %v3861_v22  ;;  %v8180_v22 = vld [vmem:[%s8854_s3 + $0x40] sm:$0xff] }
 0xd39   :  { %4010 = vperm.xlu1 %5577, %v8067_v27   ;;  %v3864_v39 = vpop.xlane.xlu0 %3863 }
 0xd3a   :  { %v3932_v57 = vsel %vm3900_vm10, %v3884_v12, %v3916_v29  ;;  %vm3901_vm11 = vcmp.gt.f32.partialorder %v3885_v10, 0.0  ;;  %v3917_v13 = vmul.f32 0.01, %v3885_v10  ;;  %v3886_v17 = vadd.f32 %v8011_v50, %v3864_v39  ;;  %4015 = vperm.xlu0 %5578, %v8070_v35  }
 0xd3b   :  { %v8077_v46 = vmul.f32 %v3932_v57, %v9066_v62  ;;  %v3867_v14 = vpop.xlane.xlu1 %3866  ;;  %vm3963_vm10 = vcmp.gt.f32.partialorder %v8162_v3, 0.0  ;;  %v8197_v57 = vld [vmem:[%s8854_s3 + $0x60] sm:$0xff] }
 0xd3c   :  { %v3933_v2 = vsel %vm3901_vm11, %v3885_v10, %v3917_v13  ;;  %vm3902_vm13 = vcmp.gt.f32.partialorder %v3886_v17, 0.0  ;;  %v3918_v43 = vmul.f32 0.01, %v3886_v17  ;;  %v3887_v20 = vadd.f32 %v8011_v50, %v3867_v14 }
 0xd3d   :  { %v8081_v6 = vmul.f32 %v3933_v2, %v9067_v16  ;;  %4030 = vperm.xlu1 %5577, %v8077_v46   ;;  %vm3961_vm11 = vcmp.gt.f32.partialorder %v8168_v33, 0.0  ;;  %v8209_v2 = vld [vmem:[%s8854_s3 + $0x68] sm:$0xff] }
 0xd3e   :  { %v3934_v23 = vsel %vm3902_vm13, %v3886_v17, %v3918_v43  ;;  %vm3903_vm14 = vcmp.gt.f32.partialorder %v3887_v20, 0.0  ;;  %v3919_v59 = vmul.f32 0.01, %v3887_v20  ;;  %vm3960_vm13 = vcmp.gt.f32.partialorder %v8180_v22, 0.0 }
 0xd3f   :  { %v8085_v31 = vmul.f32 %v3934_v23, %v9068_v34  ;;  %4035 = vperm.xlu0 %5578, %v8081_v6  }
 0xd40   :  { %v3935_v51 = vsel %vm3903_vm14, %v3887_v20, %v3919_v59  ;;  %vm3964_vm14 = vcmp.gt.f32.partialorder %v8197_v57, 0.0 }
 0xd41   :  { %v8089_v54 = vmul.f32 %v3935_v51, %v9069_v8  ;;  %4040 = vperm.xlu1 %5577, %v8085_v31  }
 0xd43   :  { %4045 = vperm.xlu0 %5578, %v8089_v54  }
 0xda3   :  { %v3981_v50 = vpop.permute.xlu1 %3980 }
 0xda4   :  { %v3971_v44 = vpop.permute.xlu0 %3970  ;;  %v4050_v28 = vsel %vm3954_vm15, %v3981_v50, -1e+30  ;;  %v4103_v45 = vsel %vm3954_vm15, %v3981_v50, 1e+30  ;;  %vm3965_vm15 = vcmp.gt.f32.partialorder %v8209_v2, 0.0  ;;  %v8228_v50 = vld [vmem:[%s8854_s3 + $0x70] sm:$0xff] }
 0xda5   :  { %v4048_v48 = vsel %vm3952_vm2, %v3971_v44, -1e+30  ;;  %v4101_v25 = vsel %vm3952_vm2, %v3971_v44, 1e+30  ;;  %v8154_v56 = vsel %vm83_vm0, %v4050_v28, -inf  ;;  %v8157_v63 = vsel %vm83_vm0, %v4103_v45, inf }
 0xda6   :  { %v8184_v18 = vsel %vm83_vm0, %v4048_v48, -inf  ;;  %v8187_v29 = vsel %vm83_vm0, %v4101_v25, inf  ;;  %vm3966_vm2 = vcmp.gt.f32.partialorder %v8228_v50, 0.0 }
 0xda7   :  { %v3976_v58 = vpop.permute.xlu1 %3975 }
 0xda8   :  { %v3986_v40 = vpop.permute.xlu0 %3985  ;;  %v4049_v38 = vsel %vm3953_vm3, %v3976_v58, -1e+30  ;;  %v4102_v12 = vsel %vm3953_vm3, %v3976_v58, 1e+30 }
 0xda9   :  { %v8190_v10 = vsel %vm83_vm0, %v4049_v38, -inf  ;;  %v4051_v39 = vsel %vm3955_vm4, %v3986_v40, -1e+30  ;;  %v4104_v13 = vsel %vm3955_vm4, %v3986_v40, 1e+30  ;;  %v8213_v43 = vsel %vm83_vm0, %v4102_v12, inf }
 0xdaa   :  { %v4067_v44 = vsel %vm83_vm0, %v4051_v39, -inf  ;;  %v4120_v58 = vsel %vm83_vm0, %v4104_v13, inf  ;;  %vm5003_vm4 = vcmask 253952  }
 0xdac   :  { %v4001_v19 = vpop.permute.xlu1 %4000 }
 0xdad   :  { %v4006_v61 = vpop.permute.xlu0 %4005  ;;  %v4054_v9 = vsel %vm3958_vm5, %v4001_v19, -1e+30  ;;  %v4107_v41 = vsel %vm3958_vm5, %v4001_v19, 1e+30 }
 0xdae   :  { %v4055_v17 = vsel %vm3959_vm6, %v4006_v61, -1e+30  ;;  %v4108_v62 = vsel %vm3959_vm6, %v4006_v61, 1e+30  ;;  %v4072_v20 = vsel %vm83_vm0, %v4054_v9, -inf  ;;  %v4125_v16 = vsel %vm83_vm0, %v4107_v41, inf }
 0xdaf   :  { %v4074_v40 = vsel %vm83_vm0, %v4055_v17, -inf  ;;  %v4127_v19 = vsel %vm83_vm0, %v4108_v62, inf  ;;  %v4073_v61 = vmax.f32 %v8154_v56, %v4072_v20  ;;  %v4126_v28 = vmin.f32 %v8157_v63, %v4125_v16  ;;  %v8248_v56 = vld [vmem:[%s8854_s3 + $0x78] sm:$0xff] }
 0xdb0   :  { %v3991_v5 = vpop.permute.xlu1 %3990  ;;  %vm3967_vm3 = vcmp.gt.f32.partialorder %v8248_v56, 0.0  ;;  %v4075_v63 = vmax.f32 %v4067_v44, %v4074_v40  ;;  %v4128_v41 = vmin.f32 %v4120_v58, %v4127_v19 }
 0xdb1   :  { %v3996_v4 = vpop.permute.xlu0 %3995  ;;  %v4052_v23 = vsel %vm3956_vm7, %v3991_v5, -1e+30  ;;  %v4105_v34 = vsel %vm3956_vm7, %v3991_v5, 1e+30 }
 0xdb2   :  { %v4053_v51 = vsel %vm3957_vm8, %v3996_v4, -1e+30  ;;  %v4106_v8 = vsel %vm3957_vm8, %v3996_v4, 1e+30  ;;  %v4068_v45 = vsel %vm83_vm0, %v4052_v23, -inf  ;;  %v4121_v38 = vsel %vm83_vm0, %v4105_v34, inf }
 0xdb3   :  { %v4070_v5 = vsel %vm83_vm0, %v4053_v51, -inf  ;;  %v4123_v4 = vsel %vm83_vm0, %v4106_v8, inf  ;;  %v4069_v17 = vmax.f32 %v8184_v18, %v4068_v45  ;;  %v4122_v16 = vmin.f32 %v8187_v29, %v4121_v38 }
 0xdb4   :  { %v4021_v14 = vpop.permute.xlu1 %4020  ;;  %v4071_v23 = vmax.f32 %v8190_v10, %v4070_v5  ;;  %v4124_v34 = vmin.f32 %v8213_v43, %v4123_v4 }
 0xdb5   :  { %v4026_v59 = vpop.permute.xlu0 %4025  ;;  %v4058_v48 = vsel %vm3962_vm9, %v4021_v14, -1e+30  ;;  %v4111_v12 = vsel %vm3962_vm9, %v4021_v14, 1e+30 }
 0xdb6   :  { %v4059_v39 = vsel %vm3963_vm10, %v4026_v59, -1e+30  ;;  %v4112_v13 = vsel %vm3963_vm10, %v4026_v59, 1e+30  ;;  %v4080_v62 = vsel %vm83_vm0, %v4058_v48, -inf  ;;  %v4133_v51 = vsel %vm83_vm0, %v4111_v12, inf }
 0xdb7   :  { %v4082_v59 = vsel %vm83_vm0, %v4059_v39, -inf  ;;  %v4135_v18 = vsel %vm83_vm0, %v4112_v13, inf  ;;  %v4081_v40 = vmax.f32 %v4073_v61, %v4080_v62  ;;  %v4134_v45 = vmin.f32 %v4126_v28, %v4133_v51 }
 0xdb8   :  { %v4011_v25 = vpop.permute.xlu1 %4010  ;;  %v4136_v61 = vmin.f32 %v4128_v41, %v4135_v18 }
 0xdb9   :  { %v4016_v9 = vpop.permute.xlu0 %4015  ;;  %v4056_v44 = vsel %vm3960_vm13, %v4011_v25, -1e+30  ;;  %v4109_v58 = vsel %vm3960_vm13, %v4011_v25, 1e+30  ;;  %v4083_v25 = vmax.f32 %v4075_v63, %v4082_v59 }
 0xdba   :  { %v4057_v14 = vsel %vm3961_vm11, %v4016_v9, -1e+30  ;;  %v4110_v20 = vsel %vm3961_vm11, %v4016_v9, 1e+30  ;;  %v4076_v4 = vsel %vm83_vm0, %v4056_v44, -inf  ;;  %v4129_v12 = vsel %vm83_vm0, %v4109_v58, inf }
 0xdbb   :  { %v4078_v29 = vsel %vm83_vm0, %v4057_v14, -inf  ;;  %v4131_v10 = vsel %vm83_vm0, %v4110_v20, inf  ;;  %v4130_v59 = vmin.f32 %v4122_v16, %v4129_v12 }
 0xdbc   :  { %v4031_v8 = vpop.permute.xlu1 %4030  ;;  %v4079_v14 = vmax.f32 %v4071_v23, %v4078_v29  ;;  %v4132_v20 = vmin.f32 %v4124_v34, %v4131_v10 }
 0xdbd   :  { %v4060_v43 = vsel %vm3964_vm14, %v4031_v8, -1e+30  ;;  %v4113_v48 = vsel %vm3964_vm14, %v4031_v8, 1e+30  ;;  %v4077_v8 = vmax.f32 %v4069_v17, %v4076_v4 }
 0xdbe   :  { %v4036_v19 = vpop.permute.xlu0 %4035  ;;  %v4084_v63 = vsel %vm83_vm0, %v4060_v43, -inf  ;;  %v4137_v41 = vsel %vm83_vm0, %v4113_v48, inf }
 0xdbf   :  { %v4061_v38 = vsel %vm3965_vm15, %v4036_v19, -1e+30  ;;  %v4114_v5 = vsel %vm3965_vm15, %v4036_v19, 1e+30  ;;  %v4085_v34 = vmax.f32 %v4077_v8, %v4084_v63  ;;  %v4138_v29 = vmin.f32 %v4130_v59, %v4137_v41 }
 0xdc0   :  { %v4041_v9 = vpop.permute.xlu1 %4040  ;;  %v4086_v39 = vsel %vm83_vm0, %v4061_v38, -inf  ;;  %v4139_v28 = vsel %vm83_vm0, %v4114_v5, inf }
 0xdc1   :  { %v4062_v13 = vsel %vm3966_vm2, %v4041_v9, -1e+30  ;;  %v4115_v62 = vsel %vm3966_vm2, %v4041_v9, 1e+30  ;;  %v4087_v58 = vmax.f32 %v4079_v14, %v4086_v39  ;;  %v4140_v19 = vmin.f32 %v4132_v20, %v4139_v28 }
 0xdc2   :  { %v4046_v51 = vpop.permute.xlu0 %4045  ;;  %v4088_v18 = vsel %vm83_vm0, %v4062_v13, -inf  ;;  %v4141_v44 = vsel %vm83_vm0, %v4115_v62, inf }
 0xdc3   :  { %v4063_v38 = vsel %vm3967_vm3, %v4046_v51, -1e+30  ;;  %v4116_v23 = vsel %vm3967_vm3, %v4046_v51, 1e+30  ;;  %v4089_v17 = vmax.f32 %v4081_v40, %v4088_v18  ;;  %v4142_v16 = vmin.f32 %v4134_v45, %v4141_v44 }
 0xdc4   :  { %v4090_v10 = vsel %vm83_vm0, %v4063_v38, -inf  ;;  %v4143_v43 = vsel %vm83_vm0, %v4116_v23, inf  ;;  %v4092_v4 = vmax.f32 %v4085_v34, %v4087_v58  ;;  %v4145_v12 = vmin.f32 %v4138_v29, %v4140_v19 }
 0xdc5   :  { %v4091_v48 = vmax.f32 %v4083_v25, %v4090_v10  ;;  %v4144_v5 = vmin.f32 %v4136_v61, %v4143_v43 }
 0xdc7   :  { %v4093_v9 = vmax.f32 %v4089_v17, %v4091_v48  ;;  %v4146_v39 = vmin.f32 %v4142_v16, %v4144_v5 }
 0xdc9   :  { %v4094_v28 = vmax.f32 %v4092_v4, %v4093_v9  ;;  %v4147_v13 = vmin.f32 %v4145_v12, %v4146_v39 }
 0xdcb   :  { %v4095_v62 = vrot.slane %v4094_v28, 4  ;;  %v4148_v14 = vrot.slane %v4147_v13, 4 }
 0xdcd   :  { %v4096_v20 = vmax.f32 %v4094_v28, %v4095_v62  ;;  %v4149_v51 = vmin.f32 %v4147_v13, %v4148_v14 }
 0xdcf   :  { %v4097_v63 = vrot.slane %v4096_v20, 2  ;;  %v4150_v41 = vrot.slane %v4149_v51, 2 }
 0xdd1   :  { %v4098_v8 = vmax.f32 %v4096_v20, %v4097_v63  ;;  %v4151_v59 = vmin.f32 %v4149_v51, %v4150_v41 }
 0xdd3   :  { %v4099_v38 = vrot.slane %v4098_v8, 1  ;;  %v4152_v23 = vrot.slane %v4151_v59, 1 }
 0xdd5   :  { %v8299_v40 = vmax.f32 %v4098_v8, %v4099_v38  ;;  %v8301_v45 = vmin.f32 %v4151_v59, %v4152_v23 }
 0xdd7   :  { %v4155_v25 = vmul.f32 %v8108_v11, %v8299_v40  ;;  %v4154_v61 = vmul.f32 %v8102_v7, %v8299_v40  ;;  %v4218_v58 = vmul.f32 %v8102_v7, %v8301_v45  ;;  %v4219_v19 = vmul.f32 %v8108_v11, %v8301_v45 }
 0xdd8   :  { %v4156_v10 = vmul.f32 %v8096_v53, %v8299_v40  ;;  %v4157_v43 = vmul.f32 %v8114_v24, %v8299_v40  ;;  %v4220_v11 = vmul.f32 %v8096_v53, %v8301_v45  ;;  %v4221_v16 = vmul.f32 %v8114_v24, %v8301_v45 }
 0xdd9   :  { %v4173_v18 = vsel %vm83_vm0, %v4155_v25, 0.0  ;;  %v4170_v44 = vsel %vm83_vm0, %v4154_v61, 0.0  ;;  %v4234_v34 = vsel %vm83_vm0, %v4218_v58, 0.0  ;;  %v4237_v29 = vsel %vm83_vm0, %v4219_v19, 0.0 }
 0xdda   :  { %4174 = vadd.xlane.f32.xlu0 %v4173_v18  ;;  %4171 = vadd.xlane.f32.xlu1 %v4170_v44  ;;  %v4176_v17 = vsel %vm83_vm0, %v4156_v10, 0.0  ;;  %v4179_v7 = vsel %vm83_vm0, %v4157_v43, 0.0  ;;  %v4240_v48 = vsel %vm83_vm0, %v4220_v11, 0.0  ;;  %v4243_v5 = vsel %vm83_vm0, %v4221_v16, 0.0 }
 0xddb   :  { %v4158_v4 = vmul.f32 %v8132_v42, %v8299_v40  ;;  %v4159_v12 = vmul.f32 %v8138_v15, %v8299_v40  ;;  %v4222_v24 = vmul.f32 %v8132_v42, %v8301_v45  ;;  %v4223_v39 = vmul.f32 %v8138_v15, %v8301_v45 }
 0xddc   :  { %v4160_v62 = vmul.f32 %v8120_v0, %v8299_v40  ;;  %v4161_v14 = vmul.f32 %v8126_v47, %v8299_v40  ;;  %v4224_v15 = vmul.f32 %v8120_v0, %v8301_v45  ;;  %v4225_v51 = vmul.f32 %v8126_v47, %v8301_v45 }
 0xddd   :  { %v4182_v9 = vsel %vm83_vm0, %v4158_v4, 0.0  ;;  %v4185_v53 = vsel %vm83_vm0, %v4159_v12, 0.0  ;;  %v4246_v28 = vsel %vm83_vm0, %v4222_v24, 0.0  ;;  %v4249_v13 = vsel %vm83_vm0, %v4223_v39, 0.0 }
 0xdde   :  { %4235 = vadd.xlane.f32.xlu0 %v4234_v34  ;;  %4238 = vadd.xlane.f32.xlu1 %v4237_v29  ;;  %v4188_v20 = vsel %vm83_vm0, %v4160_v62, 0.0  ;;  %v4191_v42 = vsel %vm83_vm0, %v4161_v14, 0.0  ;;  %v4252_v63 = vsel %vm83_vm0, %v4224_v15, 0.0  ;;  %v4255_v41 = vsel %vm83_vm0, %v4225_v51, 0.0 }
 0xddf   :  { %v4162_v8 = vmul.f32 %v8180_v22, %v8299_v40  ;;  %v4163_v59 = vmul.f32 %v8168_v33, %v8299_v40  ;;  %v4226_v47 = vmul.f32 %v8180_v22, %v8301_v45  ;;  %v4227_v23 = vmul.f32 %v8168_v33, %v8301_v45 }
 0xde0   :  { %v4164_v18 = vmul.f32 %v8144_v30, %v8299_v40  ;;  %v4165_v44 = vmul.f32 %v8162_v3, %v8299_v40  ;;  %v4228_v33 = vmul.f32 %v8144_v30, %v8301_v45  ;;  %v4229_v19 = vmul.f32 %v8162_v3, %v8301_v45 }
 0xde1   :  { %v4194_v38 = vsel %vm83_vm0, %v4162_v8, 0.0  ;;  %v4197_v0 = vsel %vm83_vm0, %v4163_v59, 0.0  ;;  %v4258_v25 = vsel %vm83_vm0, %v4226_v47, 0.0  ;;  %v4261_v61 = vsel %vm83_vm0, %v4227_v23, 0.0 }
 0xde2   :  { %4177 = vadd.xlane.f32.xlu0 %v4176_v17  ;;  %4180 = vadd.xlane.f32.xlu1 %v4179_v7  ;;  %v4200_v58 = vsel %vm83_vm0, %v4164_v18, 0.0  ;;  %v4203_v22 = vsel %vm83_vm0, %v4165_v44, 0.0  ;;  %v4264_v34 = vsel %vm83_vm0, %v4228_v33, 0.0  ;;  %v4267_v29 = vsel %vm83_vm0, %v4229_v19, 0.0 }
 0xde3   :  { %v4166_v10 = vmul.f32 %v8197_v57, %v8299_v40  ;;  %v4167_v43 = vmul.f32 %v8209_v2, %v8299_v40  ;;  %v4230_v3 = vmul.f32 %v8197_v57, %v8301_v45  ;;  %v4231_v7 = vmul.f32 %v8209_v2, %v8301_v45 }
 0xde4   :  { %v4232_v2 = vmul.f32 %v8228_v50, %v8301_v45  ;;  %v4233_v12 = vmul.f32 %v8248_v56, %v8301_v45 }
 0xde5   :  { %v4206_v17 = vsel %vm83_vm0, %v4166_v10, 0.0  ;;  %v4209_v30 = vsel %vm83_vm0, %v4167_v43, 0.0  ;;  %v4270_v11 = vsel %vm83_vm0, %v4230_v3, 0.0  ;;  %v4273_v16 = vsel %vm83_vm0, %v4231_v7, 0.0 }
 0xde6   :  { %4241 = vadd.xlane.f32.xlu0 %v4240_v48  ;;  %4244 = vadd.xlane.f32.xlu1 %v4243_v5  ;;  %v4168_v48 = vmul.f32 %v8228_v50, %v8299_v40  ;;  %v4169_v5 = vmul.f32 %v8248_v56, %v8299_v40  ;;  %v5635_v40 = vld [vmem:[%s8853_s2] sm:$0xff]  }
 0xde7   :  { %5513 = vmatprep.mubr.bf16.mxu1 %v5635_v40 }
 0xde8   :  { %v4212_v4 = vsel %vm83_vm0, %v4168_v48, 0.0  ;;  %v4215_v57 = vsel %vm83_vm0, %v4169_v5, 0.0 }
 0xdea   :  { %4183 = vadd.xlane.f32.xlu0 %v4182_v9  ;;  %4186 = vadd.xlane.f32.xlu1 %v4185_v53  ;;  %v4276_v9 = vsel %vm83_vm0, %v4232_v2, 0.0  ;;  %v4279_v53 = vsel %vm83_vm0, %v4233_v12, 0.0 }
 0xdee   :  { %4247 = vadd.xlane.f32.xlu0 %v4246_v28  ;;  %4250 = vadd.xlane.f32.xlu1 %v4249_v13 }
 0xdf2   :  { %4189 = vadd.xlane.f32.xlu0 %v4188_v20  ;;  %4192 = vadd.xlane.f32.xlu1 %v4191_v42 }
 0xdf6   :  { %4253 = vadd.xlane.f32.xlu0 %v4252_v63  ;;  %4256 = vadd.xlane.f32.xlu1 %v4255_v41 }
 0xdfa   :  { %4195 = vadd.xlane.f32.xlu0 %v4194_v38  ;;  %4198 = vadd.xlane.f32.xlu1 %v4197_v0 }
 0xdfe   :  { %4259 = vadd.xlane.f32.xlu0 %v4258_v25  ;;  %4262 = vadd.xlane.f32.xlu1 %v4261_v61 }
 0xe02   :  { %4201 = vadd.xlane.f32.xlu0 %v4200_v58  ;;  %4204 = vadd.xlane.f32.xlu1 %v4203_v22 }
 0xe06   :  { %4265 = vadd.xlane.f32.xlu0 %v4264_v34  ;;  %4268 = vadd.xlane.f32.xlu1 %v4267_v29 }
 0xe0a   :  { %4207 = vadd.xlane.f32.xlu0 %v4206_v17  ;;  %4210 = vadd.xlane.f32.xlu1 %v4209_v30 }
 0xe0e   :  { %4271 = vadd.xlane.f32.xlu0 %v4270_v11  ;;  %4274 = vadd.xlane.f32.xlu1 %v4273_v16 }
 0xe12   :  { %4213 = vadd.xlane.f32.xlu0 %v4212_v4  ;;  %4216 = vadd.xlane.f32.xlu1 %v4215_v57 }
 0xe16   :  { %4277 = vadd.xlane.f32.xlu0 %v4276_v9  ;;  %4280 = vadd.xlane.f32.xlu1 %v4279_v53 }
 0xe67   :  { %v4175_v24 = vpop.xlane.xlu0 %4174  ;;  %v4172_v39 = vpop.xlane.xlu1 %4171 }
 0xe68   :  { %v4299_v28 = vadd.f32 1e-06, %v4175_v24  ;;  %v4298_v50 = vadd.f32 1e-06, %v4172_v39 }
 0xe6b   :  { %v4236_v13 = vpop.xlane.xlu0 %4235  ;;  %v4239_v62 = vpop.xlane.xlu1 %4238 }
 0xe6c   :  { %v4314_v56 = vsub.f32 %v4298_v50, %v4236_v13  ;;  %v4315_v45 = vsub.f32 %v4299_v28, %v4239_v62  ;;  %v4282_v59 = vsub.f32 %v8021_v21, %v4236_v13  ;;  %v4283_v23 = vsub.f32 %v8026_v1, %v4239_v62 }
 0xe6e   :  { %5657 = vrcp.f32 %v4314_v56 }
 0xe6f   :  { %5659 = vrcp.f32 %v4315_v45  ;;  %v4178_v14 = vpop.xlane.xlu0 %4177  ;;  %v4181_v20 = vpop.xlane.xlu1 %4180 }
 0xe70   :  { %v4300_v42 = vadd.f32 1e-06, %v4178_v14  ;;  %v4301_v15 = vadd.f32 1e-06, %v4181_v20 }
 0xe73   :  { %v4242_v51 = vpop.xlane.xlu0 %4241  ;;  %v4245_v63 = vpop.xlane.xlu1 %4244 }
 0xe74   :  { %v4316_v41 = vsub.f32 %v4300_v42, %v4242_v51  ;;  %v4317_v8 = vsub.f32 %v4301_v15, %v4245_v63  ;;  %v4284_v34 = vsub.f32 %v8017_v37, %v4242_v51  ;;  %v4285_v17 = vsub.f32 %v8030_v60, %v4245_v63 }
 0xe76   :  { %5661 = vrcp.f32 %v4316_v41 }
 0xe77   :  { %5663 = vrcp.f32 %v4317_v8  ;;  %v4184_v38 = vpop.xlane.xlu0 %4183  ;;  %v4187_v0 = vpop.xlane.xlu1 %4186 }
 0xe78   :  { %v5658_v47 = vpop.eup %5657  ;;  %v4302_v44 = vadd.f32 1e-06, %v4184_v38  ;;  %v4303_v58 = vadd.f32 1e-06, %v4187_v0 }
 0xe79   :  { %v5660_v25 = vpop.eup %5659  ;;  %v8404_v61 = vmul.f32 %v5658_v47, %v4282_v59 }
 0xe7a   :  { %v8406_v18 = vmul.f32 %v5660_v25, %v4283_v23 }
 0xe7b   :  { %4362 = vst.msk [vmem:[%s8861_s10] sm:$0xff] %vm332_vm1, %v8404_v61  ;;  %v4248_v21 = vpop.xlane.xlu0 %4247  ;;  %4380 = vperm.xlu0 %5578, %v8404_v61   ;;  %v4251_v22 = vpop.xlane.xlu1 %4250 }
 0xe7c   :  { %4363 = vst.msk [vmem:[%s8861_s10 + $0x8] sm:$0xff] %vm332_vm1, %v8406_v18  ;;  %v4318_v1 = vsub.f32 %v4302_v44, %v4248_v21  ;;  %4385 = vperm.xlu1 %5577, %v8406_v18   ;;  %v4319_v33 = vsub.f32 %v4303_v58, %v4251_v22  ;;  %v4678_v19 = vpack.c.bf16 %v8406_v18, %v8404_v61 }
 0xe7d   :  { %v4286_v57 = vsub.f32 %v8047_v49, %v4248_v21  ;;  %v4287_v53 = vsub.f32 %v8051_v32, %v4251_v22 }
 0xe7e   :  { %5665 = vrcp.f32 %v4318_v1  ;;  %5497 = vmatprep.subr.bf16.mxu1 %v4678_v19 }
 0xe7f   :  { %5667 = vrcp.f32 %v4319_v33  ;;  %v4190_v29 = vpop.xlane.xlu0 %4189  ;;  %v4193_v10 = vpop.xlane.xlu1 %4192  ;;  %5498 = vmatpush3.bf16.msra.mxu1 %v4678_v19 }
 0xe80   :  { %v5662_v43 = vpop.eup %5661  ;;  %v4304_v11 = vadd.f32 1e-06, %v4190_v29  ;;  %v4305_v16 = vadd.f32 1e-06, %v4193_v10 }
 0xe81   :  { %v5664_v30 = vpop.eup %5663  ;;  %v8424_v3 = vmul.f32 %v5662_v43, %v4284_v34 }
 0xe82   :  { %v8426_v7 = vmul.f32 %v5664_v30, %v4285_v17 }
 0xe83   :  { %4364 = vst.msk [vmem:[%s8861_s10 + $0x10] sm:$0xff] %vm332_vm1, %v8424_v3  ;;  %v4254_v37 = vpop.xlane.xlu0 %4253  ;;  %4390 = vperm.xlu1 %5577, %v8424_v3   ;;  %v4257_v48 = vpop.xlane.xlu1 %4256 }
 0xe84   :  { %4365 = vst.msk [vmem:[%s8861_s10 + $0x18] sm:$0xff] %vm332_vm1, %v8426_v7  ;;  %v4320_v60 = vsub.f32 %v4304_v11, %v4254_v37  ;;  %4395 = vperm.xlu0 %5578, %v8426_v7   ;;  %v4321_v5 = vsub.f32 %v4305_v16, %v4257_v48  ;;  %v4679_v4 = vpack.c.bf16 %v8426_v7, %v8424_v3 }
 0xe85   :  { %v4288_v45 = vsub.f32 %v8037_v52, %v4254_v37  ;;  %v4289_v15 = vsub.f32 %v8041_v55, %v4257_v48 }
 0xe86   :  { %5669 = vrcp.f32 %v4320_v60  ;;  %5499 = vmatprep.subr.bf16.mxu1 %v4679_v4 }
 0xe87   :  { %5671 = vrcp.f32 %v4321_v5  ;;  %v4196_v2 = vpop.xlane.xlu0 %4195  ;;  %v4199_v12 = vpop.xlane.xlu1 %4198  ;;  %5500 = vmatpush3.bf16.msra.mxu1 %v4679_v4 }
 0xe88   :  { %v5666_v9 = vpop.eup %5665  ;;  %v4306_v28 = vadd.f32 1e-06, %v4196_v2  ;;  %v4307_v50 = vadd.f32 1e-06, %v4199_v12 }
 0xe89   :  { %v5668_v40 = vpop.eup %5667  ;;  %v8444_v24 = vmul.f32 %v5666_v9, %v4286_v57 }
 0xe8a   :  { %v8446_v39 = vmul.f32 %v5668_v40, %v4287_v53 }
 0xe8b   :  { %4366 = vst.msk [vmem:[%s8861_s10 + $0x20] sm:$0xff] %vm332_vm1, %v8444_v24  ;;  %v4260_v49 = vpop.xlane.xlu0 %4259  ;;  %4400 = vperm.xlu1 %5577, %v8444_v24   ;;  %v4263_v13 = vpop.xlane.xlu1 %4262 }
 0xe8c   :  { %4367 = vst.msk [vmem:[%s8861_s10 + $0x28] sm:$0xff] %vm332_vm1, %v8446_v39  ;;  %v4322_v32 = vsub.f32 %v4306_v28, %v4260_v49  ;;  %4405 = vperm.xlu0 %5578, %v8446_v39   ;;  %v4323_v62 = vsub.f32 %v4307_v50, %v4263_v13  ;;  %v4680_v56 = vpack.c.bf16 %v8446_v39, %v8444_v24 }
 0xe8d   :  { %v4290_v23 = vsub.f32 %v8067_v27, %v4260_v49  ;;  %v4291_v21 = vsub.f32 %v8070_v35, %v4263_v13 }
 0xe8e   :  { %5673 = vrcp.f32 %v4322_v32  ;;  %5501 = vmatprep.subr.bf16.mxu1 %v4680_v56 }
 0xe8f   :  { %5675 = vrcp.f32 %v4323_v62  ;;  %v4202_v14 = vpop.xlane.xlu0 %4201  ;;  %v4205_v20 = vpop.xlane.xlu1 %4204  ;;  %5502 = vmatpush3.bf16.msra.mxu1 %v4680_v56 }
 0xe90   :  { %v5670_v42 = vpop.eup %5669  ;;  %v4308_v8 = vadd.f32 1e-06, %v4202_v14  ;;  %v4309_v59 = vadd.f32 1e-06, %v4205_v20  ;;  %v4514_v20 = vmul.f32 %v8406_v18, %v8406_v18 }
 0xe91   :  { %v5672_v51 = vpop.eup %5671  ;;  %v8464_v63 = vmul.f32 %v5670_v42, %v4288_v45  ;;  %v5636_v42 = vld [vmem:[%s8853_s2 + $0x8] sm:$0xff]  }
 0xe92   :  { %v8466_v41 = vmul.f32 %v5672_v51, %v4289_v15  ;;  %v5637_v15 = vld [vmem:[%s8853_s2 + $0x10] sm:$0xff]   ;;  %v4516_v51 = vmul.f32 %v8426_v7, %v8426_v7 }
 0xe93   :  { %4368 = vst.msk [vmem:[%s8861_s10 + $0x30] sm:$0xff] %vm332_vm1, %v8464_v63  ;;  %v4266_v52 = vpop.xlane.xlu0 %4265  ;;  %4410 = vperm.xlu1 %5577, %v8464_v63   ;;  %v4269_v38 = vpop.xlane.xlu1 %4268 }
 0xe94   :  { %4369 = vst.msk [vmem:[%s8861_s10 + $0x38] sm:$0xff] %vm332_vm1, %v8466_v41  ;;  %v4324_v55 = vsub.f32 %v4308_v8, %v4266_v52  ;;  %4415 = vperm.xlu0 %5578, %v8466_v41   ;;  %v4325_v0 = vsub.f32 %v4309_v59, %v4269_v38  ;;  %v4681_v47 = vpack.c.bf16 %v8466_v41, %v8464_v63 }
 0xe95   :  { %v4292_v17 = vsub.f32 %v8057_v26, %v4266_v52  ;;  %v4293_v37 = vsub.f32 %v8061_v36, %v4269_v38  ;;  %v4515_v8 = vmul.f32 %v8424_v3, %v8424_v3  ;;  %v4518_v59 = vmul.f32 %v8446_v39, %v8446_v39  ;;  %v5638_v38 = vld [vmem:[%s8853_s2 + $0x18] sm:$0xff]  }
 0xe96   :  { %5677 = vrcp.f32 %v4324_v55  ;;  %5503 = vmatprep.subr.bf16.mxu1 %v4681_v47  ;;  %v4517_v52 = vmul.f32 %v8444_v24, %v8444_v24  ;;  %v5639_v55 = vld [vmem:[%s8853_s2 + $0x20] sm:$0xff]  }
 0xe97   :  { %5679 = vrcp.f32 %v4325_v0  ;;  %v4208_v25 = vpop.xlane.xlu0 %4207  ;;  %v4211_v44 = vpop.xlane.xlu1 %4210  ;;  %5504 = vmatpush3.bf16.msra.mxu1 %v4681_v47  ;;  %v4520_v0 = vmul.f32 %v8466_v41, %v8466_v41  ;;  %v4519_v47 = vmul.f32 %v8464_v63, %v8464_v63 }
 0xe98   :  { %v5674_v58 = vpop.eup %5673  ;;  %v4310_v19 = vadd.f32 1e-06, %v4208_v25  ;;  %v4311_v34 = vadd.f32 1e-06, %v4211_v44  ;;  %v5640_v44 = vld [vmem:[%s8853_s2 + $0x28] sm:$0xff]  }
 0xe99   :  { %v5676_v22 = vpop.eup %5675  ;;  %v8484_v1 = vmul.f32 %v5674_v58, %v4290_v23  ;;  %v5641_v58 = vld [vmem:[%s8853_s2 + $0x30] sm:$0xff]  }
 0xe9a   :  { %v8486_v33 = vmul.f32 %v5676_v22, %v4291_v21 }
 0xe9b   :  { %4370 = vst.msk [vmem:[%s8861_s10 + $0x40] sm:$0xff] %vm332_vm1, %v8484_v1  ;;  %v4272_v27 = vpop.xlane.xlu0 %4271  ;;  %4420 = vperm.xlu1 %5577, %v8484_v1   ;;  %v4275_v29 = vpop.xlane.xlu1 %4274  ;;  %v4521_v25 = vmul.f32 %v8484_v1, %v8484_v1 }
 0xe9c   :  { %4371 = vst.msk [vmem:[%s8861_s10 + $0x48] sm:$0xff] %vm332_vm1, %v8486_v33  ;;  %v4326_v35 = vsub.f32 %v4310_v19, %v4272_v27  ;;  %4425 = vperm.xlu0 %5578, %v8486_v33   ;;  %v4327_v10 = vsub.f32 %v4311_v34, %v4275_v29  ;;  %v4682_v43 = vpack.c.bf16 %v8486_v33, %v8484_v1  ;;  %v5642_v34 = vld [vmem:[%s8853_s2 + $0x38] sm:$0xff]  }
 0xe9d   :  { %v4294_v53 = vsub.f32 %v8077_v46, %v4272_v27  ;;  %v4295_v28 = vsub.f32 %v8081_v6, %v4275_v29  ;;  %v4522_v23 = vmul.f32 %v8486_v33, %v8486_v33 }
 0xe9e   :  { %5681 = vrcp.f32 %v4326_v35  ;;  %5505 = vmatprep.subr.bf16.mxu1 %v4682_v43 }
 0xe9f   :  { %5683 = vrcp.f32 %v4327_v10  ;;  %v4214_v30 = vpop.xlane.xlu0 %4213  ;;  %v4217_v11 = vpop.xlane.xlu1 %4216  ;;  %5506 = vmatpush3.bf16.msra.mxu1 %v4682_v43 }
 0xea0   :  { %v5678_v16 = vpop.eup %5677  ;;  %v4312_v4 = vadd.f32 1e-06, %v4214_v30  ;;  %v4313_v57 = vadd.f32 1e-06, %v4217_v11 }
 0xea1   :  { %v5680_v48 = vpop.eup %5679  ;;  %v8504_v60 = vmul.f32 %v5678_v16, %v4292_v17 }
 0xea2   :  { %v8506_v5 = vmul.f32 %v5680_v48, %v4293_v37 }
 0xea3   :  { %4372 = vst.msk [vmem:[%s8861_s10 + $0x50] sm:$0xff] %vm332_vm1, %v8504_v60  ;;  %v4278_v26 = vpop.xlane.xlu0 %4277  ;;  %4430 = vperm.xlu1 %5577, %v8504_v60   ;;  %v4281_v2 = vpop.xlane.xlu1 %4280  ;;  %v4523_v22 = vmul.f32 %v8504_v60, %v8504_v60 }
 0xea4   :  { %4373 = vst.msk [vmem:[%s8861_s10 + $0x58] sm:$0xff] %vm332_vm1, %v8506_v5  ;;  %v4328_v36 = vsub.f32 %v4312_v4, %v4278_v26  ;;  %4435 = vperm.xlu0 %5578, %v8506_v5   ;;  %v4329_v12 = vsub.f32 %v4313_v57, %v4281_v2  ;;  %v4683_v9 = vpack.c.bf16 %v8506_v5, %v8504_v60 }
 0xea5   :  { %v4296_v6 = vsub.f32 %v8085_v31, %v4278_v26  ;;  %v4297_v62 = vsub.f32 %v8089_v54, %v4281_v2  ;;  %v4513_v54 = vmul.f32 %v8404_v61, %v8404_v61  ;;  %v4524_v21 = vmul.f32 %v8506_v5, %v8506_v5 }
 0xea6   :  { %5685 = vrcp.f32 %v4328_v36  ;;  %5507 = vmatprep.subr.bf16.mxu1 %v4683_v9 }
 0xea7   :  { %5687 = vrcp.f32 %v4329_v12  ;;  %5508 = vmatpush3.bf16.msra.mxu1 %v4683_v9 }
 0xea8   :  { %v5682_v40 = vpop.eup %5681 }
 0xea9   :  { %v5684_v50 = vpop.eup %5683  ;;  %v8524_v49 = vmul.f32 %v5682_v40, %v4294_v53 }
 0xeaa   :  { %v8526_v13 = vmul.f32 %v5684_v50, %v4295_v28 }
 0xeab   :  { %4374 = vst.msk [vmem:[%s8861_s10 + $0x60] sm:$0xff] %vm332_vm1, %v8524_v49  ;;  %4440 = vperm.xlu1 %5577, %v8524_v49   ;;  %v4525_v19 = vmul.f32 %v8524_v49, %v8524_v49 }
 0xeac   :  { %4375 = vst.msk [vmem:[%s8861_s10 + $0x68] sm:$0xff] %vm332_vm1, %v8526_v13  ;;  %4445 = vperm.xlu0 %5578, %v8526_v13   ;;  %v4684_v46 = vpack.c.bf16 %v8526_v13, %v8524_v49  ;;  %v4526_v53 = vmul.f32 %v8526_v13, %v8526_v13 }
 0xeae   :  { %5509 = vmatprep.subr.bf16.mxu1 %v4684_v46 }
 0xeaf   :  { %5510 = vmatpush3.bf16.msra.mxu1 %v4684_v46 }
 0xeb0   :  { %v5686_v32 = vpop.eup %5685 }
 0xeb1   :  { %v5688_v56 = vpop.eup %5687  ;;  %v8544_v45 = vmul.f32 %v5686_v32, %v4296_v6 }
 0xeb2   :  { %v8546_v14 = vmul.f32 %v5688_v56, %v4297_v62 }
 0xeb3   :  { %4376 = vst.msk [vmem:[%s8861_s10 + $0x70] sm:$0xff] %vm332_vm1, %v8544_v45  ;;  %4450 = vperm.xlu1 %5577, %v8544_v45  }
 0xeb4   :  { %4377 = vst.msk [vmem:[%s8861_s10 + $0x78] sm:$0xff] %vm332_vm1, %v8546_v14  ;;  %4455 = vperm.xlu0 %5578, %v8546_v14   ;;  %v4685_v31 = vpack.c.bf16 %v8546_v14, %v8544_v45  ;;  %v4528_v46 = vmul.f32 %v8546_v14, %v8546_v14  ;;  %vm5001_vm1 = vcmask 195584  }
 0xeb6   :  { %5511 = vmatprep.subr.bf16.mxu1 %v4685_v31 }
 0xeb7   :  { %5512 = vmatpush3.bf16.msra.mxu1 %v4685_v31  ;;  %4531 = vperm.xlu1 %5577, %v4513_v54  }
 0xeb8   :  { %4536 = vperm.xlu0 %5578, %v4514_v20  }
 0xeba   :  { %5514 = vmatmul.mubr.bf16.vlgmr.msra.gmra.mrb[80].mxu1 %v5636_v42 }
 0xebb   :  { %4546 = vperm.xlu1 %5577, %v4516_v51   ;;  %5517 = vmatprep.mubr.bf16.mxu1 %v5637_v15 }
 0xebc   :  { %4541 = vperm.xlu0 %5578, %v4515_v8  }
 0xebf   :  { %4556 = vperm.xlu1 %5577, %v4518_v59  }
 0xec0   :  { %4551 = vperm.xlu0 %5578, %v4517_v52  }
 0xec2   :  { %5518 = vmatmul.mubr.bf16.gmra.mrb[84].mxu1 %v5638_v38 }
 0xec3   :  { %4566 = vperm.xlu1 %5577, %v4520_v0   ;;  %5521 = vmatprep.mubr.bf16.mxu1 %v5639_v55  ;;  %v8648_v0 = vld [vmem:[%s8854_s3] sm:$0xff] }
 0xec4   :  { %4561 = vperm.xlu0 %5578, %v4519_v47  }
 0xec7   :  { %4576 = vperm.xlu1 %5577, %v4522_v23   ;;  %v8654_v23 = vld [vmem:[%s8854_s3 + $0x8] sm:$0xff] }
 0xec8   :  { %4571 = vperm.xlu0 %5578, %v4521_v25  }
 0xeca   :  { %5522 = vmatmul.mubr.bf16.gmra.mrb[88].mxu1 %v5640_v44 }
 0xecb   :  { %4586 = vperm.xlu1 %5577, %v4524_v21   ;;  %5525 = vmatprep.mubr.bf16.mxu1 %v5641_v58  ;;  %v8660_v58 = vld [vmem:[%s8854_s3 + $0x10] sm:$0xff] }
 0xecc   :  { %4581 = vperm.xlu0 %5578, %v4523_v22  }
 0xed0   :  { %4591 = vperm.xlu0 %5578, %v4525_v19  }
 0xed2   :  { %5526 = vmatmul.mubr.bf16.gmra.mrb[92].mxu1 %v5642_v34 }
 0xefa   :  { %v4381_v6 = vpop.permute.xlu0 %4380 }
 0xefb   :  { %v4386_v32 = vpop.permute.xlu1 %4385  ;;  %v4458_v47 = vmul.f32 %v8648_v0, %v4381_v6 }
 0xefc   :  { %v4459_v25 = vmul.f32 %v8654_v23, %v4386_v32 }
 0xefd   :  { %v4474_v19 = vsel %vm83_vm0, %v4458_v47, 0.0 }
 0xefe   :  { %v4475_v34 = vsel %vm83_vm0, %v4459_v25, 0.0 }
 0xf03   :  { %v4396_v62 = vpop.permute.xlu0 %4395 }
 0xf0b   :  { %v4406_v56 = vpop.permute.xlu0 %4405 }
 0xf8d   :  { %v5515_v27 = vpop.f32.mrb[80].mxu1 }
 0xf8e   :  { %v4833_v29 = vmul.f32 %v5515_v27, %v8424_v3  ;;  %v4768_v35 = vpop.f32.mrb[81].mxu1 }
 0xf8f   :  { %v5516_v10 = vpop.f32.mrb[82].mxu1  ;;  %v4831_v30 = vmul.f32 %v4768_v35, %v8404_v61 }
 0xf90   :  { %v4834_v43 = vmul.f32 %v5516_v10, %v8426_v7  ;;  %4859 = vperm.xlu1 %5577, %v4833_v29   ;;  %v4771_v17 = vpop.f32.mrb[83].mxu1  ;;  %v4476_v29 = vadd.f32 %v4475_v34, %v4474_v19  ;;  %v8669_v10 = vld [vmem:[%s8854_s3 + $0x18] sm:$0xff] }
 0xf91   :  { %v4832_v11 = vmul.f32 %v4771_v17, %v8406_v18  ;;  %v8675_v17 = vld [vmem:[%s8854_s3 + $0x20] sm:$0xff] }
 0xf92   :  { %4864 = vperm.xlu0 %5578, %v4834_v43   ;;  %v4461_v43 = vmul.f32 %v8669_v10, %v4396_v62 }
 0xf94   :  { %4849 = vperm.xlu1 %5577, %v4831_v30  }
 0xf95   :  { %v5519_v16 = vpop.f32.mrb[84].mxu1 }
 0xf96   :  { %v4837_v37 = vmul.f32 %v5519_v16, %v8464_v63  ;;  %4854 = vperm.xlu0 %5578, %v4832_v11   ;;  %v4784_v48 = vpop.f32.mrb[85].mxu1 }
 0xf97   :  { %v5520_v4 = vpop.f32.mrb[86].mxu1  ;;  %v4835_v7 = vmul.f32 %v4784_v48, %v8444_v24 }
 0xf98   :  { %v4838_v3 = vmul.f32 %v5520_v4, %v8466_v41  ;;  %4879 = vperm.xlu1 %5577, %v4837_v37   ;;  %v4787_v57 = vpop.f32.mrb[87].mxu1  ;;  %v4479_v37 = vsel %vm83_vm0, %v4461_v43, 0.0 }
 0xf99   :  { %v4836_v26 = vmul.f32 %v4787_v57, %v8446_v39  ;;  %v8685_v57 = vld [vmem:[%s8854_s3 + $0x28] sm:$0xff] }
 0xf9a   :  { %4884 = vperm.xlu0 %5578, %v4838_v3  }
 0xf9c   :  { %4869 = vperm.xlu1 %5577, %v4835_v7   ;;  %v4463_v7 = vmul.f32 %v8685_v57, %v4406_v56 }
 0xf9d   :  { %v5523_v61 = vpop.f32.mrb[88].mxu1 }
 0xf9e   :  { %v4841_v18 = vmul.f32 %v5523_v61, %v8504_v60  ;;  %4874 = vperm.xlu0 %5578, %v4836_v26   ;;  %v4800_v2 = vpop.f32.mrb[89].mxu1  ;;  %v8691_v26 = vld [vmem:[%s8854_s3 + $0x30] sm:$0xff] }
 0xf9f   :  { %v5524_v36 = vpop.f32.mrb[90].mxu1  ;;  %v4839_v41 = vmul.f32 %v4800_v2, %v8484_v1 }
 0xfa0   :  { %v4842_v63 = vmul.f32 %v5524_v36, %v8506_v5  ;;  %4899 = vperm.xlu1 %5577, %v4841_v18   ;;  %v4803_v12 = vpop.f32.mrb[91].mxu1 }
 0xfa1   :  { %v4840_v9 = vmul.f32 %v4803_v12, %v8486_v33  ;;  %v4527_v33 = vmul.f32 %v8544_v45, %v8544_v45 }
 0xfa2   :  { %4904 = vperm.xlu0 %5578, %v4842_v63  }
 0xfa4   :  { %4889 = vperm.xlu1 %5577, %v4839_v41   ;;  %v4483_v41 = vsel %vm83_vm0, %v4463_v7, 0.0 }
 0xfa5   :  { %v5527_v24 = vpop.f32.mrb[92].mxu1 }
 0xfa6   :  { %4894 = vperm.xlu0 %5578, %v4840_v9   ;;  %v4816_v39 = vpop.f32.mrb[93].mxu1  ;;  %v4845_v40 = vmul.f32 %v5527_v24, %v8544_v45 }
 0xfa7   :  { %v5528_v60 = vpop.f32.mrb[94].mxu1  ;;  %v4843_v5 = vmul.f32 %v4816_v39, %v8524_v49  ;;  %v4391_v49 = vpop.permute.xlu1 %4390 }
 0xfa8   :  { %4596 = vperm.xlu1 %5577, %v4526_v53   ;;  %v4819_v28 = vpop.f32.mrb[95].mxu1  ;;  %v4846_v50 = vmul.f32 %v5528_v60, %v8546_v14  ;;  %v4460_v21 = vmul.f32 %v8660_v58, %v4391_v49 }
 0xfa9   :  { %v4844_v1 = vmul.f32 %v4819_v28, %v8526_v13  ;;  %v4416_v13 = vpop.permute.xlu0 %4415 }
 0xfaa   :  { %4919 = vperm.xlu0 %5578, %v4845_v40   ;;  %v4477_v27 = vsel %vm83_vm0, %v4460_v21, 0.0  ;;  %v8708_v40 = vld [vmem:[%s8854_s3 + $0x38] sm:$0xff] }
 0xfab   :  { %v4401_v31 = vpop.permute.xlu1 %4400  ;;  %v4478_v11 = vadd.f32 %v4477_v27, %v4476_v29  ;;  %v4465_v28 = vmul.f32 %v8708_v40, %v4416_v13  ;;  %v8750_v29 = vld [vmem:[%s8854_s3 + $0x58] sm:$0xff] }
 0xfac   :  { %4909 = vperm.xlu1 %5577, %v4843_v5   ;;  %v4462_v30 = vmul.f32 %v8675_v17, %v4401_v31  ;;  %v8714_v5 = vld [vmem:[%s8854_s3 + $0x40] sm:$0xff] }
 0xfad   :  { %v8631_v20 = vpop.permute.xlu0 %4425  ;;  %v4480_v4 = vadd.f32 %v4479_v37, %v4478_v11  ;;  %v4487_v49 = vsel %vm83_vm0, %v4465_v28, 0.0  ;;  %v8757_v37 = vld [vmem:[%s8854_s3 + $0x60] sm:$0xff] }
 0xfae   :  { %4914 = vperm.xlu0 %5578, %v4844_v1   ;;  %v4481_v48 = vsel %vm83_vm0, %v4462_v30, 0.0 }
 0xfaf   :  { %v4411_v54 = vpop.permute.xlu1 %4410  ;;  %v4482_v36 = vadd.f32 %v4481_v48, %v4480_v4 }
 0xfb0   :  { %4601 = vperm.xlu1 %5577, %v4527_v33   ;;  %v4464_v61 = vmul.f32 %v8691_v26, %v4411_v54 }
 0xfb1   :  { %v8633_v45 = vpop.permute.xlu0 %4435  ;;  %v4484_v53 = vadd.f32 %v4483_v41, %v4482_v36 }
 0xfb2   :  { %4924 = vperm.xlu0 %5578, %v4846_v50   ;;  %v4485_v9 = vsel %vm83_vm0, %v4464_v61, 0.0 }
 0xfb3   :  { %v4421_v42 = vpop.permute.xlu1 %4420  ;;  %v4486_v50 = vadd.f32 %v4485_v9, %v4484_v53 }
 0xfb4   :  { %4606 = vperm.xlu1 %5577, %v4528_v46   ;;  %v4466_v1 = vmul.f32 %v8714_v5, %v4421_v42  ;;  %v8729_v42 = vld [vmem:[%s8854_s3 + $0x48] sm:$0xff] }
 0xfb5   :  { %v8637_v51 = vpop.permute.xlu0 %4445  ;;  %v4488_v13 = vadd.f32 %v4487_v49, %v4486_v50 }
 0xfb6   :  { %v4489_v56 = vsel %vm83_vm0, %v4466_v1, 0.0 }
 0xfb7   :  { %v8635_v15 = vpop.permute.xlu1 %4430  ;;  %v4490_v25 = vadd.f32 %v4489_v56, %v4488_v13 }
 0xfb9   :  { %v8641_v14 = vpop.permute.xlu0 %4455 }
 0xfbb   :  { %v8639_v8 = vpop.permute.xlu1 %4440 }
 0xfbc   :  { %v4470_v48 = vmul.f32 %v8757_v37, %v8639_v8 }
 0xfbd   :  { %v4537_v52 = vpop.permute.xlu0 %4536 }
 0xfbe   :  { %v4610_v18 = vmul.f32 %v8654_v23, %v4537_v52  ;;  %v4467_v52 = vmul.f32 %v8729_v42, %v8631_v20 }
 0xfbf   :  { %v8643_v59 = vpop.permute.xlu1 %4450 }
 0xfc0   :  { %v4626_v24 = vsel %vm83_vm0, %v4610_v18, 0.0  ;;  %v4491_v34 = vsel %vm83_vm0, %v4467_v52, 0.0 }
 0xfc1   :  { %v4542_v55 = vpop.permute.xlu0 %4541  ;;  %v4492_v43 = vadd.f32 %v4491_v34, %v4490_v25 }
 0xfc2   :  { %v4611_v12 = vmul.f32 %v8660_v58, %v4542_v55 }
 0xfc3   :  { %v4532_v38 = vpop.permute.xlu1 %4531 }
 0xfc4   :  { %v4609_v2 = vmul.f32 %v8648_v0, %v4532_v38  ;;  %v4628_v33 = vsel %vm83_vm0, %v4611_v12, 0.0  ;;  %v8736_v38 = vld [vmem:[%s8854_s3 + $0x50] sm:$0xff]  ;;  %v4497_v12 = vsel %vm83_vm0, %v4470_v48, 0.0 }
 0xfc5   :  { %v4552_v22 = vpop.permute.xlu0 %4551  ;;  %v4468_v55 = vmul.f32 %v8736_v38, %v8635_v15  ;;  %v4469_v15 = vmul.f32 %v8750_v29, %v8633_v45 }
 0xfc6   :  { %v4625_v39 = vsel %vm83_vm0, %v4609_v2, 0.0  ;;  %v4613_v31 = vmul.f32 %v8675_v17, %v4552_v22 }
 0xfc7   :  { %v4547_v44 = vpop.permute.xlu1 %4546  ;;  %v4627_v46 = vadd.f32 %v4626_v24, %v4625_v39  ;;  %v4493_v20 = vsel %vm83_vm0, %v4468_v55, 0.0  ;;  %v4495_v45 = vsel %vm83_vm0, %v4469_v15, 0.0  ;;  %v8779_v39 = vld [vmem:[%s8854_s3 + $0x70] sm:$0xff]  ;;  %v8799_v55 = vld [vmem:[%s8854_s3 + $0x78] sm:$0xff] }
 0xfc8   :  { %v4612_v32 = vmul.f32 %v8669_v10, %v4547_v44  ;;  %v4632_v22 = vsel %vm83_vm0, %v4613_v31, 0.0  ;;  %v4494_v4 = vadd.f32 %v4493_v20, %v4492_v43  ;;  %v4472_v53 = vmul.f32 %v8779_v39, %v8643_v59 }
 0xfc9   :  { %v4562_v16 = vpop.permute.xlu0 %4561  ;;  %v4629_v62 = vadd.f32 %v4628_v33, %v4627_v46 }
 0xfca   :  { %v4630_v47 = vsel %vm83_vm0, %v4612_v32, 0.0  ;;  %v4496_v24 = vadd.f32 %v4495_v45, %v4494_v4 }
 0xfcb   :  { %v4557_v35 = vpop.permute.xlu1 %4556  ;;  %v4631_v44 = vadd.f32 %v4630_v47, %v4629_v62 }
 0xfcc   :  { %v4614_v27 = vmul.f32 %v8685_v57, %v4557_v35  ;;  %v4615_v35 = vmul.f32 %v8691_v26, %v4562_v16  ;;  %v8772_v16 = vld [vmem:[%s8854_s3 + $0x68] sm:$0xff]  ;;  %s5758_s3 = smov 8  }
 0xfcd   :  { %v8696_v63 = vpop.permute.xlu0 %4571  ;;  %v4633_v30 = vadd.f32 %v4632_v22, %v4631_v44 }
 0xfce   :  { %v4634_v61 = vsel %vm83_vm0, %v4614_v27, 0.0  ;;  %v4636_v41 = vsel %vm83_vm0, %v4615_v35, 0.0  ;;  %v4617_v62 = vmul.f32 %v8714_v5, %v8696_v63  ;;  %v4473_v63 = vmul.f32 %v8799_v55, %v8641_v14 }
 0xfcf   :  { %v8680_v3 = vpop.permute.xlu1 %4566  ;;  %v4635_v2 = vadd.f32 %v4634_v61, %v4633_v30 }
 0xfd1   :  { %v8718_v6 = vpop.permute.xlu0 %4581  ;;  %v4637_v50 = vadd.f32 %v4636_v41, %v4635_v2 }
 0xfd3   :  { %v8703_v60 = vpop.permute.xlu1 %4576 }
 0xfd4   :  { %v4618_v30 = vmul.f32 %v8729_v42, %v8703_v60 }
 0xfd5   :  { %v8741_v21 = vpop.permute.xlu0 %4591 }
 0xfd6   :  { %v4642_v2 = vsel %vm83_vm0, %v4618_v30, 0.0 }
 0xfd7   :  { %v8724_v54 = vpop.permute.xlu1 %4586 }
0x100f   :  { %v4860_v19 = vpop.permute.xlu1 %4859 }
0x1010   :  { %v4929_v9 = vmul.f32 %v8660_v58, %v4860_v19  ;;  %v4640_v19 = vsel %vm83_vm0, %v4617_v62, 0.0 }
0x1011   :  { %v4865_v11 = vpop.permute.xlu0 %4864 }
0x1012   :  { %v4930_v28 = vmul.f32 %v8669_v10, %v4865_v11  ;;  %v4946_v49 = vsel %vm83_vm0, %v4929_v9, 0.0 }
0x1013   :  { %v4850_v7 = vpop.permute.xlu1 %4849 }
0x1014   :  { %v4927_v18 = vmul.f32 %v8648_v0, %v4850_v7  ;;  %v4471_v0 = vmul.f32 %v8772_v16, %v8637_v51  ;;  %v4498_v51 = vadd.f32 %v4497_v12, %v4496_v24  ;;  %v4948_v13 = vsel %vm83_vm0, %v4930_v28, 0.0 }
0x1015   :  { %v4855_v36 = vpop.permute.xlu0 %4854  ;;  %v4503_v7 = vsel %vm83_vm0, %v4473_v63, 0.0 }
0x1016   :  { %v4928_v8 = vmul.f32 %v8654_v23, %v4855_v36  ;;  %v4616_v23 = vmul.f32 %v8708_v40, %v8680_v3  ;;  %v4943_v1 = vsel %vm83_vm0, %v4927_v18, 0.0  ;;  %v4499_v59 = vsel %vm83_vm0, %v4471_v0, 0.0 }
0x1017   :  { %v4880_v58 = vpop.permute.xlu1 %4879  ;;  %v4501_v3 = vsel %vm83_vm0, %v4472_v53, 0.0  ;;  %v4500_v47 = vadd.f32 %v4499_v59, %v4498_v51 }
0x1018   :  { %v4944_v33 = vsel %vm83_vm0, %v4928_v8, 0.0  ;;  %v4638_v10 = vsel %vm83_vm0, %v4616_v23, 0.0  ;;  %v4933_v34 = vmul.f32 %v8691_v26, %v4880_v58  ;;  %v4619_v26 = vmul.f32 %v8736_v38, %v8718_v6 }
0x1019   :  { %v4945_v46 = vadd.f32 %v4944_v33, %v4943_v1  ;;  %v4885_v32 = vpop.permute.xlu0 %4884  ;;  %v4639_v25 = vadd.f32 %v4638_v10, %v4637_v50  ;;  %v4502_v27 = vadd.f32 %v4501_v3, %v4500_v47  ;;  %v4620_v23 = vmul.f32 %v8750_v29, %v8724_v54 }
0x101a   :  { %v4934_v14 = vmul.f32 %v8708_v40, %v4885_v32  ;;  %v4644_v9 = vsel %vm83_vm0, %v4619_v26, 0.0 }
0x101b   :  { %v4947_v56 = vadd.f32 %v4946_v49, %v4945_v46  ;;  %v4870_v31 = vpop.permute.xlu1 %4869  ;;  %v4641_v48 = vadd.f32 %v4640_v19, %v4639_v25  ;;  %v4504_v61 = vadd.f32 %v4503_v7, %v4502_v27  ;;  %v4646_v62 = vsel %vm83_vm0, %v4620_v23, 0.0 }
0x101c   :  { %v4931_v52 = vmul.f32 %v8675_v17, %v4870_v31  ;;  %v4956_v60 = vsel %vm83_vm0, %v4934_v14, 0.0 }
0x101d   :  { %v4949_v44 = vadd.f32 %v4948_v13, %v4947_v56  ;;  %v4875_v22 = vpop.permute.xlu0 %4874  ;;  %v4643_v36 = vadd.f32 %v4642_v2, %v4641_v48  ;;  %v4505_v24 = vrot.slane %v4504_v61, 4 }
0x101e   :  { %v4950_v20 = vsel %vm83_vm0, %v4931_v52, 0.0  ;;  %v4932_v17 = vmul.f32 %v8685_v57, %v4875_v22  ;;  %v4954_v57 = vsel %vm83_vm0, %v4933_v34, 0.0 }
0x101f   :  { %v4951_v15 = vadd.f32 %v4950_v20, %v4949_v44  ;;  %v4900_v43 = vpop.permute.xlu1 %4899  ;;  %v4645_v1 = vadd.f32 %v4644_v9, %v4643_v36  ;;  %v4506_v46 = vadd.f32 %v4505_v24, %v4504_v61 }
0x1020   :  { %v4952_v11 = vsel %vm83_vm0, %v4932_v17, 0.0  ;;  %v4937_v8 = vmul.f32 %v8736_v38, %v4900_v43  ;;  %v4621_v38 = vmul.f32 %v8757_v37, %v8741_v21 }
0x1021   :  { %v4953_v35 = vadd.f32 %v4952_v11, %v4951_v15  ;;  %v4905_v4 = vpop.permute.xlu0 %4904  ;;  %v4647_v59 = vadd.f32 %v4646_v62, %v4645_v1  ;;  %v4507_v52 = vrot.slane %v4506_v46, 2 }
0x1022   :  { %v4938_v28 = vmul.f32 %v8750_v29, %v4905_v4  ;;  %v4962_v50 = vsel %vm83_vm0, %v4937_v8, 0.0  ;;  %v4648_v3 = vsel %vm83_vm0, %v4621_v38, 0.0 }
0x1023   :  { %v4955_v18 = vadd.f32 %v4954_v57, %v4953_v35  ;;  %v4890_v45 = vpop.permute.xlu1 %4889  ;;  %v4649_v22 = vadd.f32 %v4648_v3, %v4647_v59  ;;  %v4508_v15 = vadd.f32 %v4507_v52, %v4506_v46 }
0x1024   :  { %v4935_v40 = vmul.f32 %v8714_v5, %v4890_v45  ;;  %v4964_v49 = vsel %vm83_vm0, %v4938_v28, 0.0 }
0x1025   :  { %v4957_v12 = vadd.f32 %v4956_v60, %v4955_v18  ;;  %v4895_v41 = vpop.permute.xlu0 %4894  ;;  %v4509_v4 = vrot.slane %v4508_v15, 1 }
0x1026   :  { %v4958_v6 = vsel %vm83_vm0, %v4935_v40, 0.0  ;;  %v4936_v0 = vmul.f32 %v8729_v42, %v4895_v41 }
0x1027   :  { %v4959_v53 = vadd.f32 %v4958_v6, %v4957_v12  ;;  %v4597_v58 = vpop.permute.xlu1 %4596  ;;  %v4510_v2 = vadd.f32 %v4509_v4, %v4508_v15 }
0x1028   :  { %v4960_v5 = vsel %vm83_vm0, %v4936_v0, 0.0  ;;  %v4622_v54 = vmul.f32 %v8772_v16, %v4597_v58 }
0x1029   :  { %v4961_v33 = vadd.f32 %v4960_v5, %v4959_v53  ;;  %v4920_v51 = vpop.permute.xlu0 %4919  ;;  %v4511_v41 = vmul.f32 0.5, %v4510_v2 }
0x102a   :  { %v4941_v21 = vmul.f32 %v8779_v39, %v4920_v51  ;;  %v4650_v25 = vsel %vm83_vm0, %v4622_v54, 0.0 }
0x102b   :  { %v4963_v42 = vadd.f32 %v4962_v50, %v4961_v33  ;;  %v4910_v32 = vpop.permute.xlu1 %4909 }
0x102c   :  { %v4939_v29 = vmul.f32 %v8757_v37, %v4910_v32  ;;  %v4970_v20 = vsel %vm83_vm0, %v4941_v21, 0.0 }
0x102d   :  { %v4965_v56 = vadd.f32 %v4964_v49, %v4963_v42  ;;  %v4915_v31 = vpop.permute.xlu0 %4914 }
0x102e   :  { %v4966_v10 = vsel %vm83_vm0, %v4939_v29, 0.0  ;;  %v4940_v13 = vmul.f32 %v8772_v16, %v4915_v31  ;;  %v4651_v16 = vadd.f32 %v4650_v25, %v4649_v22 }
0x102f   :  { %v4967_v63 = vadd.f32 %v4966_v10, %v4965_v56  ;;  %v4602_v47 = vpop.permute.xlu1 %4601 }
0x1030   :  { %v4968_v44 = vsel %vm83_vm0, %v4940_v13, 0.0  ;;  %v4623_v37 = vmul.f32 %v8779_v39, %v4602_v47 }
0x1031   :  { %v4969_v19 = vadd.f32 %v4968_v44, %v4967_v63  ;;  %v4925_v34 = vpop.permute.xlu0 %4924 }
0x1032   :  { %v4652_v17 = vsel %vm83_vm0, %v4623_v37, 0.0  ;;  %v4942_v27 = vmul.f32 %v8799_v55, %v4925_v34 }
0x1033   :  { %v4971_v43 = vadd.f32 %v4970_v20, %v4969_v19  ;;  %v4607_v30 = vpop.permute.xlu1 %4606  ;;  %v4653_v48 = vadd.f32 %v4652_v17, %v4651_v16 }
0x1034   :  { %v4972_v14 = vsel %vm83_vm0, %v4942_v27, 0.0  ;;  %v4624_v11 = vmul.f32 %v8799_v55, %v4607_v30  ;;  %v4512_v55 = vmul.f32 %v4511_v41, %v4510_v2 }
0x1035   :  { %v4973_v35 = vadd.f32 %v4972_v14, %v4971_v43 }
0x1036   :  { %v4654_v39 = vsel %vm83_vm0, %v4624_v11, 0.0 }
0x1037   :  { %v4974_v7 = vrot.slane %v4973_v35, 4  ;;  %v4655_v26 = vadd.f32 %v4654_v39, %v4653_v48 }
0x1039   :  { %v4975_v57 = vadd.f32 %v4974_v7, %v4973_v35  ;;  %v4656_v61 = vrot.slane %v4655_v26, 4 }
0x103b   :  { %v4976_v18 = vrot.slane %v4975_v57, 2  ;;  %v4657_v45 = vadd.f32 %v4656_v61, %v4655_v26 }
0x103d   :  { %v4977_v60 = vadd.f32 %v4976_v18, %v4975_v57  ;;  %v4658_v40 = vrot.slane %v4657_v45, 2 }
0x103f   :  { %v4978_v36 = vrot.slane %v4977_v60, 1  ;;  %v4659_v12 = vadd.f32 %v4658_v40, %v4657_v45 }
0x1041   :  { %v4979_v9 = vadd.f32 %v4978_v36, %v4977_v60  ;;  %v4660_v8 = vrot.slane %v4659_v12, 1 }
0x1043   :  { %v4661_v6 = vadd.f32 %v4660_v8, %v4659_v12  ;;  %v4980_v0 = vmul.f32 0.5, %v4979_v9 }
0x1045   :  { %v4981_v24 = vsub.f32 %v4512_v55, %v4661_v6  ;;  %v4985_v28 = vmul.f32 0.5, %v4980_v0 }
0x1047   :  { %4988 = vrot.lane.b32.xlu1 %v4981_v24, %s5758_s3  ;;  %v4982_v53 = vsub.f32 %v4981_v24, %v4980_v0 }
0x1049   :  { %4992 = vrot.lane.b32.xlu0 %v4982_v53, %s5759_s8  ;;  %v4983_v58 = vmul.f32 0.25, %v4982_v53 }
0x104b   :  { %v4984_v23 = vmul.f32 0.5, %v4983_v58 }
0x104d   :  { %v4986_v5 = vsub.f32 %v4984_v23, %v4985_v28 }
0x104f   :  { %4996 = vrot.lane.b32.xlu1 %v4986_v5, %s5760_s29 }
0x10b9   :  { %v4989_v1 = vpop.permute.xlu1 %4988 }
0x10ba   :  { %v4999_v33 = vsel %vm83_vm0, %v4980_v0, %v4989_v1 }
0x10bb   :  { %v4993_v51 = vpop.permute.xlu0 %4992 }
0x10bc   :  { %v5000_v38 = vsel %vm3819_vm12, %v4999_v33, %v4993_v51 }
0x10c1   :  { %v4997_v50 = vpop.permute.xlu1 %4996 }
0x10c2   :  { %v5002_v46 = vsel %vm5001_vm1, %v5000_v38, %v4997_v50 }
0x10c3   :  { %5004 = vst.msk [vmem:[%s8862_s11] sm:$0x1] %vm5003_vm4, %v5002_v46 }
0x10c4   :  { %5013 = vsyncpa [#allocation3], 1 }

</bundles_post_ra>
